<compile_context>
chip_gen: v5e
topology: v5e:2x2
jax: 0.10.0
libtpu: 0.0.40
codegen_flags: <defaults>
</compile_context>

<pallas_src>
import jax
import jax.numpy as jnp
from jax.experimental import pallas as pl
from jax.experimental.pallas import tpu as pltpu

EPS = 1e-3


# ----------------------------- helpers --------------------------------------

def _pick_tile(m, target):
    """Largest divisor of m that is <= target and a multiple of 8 (else m itself)."""
    if m <= target:
        return m
    for t in range(target, 7, -1):
        if m % t == 0 and t % 8 == 0:
            return t
    return m


# ----------------------------- Pallas kernels -------------------------------

def _conv_acc_kernel(t_ref, w_ref, o_ref, acc_ref):
    """Tap-accumulating matmul: acc += tap_tile @ w_tap (bf16 in, f32 accumulate)."""
    @pl.when(pl.program_id(2) == 0)
    def _init():
        acc_ref[...] = jnp.zeros_like(acc_ref)

    acc_ref[...] += jnp.dot(t_ref[...], w_ref[...],
                            preferred_element_type=jnp.float32)

    @pl.when(pl.program_id(2) == pl.num_programs(2) - 1)
    def _store():
        o_ref[...] = acc_ref[...]


def _bn_stats_kernel(x_ref, s_ref):
    """Accumulate per-channel sum / sum-of-squares into a resident (8, C) output."""
    @pl.when(pl.program_id(0) == 0)
    def _init():
        s_ref[...] = jnp.zeros_like(s_ref)

    x = x_ref[...]
    s_ref[0:1, :] += jnp.sum(x, axis=0, keepdims=True)
    s_ref[1:2, :] += jnp.sum(x * x, axis=0, keepdims=True)


def _bn_prelu_apply_kernel(x_ref, sc_ref, sh_ref, a_ref, o_ref):
    y = x_ref[...] * sc_ref[...] + sh_ref[...]
    o_ref[...] = jnp.where(y >= 0, y, a_ref[...] * y)


def _avgpool_kernel(t_ref, o_ref):
    # AvgPool2d(3, stride=2, padding=1), count_include_pad=True -> always divide by 9.
    acc = t_ref[0]
    for k in range(1, 9):
        acc = acc + t_ref[k]
    o_ref[...] = acc * (1.0 / 9.0)


def _classifier_softmax_kernel(x_ref, w_ref, o_ref):
    logits = jnp.dot(x_ref[...], w_ref[...], preferred_element_type=jnp.float32)
    m = jnp.max(logits, axis=-1, keepdims=True)
    e = jnp.exp(logits - m)
    o_ref[...] = e / jnp.sum(e, axis=-1, keepdims=True)


# ----------------------------- op wrappers -----------------------------------

def _tap_matmul(taps_bf16, w_bf16, groups):
    """taps: (G*T, M, Cin) bf16, w: (G*T, Cin, Cout) bf16 -> (G, M, Cout) f32."""
    GT, M, Cin = taps_bf16.shape
    Cout = w_bf16.shape[-1]
    T = GT // groups
    tm = _pick_tile(M, 256)
    return pl.pallas_call(
        _conv_acc_kernel,
        out_shape=jax.ShapeDtypeStruct((groups, M, Cout), jnp.float32),
        grid=(M // tm, groups, T),
        in_specs=[
            pl.BlockSpec((None, tm, Cin), lambda i, g, t: (g * T + t, i, 0)),
            pl.BlockSpec((None, Cin, Cout), lambda i, g, t: (g * T + t, 0, 0)),
        ],
        out_specs=pl.BlockSpec((None, tm, Cout), lambda i, g, t: (g, i, 0)),
        scratch_shapes=[pltpu.VMEM((tm, Cout), jnp.float32)],
        compiler_params=pltpu.CompilerParams(
            dimension_semantics=("parallel", "arbitrary", "arbitrary")),
    )(taps_bf16, w_bf16)


def _build_taps(x, k, stride, dilation):
    """x: NHWC -> tap-stacked (k*k, M, C) plus output spatial dims."""
    n, h, w, c = x.shape
    if k == 1:
        sl = x[:, ::stride, ::stride, :]
        ho, wo = sl.shape[1], sl.shape[2]
        return sl.reshape(1, n * ho * wo, c), (n, ho, wo)
    pad = ((k - 1) // 2) * dilation
    xp = jnp.pad(x, ((0, 0), (pad, pad), (pad, pad), (0, 0)))
    ho = (h + 2 * pad - dilation * (k - 1) - 1) // stride + 1
    wo = (w + 2 * pad - dilation * (k - 1) - 1) // stride + 1
    cols = []
    for i in range(k):
        for j in range(k):
            r0, c0 = i * dilation, j * dilation
            sl = xp[:, r0:r0 + (ho - 1) * stride + 1:stride,
                       c0:c0 + (wo - 1) * stride + 1:stride, :]
            cols.append(sl.reshape(n * ho * wo, c))
    return jnp.stack(cols, axis=0), (n, ho, wo)


def conv2d(w, x, stride=1, dilation=1):
    """w: [Cout, Cin, k, k] (PyTorch layout), x: NHWC, bias-free conv -> NHWC f32."""
    cout, cin, k, _ = w.shape
    taps, (n, ho, wo) = _build_taps(x, k, stride, dilation)
    wm = jnp.transpose(w, (2, 3, 1, 0)).reshape(k * k, cin, cout)
    y = _tap_matmul(taps.astype(jnp.bfloat16), wm.astype(jnp.bfloat16), groups=1)
    return y[0].reshape(n, ho, wo, cout)


def esp_branches(ws, dils, x):
    """Fused 5-branch dilated 3x3 convs on shared input x -> (5, M, n_max) f32."""
    cin = x.shape[-1]
    n_max = max(w.shape[0] for w in ws)
    taps_all, w_all, shape_out = [], [], None
    for w, d in zip(ws, dils):
        taps, shape_out = _build_taps(x, 3, 1, d)
        taps_all.append(taps)
        wm = jnp.transpose(w, (2, 3, 1, 0)).reshape(9, cin, w.shape[0])
        if w.shape[0] < n_max:
            wm = jnp.pad(wm, ((0, 0), (0, 0), (0, n_max - w.shape[0])))
        w_all.append(wm)
    taps_all = jnp.concatenate(taps_all, axis=0).astype(jnp.bfloat16)   # (45, M, cin)
    w_all = jnp.concatenate(w_all, axis=0).astype(jnp.bfloat16)         # (45, cin, n_max)
    raw = _tap_matmul(taps_all, w_all, groups=len(ws))                  # (5, M, n_max)
    return raw, shape_out


def bn_prelu_2d(p, x2d):
    """Train-mode BatchNorm (global batch stats) + per-channel PReLU, row-tiled."""
    M, C = x2d.shape
    tm = _pick_tile(M, 512)
    stats = pl.pallas_call(
        _bn_stats_kernel,
        out_shape=jax.ShapeDtypeStruct((8, C), jnp.float32),
        grid=(M // tm,),
        in_specs=[pl.BlockSpec((tm, C), lambda i: (i, 0))],
        out_specs=pl.BlockSpec((8, C), lambda i: (0, 0)),
        compiler_params=pltpu.CompilerParams(dimension_semantics=("arbitrary",)),
    )(x2d)
    mean = stats[0:1, :] / M
    var = stats[1:2, :] / M - mean * mean          # biased variance (train-mode BN)
    scale = p['gamma'] * jax.lax.rsqrt(var + EPS)
    shift = p['beta'] - mean * scale
    return pl.pallas_call(
        _bn_prelu_apply_kernel,
        out_shape=jax.ShapeDtypeStruct((M, C), jnp.float32),
        grid=(M // tm,),
        in_specs=[pl.BlockSpec((tm, C), lambda i: (i, 0)),
                  pl.BlockSpec((1, C), lambda i: (0, 0)),
                  pl.BlockSpec((1, C), lambda i: (0, 0)),
                  pl.BlockSpec((1, C), lambda i: (0, 0))],
        out_specs=pl.BlockSpec((tm, C), lambda i: (i, 0)),
        compiler_params=pltpu.CompilerParams(dimension_semantics=("parallel",)),
    )(x2d, scale, shift, p['alpha'])


def bn_prelu(p, x):
    n, h, w, c = x.shape
    return bn_prelu_2d(p, x.reshape(n * h * w, c)).reshape(n, h, w, c)


def avg_pool_3x3_s2_p1(x):
    n, h, w, c = x.shape
    xp = jnp.pad(x, ((0, 0), (1, 1), (1, 1), (0, 0)))
    ho = (h + 2 - 3) // 2 + 1
    wo = (w + 2 - 3) // 2 + 1
    taps = []
    for i in range(3):
        for j in range(3):
            sl = xp[:, i:i + (ho - 1) * 2 + 1:2, j:j + (wo - 1) * 2 + 1:2, :]
            taps.append(sl.reshape(n * ho, wo * c))   # lane dim = Wo*C (denser stores)
    taps = jnp.stack(taps, axis=0)                    # (9, N*Ho, Wo*C)
    R, WC = n * ho, wo * c
    tr = _pick_tile(R, 512)
    y = pl.pallas_call(
        _avgpool_kernel,
        out_shape=jax.ShapeDtypeStruct((R, WC), jnp.float32),
        grid=(R // tr,),
        in_specs=[pl.BlockSpec((9, tr, WC), lambda i: (0, i, 0))],
        out_specs=pl.BlockSpec((tr, WC), lambda i: (i, 0)),
        compiler_params=pltpu.CompilerParams(dimension_semantics=("parallel",)),
    )(taps)
    return y.reshape(n, ho, wo, c)


def classifier_softmax(w, x):
    """Fused 1x1 classifier conv + channel softmax.  w: [classes, Cin, 1, 1]."""
    n, h, wd, c = x.shape
    classes = w.shape[0]
    M = n * h * wd
    xf = x.reshape(M, c).astype(jnp.bfloat16)
    wm = jnp.transpose(w.reshape(classes, c), (1, 0)).astype(jnp.bfloat16)  # (c, classes)
    tm = _pick_tile(M, 512)
    y = pl.pallas_call(
        _classifier_softmax_kernel,
        out_shape=jax.ShapeDtypeStruct((M, classes), jnp.float32),
        grid=(M // tm,),
        in_specs=[pl.BlockSpec((tm, c), lambda i: (i, 0)),
                  pl.BlockSpec((c, classes), lambda i: (0, 0))],
        out_specs=pl.BlockSpec((tm, classes), lambda i: (i, 0)),
        compiler_params=pltpu.CompilerParams(dimension_semantics=("parallel",)),
    )(xf, wm)
    return y.reshape(n, h, wd, classes)


# ----------------------------- ESPNet blocks ---------------------------------

# TODO(synk): hierarchical adds + channel concat (and the residual add) are thin XLA
#             elementwise glue between the fused-branch conv and the BN/PReLU kernels.
def _merge_branches(p, raw):
    n1 = p['d1'].shape[0]
    nb = p['d2'].shape[0]
    d1 = raw[0][:, :n1]
    add1 = raw[1][:, :nb]
    add2 = add1 + raw[2][:, :nb]
    add3 = add2 + raw[3][:, :nb]
    add4 = add3 + raw[4][:, :nb]
    return jnp.concatenate([d1, add1, add2, add3, add4], axis=-1)


def esp_block(p, x, add=True):
    """DilatedParllelResidualBlockB: reduce -> split -> transform -> merge."""
    o1 = conv2d(p['c1'], x, stride=1, dilation=1)                       # 1x1 reduce
    raw, (n_, ho, wo) = esp_branches(
        [p['d1'], p['d2'], p['d4'], p['d8'], p['d16']], [1, 2, 4, 8, 16], o1)
    combine = _merge_branches(p, raw)                                   # (M, nOut)
    if add:
        combine = combine + x.reshape(combine.shape)
    y = bn_prelu_2d(p['bn'], combine)
    return y.reshape(n_, ho, wo, -1)


def downsampler_b(p, x):
    o1 = conv2d(p['c1'], x, stride=2, dilation=1)                       # 3x3 s2 reduce
    raw, (n_, ho, wo) = esp_branches(
        [p['d1'], p['d2'], p['d4'], p['d8'], p['d16']], [1, 2, 4, 8, 16], o1)
    combine = _merge_branches(p, raw)
    y = bn_prelu_2d(p['bn'], combine)
    return y.reshape(n_, ho, wo, -1)


def espnet_encoder(params, x_5d):
    """x_5d: [1, N, 3, H, W] -> [1, N, classes, H/8, W/8]."""
    x = jnp.transpose(x_5d[0], (0, 2, 3, 1))                            # NCHW -> NHWC

    out0 = bn_prelu(params['level1']['bn'],
                    conv2d(params['level1']['w'], x, stride=2))         # level1 (CBR)
    inp1 = avg_pool_3x3_s2_p1(x)                                        # sample1
    inp2 = avg_pool_3x3_s2_p1(inp1)                                     # sample2

    out0_cat = bn_prelu(params['b1'], jnp.concatenate([out0, inp1], axis=-1))

    out1_0 = downsampler_b(params['level2_0'], out0_cat)
    out1 = out1_0
    for bp in params['level2']:
        out1 = esp_block(bp, out1, add=True)
    out1_cat = bn_prelu(params['b2'],
                        jnp.concatenate([out1, out1_0, inp2], axis=-1))

    out2_0 = downsampler_b(params['level3_0'], out1_cat)
    out2 = out2_0
    for bp in params['level3']:
        out2 = esp_block(bp, out2, add=True)
    out2_cat = bn_prelu(params['b3'],
                        jnp.concatenate([out2_0, out2], axis=-1))

    probs = classifier_softmax(params['classifier'], out2_cat)          # 1x1 conv + softmax
    return jnp.transpose(probs, (0, 3, 1, 2))[None]                     # NHWC -> NCHW, unsqueeze(0)


# ----------------------------- parameters ------------------------------------

def _bn_act(c):
    # PyTorch defaults: BN gamma=1, beta=0; PReLU(nOut) alpha=0.25 (per-channel).
    return dict(gamma=jnp.ones((1, c), jnp.float32),
                beta=jnp.zeros((1, c), jnp.float32),
                alpha=jnp.full((1, c), 0.25, jnp.float32))


def make_params(classes=19, p=2, q=3, seed=0):
    key = jax.random.PRNGKey(seed)

    def nk():
        nonlocal key
        key, sub = jax.random.split(key)
        return sub

    def conv_w(cout, cin, k):
        fan_in = cin * k * k
        bound = 1.0 / (fan_in ** 0.5)
        return jax.random.uniform(nk(), (cout, cin, k, k), jnp.float32, -bound, bound)

    def esp_params(nin, nout, c1_k):
        n = nout // 5
        n1 = nout - 4 * n
        return dict(c1=conv_w(n, nin, c1_k),
                    d1=conv_w(n1, n, 3),
                    d2=conv_w(n, n, 3),
                    d4=conv_w(n, n, 3),
                    d8=conv_w(n, n, 3),
                    d16=conv_w(n, n, 3),
                    bn=_bn_act(nout))

    return dict(
        level1=dict(w=conv_w(16, 3, 3), bn=_bn_act(16)),
        b1=_bn_act(16 + 3),
        level2_0=esp_params(16 + 3, 64, c1_k=3),      # DownSamplerB (c1 is 3x3 stride 2)
        level2=[esp_params(64, 64, c1_k=1) for _ in range(p)],
        b2=_bn_act(128 + 3),
        level3_0=esp_params(128 + 3, 128, c1_k=3),
        level3=[esp_params(128, 128, c1_k=1) for _ in range(q)],
        b3=_bn_act(256),
        classifier=conv_w(classes, 256, 1),
    )


# ----------------------------- main -------------------------------------------

if __name__ == "__main__":
    classes, p, q = 19, 2, 3
    key = jax.random.PRNGKey(0)
    # [1, N, 3, H, W]: leading singleton dim is squeezed by forward(); H=W=32 -> out 4x4.
    x = jax.random.normal(key, (1, 2, 3, 32, 32), jnp.float32)

    params = make_params(classes=classes, p=p, q=q, seed=0)

    fwd = jax.jit(espnet_encoder)
    out = jax.block_until_ready(fwd(params, x))

    assert out.shape == (1, 2, classes, 4, 4), out.shape
    assert bool(jnp.all(jnp.isfinite(out)))
    # softmax over the class axis sums to 1
    assert bool(jnp.allclose(jnp.sum(out, axis=2), 1.0, atol=1e-4))
    print("KERNEL_OK")
</pallas_src>

<mosaic_0001>
module attributes {stable_mosaic.version = 11 : i64} {
  func.func @_bn_stats_kernel(%arg0: i32, %arg1: memref<512x16xf32, #tpu.memory_space<vmem>>, %arg2: memref<8x16xf32, #tpu.memory_space<vmem>>) attributes {dimension_semantics = [#tpu.dimension_semantics<arbitrary>], iteration_bounds = array<i64: 1>, scalar_prefetch = 0 : i64, scratch_operands = 0 : i64, tpu.core_type = #tpu.core_type<tc>, window_params = [{transform_indices = @transform_0, window_bounds = array<i64: 512, 16>}, {pipeline_mode = #tpu.pipeline_mode<synchronous>, transform_indices = @transform_1, window_bounds = array<i64: 8, 16>}]} {
    %c0_i32 = arith.constant 0 : i32
    %0 = arith.cmpi eq, %arg0, %c0_i32 : i32
    %1 = arith.extui %0 : i1 to i32
    %c0_i32_0 = arith.constant 0 : i32
    %2 = arith.cmpi ne, %1, %c0_i32_0 : i32
    scf.if %2 {
      %cst_10 = arith.constant 0.000000e+00 : f32
      %15 = vector.broadcast %cst_10 : f32 to vector<8x16xf32>
      %c0_11 = arith.constant 0 : index
      %c0_12 = arith.constant 0 : index
      %16 = vector.load %arg2[%c0_11, %c0_12] : memref<8x16xf32, #tpu.memory_space<vmem>>, vector<8x16xf32>
      tpu.vector_store %arg2[%c0_11, %c0_12], %15 {strides = array<i32>} : memref<8x16xf32, #tpu.memory_space<vmem>>, vector<8x16xf32>,
    } else {
    }
    %c0 = arith.constant 0 : index
    %c0_1 = arith.constant 0 : index
    %3 = vector.load %arg1[%c0, %c0_1] : memref<512x16xf32, #tpu.memory_space<vmem>>, vector<512x16xf32>
    %c0_2 = arith.constant 0 : index
    %c0_3 = arith.constant 0 : index
    %4 = vector.load %arg2[%c0_2, %c0_3] : memref<8x16xf32, #tpu.memory_space<vmem>>, vector<1x16xf32>
    %cst = arith.constant dense<0.000000e+00> : vector<16xf32>
    %5 = vector.multi_reduction <add>, %3, %cst [0] : vector<512x16xf32> to vector<16xf32>
    %6 = vector.shape_cast %5 : vector<16xf32> to vector<1x16xf32>
    %7 = arith.addf %4, %6 : vector<1x16xf32>
    %c0_4 = arith.constant 0 : index
    %c0_5 = arith.constant 0 : index
    %8 = vector.load %arg2[%c0_4, %c0_5] : memref<8x16xf32, #tpu.memory_space<vmem>>, vector<1x16xf32>
    tpu.vector_store %arg2[%c0_4, %c0_5], %7 {strides = array<i32>} : memref<8x16xf32, #tpu.memory_space<vmem>>, vector<1x16xf32>,
    %c1 = arith.constant 1 : index
    %c0_6 = arith.constant 0 : index
    %9 = vector.load %arg2[%c1, %c0_6] : memref<8x16xf32, #tpu.memory_space<vmem>>, vector<1x16xf32>
    %10 = arith.mulf %3, %3 : vector<512x16xf32>
    %cst_7 = arith.constant dense<0.000000e+00> : vector<16xf32>
    %11 = vector.multi_reduction <add>, %10, %cst_7 [0] : vector<512x16xf32> to vector<16xf32>
    %12 = vector.shape_cast %11 : vector<16xf32> to vector<1x16xf32>
    %13 = arith.addf %9, %12 : vector<1x16xf32>
    %c1_8 = arith.constant 1 : index
    %c0_9 = arith.constant 0 : index
    %14 = vector.load %arg2[%c1_8, %c0_9] : memref<8x16xf32, #tpu.memory_space<vmem>>, vector<1x16xf32>
    tpu.vector_store %arg2[%c1_8, %c0_9], %13 {strides = array<i32>} : memref<8x16xf32, #tpu.memory_space<vmem>>, vector<1x16xf32>,
    return
  }
  func.func @transform_0(%arg0: i32) -> (i32, i32) {
    %c0_i32 = arith.constant 0 : i32
    %c0_i32_0 = arith.constant 0 : i32
    return %arg0, %c0_i32 : i32, i32
  }
  func.func @transform_1(%arg0: i32) -> (i32, i32) {
    %c0_i32 = arith.constant 0 : i32
    %c0_i32_0 = arith.constant 0 : i32
    %c0_i32_1 = arith.constant 0 : i32
    return %c0_i32, %c0_i32_0 : i32, i32
  }
}

module attributes {stable_mosaic.version = 11 : i64} {
  func.func @_bn_prelu_apply_kernel(%arg0: i32, %arg1: memref<512x16xf32, #tpu.memory_space<vmem>>, %arg2: memref<1x16xf32, #tpu.memory_space<vmem>>, %arg3: memref<1x16xf32, #tpu.memory_space<vmem>>, %arg4: memref<1x16xf32, #tpu.memory_space<vmem>>, %arg5: memref<512x16xf32, #tpu.memory_space<vmem>>) attributes {dimension_semantics = [#tpu.dimension_semantics<parallel>], iteration_bounds = array<i64: 1>, scalar_prefetch = 0 : i64, scratch_operands = 0 : i64, tpu.core_type = #tpu.core_type<tc>, window_params = [{transform_indices = @transform_0, window_bounds = array<i64: 512, 16>}, {pipeline_mode = #tpu.pipeline_mode<synchronous>, transform_indices = @transform_1, window_bounds = array<i64: 1, 16>}, {pipeline_mode = #tpu.pipeline_mode<synchronous>, transform_indices = @transform_2, window_bounds = array<i64: 1, 16>}, {pipeline_mode = #tpu.pipeline_mode<synchronous>, transform_indices = @transform_3, window_bounds = array<i64: 1, 16>}, {transform_indices = @transform_4, window_bounds = array<i64: 512, 16>}]} {
    %c0 = arith.constant 0 : index
    %c0_0 = arith.constant 0 : index
    %0 = vector.load %arg1[%c0, %c0_0] : memref<512x16xf32, #tpu.memory_space<vmem>>, vector<512x16xf32>
    %c0_1 = arith.constant 0 : index
    %c0_2 = arith.constant 0 : index
    %1 = vector.load %arg2[%c0_1, %c0_2] : memref<1x16xf32, #tpu.memory_space<vmem>>, vector<1x16xf32>
    %2 = vector.broadcast %1 : vector<1x16xf32> to vector<512x16xf32>
    %3 = arith.mulf %0, %2 : vector<512x16xf32>
    %c0_3 = arith.constant 0 : index
    %c0_4 = arith.constant 0 : index
    %4 = vector.load %arg3[%c0_3, %c0_4] : memref<1x16xf32, #tpu.memory_space<vmem>>, vector<1x16xf32>
    %5 = vector.broadcast %4 : vector<1x16xf32> to vector<512x16xf32>
    %6 = arith.addf %3, %5 : vector<512x16xf32>
    %cst = arith.constant 0.000000e+00 : f32
    %7 = vector.broadcast %cst : f32 to vector<512x16xf32>
    %8 = arith.cmpf oge, %6, %7 : vector<512x16xf32>
    %c0_5 = arith.constant 0 : index
    %c0_6 = arith.constant 0 : index
    %9 = vector.load %arg4[%c0_5, %c0_6] : memref<1x16xf32, #tpu.memory_space<vmem>>, vector<1x16xf32>
    %10 = vector.broadcast %9 : vector<1x16xf32> to vector<512x16xf32>
    %11 = arith.mulf %10, %6 : vector<512x16xf32>
    %12 = arith.select %8, %6, %11 : vector<512x16xi1>, vector<512x16xf32>
    %c0_7 = arith.constant 0 : index
    %c0_8 = arith.constant 0 : index
    %13 = vector.load %arg5[%c0_7, %c0_8] : memref<512x16xf32, #tpu.memory_space<vmem>>, vector<512x16xf32>
    tpu.vector_store %arg5[%c0_7, %c0_8], %12 {strides = array<i32>} : memref<512x16xf32, #tpu.memory_space<vmem>>, vector<512x16xf32>,
    return
  }
  func.func @transform_0(%arg0: i32) -> (i32, i32) {
    %c0_i32 = arith.constant 0 : i32
    %c0_i32_0 = arith.constant 0 : i32
    return %arg0, %c0_i32 : i32, i32
  }
  func.func @transform_1(%arg0: i32) -> (i32, i32) {
    %c0_i32 = arith.constant 0 : i32
    %c0_i32_0 = arith.constant 0 : i32
    %c0_i32_1 = arith.constant 0 : i32
    return %c0_i32, %c0_i32_0 : i32, i32
  }
  func.func @transform_2(%arg0: i32) -> (i32, i32) {
    %c0_i32 = arith.constant 0 : i32
    %c0_i32_0 = arith.constant 0 : i32
    %c0_i32_1 = arith.constant 0 : i32
    return %c0_i32, %c0_i32_0 : i32, i32
  }
  func.func @transform_3(%arg0: i32) -> (i32, i32) {
    %c0_i32 = arith.constant 0 : i32
    %c0_i32_0 = arith.constant 0 : i32
    %c0_i32_1 = arith.constant 0 : i32
    return %c0_i32, %c0_i32_0 : i32, i32
  }
  func.func @transform_4(%arg0: i32) -> (i32, i32) {
    %c0_i32 = arith.constant 0 : i32
    %c0_i32_0 = arith.constant 0 : i32
    return %arg0, %c0_i32 : i32, i32
  }
}

module attributes {stable_mosaic.version = 11 : i64} {
  func.func @_conv_acc_kernel(%arg0: i32, %arg1: i32, %arg2: i32, %arg3: memref<1x256x3xbf16, #tpu.memory_space<vmem>>, %arg4: memref<1x3x16xbf16, #tpu.memory_space<vmem>>, %arg5: memref<1x256x16xf32, #tpu.memory_space<vmem>>, %arg6: memref<256x16xf32, #tpu.memory_space<vmem>>) attributes {dimension_semantics = [#tpu.dimension_semantics<parallel>, #tpu.dimension_semantics<arbitrary>, #tpu.dimension_semantics<arbitrary>], iteration_bounds = array<i64: 2, 1, 9>, scalar_prefetch = 0 : i64, scratch_operands = 1 : i64, tpu.core_type = #tpu.core_type<tc>, window_params = [{transform_indices = @transform_0, window_bounds = array<i64: 1, 256, 3>}, {transform_indices = @transform_1, window_bounds = array<i64: 1, 3, 16>}, {transform_indices = @transform_2, window_bounds = array<i64: 1, 256, 16>}]} {
    %c0_i32 = arith.constant 0 : i32
    %0 = arith.cmpi eq, %arg2, %c0_i32 : i32
    %1 = arith.extui %0 : i1 to i32
    %c0_i32_0 = arith.constant 0 : i32
    %2 = arith.cmpi ne, %1, %c0_i32_0 : i32
    scf.if %2 {
      %cst_11 = arith.constant 0.000000e+00 : f32
      %14 = vector.broadcast %cst_11 : f32 to vector<256x16xf32>
      %c0_12 = arith.constant 0 : index
      %c0_13 = arith.constant 0 : index
      %15 = vector.load %arg6[%c0_12, %c0_13] : memref<256x16xf32, #tpu.memory_space<vmem>>, vector<256x16xf32>
      tpu.vector_store %arg6[%c0_12, %c0_13], %14 {strides = array<i32>} : memref<256x16xf32, #tpu.memory_space<vmem>>, vector<256x16xf32>,
    } else {
    }
    %c0 = arith.constant 0 : index
    %c0_1 = arith.constant 0 : index
    %3 = vector.load %arg6[%c0, %c0_1] : memref<256x16xf32, #tpu.memory_space<vmem>>, vector<256x16xf32>
    %c0_2 = arith.constant 0 : index
    %c0_3 = arith.constant 0 : index
    %c0_4 = arith.constant 0 : index
    %4 = vector.load %arg3[%c0_2, %c0_3, %c0_4] : memref<1x256x3xbf16, #tpu.memory_space<vmem>>, vector<1x256x3xbf16>
    %5 = vector.shape_cast %4 : vector<1x256x3xbf16> to vector<256x3xbf16>
    %c0_5 = arith.constant 0 : index
    %c0_6 = arith.constant 0 : index
    %c0_7 = arith.constant 0 : index
    %6 = vector.load %arg4[%c0_5, %c0_6, %c0_7] : memref<1x3x16xbf16, #tpu.memory_space<vmem>>, vector<1x3x16xbf16>
    %7 = vector.shape_cast %6 : vector<1x3x16xbf16> to vector<3x16xbf16>
    %cst = arith.constant dense<0.000000e+00> : vector<256x16xf32>
    %8 = tpu.matmul %5, %7, %cst {dimension_numbers = #tpu.dot_dimension_numbers<[1], [0], [0], [1], [0, 0, 1, 1], [], []>} : vector<256x3xbf16>, vector<3x16xbf16>, vector<256x16xf32> -> vector<256x16xf32>
    %9 = arith.addf %3, %8 : vector<256x16xf32>
    %c0_8 = arith.constant 0 : index
    %c0_9 = arith.constant 0 : index
    %10 = vector.load %arg6[%c0_8, %c0_9] : memref<256x16xf32, #tpu.memory_space<vmem>>, vector<256x16xf32>
    tpu.vector_store %arg6[%c0_8, %c0_9], %9 {strides = array<i32>} : memref<256x16xf32, #tpu.memory_space<vmem>>, vector<256x16xf32>,
    %c8_i32 = arith.constant 8 : i32
    %11 = arith.cmpi eq, %arg2, %c8_i32 : i32
    %12 = arith.extui %11 : i1 to i32
    %c0_i32_10 = arith.constant 0 : i32
    %13 = arith.cmpi ne, %12, %c0_i32_10 : i32
    scf.if %13 {
      %c0_11 = arith.constant 0 : index
      %c0_12 = arith.constant 0 : index
      %14 = vector.load %arg6[%c0_11, %c0_12] : memref<256x16xf32, #tpu.memory_space<vmem>>, vector<256x16xf32>
      %c0_13 = arith.constant 0 : index
      %c0_14 = arith.constant 0 : index
      %c0_15 = arith.constant 0 : index
      %15 = vector.load %arg5[%c0_13, %c0_14, %c0_15] : memref<1x256x16xf32, #tpu.memory_space<vmem>>, vector<1x256x16xf32>
      %16 = vector.shape_cast %15 : vector<1x256x16xf32> to vector<256x16xf32>
      %17 = vector.shape_cast %14 : vector<256x16xf32> to vector<1x256x16xf32>
      tpu.vector_store %arg5[%c0_13, %c0_14, %c0_15], %17 {strides = array<i32>} : memref<1x256x16xf32, #tpu.memory_space<vmem>>, vector<1x256x16xf32>,
    } else {
    }
    return
  }
  func.func @transform_0(%arg0: i32, %arg1: i32, %arg2: i32) -> (i32, i32, i32) {
    %c9_i32 = arith.constant 9 : i32
    %0 = arith.muli %arg1, %c9_i32 : i32
    %1 = arith.addi %0, %arg2 : i32
    %c0_i32 = arith.constant 0 : i32
    %c0_i32_0 = arith.constant 0 : i32
    return %1, %arg0, %c0_i32 : i32, i32, i32
  }
  func.func @transform_1(%arg0: i32, %arg1: i32, %arg2: i32) -> (i32, i32, i32) {
    %c9_i32 = arith.constant 9 : i32
    %0 = arith.muli %arg1, %c9_i32 : i32
    %1 = arith.addi %0, %arg2 : i32
    %c0_i32 = arith.constant 0 : i32
    %c0_i32_0 = arith.constant 0 : i32
    %c0_i32_1 = arith.constant 0 : i32
    return %1, %c0_i32, %c0_i32_0 : i32, i32, i32
  }
  func.func @transform_2(%arg0: i32, %arg1: i32, %arg2: i32) -> (i32, i32, i32) {
    %c0_i32 = arith.constant 0 : i32
    %c0_i32_0 = arith.constant 0 : i32
    return %arg1, %arg0, %c0_i32 : i32, i32, i32
  }
}

module attributes {stable_mosaic.version = 11 : i64} {
  func.func @_avgpool_kernel(%arg0: i32, %arg1: memref<9x32x48xf32, #tpu.memory_space<vmem>>, %arg2: memref<32x48xf32, #tpu.memory_space<vmem>>) attributes {dimension_semantics = [#tpu.dimension_semantics<parallel>], iteration_bounds = array<i64: 1>, scalar_prefetch = 0 : i64, scratch_operands = 0 : i64, tpu.core_type = #tpu.core_type<tc>, window_params = [{transform_indices = @transform_0, window_bounds = array<i64: 9, 32, 48>}, {transform_indices = @transform_1, window_bounds = array<i64: 32, 48>}]} {
    %c0 = arith.constant 0 : index
    %c0_0 = arith.constant 0 : index
    %c0_1 = arith.constant 0 : index
    %0 = vector.load %arg1[%c0, %c0_0, %c0_1] : memref<9x32x48xf32, #tpu.memory_space<vmem>>, vector<1x32x48xf32>
    %1 = vector.shape_cast %0 : vector<1x32x48xf32> to vector<32x48xf32>
    %c1 = arith.constant 1 : index
    %c0_2 = arith.constant 0 : index
    %c0_3 = arith.constant 0 : index
    %2 = vector.load %arg1[%c1, %c0_2, %c0_3] : memref<9x32x48xf32, #tpu.memory_space<vmem>>, vector<1x32x48xf32>
    %3 = vector.shape_cast %2 : vector<1x32x48xf32> to vector<32x48xf32>
    %4 = arith.addf %1, %3 : vector<32x48xf32>
    %c2 = arith.constant 2 : index
    %c0_4 = arith.constant 0 : index
    %c0_5 = arith.constant 0 : index
    %5 = vector.load %arg1[%c2, %c0_4, %c0_5] : memref<9x32x48xf32, #tpu.memory_space<vmem>>, vector<1x32x48xf32>
    %6 = vector.shape_cast %5 : vector<1x32x48xf32> to vector<32x48xf32>
    %7 = arith.addf %4, %6 : vector<32x48xf32>
    %c3 = arith.constant 3 : index
    %c0_6 = arith.constant 0 : index
    %c0_7 = arith.constant 0 : index
    %8 = vector.load %arg1[%c3, %c0_6, %c0_7] : memref<9x32x48xf32, #tpu.memory_space<vmem>>, vector<1x32x48xf32>
    %9 = vector.shape_cast %8 : vector<1x32x48xf32> to vector<32x48xf32>
    %10 = arith.addf %7, %9 : vector<32x48xf32>
    %c4 = arith.constant 4 : index
    %c0_8 = arith.constant 0 : index
    %c0_9 = arith.constant 0 : index
    %11 = vector.load %arg1[%c4, %c0_8, %c0_9] : memref<9x32x48xf32, #tpu.memory_space<vmem>>, vector<1x32x48xf32>
    %12 = vector.shape_cast %11 : vector<1x32x48xf32> to vector<32x48xf32>
    %13 = arith.addf %10, %12 : vector<32x48xf32>
    %c5 = arith.constant 5 : index
    %c0_10 = arith.constant 0 : index
    %c0_11 = arith.constant 0 : index
    %14 = vector.load %arg1[%c5, %c0_10, %c0_11] : memref<9x32x48xf32, #tpu.memory_space<vmem>>, vector<1x32x48xf32>
    %15 = vector.shape_cast %14 : vector<1x32x48xf32> to vector<32x48xf32>
    %16 = arith.addf %13, %15 : vector<32x48xf32>
    %c6 = arith.constant 6 : index
    %c0_12 = arith.constant 0 : index
    %c0_13 = arith.constant 0 : index
    %17 = vector.load %arg1[%c6, %c0_12, %c0_13] : memref<9x32x48xf32, #tpu.memory_space<vmem>>, vector<1x32x48xf32>
    %18 = vector.shape_cast %17 : vector<1x32x48xf32> to vector<32x48xf32>
    %19 = arith.addf %16, %18 : vector<32x48xf32>
    %c7 = arith.constant 7 : index
    %c0_14 = arith.constant 0 : index
    %c0_15 = arith.constant 0 : index
    %20 = vector.load %arg1[%c7, %c0_14, %c0_15] : memref<9x32x48xf32, #tpu.memory_space<vmem>>, vector<1x32x48xf32>
    %21 = vector.shape_cast %20 : vector<1x32x48xf32> to vector<32x48xf32>
    %22 = arith.addf %19, %21 : vector<32x48xf32>
    %c8 = arith.constant 8 : index
    %c0_16 = arith.constant 0 : index
    %c0_17 = arith.constant 0 : index
    %23 = vector.load %arg1[%c8, %c0_16, %c0_17] : memref<9x32x48xf32, #tpu.memory_space<vmem>>, vector<1x32x48xf32>
    %24 = vector.shape_cast %23 : vector<1x32x48xf32> to vector<32x48xf32>
    %25 = arith.addf %22, %24 : vector<32x48xf32>
    %cst = arith.constant 0.111111112 : f32
    %26 = vector.broadcast %cst : f32 to vector<32x48xf32>
    %27 = arith.mulf %25, %26 : vector<32x48xf32>
    %c0_18 = arith.constant 0 : index
    %c0_19 = arith.constant 0 : index
    %28 = vector.load %arg2[%c0_18, %c0_19] : memref<32x48xf32, #tpu.memory_space<vmem>>, vector<32x48xf32>
    tpu.vector_store %arg2[%c0_18, %c0_19], %27 {strides = array<i32>} : memref<32x48xf32, #tpu.memory_space<vmem>>, vector<32x48xf32>,
    return
  }
  func.func @transform_0(%arg0: i32) -> (i32, i32, i32) {
    %c0_i32 = arith.constant 0 : i32
    %c0_i32_0 = arith.constant 0 : i32
    %c0_i32_1 = arith.constant 0 : i32
    return %c0_i32, %arg0, %c0_i32_0 : i32, i32, i32
  }
  func.func @transform_1(%arg0: i32) -> (i32, i32) {
    %c0_i32 = arith.constant 0 : i32
    %c0_i32_0 = arith.constant 0 : i32
    return %arg0, %c0_i32 : i32, i32
  }
}

module attributes {stable_mosaic.version = 11 : i64} {
  func.func @_bn_stats_kernel(%arg0: i32, %arg1: memref<512x19xf32, #tpu.memory_space<vmem>>, %arg2: memref<8x19xf32, #tpu.memory_space<vmem>>) attributes {dimension_semantics = [#tpu.dimension_semantics<arbitrary>], iteration_bounds = array<i64: 1>, scalar_prefetch = 0 : i64, scratch_operands = 0 : i64, tpu.core_type = #tpu.core_type<tc>, window_params = [{transform_indices = @transform_0, window_bounds = array<i64: 512, 19>}, {pipeline_mode = #tpu.pipeline_mode<synchronous>, transform_indices = @transform_1, window_bounds = array<i64: 8, 19>}]} {
    %c0_i32 = arith.constant 0 : i32
    %0 = arith.cmpi eq, %arg0, %c0_i32 : i32
    %1 = arith.extui %0 : i1 to i32
    %c0_i32_0 = arith.constant 0 : i32
    %2 = arith.cmpi ne, %1, %c0_i32_0 : i32
    scf.if %2 {
      %cst_10 = arith.constant 0.000000e+00 : f32
      %15 = vector.broadcast %cst_10 : f32 to vector<8x19xf32>
      %c0_11 = arith.constant 0 : index
      %c0_12 = arith.constant 0 : index
      %16 = vector.load %arg2[%c0_11, %c0_12] : memref<8x19xf32, #tpu.memory_space<vmem>>, vector<8x19xf32>
      tpu.vector_store %arg2[%c0_11, %c0_12], %15 {strides = array<i32>} : memref<8x19xf32, #tpu.memory_space<vmem>>, vector<8x19xf32>,
    } else {
    }
    %c0 = arith.constant 0 : index
    %c0_1 = arith.constant 0 : index
    %3 = vector.load %arg1[%c0, %c0_1] : memref<512x19xf32, #tpu.memory_space<vmem>>, vector<512x19xf32>
    %c0_2 = arith.constant 0 : index
    %c0_3 = arith.constant 0 : index
    %4 = vector.load %arg2[%c0_2, %c0_3] : memref<8x19xf32, #tpu.memory_space<vmem>>, vector<1x19xf32>
    %cst = arith.constant dense<0.000000e+00> : vector<19xf32>
    %5 = vector.multi_reduction <add>, %3, %cst [0] : vector<512x19xf32> to vector<19xf32>
    %6 = vector.shape_cast %5 : vector<19xf32> to vector<1x19xf32>
    %7 = arith.addf %4, %6 : vector<1x19xf32>
    %c0_4 = arith.constant 0 : index
    %c0_5 = arith.constant 0 : index
    %8 = vector.load %arg2[%c0_4, %c0_5] : memref<8x19xf32, #tpu.memory_space<vmem>>, vector<1x19xf32>
    tpu.vector_store %arg2[%c0_4, %c0_5], %7 {strides = array<i32>} : memref<8x19xf32, #tpu.memory_space<vmem>>, vector<1x19xf32>,
    %c1 = arith.constant 1 : index
    %c0_6 = arith.constant 0 : index
    %9 = vector.load %arg2[%c1, %c0_6] : memref<8x19xf32, #tpu.memory_space<vmem>>, vector<1x19xf32>
    %10 = arith.mulf %3, %3 : vector<512x19xf32>
    %cst_7 = arith.constant dense<0.000000e+00> : vector<19xf32>
    %11 = vector.multi_reduction <add>, %10, %cst_7 [0] : vector<512x19xf32> to vector<19xf32>
    %12 = vector.shape_cast %11 : vector<19xf32> to vector<1x19xf32>
    %13 = arith.addf %9, %12 : vector<1x19xf32>
    %c1_8 = arith.constant 1 : index
    %c0_9 = arith.constant 0 : index
    %14 = vector.load %arg2[%c1_8, %c0_9] : memref<8x19xf32, #tpu.memory_space<vmem>>, vector<1x19xf32>
    tpu.vector_store %arg2[%c1_8, %c0_9], %13 {strides = array<i32>} : memref<8x19xf32, #tpu.memory_space<vmem>>, vector<1x19xf32>,
    return
  }
  func.func @transform_0(%arg0: i32) -> (i32, i32) {
    %c0_i32 = arith.constant 0 : i32
    %c0_i32_0 = arith.constant 0 : i32
    return %arg0, %c0_i32 : i32, i32
  }
  func.func @transform_1(%arg0: i32) -> (i32, i32) {
    %c0_i32 = arith.constant 0 : i32
    %c0_i32_0 = arith.constant 0 : i32
    %c0_i32_1 = arith.constant 0 : i32
    return %c0_i32, %c0_i32_0 : i32, i32
  }
}

module attributes {stable_mosaic.version = 11 : i64} {
  func.func @_bn_prelu_apply_kernel(%arg0: i32, %arg1: memref<512x19xf32, #tpu.memory_space<vmem>>, %arg2: memref<1x19xf32, #tpu.memory_space<vmem>>, %arg3: memref<1x19xf32, #tpu.memory_space<vmem>>, %arg4: memref<1x19xf32, #tpu.memory_space<vmem>>, %arg5: memref<512x19xf32, #tpu.memory_space<vmem>>) attributes {dimension_semantics = [#tpu.dimension_semantics<parallel>], iteration_bounds = array<i64: 1>, scalar_prefetch = 0 : i64, scratch_operands = 0 : i64, tpu.core_type = #tpu.core_type<tc>, window_params = [{transform_indices = @transform_0, window_bounds = array<i64: 512, 19>}, {pipeline_mode = #tpu.pipeline_mode<synchronous>, transform_indices = @transform_1, window_bounds = array<i64: 1, 19>}, {pipeline_mode = #tpu.pipeline_mode<synchronous>, transform_indices = @transform_2, window_bounds = array<i64: 1, 19>}, {pipeline_mode = #tpu.pipeline_mode<synchronous>, transform_indices = @transform_3, window_bounds = array<i64: 1, 19>}, {transform_indices = @transform_4, window_bounds = array<i64: 512, 19>}]} {
    %c0 = arith.constant 0 : index
    %c0_0 = arith.constant 0 : index
    %0 = vector.load %arg1[%c0, %c0_0] : memref<512x19xf32, #tpu.memory_space<vmem>>, vector<512x19xf32>
    %c0_1 = arith.constant 0 : index
    %c0_2 = arith.constant 0 : index
    %1 = vector.load %arg2[%c0_1, %c0_2] : memref<1x19xf32, #tpu.memory_space<vmem>>, vector<1x19xf32>
    %2 = vector.broadcast %1 : vector<1x19xf32> to vector<512x19xf32>
    %3 = arith.mulf %0, %2 : vector<512x19xf32>
    %c0_3 = arith.constant 0 : index
    %c0_4 = arith.constant 0 : index
    %4 = vector.load %arg3[%c0_3, %c0_4] : memref<1x19xf32, #tpu.memory_space<vmem>>, vector<1x19xf32>
    %5 = vector.broadcast %4 : vector<1x19xf32> to vector<512x19xf32>
    %6 = arith.addf %3, %5 : vector<512x19xf32>
    %cst = arith.constant 0.000000e+00 : f32
    %7 = vector.broadcast %cst : f32 to vector<512x19xf32>
    %8 = arith.cmpf oge, %6, %7 : vector<512x19xf32>
    %c0_5 = arith.constant 0 : index
    %c0_6 = arith.constant 0 : index
    %9 = vector.load %arg4[%c0_5, %c0_6] : memref<1x19xf32, #tpu.memory_space<vmem>>, vector<1x19xf32>
    %10 = vector.broadcast %9 : vector<1x19xf32> to vector<512x19xf32>
    %11 = arith.mulf %10, %6 : vector<512x19xf32>
    %12 = arith.select %8, %6, %11 : vector<512x19xi1>, vector<512x19xf32>
    %c0_7 = arith.constant 0 : index
    %c0_8 = arith.constant 0 : index
    %13 = vector.load %arg5[%c0_7, %c0_8] : memref<512x19xf32, #tpu.memory_space<vmem>>, vector<512x19xf32>
    tpu.vector_store %arg5[%c0_7, %c0_8], %12 {strides = array<i32>} : memref<512x19xf32, #tpu.memory_space<vmem>>, vector<512x19xf32>,
    return
  }
  func.func @transform_0(%arg0: i32) -> (i32, i32) {
    %c0_i32 = arith.constant 0 : i32
    %c0_i32_0 = arith.constant 0 : i32
    return %arg0, %c0_i32 : i32, i32
  }
  func.func @transform_1(%arg0: i32) -> (i32, i32) {
    %c0_i32 = arith.constant 0 : i32
    %c0_i32_0 = arith.constant 0 : i32
    %c0_i32_1 = arith.constant 0 : i32
    return %c0_i32, %c0_i32_0 : i32, i32
  }
  func.func @transform_2(%arg0: i32) -> (i32, i32) {
    %c0_i32 = arith.constant 0 : i32
    %c0_i32_0 = arith.constant 0 : i32
    %c0_i32_1 = arith.constant 0 : i32
    return %c0_i32, %c0_i32_0 : i32, i32
  }
  func.func @transform_3(%arg0: i32) -> (i32, i32) {
    %c0_i32 = arith.constant 0 : i32
    %c0_i32_0 = arith.constant 0 : i32
    %c0_i32_1 = arith.constant 0 : i32
    return %c0_i32, %c0_i32_0 : i32, i32
  }
  func.func @transform_4(%arg0: i32) -> (i32, i32) {
    %c0_i32 = arith.constant 0 : i32
    %c0_i32_0 = arith.constant 0 : i32
    return %arg0, %c0_i32 : i32, i32
  }
}

module attributes {stable_mosaic.version = 11 : i64} {
  func.func @_conv_acc_kernel(%arg0: i32, %arg1: i32, %arg2: i32, %arg3: memref<1x128x19xbf16, #tpu.memory_space<vmem>>, %arg4: memref<1x19x12xbf16, #tpu.memory_space<vmem>>, %arg5: memref<1x128x12xf32, #tpu.memory_space<vmem>>, %arg6: memref<128x12xf32, #tpu.memory_space<vmem>>) attributes {dimension_semantics = [#tpu.dimension_semantics<parallel>, #tpu.dimension_semantics<arbitrary>, #tpu.dimension_semantics<arbitrary>], iteration_bounds = array<i64: 1, 1, 9>, scalar_prefetch = 0 : i64, scratch_operands = 1 : i64, tpu.core_type = #tpu.core_type<tc>, window_params = [{transform_indices = @transform_0, window_bounds = array<i64: 1, 128, 19>}, {transform_indices = @transform_1, window_bounds = array<i64: 1, 19, 12>}, {transform_indices = @transform_2, window_bounds = array<i64: 1, 128, 12>}]} {
    %c0_i32 = arith.constant 0 : i32
    %0 = arith.cmpi eq, %arg2, %c0_i32 : i32
    %1 = arith.extui %0 : i1 to i32
    %c0_i32_0 = arith.constant 0 : i32
    %2 = arith.cmpi ne, %1, %c0_i32_0 : i32
    scf.if %2 {
      %cst_11 = arith.constant 0.000000e+00 : f32
      %14 = vector.broadcast %cst_11 : f32 to vector<128x12xf32>
      %c0_12 = arith.constant 0 : index
      %c0_13 = arith.constant 0 : index
      %15 = vector.load %arg6[%c0_12, %c0_13] : memref<128x12xf32, #tpu.memory_space<vmem>>, vector<128x12xf32>
      tpu.vector_store %arg6[%c0_12, %c0_13], %14 {strides = array<i32>} : memref<128x12xf32, #tpu.memory_space<vmem>>, vector<128x12xf32>,
    } else {
    }
    %c0 = arith.constant 0 : index
    %c0_1 = arith.constant 0 : index
    %3 = vector.load %arg6[%c0, %c0_1] : memref<128x12xf32, #tpu.memory_space<vmem>>, vector<128x12xf32>
    %c0_2 = arith.constant 0 : index
    %c0_3 = arith.constant 0 : index
    %c0_4 = arith.constant 0 : index
    %4 = vector.load %arg3[%c0_2, %c0_3, %c0_4] : memref<1x128x19xbf16, #tpu.memory_space<vmem>>, vector<1x128x19xbf16>
    %5 = vector.shape_cast %4 : vector<1x128x19xbf16> to vector<128x19xbf16>
    %c0_5 = arith.constant 0 : index
    %c0_6 = arith.constant 0 : index
    %c0_7 = arith.constant 0 : index
    %6 = vector.load %arg4[%c0_5, %c0_6, %c0_7] : memref<1x19x12xbf16, #tpu.memory_space<vmem>>, vector<1x19x12xbf16>
    %7 = vector.shape_cast %6 : vector<1x19x12xbf16> to vector<19x12xbf16>
    %cst = arith.constant dense<0.000000e+00> : vector<128x12xf32>
    %8 = tpu.matmul %5, %7, %cst {dimension_numbers = #tpu.dot_dimension_numbers<[1], [0], [0], [1], [0, 0, 1, 1], [], []>} : vector<128x19xbf16>, vector<19x12xbf16>, vector<128x12xf32> -> vector<128x12xf32>
    %9 = arith.addf %3, %8 : vector<128x12xf32>
    %c0_8 = arith.constant 0 : index
    %c0_9 = arith.constant 0 : index
    %10 = vector.load %arg6[%c0_8, %c0_9] : memref<128x12xf32, #tpu.memory_space<vmem>>, vector<128x12xf32>
    tpu.vector_store %arg6[%c0_8, %c0_9], %9 {strides = array<i32>} : memref<128x12xf32, #tpu.memory_space<vmem>>, vector<128x12xf32>,
    %c8_i32 = arith.constant 8 : i32
    %11 = arith.cmpi eq, %arg2, %c8_i32 : i32
    %12 = arith.extui %11 : i1 to i32
    %c0_i32_10 = arith.constant 0 : i32
    %13 = arith.cmpi ne, %12, %c0_i32_10 : i32
    scf.if %13 {
      %c0_11 = arith.constant 0 : index
      %c0_12 = arith.constant 0 : index
      %14 = vector.load %arg6[%c0_11, %c0_12] : memref<128x12xf32, #tpu.memory_space<vmem>>, vector<128x12xf32>
      %c0_13 = arith.constant 0 : index
      %c0_14 = arith.constant 0 : index
      %c0_15 = arith.constant 0 : index
      %15 = vector.load %arg5[%c0_13, %c0_14, %c0_15] : memref<1x128x12xf32, #tpu.memory_space<vmem>>, vector<1x128x12xf32>
      %16 = vector.shape_cast %15 : vector<1x128x12xf32> to vector<128x12xf32>
      %17 = vector.shape_cast %14 : vector<128x12xf32> to vector<1x128x12xf32>
      tpu.vector_store %arg5[%c0_13, %c0_14, %c0_15], %17 {strides = array<i32>} : memref<1x128x12xf32, #tpu.memory_space<vmem>>, vector<1x128x12xf32>,
    } else {
    }
    return
  }
  func.func @transform_0(%arg0: i32, %arg1: i32, %arg2: i32) -> (i32, i32, i32) {
    %c9_i32 = arith.constant 9 : i32
    %0 = arith.muli %arg1, %c9_i32 : i32
    %1 = arith.addi %0, %arg2 : i32
    %c0_i32 = arith.constant 0 : i32
    %c0_i32_0 = arith.constant 0 : i32
    return %1, %arg0, %c0_i32 : i32, i32, i32
  }
  func.func @transform_1(%arg0: i32, %arg1: i32, %arg2: i32) -> (i32, i32, i32) {
    %c9_i32 = arith.constant 9 : i32
    %0 = arith.muli %arg1, %c9_i32 : i32
    %1 = arith.addi %0, %arg2 : i32
    %c0_i32 = arith.constant 0 : i32
    %c0_i32_0 = arith.constant 0 : i32
    %c0_i32_1 = arith.constant 0 : i32
    return %1, %c0_i32, %c0_i32_0 : i32, i32, i32
  }
  func.func @transform_2(%arg0: i32, %arg1: i32, %arg2: i32) -> (i32, i32, i32) {
    %c0_i32 = arith.constant 0 : i32
    %c0_i32_0 = arith.constant 0 : i32
    return %arg1, %arg0, %c0_i32 : i32, i32, i32
  }
}

module attributes {stable_mosaic.version = 11 : i64} {
  func.func @_conv_acc_kernel(%arg0: i32, %arg1: i32, %arg2: i32, %arg3: memref<1x128x12xbf16, #tpu.memory_space<vmem>>, %arg4: memref<1x12x16xbf16, #tpu.memory_space<vmem>>, %arg5: memref<1x128x16xf32, #tpu.memory_space<vmem>>, %arg6: memref<128x16xf32, #tpu.memory_space<vmem>>) attributes {dimension_semantics = [#tpu.dimension_semantics<parallel>, #tpu.dimension_semantics<arbitrary>, #tpu.dimension_semantics<arbitrary>], iteration_bounds = array<i64: 1, 5, 9>, scalar_prefetch = 0 : i64, scratch_operands = 1 : i64, tpu.core_type = #tpu.core_type<tc>, window_params = [{transform_indices = @transform_0, window_bounds = array<i64: 1, 128, 12>}, {transform_indices = @transform_1, window_bounds = array<i64: 1, 12, 16>}, {transform_indices = @transform_2, window_bounds = array<i64: 1, 128, 16>}]} {
    %c0_i32 = arith.constant 0 : i32
    %0 = arith.cmpi eq, %arg2, %c0_i32 : i32
    %1 = arith.extui %0 : i1 to i32
    %c0_i32_0 = arith.constant 0 : i32
    %2 = arith.cmpi ne, %1, %c0_i32_0 : i32
    scf.if %2 {
      %cst_11 = arith.constant 0.000000e+00 : f32
      %14 = vector.broadcast %cst_11 : f32 to vector<128x16xf32>
      %c0_12 = arith.constant 0 : index
      %c0_13 = arith.constant 0 : index
      %15 = vector.load %arg6[%c0_12, %c0_13] : memref<128x16xf32, #tpu.memory_space<vmem>>, vector<128x16xf32>
      tpu.vector_store %arg6[%c0_12, %c0_13], %14 {strides = array<i32>} : memref<128x16xf32, #tpu.memory_space<vmem>>, vector<128x16xf32>,
    } else {
    }
    %c0 = arith.constant 0 : index
    %c0_1 = arith.constant 0 : index
    %3 = vector.load %arg6[%c0, %c0_1] : memref<128x16xf32, #tpu.memory_space<vmem>>, vector<128x16xf32>
    %c0_2 = arith.constant 0 : index
    %c0_3 = arith.constant 0 : index
    %c0_4 = arith.constant 0 : index
    %4 = vector.load %arg3[%c0_2, %c0_3, %c0_4] : memref<1x128x12xbf16, #tpu.memory_space<vmem>>, vector<1x128x12xbf16>
    %5 = vector.shape_cast %4 : vector<1x128x12xbf16> to vector<128x12xbf16>
    %c0_5 = arith.constant 0 : index
    %c0_6 = arith.constant 0 : index
    %c0_7 = arith.constant 0 : index
    %6 = vector.load %arg4[%c0_5, %c0_6, %c0_7] : memref<1x12x16xbf16, #tpu.memory_space<vmem>>, vector<1x12x16xbf16>
    %7 = vector.shape_cast %6 : vector<1x12x16xbf16> to vector<12x16xbf16>
    %cst = arith.constant dense<0.000000e+00> : vector<128x16xf32>
    %8 = tpu.matmul %5, %7, %cst {dimension_numbers = #tpu.dot_dimension_numbers<[1], [0], [0], [1], [0, 0, 1, 1], [], []>} : vector<128x12xbf16>, vector<12x16xbf16>, vector<128x16xf32> -> vector<128x16xf32>
    %9 = arith.addf %3, %8 : vector<128x16xf32>
    %c0_8 = arith.constant 0 : index
    %c0_9 = arith.constant 0 : index
    %10 = vector.load %arg6[%c0_8, %c0_9] : memref<128x16xf32, #tpu.memory_space<vmem>>, vector<128x16xf32>
    tpu.vector_store %arg6[%c0_8, %c0_9], %9 {strides = array<i32>} : memref<128x16xf32, #tpu.memory_space<vmem>>, vector<128x16xf32>,
    %c8_i32 = arith.constant 8 : i32
    %11 = arith.cmpi eq, %arg2, %c8_i32 : i32
    %12 = arith.extui %11 : i1 to i32
    %c0_i32_10 = arith.constant 0 : i32
    %13 = arith.cmpi ne, %12, %c0_i32_10 : i32
    scf.if %13 {
      %c0_11 = arith.constant 0 : index
      %c0_12 = arith.constant 0 : index
      %14 = vector.load %arg6[%c0_11, %c0_12] : memref<128x16xf32, #tpu.memory_space<vmem>>, vector<128x16xf32>
      %c0_13 = arith.constant 0 : index
      %c0_14 = arith.constant 0 : index
      %c0_15 = arith.constant 0 : index
      %15 = vector.load %arg5[%c0_13, %c0_14, %c0_15] : memref<1x128x16xf32, #tpu.memory_space<vmem>>, vector<1x128x16xf32>
      %16 = vector.shape_cast %15 : vector<1x128x16xf32> to vector<128x16xf32>
      %17 = vector.shape_cast %14 : vector<128x16xf32> to vector<1x128x16xf32>
      tpu.vector_store %arg5[%c0_13, %c0_14, %c0_15], %17 {strides = array<i32>} : memref<1x128x16xf32, #tpu.memory_space<vmem>>, vector<1x128x16xf32>,
    } else {
    }
    return
  }
  func.func @transform_0(%arg0: i32, %arg1: i32, %arg2: i32) -> (i32, i32, i32) {
    %c9_i32 = arith.constant 9 : i32
    %0 = arith.muli %arg1, %c9_i32 : i32
    %1 = arith.addi %0, %arg2 : i32
    %c0_i32 = arith.constant 0 : i32
    %c0_i32_0 = arith.constant 0 : i32
    return %1, %arg0, %c0_i32 : i32, i32, i32
  }
  func.func @transform_1(%arg0: i32, %arg1: i32, %arg2: i32) -> (i32, i32, i32) {
    %c9_i32 = arith.constant 9 : i32
    %0 = arith.muli %arg1, %c9_i32 : i32
    %1 = arith.addi %0, %arg2 : i32
    %c0_i32 = arith.constant 0 : i32
    %c0_i32_0 = arith.constant 0 : i32
    %c0_i32_1 = arith.constant 0 : i32
    return %1, %c0_i32, %c0_i32_0 : i32, i32, i32
  }
  func.func @transform_2(%arg0: i32, %arg1: i32, %arg2: i32) -> (i32, i32, i32) {
    %c0_i32 = arith.constant 0 : i32
    %c0_i32_0 = arith.constant 0 : i32
    return %arg1, %arg0, %c0_i32 : i32, i32, i32
  }
}

module attributes {stable_mosaic.version = 11 : i64} {
  func.func @_bn_stats_kernel(%arg0: i32, %arg1: memref<128x64xf32, #tpu.memory_space<vmem>>, %arg2: memref<8x64xf32, #tpu.memory_space<vmem>>) attributes {dimension_semantics = [#tpu.dimension_semantics<arbitrary>], iteration_bounds = array<i64: 1>, scalar_prefetch = 0 : i64, scratch_operands = 0 : i64, tpu.core_type = #tpu.core_type<tc>, window_params = [{transform_indices = @transform_0, window_bounds = array<i64: 128, 64>}, {pipeline_mode = #tpu.pipeline_mode<synchronous>, transform_indices = @transform_1, window_bounds = array<i64: 8, 64>}]} {
    %c0_i32 = arith.constant 0 : i32
    %0 = arith.cmpi eq, %arg0, %c0_i32 : i32
    %1 = arith.extui %0 : i1 to i32
    %c0_i32_0 = arith.constant 0 : i32
    %2 = arith.cmpi ne, %1, %c0_i32_0 : i32
    scf.if %2 {
      %cst_10 = arith.constant 0.000000e+00 : f32
      %15 = vector.broadcast %cst_10 : f32 to vector<8x64xf32>
      %c0_11 = arith.constant 0 : index
      %c0_12 = arith.constant 0 : index
      %16 = vector.load %arg2[%c0_11, %c0_12] : memref<8x64xf32, #tpu.memory_space<vmem>>, vector<8x64xf32>
      tpu.vector_store %arg2[%c0_11, %c0_12], %15 {strides = array<i32>} : memref<8x64xf32, #tpu.memory_space<vmem>>, vector<8x64xf32>,
    } else {
    }
    %c0 = arith.constant 0 : index
    %c0_1 = arith.constant 0 : index
    %3 = vector.load %arg1[%c0, %c0_1] : memref<128x64xf32, #tpu.memory_space<vmem>>, vector<128x64xf32>
    %c0_2 = arith.constant 0 : index
    %c0_3 = arith.constant 0 : index
    %4 = vector.load %arg2[%c0_2, %c0_3] : memref<8x64xf32, #tpu.memory_space<vmem>>, vector<1x64xf32>
    %cst = arith.constant dense<0.000000e+00> : vector<64xf32>
    %5 = vector.multi_reduction <add>, %3, %cst [0] : vector<128x64xf32> to vector<64xf32>
    %6 = vector.shape_cast %5 : vector<64xf32> to vector<1x64xf32>
    %7 = arith.addf %4, %6 : vector<1x64xf32>
    %c0_4 = arith.constant 0 : index
    %c0_5 = arith.constant 0 : index
    %8 = vector.load %arg2[%c0_4, %c0_5] : memref<8x64xf32, #tpu.memory_space<vmem>>, vector<1x64xf32>
    tpu.vector_store %arg2[%c0_4, %c0_5], %7 {strides = array<i32>} : memref<8x64xf32, #tpu.memory_space<vmem>>, vector<1x64xf32>,
    %c1 = arith.constant 1 : index
    %c0_6 = arith.constant 0 : index
    %9 = vector.load %arg2[%c1, %c0_6] : memref<8x64xf32, #tpu.memory_space<vmem>>, vector<1x64xf32>
    %10 = arith.mulf %3, %3 : vector<128x64xf32>
    %cst_7 = arith.constant dense<0.000000e+00> : vector<64xf32>
    %11 = vector.multi_reduction <add>, %10, %cst_7 [0] : vector<128x64xf32> to vector<64xf32>
    %12 = vector.shape_cast %11 : vector<64xf32> to vector<1x64xf32>
    %13 = arith.addf %9, %12 : vector<1x64xf32>
    %c1_8 = arith.constant 1 : index
    %c0_9 = arith.constant 0 : index
    %14 = vector.load %arg2[%c1_8, %c0_9] : memref<8x64xf32, #tpu.memory_space<vmem>>, vector<1x64xf32>
    tpu.vector_store %arg2[%c1_8, %c0_9], %13 {strides = array<i32>} : memref<8x64xf32, #tpu.memory_space<vmem>>, vector<1x64xf32>,
    return
  }
  func.func @transform_0(%arg0: i32) -> (i32, i32) {
    %c0_i32 = arith.constant 0 : i32
    %c0_i32_0 = arith.constant 0 : i32
    return %arg0, %c0_i32 : i32, i32
  }
  func.func @transform_1(%arg0: i32) -> (i32, i32) {
    %c0_i32 = arith.constant 0 : i32
    %c0_i32_0 = arith.constant 0 : i32
    %c0_i32_1 = arith.constant 0 : i32
    return %c0_i32, %c0_i32_0 : i32, i32
  }
}

module attributes {stable_mosaic.version = 11 : i64} {
  func.func @_bn_prelu_apply_kernel(%arg0: i32, %arg1: memref<128x64xf32, #tpu.memory_space<vmem>>, %arg2: memref<1x64xf32, #tpu.memory_space<vmem>>, %arg3: memref<1x64xf32, #tpu.memory_space<vmem>>, %arg4: memref<1x64xf32, #tpu.memory_space<vmem>>, %arg5: memref<128x64xf32, #tpu.memory_space<vmem>>) attributes {dimension_semantics = [#tpu.dimension_semantics<parallel>], iteration_bounds = array<i64: 1>, scalar_prefetch = 0 : i64, scratch_operands = 0 : i64, tpu.core_type = #tpu.core_type<tc>, window_params = [{transform_indices = @transform_0, window_bounds = array<i64: 128, 64>}, {pipeline_mode = #tpu.pipeline_mode<synchronous>, transform_indices = @transform_1, window_bounds = array<i64: 1, 64>}, {pipeline_mode = #tpu.pipeline_mode<synchronous>, transform_indices = @transform_2, window_bounds = array<i64: 1, 64>}, {pipeline_mode = #tpu.pipeline_mode<synchronous>, transform_indices = @transform_3, window_bounds = array<i64: 1, 64>}, {transform_indices = @transform_4, window_bounds = array<i64: 128, 64>}]} {
    %c0 = arith.constant 0 : index
    %c0_0 = arith.constant 0 : index
    %0 = vector.load %arg1[%c0, %c0_0] : memref<128x64xf32, #tpu.memory_space<vmem>>, vector<128x64xf32>
    %c0_1 = arith.constant 0 : index
    %c0_2 = arith.constant 0 : index
    %1 = vector.load %arg2[%c0_1, %c0_2] : memref<1x64xf32, #tpu.memory_space<vmem>>, vector<1x64xf32>
    %2 = vector.broadcast %1 : vector<1x64xf32> to vector<128x64xf32>
    %3 = arith.mulf %0, %2 : vector<128x64xf32>
    %c0_3 = arith.constant 0 : index
    %c0_4 = arith.constant 0 : index
    %4 = vector.load %arg3[%c0_3, %c0_4] : memref<1x64xf32, #tpu.memory_space<vmem>>, vector<1x64xf32>
    %5 = vector.broadcast %4 : vector<1x64xf32> to vector<128x64xf32>
    %6 = arith.addf %3, %5 : vector<128x64xf32>
    %cst = arith.constant 0.000000e+00 : f32
    %7 = vector.broadcast %cst : f32 to vector<128x64xf32>
    %8 = arith.cmpf oge, %6, %7 : vector<128x64xf32>
    %c0_5 = arith.constant 0 : index
    %c0_6 = arith.constant 0 : index
    %9 = vector.load %arg4[%c0_5, %c0_6] : memref<1x64xf32, #tpu.memory_space<vmem>>, vector<1x64xf32>
    %10 = vector.broadcast %9 : vector<1x64xf32> to vector<128x64xf32>
    %11 = arith.mulf %10, %6 : vector<128x64xf32>
    %12 = arith.select %8, %6, %11 : vector<128x64xi1>, vector<128x64xf32>
    %c0_7 = arith.constant 0 : index
    %c0_8 = arith.constant 0 : index
    %13 = vector.load %arg5[%c0_7, %c0_8] : memref<128x64xf32, #tpu.memory_space<vmem>>, vector<128x64xf32>
    tpu.vector_store %arg5[%c0_7, %c0_8], %12 {strides = array<i32>} : memref<128x64xf32, #tpu.memory_space<vmem>>, vector<128x64xf32>,
    return
  }
  func.func @transform_0(%arg0: i32) -> (i32, i32) {
    %c0_i32 = arith.constant 0 : i32
    %c0_i32_0 = arith.constant 0 : i32
    return %arg0, %c0_i32 : i32, i32
  }
  func.func @transform_1(%arg0: i32) -> (i32, i32) {
    %c0_i32 = arith.constant 0 : i32
    %c0_i32_0 = arith.constant 0 : i32
    %c0_i32_1 = arith.constant 0 : i32
    return %c0_i32, %c0_i32_0 : i32, i32
  }
  func.func @transform_2(%arg0: i32) -> (i32, i32) {
    %c0_i32 = arith.constant 0 : i32
    %c0_i32_0 = arith.constant 0 : i32
    %c0_i32_1 = arith.constant 0 : i32
    return %c0_i32, %c0_i32_0 : i32, i32
  }
  func.func @transform_3(%arg0: i32) -> (i32, i32) {
    %c0_i32 = arith.constant 0 : i32
    %c0_i32_0 = arith.constant 0 : i32
    %c0_i32_1 = arith.constant 0 : i32
    return %c0_i32, %c0_i32_0 : i32, i32
  }
  func.func @transform_4(%arg0: i32) -> (i32, i32) {
    %c0_i32 = arith.constant 0 : i32
    %c0_i32_0 = arith.constant 0 : i32
    return %arg0, %c0_i32 : i32, i32
  }
}

module attributes {stable_mosaic.version = 11 : i64} {
  func.func @_conv_acc_kernel(%arg0: i32, %arg1: i32, %arg2: i32, %arg3: memref<1x128x64xbf16, #tpu.memory_space<vmem>>, %arg4: memref<1x64x12xbf16, #tpu.memory_space<vmem>>, %arg5: memref<1x128x12xf32, #tpu.memory_space<vmem>>, %arg6: memref<128x12xf32, #tpu.memory_space<vmem>>) attributes {dimension_semantics = [#tpu.dimension_semantics<parallel>, #tpu.dimension_semantics<arbitrary>, #tpu.dimension_semantics<arbitrary>], iteration_bounds = array<i64: 1, 1, 1>, scalar_prefetch = 0 : i64, scratch_operands = 1 : i64, tpu.core_type = #tpu.core_type<tc>, window_params = [{transform_indices = @transform_0, window_bounds = array<i64: 1, 128, 64>}, {transform_indices = @transform_1, window_bounds = array<i64: 1, 64, 12>}, {transform_indices = @transform_2, window_bounds = array<i64: 1, 128, 12>}]} {
    %c0_i32 = arith.constant 0 : i32
    %0 = arith.cmpi eq, %arg2, %c0_i32 : i32
    %1 = arith.extui %0 : i1 to i32
    %c0_i32_0 = arith.constant 0 : i32
    %2 = arith.cmpi ne, %1, %c0_i32_0 : i32
    scf.if %2 {
      %cst_12 = arith.constant 0.000000e+00 : f32
      %14 = vector.broadcast %cst_12 : f32 to vector<128x12xf32>
      %c0_13 = arith.constant 0 : index
      %c0_14 = arith.constant 0 : index
      %15 = vector.load %arg6[%c0_13, %c0_14] : memref<128x12xf32, #tpu.memory_space<vmem>>, vector<128x12xf32>
      tpu.vector_store %arg6[%c0_13, %c0_14], %14 {strides = array<i32>} : memref<128x12xf32, #tpu.memory_space<vmem>>, vector<128x12xf32>,
    } else {
    }
    %c0 = arith.constant 0 : index
    %c0_1 = arith.constant 0 : index
    %3 = vector.load %arg6[%c0, %c0_1] : memref<128x12xf32, #tpu.memory_space<vmem>>, vector<128x12xf32>
    %c0_2 = arith.constant 0 : index
    %c0_3 = arith.constant 0 : index
    %c0_4 = arith.constant 0 : index
    %4 = vector.load %arg3[%c0_2, %c0_3, %c0_4] : memref<1x128x64xbf16, #tpu.memory_space<vmem>>, vector<1x128x64xbf16>
    %5 = vector.shape_cast %4 : vector<1x128x64xbf16> to vector<128x64xbf16>
    %c0_5 = arith.constant 0 : index
    %c0_6 = arith.constant 0 : index
    %c0_7 = arith.constant 0 : index
    %6 = vector.load %arg4[%c0_5, %c0_6, %c0_7] : memref<1x64x12xbf16, #tpu.memory_space<vmem>>, vector<1x64x12xbf16>
    %7 = vector.shape_cast %6 : vector<1x64x12xbf16> to vector<64x12xbf16>
    %cst = arith.constant dense<0.000000e+00> : vector<128x12xf32>
    %8 = tpu.matmul %5, %7, %cst {dimension_numbers = #tpu.dot_dimension_numbers<[1], [0], [0], [1], [0, 0, 1, 1], [], []>} : vector<128x64xbf16>, vector<64x12xbf16>, vector<128x12xf32> -> vector<128x12xf32>
    %9 = arith.addf %3, %8 : vector<128x12xf32>
    %c0_8 = arith.constant 0 : index
    %c0_9 = arith.constant 0 : index
    %10 = vector.load %arg6[%c0_8, %c0_9] : memref<128x12xf32, #tpu.memory_space<vmem>>, vector<128x12xf32>
    tpu.vector_store %arg6[%c0_8, %c0_9], %9 {strides = array<i32>} : memref<128x12xf32, #tpu.memory_space<vmem>>, vector<128x12xf32>,
    %c0_i32_10 = arith.constant 0 : i32
    %11 = arith.cmpi eq, %arg2, %c0_i32_10 : i32
    %12 = arith.extui %11 : i1 to i32
    %c0_i32_11 = arith.constant 0 : i32
    %13 = arith.cmpi ne, %12, %c0_i32_11 : i32
    scf.if %13 {
      %c0_12 = arith.constant 0 : index
      %c0_13 = arith.constant 0 : index
      %14 = vector.load %arg6[%c0_12, %c0_13] : memref<128x12xf32, #tpu.memory_space<vmem>>, vector<128x12xf32>
      %c0_14 = arith.constant 0 : index
      %c0_15 = arith.constant 0 : index
      %c0_16 = arith.constant 0 : index
      %15 = vector.load %arg5[%c0_14, %c0_15, %c0_16] : memref<1x128x12xf32, #tpu.memory_space<vmem>>, vector<1x128x12xf32>
      %16 = vector.shape_cast %15 : vector<1x128x12xf32> to vector<128x12xf32>
      %17 = vector.shape_cast %14 : vector<128x12xf32> to vector<1x128x12xf32>
      tpu.vector_store %arg5[%c0_14, %c0_15, %c0_16], %17 {strides = array<i32>} : memref<1x128x12xf32, #tpu.memory_space<vmem>>, vector<1x128x12xf32>,
    } else {
    }
    return
  }
  func.func @transform_0(%arg0: i32, %arg1: i32, %arg2: i32) -> (i32, i32, i32) {
    %c1_i32 = arith.constant 1 : i32
    %0 = arith.muli %arg1, %c1_i32 : i32
    %1 = arith.addi %0, %arg2 : i32
    %c0_i32 = arith.constant 0 : i32
    %c0_i32_0 = arith.constant 0 : i32
    return %1, %arg0, %c0_i32 : i32, i32, i32
  }
  func.func @transform_1(%arg0: i32, %arg1: i32, %arg2: i32) -> (i32, i32, i32) {
    %c1_i32 = arith.constant 1 : i32
    %0 = arith.muli %arg1, %c1_i32 : i32
    %1 = arith.addi %0, %arg2 : i32
    %c0_i32 = arith.constant 0 : i32
    %c0_i32_0 = arith.constant 0 : i32
    %c0_i32_1 = arith.constant 0 : i32
    return %1, %c0_i32, %c0_i32_0 : i32, i32, i32
  }
  func.func @transform_2(%arg0: i32, %arg1: i32, %arg2: i32) -> (i32, i32, i32) {
    %c0_i32 = arith.constant 0 : i32
    %c0_i32_0 = arith.constant 0 : i32
    return %arg1, %arg0, %c0_i32 : i32, i32, i32
  }
}

module attributes {stable_mosaic.version = 11 : i64} {
  func.func @_bn_stats_kernel(%arg0: i32, %arg1: memref<128x131xf32, #tpu.memory_space<vmem>>, %arg2: memref<8x131xf32, #tpu.memory_space<vmem>>) attributes {dimension_semantics = [#tpu.dimension_semantics<arbitrary>], iteration_bounds = array<i64: 1>, scalar_prefetch = 0 : i64, scratch_operands = 0 : i64, tpu.core_type = #tpu.core_type<tc>, window_params = [{transform_indices = @transform_0, window_bounds = array<i64: 128, 131>}, {pipeline_mode = #tpu.pipeline_mode<synchronous>, transform_indices = @transform_1, window_bounds = array<i64: 8, 131>}]} {
    %c0_i32 = arith.constant 0 : i32
    %0 = arith.cmpi eq, %arg0, %c0_i32 : i32
    %1 = arith.extui %0 : i1 to i32
    %c0_i32_0 = arith.constant 0 : i32
    %2 = arith.cmpi ne, %1, %c0_i32_0 : i32
    scf.if %2 {
      %cst_10 = arith.constant 0.000000e+00 : f32
      %15 = vector.broadcast %cst_10 : f32 to vector<8x131xf32>
      %c0_11 = arith.constant 0 : index
      %c0_12 = arith.constant 0 : index
      %16 = vector.load %arg2[%c0_11, %c0_12] : memref<8x131xf32, #tpu.memory_space<vmem>>, vector<8x131xf32>
      tpu.vector_store %arg2[%c0_11, %c0_12], %15 {strides = array<i32>} : memref<8x131xf32, #tpu.memory_space<vmem>>, vector<8x131xf32>,
    } else {
    }
    %c0 = arith.constant 0 : index
    %c0_1 = arith.constant 0 : index
    %3 = vector.load %arg1[%c0, %c0_1] : memref<128x131xf32, #tpu.memory_space<vmem>>, vector<128x131xf32>
    %c0_2 = arith.constant 0 : index
    %c0_3 = arith.constant 0 : index
    %4 = vector.load %arg2[%c0_2, %c0_3] : memref<8x131xf32, #tpu.memory_space<vmem>>, vector<1x131xf32>
    %cst = arith.constant dense<0.000000e+00> : vector<131xf32>
    %5 = vector.multi_reduction <add>, %3, %cst [0] : vector<128x131xf32> to vector<131xf32>
    %6 = vector.shape_cast %5 : vector<131xf32> to vector<1x131xf32>
    %7 = arith.addf %4, %6 : vector<1x131xf32>
    %c0_4 = arith.constant 0 : index
    %c0_5 = arith.constant 0 : index
    %8 = vector.load %arg2[%c0_4, %c0_5] : memref<8x131xf32, #tpu.memory_space<vmem>>, vector<1x131xf32>
    tpu.vector_store %arg2[%c0_4, %c0_5], %7 {strides = array<i32>} : memref<8x131xf32, #tpu.memory_space<vmem>>, vector<1x131xf32>,
    %c1 = arith.constant 1 : index
    %c0_6 = arith.constant 0 : index
    %9 = vector.load %arg2[%c1, %c0_6] : memref<8x131xf32, #tpu.memory_space<vmem>>, vector<1x131xf32>
    %10 = arith.mulf %3, %3 : vector<128x131xf32>
    %cst_7 = arith.constant dense<0.000000e+00> : vector<131xf32>
    %11 = vector.multi_reduction <add>, %10, %cst_7 [0] : vector<128x131xf32> to vector<131xf32>
    %12 = vector.shape_cast %11 : vector<131xf32> to vector<1x131xf32>
    %13 = arith.addf %9, %12 : vector<1x131xf32>
    %c1_8 = arith.constant 1 : index
    %c0_9 = arith.constant 0 : index
    %14 = vector.load %arg2[%c1_8, %c0_9] : memref<8x131xf32, #tpu.memory_space<vmem>>, vector<1x131xf32>
    tpu.vector_store %arg2[%c1_8, %c0_9], %13 {strides = array<i32>} : memref<8x131xf32, #tpu.memory_space<vmem>>, vector<1x131xf32>,
    return
  }
  func.func @transform_0(%arg0: i32) -> (i32, i32) {
    %c0_i32 = arith.constant 0 : i32
    %c0_i32_0 = arith.constant 0 : i32
    return %arg0, %c0_i32 : i32, i32
  }
  func.func @transform_1(%arg0: i32) -> (i32, i32) {
    %c0_i32 = arith.constant 0 : i32
    %c0_i32_0 = arith.constant 0 : i32
    %c0_i32_1 = arith.constant 0 : i32
    return %c0_i32, %c0_i32_0 : i32, i32
  }
}

module attributes {stable_mosaic.version = 11 : i64} {
  func.func @_avgpool_kernel(%arg0: i32, %arg1: memref<9x16x24xf32, #tpu.memory_space<vmem>>, %arg2: memref<16x24xf32, #tpu.memory_space<vmem>>) attributes {dimension_semantics = [#tpu.dimension_semantics<parallel>], iteration_bounds = array<i64: 1>, scalar_prefetch = 0 : i64, scratch_operands = 0 : i64, tpu.core_type = #tpu.core_type<tc>, window_params = [{transform_indices = @transform_0, window_bounds = array<i64: 9, 16, 24>}, {transform_indices = @transform_1, window_bounds = array<i64: 16, 24>}]} {
    %c0 = arith.constant 0 : index
    %c0_0 = arith.constant 0 : index
    %c0_1 = arith.constant 0 : index
    %0 = vector.load %arg1[%c0, %c0_0, %c0_1] : memref<9x16x24xf32, #tpu.memory_space<vmem>>, vector<1x16x24xf32>
    %1 = vector.shape_cast %0 : vector<1x16x24xf32> to vector<16x24xf32>
    %c1 = arith.constant 1 : index
    %c0_2 = arith.constant 0 : index
    %c0_3 = arith.constant 0 : index
    %2 = vector.load %arg1[%c1, %c0_2, %c0_3] : memref<9x16x24xf32, #tpu.memory_space<vmem>>, vector<1x16x24xf32>
    %3 = vector.shape_cast %2 : vector<1x16x24xf32> to vector<16x24xf32>
    %4 = arith.addf %1, %3 : vector<16x24xf32>
    %c2 = arith.constant 2 : index
    %c0_4 = arith.constant 0 : index
    %c0_5 = arith.constant 0 : index
    %5 = vector.load %arg1[%c2, %c0_4, %c0_5] : memref<9x16x24xf32, #tpu.memory_space<vmem>>, vector<1x16x24xf32>
    %6 = vector.shape_cast %5 : vector<1x16x24xf32> to vector<16x24xf32>
    %7 = arith.addf %4, %6 : vector<16x24xf32>
    %c3 = arith.constant 3 : index
    %c0_6 = arith.constant 0 : index
    %c0_7 = arith.constant 0 : index
    %8 = vector.load %arg1[%c3, %c0_6, %c0_7] : memref<9x16x24xf32, #tpu.memory_space<vmem>>, vector<1x16x24xf32>
    %9 = vector.shape_cast %8 : vector<1x16x24xf32> to vector<16x24xf32>
    %10 = arith.addf %7, %9 : vector<16x24xf32>
    %c4 = arith.constant 4 : index
    %c0_8 = arith.constant 0 : index
    %c0_9 = arith.constant 0 : index
    %11 = vector.load %arg1[%c4, %c0_8, %c0_9] : memref<9x16x24xf32, #tpu.memory_space<vmem>>, vector<1x16x24xf32>
    %12 = vector.shape_cast %11 : vector<1x16x24xf32> to vector<16x24xf32>
    %13 = arith.addf %10, %12 : vector<16x24xf32>
    %c5 = arith.constant 5 : index
    %c0_10 = arith.constant 0 : index
    %c0_11 = arith.constant 0 : index
    %14 = vector.load %arg1[%c5, %c0_10, %c0_11] : memref<9x16x24xf32, #tpu.memory_space<vmem>>, vector<1x16x24xf32>
    %15 = vector.shape_cast %14 : vector<1x16x24xf32> to vector<16x24xf32>
    %16 = arith.addf %13, %15 : vector<16x24xf32>
    %c6 = arith.constant 6 : index
    %c0_12 = arith.constant 0 : index
    %c0_13 = arith.constant 0 : index
    %17 = vector.load %arg1[%c6, %c0_12, %c0_13] : memref<9x16x24xf32, #tpu.memory_space<vmem>>, vector<1x16x24xf32>
    %18 = vector.shape_cast %17 : vector<1x16x24xf32> to vector<16x24xf32>
    %19 = arith.addf %16, %18 : vector<16x24xf32>
    %c7 = arith.constant 7 : index
    %c0_14 = arith.constant 0 : index
    %c0_15 = arith.constant 0 : index
    %20 = vector.load %arg1[%c7, %c0_14, %c0_15] : memref<9x16x24xf32, #tpu.memory_space<vmem>>, vector<1x16x24xf32>
    %21 = vector.shape_cast %20 : vector<1x16x24xf32> to vector<16x24xf32>
    %22 = arith.addf %19, %21 : vector<16x24xf32>
    %c8 = arith.constant 8 : index
    %c0_16 = arith.constant 0 : index
    %c0_17 = arith.constant 0 : index
    %23 = vector.load %arg1[%c8, %c0_16, %c0_17] : memref<9x16x24xf32, #tpu.memory_space<vmem>>, vector<1x16x24xf32>
    %24 = vector.shape_cast %23 : vector<1x16x24xf32> to vector<16x24xf32>
    %25 = arith.addf %22, %24 : vector<16x24xf32>
    %cst = arith.constant 0.111111112 : f32
    %26 = vector.broadcast %cst : f32 to vector<16x24xf32>
    %27 = arith.mulf %25, %26 : vector<16x24xf32>
    %c0_18 = arith.constant 0 : index
    %c0_19 = arith.constant 0 : index
    %28 = vector.load %arg2[%c0_18, %c0_19] : memref<16x24xf32, #tpu.memory_space<vmem>>, vector<16x24xf32>
    tpu.vector_store %arg2[%c0_18, %c0_19], %27 {strides = array<i32>} : memref<16x24xf32, #tpu.memory_space<vmem>>, vector<16x24xf32>,
    return
  }
  func.func @transform_0(%arg0: i32) -> (i32, i32, i32) {
    %c0_i32 = arith.constant 0 : i32
    %c0_i32_0 = arith.constant 0 : i32
    %c0_i32_1 = arith.constant 0 : i32
    return %c0_i32, %arg0, %c0_i32_0 : i32, i32, i32
  }
  func.func @transform_1(%arg0: i32) -> (i32, i32) {
    %c0_i32 = arith.constant 0 : i32
    %c0_i32_0 = arith.constant 0 : i32
    return %arg0, %c0_i32 : i32, i32
  }
}

module attributes {stable_mosaic.version = 11 : i64} {
  func.func @_bn_prelu_apply_kernel(%arg0: i32, %arg1: memref<128x131xf32, #tpu.memory_space<vmem>>, %arg2: memref<1x131xf32, #tpu.memory_space<vmem>>, %arg3: memref<1x131xf32, #tpu.memory_space<vmem>>, %arg4: memref<1x131xf32, #tpu.memory_space<vmem>>, %arg5: memref<128x131xf32, #tpu.memory_space<vmem>>) attributes {dimension_semantics = [#tpu.dimension_semantics<parallel>], iteration_bounds = array<i64: 1>, scalar_prefetch = 0 : i64, scratch_operands = 0 : i64, tpu.core_type = #tpu.core_type<tc>, window_params = [{transform_indices = @transform_0, window_bounds = array<i64: 128, 131>}, {pipeline_mode = #tpu.pipeline_mode<synchronous>, transform_indices = @transform_1, window_bounds = array<i64: 1, 131>}, {pipeline_mode = #tpu.pipeline_mode<synchronous>, transform_indices = @transform_2, window_bounds = array<i64: 1, 131>}, {pipeline_mode = #tpu.pipeline_mode<synchronous>, transform_indices = @transform_3, window_bounds = array<i64: 1, 131>}, {transform_indices = @transform_4, window_bounds = array<i64: 128, 131>}]} {
    %c0 = arith.constant 0 : index
    %c0_0 = arith.constant 0 : index
    %0 = vector.load %arg1[%c0, %c0_0] : memref<128x131xf32, #tpu.memory_space<vmem>>, vector<128x131xf32>
    %c0_1 = arith.constant 0 : index
    %c0_2 = arith.constant 0 : index
    %1 = vector.load %arg2[%c0_1, %c0_2] : memref<1x131xf32, #tpu.memory_space<vmem>>, vector<1x131xf32>
    %2 = vector.broadcast %1 : vector<1x131xf32> to vector<128x131xf32>
    %3 = arith.mulf %0, %2 : vector<128x131xf32>
    %c0_3 = arith.constant 0 : index
    %c0_4 = arith.constant 0 : index
    %4 = vector.load %arg3[%c0_3, %c0_4] : memref<1x131xf32, #tpu.memory_space<vmem>>, vector<1x131xf32>
    %5 = vector.broadcast %4 : vector<1x131xf32> to vector<128x131xf32>
    %6 = arith.addf %3, %5 : vector<128x131xf32>
    %cst = arith.constant 0.000000e+00 : f32
    %7 = vector.broadcast %cst : f32 to vector<128x131xf32>
    %8 = arith.cmpf oge, %6, %7 : vector<128x131xf32>
    %c0_5 = arith.constant 0 : index
    %c0_6 = arith.constant 0 : index
    %9 = vector.load %arg4[%c0_5, %c0_6] : memref<1x131xf32, #tpu.memory_space<vmem>>, vector<1x131xf32>
    %10 = vector.broadcast %9 : vector<1x131xf32> to vector<128x131xf32>
    %11 = arith.mulf %10, %6 : vector<128x131xf32>
    %12 = arith.select %8, %6, %11 : vector<128x131xi1>, vector<128x131xf32>
    %c0_7 = arith.constant 0 : index
    %c0_8 = arith.constant 0 : index
    %13 = vector.load %arg5[%c0_7, %c0_8] : memref<128x131xf32, #tpu.memory_space<vmem>>, vector<128x131xf32>
    tpu.vector_store %arg5[%c0_7, %c0_8], %12 {strides = array<i32>} : memref<128x131xf32, #tpu.memory_space<vmem>>, vector<128x131xf32>,
    return
  }
  func.func @transform_0(%arg0: i32) -> (i32, i32) {
    %c0_i32 = arith.constant 0 : i32
    %c0_i32_0 = arith.constant 0 : i32
    return %arg0, %c0_i32 : i32, i32
  }
  func.func @transform_1(%arg0: i32) -> (i32, i32) {
    %c0_i32 = arith.constant 0 : i32
    %c0_i32_0 = arith.constant 0 : i32
    %c0_i32_1 = arith.constant 0 : i32
    return %c0_i32, %c0_i32_0 : i32, i32
  }
  func.func @transform_2(%arg0: i32) -> (i32, i32) {
    %c0_i32 = arith.constant 0 : i32
    %c0_i32_0 = arith.constant 0 : i32
    %c0_i32_1 = arith.constant 0 : i32
    return %c0_i32, %c0_i32_0 : i32, i32
  }
  func.func @transform_3(%arg0: i32) -> (i32, i32) {
    %c0_i32 = arith.constant 0 : i32
    %c0_i32_0 = arith.constant 0 : i32
    %c0_i32_1 = arith.constant 0 : i32
    return %c0_i32, %c0_i32_0 : i32, i32
  }
  func.func @transform_4(%arg0: i32) -> (i32, i32) {
    %c0_i32 = arith.constant 0 : i32
    %c0_i32_0 = arith.constant 0 : i32
    return %arg0, %c0_i32 : i32, i32
  }
}

module attributes {stable_mosaic.version = 11 : i64} {
  func.func @_conv_acc_kernel(%arg0: i32, %arg1: i32, %arg2: i32, %arg3: memref<1x32x131xbf16, #tpu.memory_space<vmem>>, %arg4: memref<1x131x25xbf16, #tpu.memory_space<vmem>>, %arg5: memref<1x32x25xf32, #tpu.memory_space<vmem>>, %arg6: memref<32x25xf32, #tpu.memory_space<vmem>>) attributes {dimension_semantics = [#tpu.dimension_semantics<parallel>, #tpu.dimension_semantics<arbitrary>, #tpu.dimension_semantics<arbitrary>], iteration_bounds = array<i64: 1, 1, 9>, scalar_prefetch = 0 : i64, scratch_operands = 1 : i64, tpu.core_type = #tpu.core_type<tc>, window_params = [{transform_indices = @transform_0, window_bounds = array<i64: 1, 32, 131>}, {transform_indices = @transform_1, window_bounds = array<i64: 1, 131, 25>}, {transform_indices = @transform_2, window_bounds = array<i64: 1, 32, 25>}]} {
    %c0_i32 = arith.constant 0 : i32
    %0 = arith.cmpi eq, %arg2, %c0_i32 : i32
    %1 = arith.extui %0 : i1 to i32
    %c0_i32_0 = arith.constant 0 : i32
    %2 = arith.cmpi ne, %1, %c0_i32_0 : i32
    scf.if %2 {
      %cst_11 = arith.constant 0.000000e+00 : f32
      %14 = vector.broadcast %cst_11 : f32 to vector<32x25xf32>
      %c0_12 = arith.constant 0 : index
      %c0_13 = arith.constant 0 : index
      %15 = vector.load %arg6[%c0_12, %c0_13] : memref<32x25xf32, #tpu.memory_space<vmem>>, vector<32x25xf32>
      tpu.vector_store %arg6[%c0_12, %c0_13], %14 {strides = array<i32>} : memref<32x25xf32, #tpu.memory_space<vmem>>, vector<32x25xf32>,
    } else {
    }
    %c0 = arith.constant 0 : index
    %c0_1 = arith.constant 0 : index
    %3 = vector.load %arg6[%c0, %c0_1] : memref<32x25xf32, #tpu.memory_space<vmem>>, vector<32x25xf32>
    %c0_2 = arith.constant 0 : index
    %c0_3 = arith.constant 0 : index
    %c0_4 = arith.constant 0 : index
    %4 = vector.load %arg3[%c0_2, %c0_3, %c0_4] : memref<1x32x131xbf16, #tpu.memory_space<vmem>>, vector<1x32x131xbf16>
    %5 = vector.shape_cast %4 : vector<1x32x131xbf16> to vector<32x131xbf16>
    %c0_5 = arith.constant 0 : index
    %c0_6 = arith.constant 0 : index
    %c0_7 = arith.constant 0 : index
    %6 = vector.load %arg4[%c0_5, %c0_6, %c0_7] : memref<1x131x25xbf16, #tpu.memory_space<vmem>>, vector<1x131x25xbf16>
    %7 = vector.shape_cast %6 : vector<1x131x25xbf16> to vector<131x25xbf16>
    %cst = arith.constant dense<0.000000e+00> : vector<32x25xf32>
    %8 = tpu.matmul %5, %7, %cst {dimension_numbers = #tpu.dot_dimension_numbers<[1], [0], [0], [1], [0, 0, 1, 1], [], []>} : vector<32x131xbf16>, vector<131x25xbf16>, vector<32x25xf32> -> vector<32x25xf32>
    %9 = arith.addf %3, %8 : vector<32x25xf32>
    %c0_8 = arith.constant 0 : index
    %c0_9 = arith.constant 0 : index
    %10 = vector.load %arg6[%c0_8, %c0_9] : memref<32x25xf32, #tpu.memory_space<vmem>>, vector<32x25xf32>
    tpu.vector_store %arg6[%c0_8, %c0_9], %9 {strides = array<i32>} : memref<32x25xf32, #tpu.memory_space<vmem>>, vector<32x25xf32>,
    %c8_i32 = arith.constant 8 : i32
    %11 = arith.cmpi eq, %arg2, %c8_i32 : i32
    %12 = arith.extui %11 : i1 to i32
    %c0_i32_10 = arith.constant 0 : i32
    %13 = arith.cmpi ne, %12, %c0_i32_10 : i32
    scf.if %13 {
      %c0_11 = arith.constant 0 : index
      %c0_12 = arith.constant 0 : index
      %14 = vector.load %arg6[%c0_11, %c0_12] : memref<32x25xf32, #tpu.memory_space<vmem>>, vector<32x25xf32>
      %c0_13 = arith.constant 0 : index
      %c0_14 = arith.constant 0 : index
      %c0_15 = arith.constant 0 : index
      %15 = vector.load %arg5[%c0_13, %c0_14, %c0_15] : memref<1x32x25xf32, #tpu.memory_space<vmem>>, vector<1x32x25xf32>
      %16 = vector.shape_cast %15 : vector<1x32x25xf32> to vector<32x25xf32>
      %17 = vector.shape_cast %14 : vector<32x25xf32> to vector<1x32x25xf32>
      tpu.vector_store %arg5[%c0_13, %c0_14, %c0_15], %17 {strides = array<i32>} : memref<1x32x25xf32, #tpu.memory_space<vmem>>, vector<1x32x25xf32>,
    } else {
    }
    return
  }
  func.func @transform_0(%arg0: i32, %arg1: i32, %arg2: i32) -> (i32, i32, i32) {
    %c9_i32 = arith.constant 9 : i32
    %0 = arith.muli %arg1, %c9_i32 : i32
    %1 = arith.addi %0, %arg2 : i32
    %c0_i32 = arith.constant 0 : i32
    %c0_i32_0 = arith.constant 0 : i32
    return %1, %arg0, %c0_i32 : i32, i32, i32
  }
  func.func @transform_1(%arg0: i32, %arg1: i32, %arg2: i32) -> (i32, i32, i32) {
    %c9_i32 = arith.constant 9 : i32
    %0 = arith.muli %arg1, %c9_i32 : i32
    %1 = arith.addi %0, %arg2 : i32
    %c0_i32 = arith.constant 0 : i32
    %c0_i32_0 = arith.constant 0 : i32
    %c0_i32_1 = arith.constant 0 : i32
    return %1, %c0_i32, %c0_i32_0 : i32, i32, i32
  }
  func.func @transform_2(%arg0: i32, %arg1: i32, %arg2: i32) -> (i32, i32, i32) {
    %c0_i32 = arith.constant 0 : i32
    %c0_i32_0 = arith.constant 0 : i32
    return %arg1, %arg0, %c0_i32 : i32, i32, i32
  }
}

module attributes {stable_mosaic.version = 11 : i64} {
  func.func @_conv_acc_kernel(%arg0: i32, %arg1: i32, %arg2: i32, %arg3: memref<1x32x25xbf16, #tpu.memory_space<vmem>>, %arg4: memref<1x25x28xbf16, #tpu.memory_space<vmem>>, %arg5: memref<1x32x28xf32, #tpu.memory_space<vmem>>, %arg6: memref<32x28xf32, #tpu.memory_space<vmem>>) attributes {dimension_semantics = [#tpu.dimension_semantics<parallel>, #tpu.dimension_semantics<arbitrary>, #tpu.dimension_semantics<arbitrary>], iteration_bounds = array<i64: 1, 5, 9>, scalar_prefetch = 0 : i64, scratch_operands = 1 : i64, tpu.core_type = #tpu.core_type<tc>, window_params = [{transform_indices = @transform_0, window_bounds = array<i64: 1, 32, 25>}, {transform_indices = @transform_1, window_bounds = array<i64: 1, 25, 28>}, {transform_indices = @transform_2, window_bounds = array<i64: 1, 32, 28>}]} {
    %c0_i32 = arith.constant 0 : i32
    %0 = arith.cmpi eq, %arg2, %c0_i32 : i32
    %1 = arith.extui %0 : i1 to i32
    %c0_i32_0 = arith.constant 0 : i32
    %2 = arith.cmpi ne, %1, %c0_i32_0 : i32
    scf.if %2 {
      %cst_11 = arith.constant 0.000000e+00 : f32
      %14 = vector.broadcast %cst_11 : f32 to vector<32x28xf32>
      %c0_12 = arith.constant 0 : index
      %c0_13 = arith.constant 0 : index
      %15 = vector.load %arg6[%c0_12, %c0_13] : memref<32x28xf32, #tpu.memory_space<vmem>>, vector<32x28xf32>
      tpu.vector_store %arg6[%c0_12, %c0_13], %14 {strides = array<i32>} : memref<32x28xf32, #tpu.memory_space<vmem>>, vector<32x28xf32>,
    } else {
    }
    %c0 = arith.constant 0 : index
    %c0_1 = arith.constant 0 : index
    %3 = vector.load %arg6[%c0, %c0_1] : memref<32x28xf32, #tpu.memory_space<vmem>>, vector<32x28xf32>
    %c0_2 = arith.constant 0 : index
    %c0_3 = arith.constant 0 : index
    %c0_4 = arith.constant 0 : index
    %4 = vector.load %arg3[%c0_2, %c0_3, %c0_4] : memref<1x32x25xbf16, #tpu.memory_space<vmem>>, vector<1x32x25xbf16>
    %5 = vector.shape_cast %4 : vector<1x32x25xbf16> to vector<32x25xbf16>
    %c0_5 = arith.constant 0 : index
    %c0_6 = arith.constant 0 : index
    %c0_7 = arith.constant 0 : index
    %6 = vector.load %arg4[%c0_5, %c0_6, %c0_7] : memref<1x25x28xbf16, #tpu.memory_space<vmem>>, vector<1x25x28xbf16>
    %7 = vector.shape_cast %6 : vector<1x25x28xbf16> to vector<25x28xbf16>
    %cst = arith.constant dense<0.000000e+00> : vector<32x28xf32>
    %8 = tpu.matmul %5, %7, %cst {dimension_numbers = #tpu.dot_dimension_numbers<[1], [0], [0], [1], [0, 0, 1, 1], [], []>} : vector<32x25xbf16>, vector<25x28xbf16>, vector<32x28xf32> -> vector<32x28xf32>
    %9 = arith.addf %3, %8 : vector<32x28xf32>
    %c0_8 = arith.constant 0 : index
    %c0_9 = arith.constant 0 : index
    %10 = vector.load %arg6[%c0_8, %c0_9] : memref<32x28xf32, #tpu.memory_space<vmem>>, vector<32x28xf32>
    tpu.vector_store %arg6[%c0_8, %c0_9], %9 {strides = array<i32>} : memref<32x28xf32, #tpu.memory_space<vmem>>, vector<32x28xf32>,
    %c8_i32 = arith.constant 8 : i32
    %11 = arith.cmpi eq, %arg2, %c8_i32 : i32
    %12 = arith.extui %11 : i1 to i32
    %c0_i32_10 = arith.constant 0 : i32
    %13 = arith.cmpi ne, %12, %c0_i32_10 : i32
    scf.if %13 {
      %c0_11 = arith.constant 0 : index
      %c0_12 = arith.constant 0 : index
      %14 = vector.load %arg6[%c0_11, %c0_12] : memref<32x28xf32, #tpu.memory_space<vmem>>, vector<32x28xf32>
      %c0_13 = arith.constant 0 : index
      %c0_14 = arith.constant 0 : index
      %c0_15 = arith.constant 0 : index
      %15 = vector.load %arg5[%c0_13, %c0_14, %c0_15] : memref<1x32x28xf32, #tpu.memory_space<vmem>>, vector<1x32x28xf32>
      %16 = vector.shape_cast %15 : vector<1x32x28xf32> to vector<32x28xf32>
      %17 = vector.shape_cast %14 : vector<32x28xf32> to vector<1x32x28xf32>
      tpu.vector_store %arg5[%c0_13, %c0_14, %c0_15], %17 {strides = array<i32>} : memref<1x32x28xf32, #tpu.memory_space<vmem>>, vector<1x32x28xf32>,
    } else {
    }
    return
  }
  func.func @transform_0(%arg0: i32, %arg1: i32, %arg2: i32) -> (i32, i32, i32) {
    %c9_i32 = arith.constant 9 : i32
    %0 = arith.muli %arg1, %c9_i32 : i32
    %1 = arith.addi %0, %arg2 : i32
    %c0_i32 = arith.constant 0 : i32
    %c0_i32_0 = arith.constant 0 : i32
    return %1, %arg0, %c0_i32 : i32, i32, i32
  }
  func.func @transform_1(%arg0: i32, %arg1: i32, %arg2: i32) -> (i32, i32, i32) {
    %c9_i32 = arith.constant 9 : i32
    %0 = arith.muli %arg1, %c9_i32 : i32
    %1 = arith.addi %0, %arg2 : i32
    %c0_i32 = arith.constant 0 : i32
    %c0_i32_0 = arith.constant 0 : i32
    %c0_i32_1 = arith.constant 0 : i32
    return %1, %c0_i32, %c0_i32_0 : i32, i32, i32
  }
  func.func @transform_2(%arg0: i32, %arg1: i32, %arg2: i32) -> (i32, i32, i32) {
    %c0_i32 = arith.constant 0 : i32
    %c0_i32_0 = arith.constant 0 : i32
    return %arg1, %arg0, %c0_i32 : i32, i32, i32
  }
}

module attributes {stable_mosaic.version = 11 : i64} {
  func.func @_bn_stats_kernel(%arg0: i32, %arg1: memref<32x128xf32, #tpu.memory_space<vmem>>, %arg2: memref<8x128xf32, #tpu.memory_space<vmem>>) attributes {dimension_semantics = [#tpu.dimension_semantics<arbitrary>], iteration_bounds = array<i64: 1>, scalar_prefetch = 0 : i64, scratch_operands = 0 : i64, tpu.core_type = #tpu.core_type<tc>, window_params = [{transform_indices = @transform_0, window_bounds = array<i64: 32, 128>}, {pipeline_mode = #tpu.pipeline_mode<synchronous>, transform_indices = @transform_1, window_bounds = array<i64: 8, 128>}]} {
    %c0_i32 = arith.constant 0 : i32
    %0 = arith.cmpi eq, %arg0, %c0_i32 : i32
    %1 = arith.extui %0 : i1 to i32
    %c0_i32_0 = arith.constant 0 : i32
    %2 = arith.cmpi ne, %1, %c0_i32_0 : i32
    scf.if %2 {
      %cst_10 = arith.constant 0.000000e+00 : f32
      %15 = vector.broadcast %cst_10 : f32 to vector<8x128xf32>
      %c0_11 = arith.constant 0 : index
      %c0_12 = arith.constant 0 : index
      %16 = vector.load %arg2[%c0_11, %c0_12] : memref<8x128xf32, #tpu.memory_space<vmem>>, vector<8x128xf32>
      tpu.vector_store %arg2[%c0_11, %c0_12], %15 {strides = array<i32>} : memref<8x128xf32, #tpu.memory_space<vmem>>, vector<8x128xf32>,
    } else {
    }
    %c0 = arith.constant 0 : index
    %c0_1 = arith.constant 0 : index
    %3 = vector.load %arg1[%c0, %c0_1] : memref<32x128xf32, #tpu.memory_space<vmem>>, vector<32x128xf32>
    %c0_2 = arith.constant 0 : index
    %c0_3 = arith.constant 0 : index
    %4 = vector.load %arg2[%c0_2, %c0_3] : memref<8x128xf32, #tpu.memory_space<vmem>>, vector<1x128xf32>
    %cst = arith.constant dense<0.000000e+00> : vector<128xf32>
    %5 = vector.multi_reduction <add>, %3, %cst [0] : vector<32x128xf32> to vector<128xf32>
    %6 = vector.shape_cast %5 : vector<128xf32> to vector<1x128xf32>
    %7 = arith.addf %4, %6 : vector<1x128xf32>
    %c0_4 = arith.constant 0 : index
    %c0_5 = arith.constant 0 : index
    %8 = vector.load %arg2[%c0_4, %c0_5] : memref<8x128xf32, #tpu.memory_space<vmem>>, vector<1x128xf32>
    tpu.vector_store %arg2[%c0_4, %c0_5], %7 {strides = array<i32>} : memref<8x128xf32, #tpu.memory_space<vmem>>, vector<1x128xf32>,
    %c1 = arith.constant 1 : index
    %c0_6 = arith.constant 0 : index
    %9 = vector.load %arg2[%c1, %c0_6] : memref<8x128xf32, #tpu.memory_space<vmem>>, vector<1x128xf32>
    %10 = arith.mulf %3, %3 : vector<32x128xf32>
    %cst_7 = arith.constant dense<0.000000e+00> : vector<128xf32>
    %11 = vector.multi_reduction <add>, %10, %cst_7 [0] : vector<32x128xf32> to vector<128xf32>
    %12 = vector.shape_cast %11 : vector<128xf32> to vector<1x128xf32>
    %13 = arith.addf %9, %12 : vector<1x128xf32>
    %c1_8 = arith.constant 1 : index
    %c0_9 = arith.constant 0 : index
    %14 = vector.load %arg2[%c1_8, %c0_9] : memref<8x128xf32, #tpu.memory_space<vmem>>, vector<1x128xf32>
    tpu.vector_store %arg2[%c1_8, %c0_9], %13 {strides = array<i32>} : memref<8x128xf32, #tpu.memory_space<vmem>>, vector<1x128xf32>,
    return
  }
  func.func @transform_0(%arg0: i32) -> (i32, i32) {
    %c0_i32 = arith.constant 0 : i32
    %c0_i32_0 = arith.constant 0 : i32
    return %arg0, %c0_i32 : i32, i32
  }
  func.func @transform_1(%arg0: i32) -> (i32, i32) {
    %c0_i32 = arith.constant 0 : i32
    %c0_i32_0 = arith.constant 0 : i32
    %c0_i32_1 = arith.constant 0 : i32
    return %c0_i32, %c0_i32_0 : i32, i32
  }
}

module attributes {stable_mosaic.version = 11 : i64} {
  func.func @_bn_prelu_apply_kernel(%arg0: i32, %arg1: memref<32x128xf32, #tpu.memory_space<vmem>>, %arg2: memref<1x128xf32, #tpu.memory_space<vmem>>, %arg3: memref<1x128xf32, #tpu.memory_space<vmem>>, %arg4: memref<1x128xf32, #tpu.memory_space<vmem>>, %arg5: memref<32x128xf32, #tpu.memory_space<vmem>>) attributes {dimension_semantics = [#tpu.dimension_semantics<parallel>], iteration_bounds = array<i64: 1>, scalar_prefetch = 0 : i64, scratch_operands = 0 : i64, tpu.core_type = #tpu.core_type<tc>, window_params = [{transform_indices = @transform_0, window_bounds = array<i64: 32, 128>}, {pipeline_mode = #tpu.pipeline_mode<synchronous>, transform_indices = @transform_1, window_bounds = array<i64: 1, 128>}, {pipeline_mode = #tpu.pipeline_mode<synchronous>, transform_indices = @transform_2, window_bounds = array<i64: 1, 128>}, {pipeline_mode = #tpu.pipeline_mode<synchronous>, transform_indices = @transform_3, window_bounds = array<i64: 1, 128>}, {transform_indices = @transform_4, window_bounds = array<i64: 32, 128>}]} {
    %c0 = arith.constant 0 : index
    %c0_0 = arith.constant 0 : index
    %0 = vector.load %arg1[%c0, %c0_0] : memref<32x128xf32, #tpu.memory_space<vmem>>, vector<32x128xf32>
    %c0_1 = arith.constant 0 : index
    %c0_2 = arith.constant 0 : index
    %1 = vector.load %arg2[%c0_1, %c0_2] : memref<1x128xf32, #tpu.memory_space<vmem>>, vector<1x128xf32>
    %2 = vector.broadcast %1 : vector<1x128xf32> to vector<32x128xf32>
    %3 = arith.mulf %0, %2 : vector<32x128xf32>
    %c0_3 = arith.constant 0 : index
    %c0_4 = arith.constant 0 : index
    %4 = vector.load %arg3[%c0_3, %c0_4] : memref<1x128xf32, #tpu.memory_space<vmem>>, vector<1x128xf32>
    %5 = vector.broadcast %4 : vector<1x128xf32> to vector<32x128xf32>
    %6 = arith.addf %3, %5 : vector<32x128xf32>
    %cst = arith.constant 0.000000e+00 : f32
    %7 = vector.broadcast %cst : f32 to vector<32x128xf32>
    %8 = arith.cmpf oge, %6, %7 : vector<32x128xf32>
    %c0_5 = arith.constant 0 : index
    %c0_6 = arith.constant 0 : index
    %9 = vector.load %arg4[%c0_5, %c0_6] : memref<1x128xf32, #tpu.memory_space<vmem>>, vector<1x128xf32>
    %10 = vector.broadcast %9 : vector<1x128xf32> to vector<32x128xf32>
    %11 = arith.mulf %10, %6 : vector<32x128xf32>
    %12 = arith.select %8, %6, %11 : vector<32x128xi1>, vector<32x128xf32>
    %c0_7 = arith.constant 0 : index
    %c0_8 = arith.constant 0 : index
    %13 = vector.load %arg5[%c0_7, %c0_8] : memref<32x128xf32, #tpu.memory_space<vmem>>, vector<32x128xf32>
    tpu.vector_store %arg5[%c0_7, %c0_8], %12 {strides = array<i32>} : memref<32x128xf32, #tpu.memory_space<vmem>>, vector<32x128xf32>,
    return
  }
  func.func @transform_0(%arg0: i32) -> (i32, i32) {
    %c0_i32 = arith.constant 0 : i32
    %c0_i32_0 = arith.constant 0 : i32
    return %arg0, %c0_i32 : i32, i32
  }
  func.func @transform_1(%arg0: i32) -> (i32, i32) {
    %c0_i32 = arith.constant 0 : i32
    %c0_i32_0 = arith.constant 0 : i32
    %c0_i32_1 = arith.constant 0 : i32
    return %c0_i32, %c0_i32_0 : i32, i32
  }
  func.func @transform_2(%arg0: i32) -> (i32, i32) {
    %c0_i32 = arith.constant 0 : i32
    %c0_i32_0 = arith.constant 0 : i32
    %c0_i32_1 = arith.constant 0 : i32
    return %c0_i32, %c0_i32_0 : i32, i32
  }
  func.func @transform_3(%arg0: i32) -> (i32, i32) {
    %c0_i32 = arith.constant 0 : i32
    %c0_i32_0 = arith.constant 0 : i32
    %c0_i32_1 = arith.constant 0 : i32
    return %c0_i32, %c0_i32_0 : i32, i32
  }
  func.func @transform_4(%arg0: i32) -> (i32, i32) {
    %c0_i32 = arith.constant 0 : i32
    %c0_i32_0 = arith.constant 0 : i32
    return %arg0, %c0_i32 : i32, i32
  }
}

module attributes {stable_mosaic.version = 11 : i64} {
  func.func @_conv_acc_kernel(%arg0: i32, %arg1: i32, %arg2: i32, %arg3: memref<1x32x128xbf16, #tpu.memory_space<vmem>>, %arg4: memref<1x128x25xbf16, #tpu.memory_space<vmem>>, %arg5: memref<1x32x25xf32, #tpu.memory_space<vmem>>, %arg6: memref<32x25xf32, #tpu.memory_space<vmem>>) attributes {dimension_semantics = [#tpu.dimension_semantics<parallel>, #tpu.dimension_semantics<arbitrary>, #tpu.dimension_semantics<arbitrary>], iteration_bounds = array<i64: 1, 1, 1>, scalar_prefetch = 0 : i64, scratch_operands = 1 : i64, tpu.core_type = #tpu.core_type<tc>, window_params = [{transform_indices = @transform_0, window_bounds = array<i64: 1, 32, 128>}, {transform_indices = @transform_1, window_bounds = array<i64: 1, 128, 25>}, {transform_indices = @transform_2, window_bounds = array<i64: 1, 32, 25>}]} {
    %c0_i32 = arith.constant 0 : i32
    %0 = arith.cmpi eq, %arg2, %c0_i32 : i32
    %1 = arith.extui %0 : i1 to i32
    %c0_i32_0 = arith.constant 0 : i32
    %2 = arith.cmpi ne, %1, %c0_i32_0 : i32
    scf.if %2 {
      %cst_12 = arith.constant 0.000000e+00 : f32
      %14 = vector.broadcast %cst_12 : f32 to vector<32x25xf32>
      %c0_13 = arith.constant 0 : index
      %c0_14 = arith.constant 0 : index
      %15 = vector.load %arg6[%c0_13, %c0_14] : memref<32x25xf32, #tpu.memory_space<vmem>>, vector<32x25xf32>
      tpu.vector_store %arg6[%c0_13, %c0_14], %14 {strides = array<i32>} : memref<32x25xf32, #tpu.memory_space<vmem>>, vector<32x25xf32>,
    } else {
    }
    %c0 = arith.constant 0 : index
    %c0_1 = arith.constant 0 : index
    %3 = vector.load %arg6[%c0, %c0_1] : memref<32x25xf32, #tpu.memory_space<vmem>>, vector<32x25xf32>
    %c0_2 = arith.constant 0 : index
    %c0_3 = arith.constant 0 : index
    %c0_4 = arith.constant 0 : index
    %4 = vector.load %arg3[%c0_2, %c0_3, %c0_4] : memref<1x32x128xbf16, #tpu.memory_space<vmem>>, vector<1x32x128xbf16>
    %5 = vector.shape_cast %4 : vector<1x32x128xbf16> to vector<32x128xbf16>
    %c0_5 = arith.constant 0 : index
    %c0_6 = arith.constant 0 : index
    %c0_7 = arith.constant 0 : index
    %6 = vector.load %arg4[%c0_5, %c0_6, %c0_7] : memref<1x128x25xbf16, #tpu.memory_space<vmem>>, vector<1x128x25xbf16>
    %7 = vector.shape_cast %6 : vector<1x128x25xbf16> to vector<128x25xbf16>
    %cst = arith.constant dense<0.000000e+00> : vector<32x25xf32>
    %8 = tpu.matmul %5, %7, %cst {dimension_numbers = #tpu.dot_dimension_numbers<[1], [0], [0], [1], [0, 0, 1, 1], [], []>} : vector<32x128xbf16>, vector<128x25xbf16>, vector<32x25xf32> -> vector<32x25xf32>
    %9 = arith.addf %3, %8 : vector<32x25xf32>
    %c0_8 = arith.constant 0 : index
    %c0_9 = arith.constant 0 : index
    %10 = vector.load %arg6[%c0_8, %c0_9] : memref<32x25xf32, #tpu.memory_space<vmem>>, vector<32x25xf32>
    tpu.vector_store %arg6[%c0_8, %c0_9], %9 {strides = array<i32>} : memref<32x25xf32, #tpu.memory_space<vmem>>, vector<32x25xf32>,
    %c0_i32_10 = arith.constant 0 : i32
    %11 = arith.cmpi eq, %arg2, %c0_i32_10 : i32
    %12 = arith.extui %11 : i1 to i32
    %c0_i32_11 = arith.constant 0 : i32
    %13 = arith.cmpi ne, %12, %c0_i32_11 : i32
    scf.if %13 {
      %c0_12 = arith.constant 0 : index
      %c0_13 = arith.constant 0 : index
      %14 = vector.load %arg6[%c0_12, %c0_13] : memref<32x25xf32, #tpu.memory_space<vmem>>, vector<32x25xf32>
      %c0_14 = arith.constant 0 : index
      %c0_15 = arith.constant 0 : index
      %c0_16 = arith.constant 0 : index
      %15 = vector.load %arg5[%c0_14, %c0_15, %c0_16] : memref<1x32x25xf32, #tpu.memory_space<vmem>>, vector<1x32x25xf32>
      %16 = vector.shape_cast %15 : vector<1x32x25xf32> to vector<32x25xf32>
      %17 = vector.shape_cast %14 : vector<32x25xf32> to vector<1x32x25xf32>
      tpu.vector_store %arg5[%c0_14, %c0_15, %c0_16], %17 {strides = array<i32>} : memref<1x32x25xf32, #tpu.memory_space<vmem>>, vector<1x32x25xf32>,
    } else {
    }
    return
  }
  func.func @transform_0(%arg0: i32, %arg1: i32, %arg2: i32) -> (i32, i32, i32) {
    %c1_i32 = arith.constant 1 : i32
    %0 = arith.muli %arg1, %c1_i32 : i32
    %1 = arith.addi %0, %arg2 : i32
    %c0_i32 = arith.constant 0 : i32
    %c0_i32_0 = arith.constant 0 : i32
    return %1, %arg0, %c0_i32 : i32, i32, i32
  }
  func.func @transform_1(%arg0: i32, %arg1: i32, %arg2: i32) -> (i32, i32, i32) {
    %c1_i32 = arith.constant 1 : i32
    %0 = arith.muli %arg1, %c1_i32 : i32
    %1 = arith.addi %0, %arg2 : i32
    %c0_i32 = arith.constant 0 : i32
    %c0_i32_0 = arith.constant 0 : i32
    %c0_i32_1 = arith.constant 0 : i32
    return %1, %c0_i32, %c0_i32_0 : i32, i32, i32
  }
  func.func @transform_2(%arg0: i32, %arg1: i32, %arg2: i32) -> (i32, i32, i32) {
    %c0_i32 = arith.constant 0 : i32
    %c0_i32_0 = arith.constant 0 : i32
    return %arg1, %arg0, %c0_i32 : i32, i32, i32
  }
}

module attributes {stable_mosaic.version = 11 : i64} {
  func.func @_bn_stats_kernel(%arg0: i32, %arg1: memref<32x256xf32, #tpu.memory_space<vmem>>, %arg2: memref<8x256xf32, #tpu.memory_space<vmem>>) attributes {dimension_semantics = [#tpu.dimension_semantics<arbitrary>], iteration_bounds = array<i64: 1>, scalar_prefetch = 0 : i64, scratch_operands = 0 : i64, tpu.core_type = #tpu.core_type<tc>, window_params = [{transform_indices = @transform_0, window_bounds = array<i64: 32, 256>}, {pipeline_mode = #tpu.pipeline_mode<synchronous>, transform_indices = @transform_1, window_bounds = array<i64: 8, 256>}]} {
    %c0_i32 = arith.constant 0 : i32
    %0 = arith.cmpi eq, %arg0, %c0_i32 : i32
    %1 = arith.extui %0 : i1 to i32
    %c0_i32_0 = arith.constant 0 : i32
    %2 = arith.cmpi ne, %1, %c0_i32_0 : i32
    scf.if %2 {
      %cst_10 = arith.constant 0.000000e+00 : f32
      %15 = vector.broadcast %cst_10 : f32 to vector<8x256xf32>
      %c0_11 = arith.constant 0 : index
      %c0_12 = arith.constant 0 : index
      %16 = vector.load %arg2[%c0_11, %c0_12] : memref<8x256xf32, #tpu.memory_space<vmem>>, vector<8x256xf32>
      tpu.vector_store %arg2[%c0_11, %c0_12], %15 {strides = array<i32>} : memref<8x256xf32, #tpu.memory_space<vmem>>, vector<8x256xf32>,
    } else {
    }
    %c0 = arith.constant 0 : index
    %c0_1 = arith.constant 0 : index
    %3 = vector.load %arg1[%c0, %c0_1] : memref<32x256xf32, #tpu.memory_space<vmem>>, vector<32x256xf32>
    %c0_2 = arith.constant 0 : index
    %c0_3 = arith.constant 0 : index
    %4 = vector.load %arg2[%c0_2, %c0_3] : memref<8x256xf32, #tpu.memory_space<vmem>>, vector<1x256xf32>
    %cst = arith.constant dense<0.000000e+00> : vector<256xf32>
    %5 = vector.multi_reduction <add>, %3, %cst [0] : vector<32x256xf32> to vector<256xf32>
    %6 = vector.shape_cast %5 : vector<256xf32> to vector<1x256xf32>
    %7 = arith.addf %4, %6 : vector<1x256xf32>
    %c0_4 = arith.constant 0 : index
    %c0_5 = arith.constant 0 : index
    %8 = vector.load %arg2[%c0_4, %c0_5] : memref<8x256xf32, #tpu.memory_space<vmem>>, vector<1x256xf32>
    tpu.vector_store %arg2[%c0_4, %c0_5], %7 {strides = array<i32>} : memref<8x256xf32, #tpu.memory_space<vmem>>, vector<1x256xf32>,
    %c1 = arith.constant 1 : index
    %c0_6 = arith.constant 0 : index
    %9 = vector.load %arg2[%c1, %c0_6] : memref<8x256xf32, #tpu.memory_space<vmem>>, vector<1x256xf32>
    %10 = arith.mulf %3, %3 : vector<32x256xf32>
    %cst_7 = arith.constant dense<0.000000e+00> : vector<256xf32>
    %11 = vector.multi_reduction <add>, %10, %cst_7 [0] : vector<32x256xf32> to vector<256xf32>
    %12 = vector.shape_cast %11 : vector<256xf32> to vector<1x256xf32>
    %13 = arith.addf %9, %12 : vector<1x256xf32>
    %c1_8 = arith.constant 1 : index
    %c0_9 = arith.constant 0 : index
    %14 = vector.load %arg2[%c1_8, %c0_9] : memref<8x256xf32, #tpu.memory_space<vmem>>, vector<1x256xf32>
    tpu.vector_store %arg2[%c1_8, %c0_9], %13 {strides = array<i32>} : memref<8x256xf32, #tpu.memory_space<vmem>>, vector<1x256xf32>,
    return
  }
  func.func @transform_0(%arg0: i32) -> (i32, i32) {
    %c0_i32 = arith.constant 0 : i32
    %c0_i32_0 = arith.constant 0 : i32
    return %arg0, %c0_i32 : i32, i32
  }
  func.func @transform_1(%arg0: i32) -> (i32, i32) {
    %c0_i32 = arith.constant 0 : i32
    %c0_i32_0 = arith.constant 0 : i32
    %c0_i32_1 = arith.constant 0 : i32
    return %c0_i32, %c0_i32_0 : i32, i32
  }
}

module attributes {stable_mosaic.version = 11 : i64} {
  func.func @_bn_prelu_apply_kernel(%arg0: i32, %arg1: memref<32x256xf32, #tpu.memory_space<vmem>>, %arg2: memref<1x256xf32, #tpu.memory_space<vmem>>, %arg3: memref<1x256xf32, #tpu.memory_space<vmem>>, %arg4: memref<1x256xf32, #tpu.memory_space<vmem>>, %arg5: memref<32x256xf32, #tpu.memory_space<vmem>>) attributes {dimension_semantics = [#tpu.dimension_semantics<parallel>], iteration_bounds = array<i64: 1>, scalar_prefetch = 0 : i64, scratch_operands = 0 : i64, tpu.core_type = #tpu.core_type<tc>, window_params = [{transform_indices = @transform_0, window_bounds = array<i64: 32, 256>}, {pipeline_mode = #tpu.pipeline_mode<synchronous>, transform_indices = @transform_1, window_bounds = array<i64: 1, 256>}, {pipeline_mode = #tpu.pipeline_mode<synchronous>, transform_indices = @transform_2, window_bounds = array<i64: 1, 256>}, {pipeline_mode = #tpu.pipeline_mode<synchronous>, transform_indices = @transform_3, window_bounds = array<i64: 1, 256>}, {transform_indices = @transform_4, window_bounds = array<i64: 32, 256>}]} {
    %c0 = arith.constant 0 : index
    %c0_0 = arith.constant 0 : index
    %0 = vector.load %arg1[%c0, %c0_0] : memref<32x256xf32, #tpu.memory_space<vmem>>, vector<32x256xf32>
    %c0_1 = arith.constant 0 : index
    %c0_2 = arith.constant 0 : index
    %1 = vector.load %arg2[%c0_1, %c0_2] : memref<1x256xf32, #tpu.memory_space<vmem>>, vector<1x256xf32>
    %2 = vector.broadcast %1 : vector<1x256xf32> to vector<32x256xf32>
    %3 = arith.mulf %0, %2 : vector<32x256xf32>
    %c0_3 = arith.constant 0 : index
    %c0_4 = arith.constant 0 : index
    %4 = vector.load %arg3[%c0_3, %c0_4] : memref<1x256xf32, #tpu.memory_space<vmem>>, vector<1x256xf32>
    %5 = vector.broadcast %4 : vector<1x256xf32> to vector<32x256xf32>
    %6 = arith.addf %3, %5 : vector<32x256xf32>
    %cst = arith.constant 0.000000e+00 : f32
    %7 = vector.broadcast %cst : f32 to vector<32x256xf32>
    %8 = arith.cmpf oge, %6, %7 : vector<32x256xf32>
    %c0_5 = arith.constant 0 : index
    %c0_6 = arith.constant 0 : index
    %9 = vector.load %arg4[%c0_5, %c0_6] : memref<1x256xf32, #tpu.memory_space<vmem>>, vector<1x256xf32>
    %10 = vector.broadcast %9 : vector<1x256xf32> to vector<32x256xf32>
    %11 = arith.mulf %10, %6 : vector<32x256xf32>
    %12 = arith.select %8, %6, %11 : vector<32x256xi1>, vector<32x256xf32>
    %c0_7 = arith.constant 0 : index
    %c0_8 = arith.constant 0 : index
    %13 = vector.load %arg5[%c0_7, %c0_8] : memref<32x256xf32, #tpu.memory_space<vmem>>, vector<32x256xf32>
    tpu.vector_store %arg5[%c0_7, %c0_8], %12 {strides = array<i32>} : memref<32x256xf32, #tpu.memory_space<vmem>>, vector<32x256xf32>,
    return
  }
  func.func @transform_0(%arg0: i32) -> (i32, i32) {
    %c0_i32 = arith.constant 0 : i32
    %c0_i32_0 = arith.constant 0 : i32
    return %arg0, %c0_i32 : i32, i32
  }
  func.func @transform_1(%arg0: i32) -> (i32, i32) {
    %c0_i32 = arith.constant 0 : i32
    %c0_i32_0 = arith.constant 0 : i32
    %c0_i32_1 = arith.constant 0 : i32
    return %c0_i32, %c0_i32_0 : i32, i32
  }
  func.func @transform_2(%arg0: i32) -> (i32, i32) {
    %c0_i32 = arith.constant 0 : i32
    %c0_i32_0 = arith.constant 0 : i32
    %c0_i32_1 = arith.constant 0 : i32
    return %c0_i32, %c0_i32_0 : i32, i32
  }
  func.func @transform_3(%arg0: i32) -> (i32, i32) {
    %c0_i32 = arith.constant 0 : i32
    %c0_i32_0 = arith.constant 0 : i32
    %c0_i32_1 = arith.constant 0 : i32
    return %c0_i32, %c0_i32_0 : i32, i32
  }
  func.func @transform_4(%arg0: i32) -> (i32, i32) {
    %c0_i32 = arith.constant 0 : i32
    %c0_i32_0 = arith.constant 0 : i32
    return %arg0, %c0_i32 : i32, i32
  }
}

module attributes {stable_mosaic.version = 11 : i64} {
  func.func @_classifier_softmax_kernel(%arg0: i32, %arg1: memref<32x256xbf16, #tpu.memory_space<vmem>>, %arg2: memref<256x19xbf16, #tpu.memory_space<vmem>>, %arg3: memref<32x19xf32, #tpu.memory_space<vmem>>) attributes {dimension_semantics = [#tpu.dimension_semantics<parallel>], iteration_bounds = array<i64: 1>, scalar_prefetch = 0 : i64, scratch_operands = 0 : i64, tpu.core_type = #tpu.core_type<tc>, window_params = [{transform_indices = @transform_0, window_bounds = array<i64: 32, 256>}, {pipeline_mode = #tpu.pipeline_mode<synchronous>, transform_indices = @transform_1, window_bounds = array<i64: 256, 19>}, {transform_indices = @transform_2, window_bounds = array<i64: 32, 19>}]} {
    %c0 = arith.constant 0 : index
    %c0_0 = arith.constant 0 : index
    %0 = vector.load %arg1[%c0, %c0_0] : memref<32x256xbf16, #tpu.memory_space<vmem>>, vector<32x256xbf16>
    %c0_1 = arith.constant 0 : index
    %c0_2 = arith.constant 0 : index
    %1 = vector.load %arg2[%c0_1, %c0_2] : memref<256x19xbf16, #tpu.memory_space<vmem>>, vector<256x19xbf16>
    %cst = arith.constant dense<0.000000e+00> : vector<32x19xf32>
    %2 = tpu.matmul %0, %1, %cst {dimension_numbers = #tpu.dot_dimension_numbers<[1], [0], [0], [1], [0, 0, 1, 1], [], []>} : vector<32x256xbf16>, vector<256x19xbf16>, vector<32x19xf32> -> vector<32x19xf32>
    %cst_3 = arith.constant dense<0xFF800000> : vector<32xf32>
    %3 = vector.multi_reduction <maximumf>, %2, %cst_3 [1] : vector<32x19xf32> to vector<32xf32>
    %4 = vector.shape_cast %3 : vector<32xf32> to vector<32x1xf32>
    %5 = vector.broadcast %4 : vector<32x1xf32> to vector<32x19xf32>
    %6 = arith.subf %2, %5 : vector<32x19xf32>
    %7 = math.exp %6 : vector<32x19xf32>
    %cst_4 = arith.constant dense<0.000000e+00> : vector<32xf32>
    %8 = vector.multi_reduction <add>, %7, %cst_4 [1] : vector<32x19xf32> to vector<32xf32>
    %9 = vector.shape_cast %8 : vector<32xf32> to vector<32x1xf32>
    %10 = vector.broadcast %9 : vector<32x1xf32> to vector<32x19xf32>
    %11 = arith.divf %7, %10 : vector<32x19xf32>
    %c0_5 = arith.constant 0 : index
    %c0_6 = arith.constant 0 : index
    %12 = vector.load %arg3[%c0_5, %c0_6] : memref<32x19xf32, #tpu.memory_space<vmem>>, vector<32x19xf32>
    tpu.vector_store %arg3[%c0_5, %c0_6], %11 {strides = array<i32>} : memref<32x19xf32, #tpu.memory_space<vmem>>, vector<32x19xf32>,
    return
  }
  func.func @transform_0(%arg0: i32) -> (i32, i32) {
    %c0_i32 = arith.constant 0 : i32
    %c0_i32_0 = arith.constant 0 : i32
    return %arg0, %c0_i32 : i32, i32
  }
  func.func @transform_1(%arg0: i32) -> (i32, i32) {
    %c0_i32 = arith.constant 0 : i32
    %c0_i32_0 = arith.constant 0 : i32
    %c0_i32_1 = arith.constant 0 : i32
    return %c0_i32, %c0_i32_0 : i32, i32
  }
  func.func @transform_2(%arg0: i32) -> (i32, i32) {
    %c0_i32 = arith.constant 0 : i32
    %c0_i32_0 = arith.constant 0 : i32
    return %arg0, %c0_i32 : i32, i32
  }
}

</mosaic_0001>

<bundles_post_ra>
// kernel: espnet_encoder.41
= control target key start
LH: loop header
LB: loop body
LE: loop exit
PB: predicated region body
PF: predicated region fallthrough
CT: control target
= control target key end

     0   :  { %vm12_vm0 = vcmask 130048   ;;  %v421_v0 = vmov 0.0   ;;  %vm214_vm1 = vcmask 122880   ;;  %s768_s0 = inlined_call_operand.vmem [shape: f32[512,16], index: 0, kind: input, shape index: {}]   ;;  %s769_s1 = inlined_call_operand.vmem [shape: f32[8,16], index: 1, kind: output, shape index: {}]  }
   0x1   :  { %13 = vst.msk [vmem:[%s769_s1] sm:$0xff] %vm12_vm0, %v421_v0  ;;  %v14_v1 = vld [vmem:[%s768_s0] sm:$0xff]  ;;  %v15_v2 = vld [vmem:[%s768_s0 + $0x8] sm:$0xff]  ;;  %v16_v3 = vld [vmem:[%s768_s0 + $0x10] sm:$0xff] }
   0x2   :  { %v80_v4 = vsel %vm12_vm0, %v14_v1, 0.0  ;;  %v81_v5 = vsel %vm12_vm0, %v15_v2, 0.0  ;;  %v83_v6 = vsel %vm12_vm0, %v16_v3, 0.0  ;;  %v17_v7 = vld [vmem:[%s768_s0 + $0x18] sm:$0xff]  ;;  %v18_v10 = vld [vmem:[%s768_s0 + $0x20] sm:$0xff]  ;;  %v19_v13 = vld [vmem:[%s768_s0 + $0x28] sm:$0xff]  ;;  %v217_v21 = vmul.f32 %v14_v1, %v14_v1 }
   0x3   :  { %v82_v8 = vadd.f32 %v81_v5, %v80_v4  ;;  %v85_v9 = vsel %vm12_vm0, %v17_v7, 0.0  ;;  %v87_v12 = vsel %vm12_vm0, %v18_v10, 0.0  ;;  %v89_v15 = vsel %vm12_vm0, %v19_v13, 0.0  ;;  %v20_v16 = vld [vmem:[%s768_s0 + $0x30] sm:$0xff]  ;;  %v21_v19 = vld [vmem:[%s768_s0 + $0x38] sm:$0xff]  ;;  %v22_v25 = vld [vmem:[%s768_s0 + $0x40] sm:$0xff] }
   0x4   :  { %v91_v18 = vsel %vm12_vm0, %v20_v16, 0.0  ;;  %v93_v22 = vsel %vm12_vm0, %v21_v19, 0.0  ;;  %v218_v23 = vmul.f32 %v15_v2, %v15_v2  ;;  %v219_v24 = vmul.f32 %v16_v3, %v16_v3  ;;  %v23_v29 = vld [vmem:[%s768_s0 + $0x48] sm:$0xff]  ;;  %v24_v36 = vld [vmem:[%s768_s0 + $0x50] sm:$0xff]  ;;  %v25_v42 = vld [vmem:[%s768_s0 + $0x58] sm:$0xff] }
   0x5   :  { %v84_v11 = vadd.f32 %v83_v6, %v82_v8  ;;  %v95_v27 = vsel %vm12_vm0, %v22_v25, 0.0  ;;  %v220_v28 = vmul.f32 %v17_v7, %v17_v7  ;;  %v281_v31 = vsel %vm12_vm0, %v217_v21, 0.0  ;;  %v26_v48 = vld [vmem:[%s768_s0 + $0x60] sm:$0xff]  ;;  %v27_v54 = vld [vmem:[%s768_s0 + $0x68] sm:$0xff]  ;;  %v28_v60 = vld [vmem:[%s768_s0 + $0x70] sm:$0xff] }
   0x6   :  { %v97_v32 = vsel %vm12_vm0, %v23_v29, 0.0  ;;  %v221_v33 = vmul.f32 %v18_v10, %v18_v10  ;;  %v282_v34 = vsel %vm12_vm0, %v218_v23, 0.0  ;;  %v284_v35 = vsel %vm12_vm0, %v219_v24, 0.0  ;;  %v29_v2 = vld [vmem:[%s768_s0 + $0x78] sm:$0xff]  ;;  %v30_v8 = vld [vmem:[%s768_s0 + $0x80] sm:$0xff] }
   0x7   :  { %v86_v14 = vadd.f32 %v85_v9, %v84_v11  ;;  %v283_v38 = vadd.f32 %v282_v34, %v281_v31  ;;  %v99_v39 = vsel %vm12_vm0, %v24_v36, 0.0  ;;  %v222_v40 = vmul.f32 %v19_v13, %v19_v13 }
   0x8   :  { %v286_v41 = vsel %vm12_vm0, %v220_v28, 0.0  ;;  %v101_v45 = vsel %vm12_vm0, %v25_v42, 0.0  ;;  %v223_v46 = vmul.f32 %v20_v16, %v20_v16  ;;  %v288_v47 = vsel %vm12_vm0, %v221_v33, 0.0 }
   0x9   :  { %v88_v17 = vadd.f32 %v87_v12, %v86_v14  ;;  %v285_v44 = vadd.f32 %v284_v35, %v283_v38  ;;  %v103_v51 = vsel %vm12_vm0, %v26_v48, 0.0  ;;  %v224_v52 = vmul.f32 %v21_v19, %v21_v19  ;;  %v31_v14 = vld [vmem:[%s768_s0 + $0x88] sm:$0xff] }
   0xa   :  { %v290_v53 = vsel %vm12_vm0, %v222_v40, 0.0  ;;  %v105_v57 = vsel %vm12_vm0, %v27_v54, 0.0  ;;  %v225_v58 = vmul.f32 %v22_v25, %v22_v25  ;;  %v292_v59 = vsel %vm12_vm0, %v223_v46, 0.0  ;;  %v35_v38 = vld [vmem:[%s768_s0 + $0xa8] sm:$0xff] }
   0xb   :  { %v90_v20 = vadd.f32 %v89_v15, %v88_v17  ;;  %v287_v50 = vadd.f32 %v286_v41, %v285_v44  ;;  %v107_v63 = vsel %vm12_vm0, %v28_v60, 0.0  ;;  %v226_v0 = vmul.f32 %v23_v29, %v23_v29  ;;  %v36_v44 = vld [vmem:[%s768_s0 + $0xb0] sm:$0xff] }
   0xc   :  { %v294_v1 = vsel %vm12_vm0, %v224_v52, 0.0  ;;  %v109_v5 = vsel %vm12_vm0, %v29_v2, 0.0  ;;  %v227_v6 = vmul.f32 %v24_v36, %v24_v36  ;;  %v296_v7 = vsel %vm12_vm0, %v225_v58, 0.0 }
   0xd   :  { %v92_v26 = vadd.f32 %v91_v18, %v90_v20  ;;  %v289_v56 = vadd.f32 %v288_v47, %v287_v50  ;;  %v111_v11 = vsel %vm12_vm0, %v30_v8, 0.0  ;;  %v228_v12 = vmul.f32 %v25_v42, %v25_v42  ;;  %v32_v20 = vld [vmem:[%s768_s0 + $0x90] sm:$0xff]  ;;  %v37_v50 = vld [vmem:[%s768_s0 + $0xb8] sm:$0xff] }
   0xe   :  { %v298_v13 = vsel %vm12_vm0, %v226_v0, 0.0  ;;  %v113_v17 = vsel %vm12_vm0, %v31_v14, 0.0  ;;  %v229_v18 = vmul.f32 %v26_v48, %v26_v48  ;;  %v300_v19 = vsel %vm12_vm0, %v227_v6, 0.0 }
   0xf   :  { %v94_v30 = vadd.f32 %v93_v22, %v92_v26  ;;  %v291_v62 = vadd.f32 %v290_v53, %v289_v56  ;;  %v115_v23 = vsel %vm12_vm0, %v32_v20, 0.0  ;;  %v230_v24 = vmul.f32 %v27_v54, %v27_v54  ;;  %v33_v26 = vld [vmem:[%s768_s0 + $0x98] sm:$0xff]  ;;  %v38_v56 = vld [vmem:[%s768_s0 + $0xc0] sm:$0xff] }
  0x10   :  { %v302_v25 = vsel %vm12_vm0, %v228_v12, 0.0  ;;  %v117_v29 = vsel %vm12_vm0, %v33_v26, 0.0  ;;  %v304_v31 = vsel %vm12_vm0, %v229_v18, 0.0  ;;  %v232_v36 = vmul.f32 %v29_v2, %v29_v2 }
  0x11   :  { %v96_v37 = vadd.f32 %v95_v27, %v94_v30  ;;  %v293_v4 = vadd.f32 %v292_v59, %v291_v62  ;;  %v231_v30 = vmul.f32 %v28_v60, %v28_v60  ;;  %v121_v41 = vsel %vm12_vm0, %v35_v38, 0.0  ;;  %v39_v62 = vld [vmem:[%s768_s0 + $0xc8] sm:$0xff] }
  0x12   :  { %v233_v42 = vmul.f32 %v30_v8, %v30_v8  ;;  %v123_v47 = vsel %vm12_vm0, %v36_v44, 0.0  ;;  %v234_v48 = vmul.f32 %v31_v14, %v31_v14  ;;  %v125_v53 = vsel %vm12_vm0, %v37_v50, 0.0 }
  0x13   :  { %v98_v43 = vadd.f32 %v97_v32, %v96_v37  ;;  %v295_v10 = vadd.f32 %v294_v1, %v293_v4  ;;  %v34_v32 = vld [vmem:[%s768_s0 + $0xa0] sm:$0xff]  ;;  %v306_v37 = vsel %vm12_vm0, %v230_v24, 0.0  ;;  %v235_v54 = vmul.f32 %v32_v20, %v32_v20  ;;  %v40_v4 = vld [vmem:[%s768_s0 + $0xd0] sm:$0xff] }
  0x14   :  { %v119_v35 = vsel %vm12_vm0, %v34_v32, 0.0  ;;  %v127_v59 = vsel %vm12_vm0, %v38_v56, 0.0  ;;  %v236_v60 = vmul.f32 %v33_v26, %v33_v26  ;;  %v129_v1 = vsel %vm12_vm0, %v39_v62, 0.0 }
  0x15   :  { %v100_v49 = vadd.f32 %v99_v39, %v98_v43  ;;  %v297_v16 = vadd.f32 %v296_v7, %v295_v10  ;;  %v308_v43 = vsel %vm12_vm0, %v231_v30, 0.0  ;;  %v237_v2 = vmul.f32 %v34_v32, %v34_v32  ;;  %v41_v10 = vld [vmem:[%s768_s0 + $0xd8] sm:$0xff] }
  0x16   :  { %v131_v7 = vsel %vm12_vm0, %v40_v4, 0.0  ;;  %v238_v8 = vmul.f32 %v35_v38, %v35_v38  ;;  %v239_v14 = vmul.f32 %v36_v44, %v36_v44  ;;  %v240_v20 = vmul.f32 %v37_v50, %v37_v50 }
  0x17   :  { %v102_v55 = vadd.f32 %v101_v45, %v100_v49  ;;  %v299_v22 = vadd.f32 %v298_v13, %v297_v16  ;;  %v310_v49 = vsel %vm12_vm0, %v232_v36, 0.0  ;;  %v133_v13 = vsel %vm12_vm0, %v41_v10, 0.0  ;;  %v42_v16 = vld [vmem:[%s768_s0 + $0xe0] sm:$0xff] }
  0x18   :  { %v241_v26 = vmul.f32 %v38_v56, %v38_v56  ;;  %v242_v32 = vmul.f32 %v39_v62, %v39_v62  ;;  %v243_v38 = vmul.f32 %v40_v4, %v40_v4  ;;  %v244_v44 = vmul.f32 %v41_v10, %v41_v10 }
  0x19   :  { %v104_v61 = vadd.f32 %v103_v51, %v102_v55  ;;  %v301_v28 = vadd.f32 %v300_v19, %v299_v22  ;;  %v312_v55 = vsel %vm12_vm0, %v233_v42, 0.0  ;;  %v135_v19 = vsel %vm12_vm0, %v42_v16, 0.0  ;;  %v43_v22 = vld [vmem:[%s768_s0 + $0xe8] sm:$0xff] }
  0x1a   :  { %v245_v50 = vmul.f32 %v42_v16, %v42_v16  ;;  %v246_v56 = vmul.f32 %v43_v22, %v43_v22 }
  0x1b   :  { %v106_v3 = vadd.f32 %v105_v57, %v104_v61  ;;  %v303_v34 = vadd.f32 %v302_v25, %v301_v28  ;;  %v314_v61 = vsel %vm12_vm0, %v234_v48, 0.0  ;;  %v137_v25 = vsel %vm12_vm0, %v43_v22, 0.0  ;;  %v44_v28 = vld [vmem:[%s768_s0 + $0xf0] sm:$0xff] }
  0x1c   :  { %v247_v62 = vmul.f32 %v44_v28, %v44_v28 }
  0x1d   :  { %v108_v9 = vadd.f32 %v107_v63, %v106_v3  ;;  %v305_v40 = vadd.f32 %v304_v31, %v303_v34  ;;  %v316_v3 = vsel %vm12_vm0, %v235_v54, 0.0  ;;  %v139_v31 = vsel %vm12_vm0, %v44_v28, 0.0  ;;  %v45_v34 = vld [vmem:[%s768_s0 + $0xf8] sm:$0xff] }
  0x1e   :  { %v248_v4 = vmul.f32 %v45_v34, %v45_v34 }
  0x1f   :  { %v110_v15 = vadd.f32 %v109_v5, %v108_v9  ;;  %v307_v46 = vadd.f32 %v306_v37, %v305_v40  ;;  %v318_v9 = vsel %vm12_vm0, %v236_v60, 0.0  ;;  %v141_v37 = vsel %vm12_vm0, %v45_v34, 0.0  ;;  %v46_v40 = vld [vmem:[%s768_s0 + $0x100] sm:$0xff] }
  0x20   :  { %v249_v10 = vmul.f32 %v46_v40, %v46_v40 }
  0x21   :  { %v112_v21 = vadd.f32 %v111_v11, %v110_v15  ;;  %v309_v52 = vadd.f32 %v308_v43, %v307_v46  ;;  %v320_v15 = vsel %vm12_vm0, %v237_v2, 0.0  ;;  %v143_v43 = vsel %vm12_vm0, %v46_v40, 0.0  ;;  %v47_v46 = vld [vmem:[%s768_s0 + $0x108] sm:$0xff] }
  0x22   :  { %v250_v16 = vmul.f32 %v47_v46, %v47_v46 }
  0x23   :  { %v114_v27 = vadd.f32 %v113_v17, %v112_v21  ;;  %v311_v58 = vadd.f32 %v310_v49, %v309_v52  ;;  %v322_v21 = vsel %vm12_vm0, %v238_v8, 0.0  ;;  %v145_v49 = vsel %vm12_vm0, %v47_v46, 0.0  ;;  %v48_v52 = vld [vmem:[%s768_s0 + $0x110] sm:$0xff] }
  0x24   :  { %v251_v22 = vmul.f32 %v48_v52, %v48_v52 }
  0x25   :  { %v116_v33 = vadd.f32 %v115_v23, %v114_v27  ;;  %v313_v0 = vadd.f32 %v312_v55, %v311_v58  ;;  %v324_v27 = vsel %vm12_vm0, %v239_v14, 0.0  ;;  %v147_v55 = vsel %vm12_vm0, %v48_v52, 0.0  ;;  %v49_v58 = vld [vmem:[%s768_s0 + $0x118] sm:$0xff] }
  0x26   :  { %v252_v28 = vmul.f32 %v49_v58, %v49_v58 }
  0x27   :  { %v118_v39 = vadd.f32 %v117_v29, %v116_v33  ;;  %v315_v6 = vadd.f32 %v314_v61, %v313_v0  ;;  %v326_v33 = vsel %vm12_vm0, %v240_v20, 0.0  ;;  %v149_v61 = vsel %vm12_vm0, %v49_v58, 0.0  ;;  %v50_v0 = vld [vmem:[%s768_s0 + $0x120] sm:$0xff] }
  0x28   :  { %v253_v34 = vmul.f32 %v50_v0, %v50_v0 }
  0x29   :  { %v120_v45 = vadd.f32 %v119_v35, %v118_v39  ;;  %v317_v12 = vadd.f32 %v316_v3, %v315_v6  ;;  %v328_v39 = vsel %vm12_vm0, %v241_v26, 0.0  ;;  %v151_v3 = vsel %vm12_vm0, %v50_v0, 0.0  ;;  %v51_v6 = vld [vmem:[%s768_s0 + $0x128] sm:$0xff] }
  0x2a   :  { %v254_v40 = vmul.f32 %v51_v6, %v51_v6 }
  0x2b   :  { %v122_v51 = vadd.f32 %v121_v41, %v120_v45  ;;  %v319_v18 = vadd.f32 %v318_v9, %v317_v12  ;;  %v330_v45 = vsel %vm12_vm0, %v242_v32, 0.0  ;;  %v153_v9 = vsel %vm12_vm0, %v51_v6, 0.0  ;;  %v52_v12 = vld [vmem:[%s768_s0 + $0x130] sm:$0xff] }
  0x2c   :  { %v255_v46 = vmul.f32 %v52_v12, %v52_v12 }
  0x2d   :  { %v124_v57 = vadd.f32 %v123_v47, %v122_v51  ;;  %v321_v24 = vadd.f32 %v320_v15, %v319_v18  ;;  %v332_v51 = vsel %vm12_vm0, %v243_v38, 0.0  ;;  %v155_v15 = vsel %vm12_vm0, %v52_v12, 0.0  ;;  %v53_v18 = vld [vmem:[%s768_s0 + $0x138] sm:$0xff] }
  0x2e   :  { %v256_v52 = vmul.f32 %v53_v18, %v53_v18 }
  0x2f   :  { %v126_v63 = vadd.f32 %v125_v53, %v124_v57  ;;  %v323_v30 = vadd.f32 %v322_v21, %v321_v24  ;;  %v334_v57 = vsel %vm12_vm0, %v244_v44, 0.0  ;;  %v157_v21 = vsel %vm12_vm0, %v53_v18, 0.0  ;;  %v54_v24 = vld [vmem:[%s768_s0 + $0x140] sm:$0xff] }
  0x30   :  { %v257_v58 = vmul.f32 %v54_v24, %v54_v24 }
  0x31   :  { %v128_v5 = vadd.f32 %v127_v59, %v126_v63  ;;  %v325_v36 = vadd.f32 %v324_v27, %v323_v30  ;;  %v336_v63 = vsel %vm12_vm0, %v245_v50, 0.0  ;;  %v159_v27 = vsel %vm12_vm0, %v54_v24, 0.0  ;;  %v55_v30 = vld [vmem:[%s768_s0 + $0x148] sm:$0xff] }
  0x32   :  { %v258_v0 = vmul.f32 %v55_v30, %v55_v30 }
  0x33   :  { %v130_v11 = vadd.f32 %v129_v1, %v128_v5  ;;  %v327_v42 = vadd.f32 %v326_v33, %v325_v36  ;;  %v338_v5 = vsel %vm12_vm0, %v246_v56, 0.0  ;;  %v161_v33 = vsel %vm12_vm0, %v55_v30, 0.0  ;;  %v56_v36 = vld [vmem:[%s768_s0 + $0x150] sm:$0xff] }
  0x34   :  { %v259_v6 = vmul.f32 %v56_v36, %v56_v36 }
  0x35   :  { %v132_v17 = vadd.f32 %v131_v7, %v130_v11  ;;  %v329_v48 = vadd.f32 %v328_v39, %v327_v42  ;;  %v340_v11 = vsel %vm12_vm0, %v247_v62, 0.0  ;;  %v163_v39 = vsel %vm12_vm0, %v56_v36, 0.0  ;;  %v57_v42 = vld [vmem:[%s768_s0 + $0x158] sm:$0xff] }
  0x36   :  { %v260_v12 = vmul.f32 %v57_v42, %v57_v42 }
  0x37   :  { %v134_v23 = vadd.f32 %v133_v13, %v132_v17  ;;  %v331_v54 = vadd.f32 %v330_v45, %v329_v48  ;;  %v342_v17 = vsel %vm12_vm0, %v248_v4, 0.0  ;;  %v165_v45 = vsel %vm12_vm0, %v57_v42, 0.0  ;;  %v58_v48 = vld [vmem:[%s768_s0 + $0x160] sm:$0xff] }
  0x38   :  { %v261_v18 = vmul.f32 %v58_v48, %v58_v48 }
  0x39   :  { %v136_v29 = vadd.f32 %v135_v19, %v134_v23  ;;  %v333_v60 = vadd.f32 %v332_v51, %v331_v54  ;;  %v344_v23 = vsel %vm12_vm0, %v249_v10, 0.0  ;;  %v167_v51 = vsel %vm12_vm0, %v58_v48, 0.0  ;;  %v59_v54 = vld [vmem:[%s768_s0 + $0x168] sm:$0xff] }
  0x3a   :  { %v262_v24 = vmul.f32 %v59_v54, %v59_v54 }
  0x3b   :  { %v138_v35 = vadd.f32 %v137_v25, %v136_v29  ;;  %v335_v2 = vadd.f32 %v334_v57, %v333_v60  ;;  %v346_v29 = vsel %vm12_vm0, %v250_v16, 0.0  ;;  %v169_v57 = vsel %vm12_vm0, %v59_v54, 0.0  ;;  %v60_v60 = vld [vmem:[%s768_s0 + $0x170] sm:$0xff] }
  0x3c   :  { %v263_v30 = vmul.f32 %v60_v60, %v60_v60 }
  0x3d   :  { %v140_v41 = vadd.f32 %v139_v31, %v138_v35  ;;  %v337_v8 = vadd.f32 %v336_v63, %v335_v2  ;;  %v348_v35 = vsel %vm12_vm0, %v251_v22, 0.0  ;;  %v171_v63 = vsel %vm12_vm0, %v60_v60, 0.0  ;;  %v61_v2 = vld [vmem:[%s768_s0 + $0x178] sm:$0xff] }
  0x3e   :  { %v264_v36 = vmul.f32 %v61_v2, %v61_v2 }
  0x3f   :  { %v142_v47 = vadd.f32 %v141_v37, %v140_v41  ;;  %v339_v14 = vadd.f32 %v338_v5, %v337_v8  ;;  %v350_v41 = vsel %vm12_vm0, %v252_v28, 0.0  ;;  %v173_v5 = vsel %vm12_vm0, %v61_v2, 0.0  ;;  %v62_v8 = vld [vmem:[%s768_s0 + $0x180] sm:$0xff] }
  0x40   :  { %v265_v42 = vmul.f32 %v62_v8, %v62_v8 }
  0x41   :  { %v144_v53 = vadd.f32 %v143_v43, %v142_v47  ;;  %v341_v20 = vadd.f32 %v340_v11, %v339_v14  ;;  %v352_v47 = vsel %vm12_vm0, %v253_v34, 0.0  ;;  %v175_v11 = vsel %vm12_vm0, %v62_v8, 0.0  ;;  %v63_v14 = vld [vmem:[%s768_s0 + $0x188] sm:$0xff] }
  0x42   :  { %v266_v48 = vmul.f32 %v63_v14, %v63_v14 }
  0x43   :  { %v146_v59 = vadd.f32 %v145_v49, %v144_v53  ;;  %v343_v26 = vadd.f32 %v342_v17, %v341_v20  ;;  %v354_v53 = vsel %vm12_vm0, %v254_v40, 0.0  ;;  %v177_v17 = vsel %vm12_vm0, %v63_v14, 0.0  ;;  %v64_v20 = vld [vmem:[%s768_s0 + $0x190] sm:$0xff] }
  0x44   :  { %v267_v54 = vmul.f32 %v64_v20, %v64_v20 }
  0x45   :  { %v148_v1 = vadd.f32 %v147_v55, %v146_v59  ;;  %v345_v32 = vadd.f32 %v344_v23, %v343_v26  ;;  %v356_v59 = vsel %vm12_vm0, %v255_v46, 0.0  ;;  %v179_v23 = vsel %vm12_vm0, %v64_v20, 0.0  ;;  %v65_v26 = vld [vmem:[%s768_s0 + $0x198] sm:$0xff] }
  0x46   :  { %v268_v60 = vmul.f32 %v65_v26, %v65_v26 }
  0x47   :  { %v150_v7 = vadd.f32 %v149_v61, %v148_v1  ;;  %v347_v38 = vadd.f32 %v346_v29, %v345_v32  ;;  %v358_v1 = vsel %vm12_vm0, %v256_v52, 0.0  ;;  %v181_v29 = vsel %vm12_vm0, %v65_v26, 0.0  ;;  %v66_v32 = vld [vmem:[%s768_s0 + $0x1a0] sm:$0xff] }
  0x48   :  { %v269_v2 = vmul.f32 %v66_v32, %v66_v32 }
  0x49   :  { %v152_v13 = vadd.f32 %v151_v3, %v150_v7  ;;  %v349_v44 = vadd.f32 %v348_v35, %v347_v38  ;;  %v360_v7 = vsel %vm12_vm0, %v257_v58, 0.0  ;;  %v183_v35 = vsel %vm12_vm0, %v66_v32, 0.0  ;;  %v67_v38 = vld [vmem:[%s768_s0 + $0x1a8] sm:$0xff] }
  0x4a   :  { %v270_v8 = vmul.f32 %v67_v38, %v67_v38 }
  0x4b   :  { %v154_v19 = vadd.f32 %v153_v9, %v152_v13  ;;  %v351_v50 = vadd.f32 %v350_v41, %v349_v44  ;;  %v362_v13 = vsel %vm12_vm0, %v258_v0, 0.0  ;;  %v185_v41 = vsel %vm12_vm0, %v67_v38, 0.0  ;;  %v68_v44 = vld [vmem:[%s768_s0 + $0x1b0] sm:$0xff] }
  0x4c   :  { %v271_v14 = vmul.f32 %v68_v44, %v68_v44 }
  0x4d   :  { %v156_v25 = vadd.f32 %v155_v15, %v154_v19  ;;  %v353_v56 = vadd.f32 %v352_v47, %v351_v50  ;;  %v364_v19 = vsel %vm12_vm0, %v259_v6, 0.0  ;;  %v187_v47 = vsel %vm12_vm0, %v68_v44, 0.0  ;;  %v69_v50 = vld [vmem:[%s768_s0 + $0x1b8] sm:$0xff] }
  0x4e   :  { %v272_v20 = vmul.f32 %v69_v50, %v69_v50 }
  0x4f   :  { %v158_v31 = vadd.f32 %v157_v21, %v156_v25  ;;  %v355_v62 = vadd.f32 %v354_v53, %v353_v56  ;;  %v366_v25 = vsel %vm12_vm0, %v260_v12, 0.0  ;;  %v189_v53 = vsel %vm12_vm0, %v69_v50, 0.0  ;;  %v70_v56 = vld [vmem:[%s768_s0 + $0x1c0] sm:$0xff] }
  0x50   :  { %v273_v26 = vmul.f32 %v70_v56, %v70_v56 }
  0x51   :  { %v160_v37 = vadd.f32 %v159_v27, %v158_v31  ;;  %v357_v4 = vadd.f32 %v356_v59, %v355_v62  ;;  %v368_v31 = vsel %vm12_vm0, %v261_v18, 0.0  ;;  %v191_v59 = vsel %vm12_vm0, %v70_v56, 0.0  ;;  %v71_v62 = vld [vmem:[%s768_s0 + $0x1c8] sm:$0xff] }
  0x52   :  { %v274_v32 = vmul.f32 %v71_v62, %v71_v62 }
  0x53   :  { %v162_v43 = vadd.f32 %v161_v33, %v160_v37  ;;  %v359_v10 = vadd.f32 %v358_v1, %v357_v4  ;;  %v370_v37 = vsel %vm12_vm0, %v262_v24, 0.0  ;;  %v193_v1 = vsel %vm12_vm0, %v71_v62, 0.0  ;;  %v72_v4 = vld [vmem:[%s768_s0 + $0x1d0] sm:$0xff] }
  0x54   :  { %v275_v38 = vmul.f32 %v72_v4, %v72_v4 }
  0x55   :  { %v164_v49 = vadd.f32 %v163_v39, %v162_v43  ;;  %v361_v16 = vadd.f32 %v360_v7, %v359_v10  ;;  %v372_v43 = vsel %vm12_vm0, %v263_v30, 0.0  ;;  %v195_v7 = vsel %vm12_vm0, %v72_v4, 0.0  ;;  %v73_v10 = vld [vmem:[%s768_s0 + $0x1d8] sm:$0xff] }
  0x57   :  { %v166_v55 = vadd.f32 %v165_v45, %v164_v49  ;;  %v363_v22 = vadd.f32 %v362_v13, %v361_v16  ;;  %v374_v49 = vsel %vm12_vm0, %v264_v36, 0.0  ;;  %v197_v13 = vsel %vm12_vm0, %v73_v10, 0.0  ;;  %v74_v16 = vld [vmem:[%s768_s0 + $0x1e0] sm:$0xff] }
  0x59   :  { %v168_v61 = vadd.f32 %v167_v51, %v166_v55  ;;  %v365_v28 = vadd.f32 %v364_v19, %v363_v22  ;;  %v376_v55 = vsel %vm12_vm0, %v265_v42, 0.0  ;;  %v199_v19 = vsel %vm12_vm0, %v74_v16, 0.0  ;;  %v75_v22 = vld [vmem:[%s768_s0 + $0x1e8] sm:$0xff] }
  0x5a   :  { %v276_v42 = vmul.f32 %v73_v10, %v73_v10  ;;  %v278_v50 = vmul.f32 %v75_v22, %v75_v22 }
  0x5b   :  { %v170_v3 = vadd.f32 %v169_v57, %v168_v61  ;;  %v367_v34 = vadd.f32 %v366_v25, %v365_v28  ;;  %v378_v61 = vsel %vm12_vm0, %v266_v48, 0.0  ;;  %v201_v25 = vsel %vm12_vm0, %v75_v22, 0.0  ;;  %v76_v28 = vld [vmem:[%s768_s0 + $0x1f0] sm:$0xff] }
  0x5d   :  { %v172_v9 = vadd.f32 %v171_v63, %v170_v3  ;;  %v369_v40 = vadd.f32 %v368_v31, %v367_v34  ;;  %v380_v3 = vsel %vm12_vm0, %v267_v54, 0.0  ;;  %v203_v31 = vsel %vm12_vm0, %v76_v28, 0.0  ;;  %v77_v34 = vld [vmem:[%s768_s0 + $0x1f8] sm:$0xff] }
  0x5e   :  { %v279_v54 = vmul.f32 %v76_v28, %v76_v28 }
  0x5f   :  { %v174_v15 = vadd.f32 %v173_v5, %v172_v9  ;;  %v371_v46 = vadd.f32 %v370_v37, %v369_v40  ;;  %v382_v9 = vsel %vm12_vm0, %v268_v60, 0.0  ;;  %v205_v37 = vsel %vm12_vm0, %v77_v34, 0.0 }
  0x60   :  { %v404_v62 = vsel %vm12_vm0, %v279_v54, 0.0 }
  0x61   :  { %v176_v21 = vadd.f32 %v175_v11, %v174_v15  ;;  %v373_v52 = vadd.f32 %v372_v43, %v371_v46  ;;  %v384_v15 = vsel %vm12_vm0, %v269_v2, 0.0  ;;  %v394_v43 = vsel %vm12_vm0, %v274_v32, 0.0 }
  0x62   :  { %v277_v46 = vmul.f32 %v74_v16, %v74_v16 }
  0x63   :  { %v178_v27 = vadd.f32 %v177_v17, %v176_v21  ;;  %v375_v58 = vadd.f32 %v374_v49, %v373_v52  ;;  %v386_v21 = vsel %vm12_vm0, %v270_v8, 0.0 }
  0x65   :  { %v180_v33 = vadd.f32 %v179_v23, %v178_v27  ;;  %v377_v0 = vadd.f32 %v376_v55, %v375_v58  ;;  %v388_v27 = vsel %vm12_vm0, %v271_v14, 0.0  ;;  %v400_v55 = vsel %vm12_vm0, %v277_v46, 0.0 }
  0x66   :  { %v280_v58 = vmul.f32 %v77_v34, %v77_v34 }
  0x67   :  { %v182_v39 = vadd.f32 %v181_v29, %v180_v33  ;;  %v379_v6 = vadd.f32 %v378_v61, %v377_v0  ;;  %v390_v33 = vsel %vm12_vm0, %v272_v20, 0.0 }
  0x68   :  { %v406_v2 = vsel %vm12_vm0, %v280_v58, 0.0 }
  0x69   :  { %v184_v45 = vadd.f32 %v183_v35, %v182_v39  ;;  %v381_v12 = vadd.f32 %v380_v3, %v379_v6  ;;  %v392_v39 = vsel %vm12_vm0, %v273_v26, 0.0 }
  0x6b   :  { %v186_v51 = vadd.f32 %v185_v41, %v184_v45  ;;  %v383_v18 = vadd.f32 %v382_v9, %v381_v12  ;;  %v216_v12 = vld [vmem:[%s769_s1 + $0x1] sm:$0x1] }
  0x6d   :  { %v188_v57 = vadd.f32 %v187_v47, %v186_v51  ;;  %v385_v24 = vadd.f32 %v384_v15, %v383_v18  ;;  %v396_v47 = vsel %vm12_vm0, %v275_v38, 0.0  ;;  %v398_v51 = vsel %vm12_vm0, %v276_v42, 0.0 }
  0x6f   :  { %v190_v63 = vadd.f32 %v189_v53, %v188_v57  ;;  %v387_v30 = vadd.f32 %v386_v21, %v385_v24 }
  0x71   :  { %v192_v5 = vadd.f32 %v191_v59, %v190_v63  ;;  %v389_v36 = vadd.f32 %v388_v27, %v387_v30  ;;  %v402_v59 = vsel %vm12_vm0, %v278_v50, 0.0 }
  0x73   :  { %v194_v11 = vadd.f32 %v193_v1, %v192_v5  ;;  %v391_v41 = vadd.f32 %v390_v33, %v389_v36  ;;  %v78_v1 = vld [vmem:[%s769_s1] sm:$0x1] }
  0x75   :  { %v196_v17 = vadd.f32 %v195_v7, %v194_v11  ;;  %v393_v45 = vadd.f32 %v392_v39, %v391_v41 }
  0x77   :  { %v198_v23 = vadd.f32 %v197_v13, %v196_v17  ;;  %v395_v49 = vadd.f32 %v394_v43, %v393_v45 }
  0x79   :  { %v200_v29 = vadd.f32 %v199_v19, %v198_v23  ;;  %v397_v53 = vadd.f32 %v396_v47, %v395_v49 }
  0x7b   :  { %v202_v35 = vadd.f32 %v201_v25, %v200_v29  ;;  %v399_v57 = vadd.f32 %v398_v51, %v397_v53 }
  0x7d   :  { %v204_v40 = vadd.f32 %v203_v31, %v202_v35  ;;  %v401_v61 = vadd.f32 %v400_v55, %v399_v57 }
  0x7f   :  { %v206_v44 = vadd.f32 %v205_v37, %v204_v40  ;;  %v403_v0 = vadd.f32 %v402_v59, %v401_v61 }
  0x81   :  { %v207_v48 = vrot.slane %v206_v44, 4  ;;  %v405_v4 = vadd.f32 %v404_v62, %v403_v0 }
  0x83   :  { %v208_v52 = vadd.f32 %v207_v48, %v206_v44  ;;  %v407_v6 = vadd.f32 %v406_v2, %v405_v4 }
  0x85   :  { %v209_v56 = vrot.slane %v208_v52, 2  ;;  %v408_v7 = vrot.slane %v407_v6, 4 }
  0x87   :  { %v210_v60 = vadd.f32 %v209_v56, %v208_v52  ;;  %v409_v8 = vadd.f32 %v408_v7, %v407_v6 }
  0x89   :  { %v211_v63 = vrot.slane %v210_v60, 1  ;;  %v410_v9 = vrot.slane %v409_v8, 2 }
  0x8b   :  { %v212_v3 = vadd.f32 %v211_v63, %v210_v60  ;;  %v411_v10 = vadd.f32 %v410_v9, %v409_v8 }
  0x8d   :  { %v213_v5 = vadd.f32 %v212_v3, %v78_v1  ;;  %v412_v11 = vrot.slane %v411_v10, 1 }
  0x8f   :  { %215 = vst.msk [vmem:[%s769_s1] sm:$0x1] %vm214_vm1, %v213_v5  ;;  %v413_v13 = vadd.f32 %v412_v11, %v411_v10 }
  0x91   :  { %v414_v14 = vadd.f32 %v413_v13, %v216_v12 }
  0x93   :  { %415 = vst.msk [vmem:[%s769_s1 + $0x1] sm:$0x1] %vm214_vm1, %v414_v14 }

// kernel: espnet_encoder.42
= control target key start
LH: loop header
LB: loop body
LE: loop exit
PB: predicated region body
PF: predicated region fallthrough
CT: control target
= control target key end

     0   :  { %vm413_vm0 = vcmask 130048   ;;  %s1167_s0 = inlined_call_operand.vmem [shape: f32[512,16], index: 0, kind: input, shape index: {}]   ;;  %s1168_s1 = inlined_call_operand.vmem [shape: f32[1,16], index: 1, kind: input, shape index: {}]   ;;  %s1169_s2 = inlined_call_operand.vmem [shape: f32[1,16], index: 2, kind: input, shape index: {}]   ;;  %s1170_s3 = inlined_call_operand.vmem [shape: f32[1,16], index: 3, kind: input, shape index: {}]   ;;  %s1171_s4 = inlined_call_operand.vmem [shape: f32[512,16], index: 4, kind: output, shape index: {}]  }
   0x1   :  { %v17_v0 = vld [vmem:[%s1167_s0] sm:$0xff]  ;;  %v18_v5 = vld [vmem:[%s1167_s0 + $0x8] sm:$0xff]  ;;  %v19_v6 = vld [vmem:[%s1167_s0 + $0x10] sm:$0xff] }
   0x2   :  { %v516_v1 = vld [vmem:[%s1168_s1] ss:$0 sm:$0xff]  ;;  %v20_v9 = vld [vmem:[%s1167_s0 + $0x18] sm:$0xff]  ;;  %v22_v11 = vld [vmem:[%s1167_s0 + $0x28] sm:$0xff] }
   0x3   :  { %v521_v2 = vld [vmem:[%s1169_s2] ss:$0 sm:$0xff]  ;;  %v85_v3 = vmul.f32 %v516_v1, %v17_v0  ;;  %v86_v7 = vmul.f32 %v516_v1, %v18_v5  ;;  %v87_v8 = vmul.f32 %v516_v1, %v19_v6  ;;  %v88_v13 = vmul.f32 %v516_v1, %v20_v9  ;;  %v23_v16 = vld [vmem:[%s1167_s0 + $0x30] sm:$0xff]  ;;  %v24_v17 = vld [vmem:[%s1167_s0 + $0x38] sm:$0xff] }
   0x4   :  { %v527_v4 = vld [vmem:[%s1170_s3] ss:$0 sm:$0xff]  ;;  %v90_v15 = vmul.f32 %v516_v1, %v22_v11  ;;  %v91_v20 = vmul.f32 %v516_v1, %v23_v16  ;;  %v92_v21 = vmul.f32 %v516_v1, %v24_v17  ;;  %v26_v30 = vld [vmem:[%s1167_s0 + $0x48] sm:$0xff]  ;;  %v27_v39 = vld [vmem:[%s1167_s0 + $0x50] sm:$0xff] }
   0x5   :  { %v21_v10 = vld [vmem:[%s1167_s0 + $0x20] sm:$0xff]  ;;  %v153_v12 = vadd.f32 %v521_v2, %v85_v3  ;;  %v154_v18 = vadd.f32 %v521_v2, %v86_v7  ;;  %v155_v19 = vadd.f32 %v521_v2, %v87_v8  ;;  %v156_v23 = vadd.f32 %v521_v2, %v88_v13  ;;  %v28_v43 = vld [vmem:[%s1167_s0 + $0x58] sm:$0xff]  ;;  %v30_v51 = vld [vmem:[%s1167_s0 + $0x68] sm:$0xff] }
   0x6   :  { %v89_v14 = vmul.f32 %v516_v1, %v21_v10  ;;  %v25_v27 = vld [vmem:[%s1167_s0 + $0x40] sm:$0xff]  ;;  %v158_v34 = vadd.f32 %v521_v2, %v90_v15  ;;  %v159_v36 = vadd.f32 %v521_v2, %v91_v20  ;;  %v160_v37 = vadd.f32 %v521_v2, %v92_v21  ;;  %v31_v56 = vld [vmem:[%s1167_s0 + $0x70] sm:$0xff]  ;;  %v32_v57 = vld [vmem:[%s1167_s0 + $0x78] sm:$0xff] }
   0x7   :  { %vm217_vm1 = vcmp.ge.f32.partialorder %v153_v12, 0.0  ;;  %v285_v22 = vmul.f32 %v527_v4, %v153_v12  ;;  %vm218_vm2 = vcmp.ge.f32.partialorder %v154_v18, 0.0  ;;  %v286_v25 = vmul.f32 %v527_v4, %v154_v18  ;;  %v29_v44 = vld [vmem:[%s1167_s0 + $0x60] sm:$0xff]  ;;  %v34_v17 = vld [vmem:[%s1167_s0 + $0x88] sm:$0xff] }
   0x8   :  { %v157_v24 = vadd.f32 %v521_v2, %v89_v14  ;;  %vm219_vm3 = vcmp.ge.f32.partialorder %v155_v19, 0.0  ;;  %v287_v26 = vmul.f32 %v527_v4, %v155_v19  ;;  %vm220_vm4 = vcmp.ge.f32.partialorder %v156_v23, 0.0  ;;  %v33_v7 = vld [vmem:[%s1167_s0 + $0x80] sm:$0xff] }
   0x9   :  { %v349_v28 = vsel %vm217_vm1, %v153_v12, %v285_v22  ;;  %v288_v29 = vmul.f32 %v527_v4, %v156_v23  ;;  %v350_v31 = vsel %vm218_vm2, %v154_v18, %v286_v25  ;;  %v93_v38 = vmul.f32 %v516_v1, %v25_v27  ;;  %v35_v18 = vld [vmem:[%s1167_s0 + $0x90] sm:$0xff]  ;;  %v37_v25 = vld [vmem:[%s1167_s0 + $0xa0] sm:$0xff] }
   0xa   :  { %vm221_vm5 = vcmp.ge.f32.partialorder %v157_v24, 0.0  ;;  %414 = vst.msk [vmem:[%s1171_s4] sm:$0xff] %vm413_vm0, %v349_v28  ;;  %v351_v32 = vsel %vm219_vm3, %v155_v19, %v287_v26  ;;  %v289_v33 = vmul.f32 %v527_v4, %v157_v24  ;;  %vm222_vm6 = vcmp.ge.f32.partialorder %v158_v34, 0.0  ;;  %v36_v19 = vld [vmem:[%s1167_s0 + $0x98] sm:$0xff] }
   0xb   :  { %415 = vst.msk [vmem:[%s1171_s4 + $0x8] sm:$0xff] %vm413_vm0, %v350_v31  ;;  %v352_v35 = vsel %vm220_vm4, %v156_v23, %v288_v29  ;;  %v290_v41 = vmul.f32 %v527_v4, %v158_v34  ;;  %v94_v42 = vmul.f32 %v516_v1, %v26_v30  ;;  %vm223_vm7 = vcmp.ge.f32.partialorder %v159_v36, 0.0  ;;  %v38_v30 = vld [vmem:[%s1167_s0 + $0xa8] sm:$0xff]  ;;  %v39_v31 = vld [vmem:[%s1167_s0 + $0xb0] sm:$0xff] }
   0xc   :  { %416 = vst.msk [vmem:[%s1171_s4 + $0x10] sm:$0xff] %vm413_vm0, %v351_v32  ;;  %v353_v40 = vsel %vm221_vm5, %v157_v24, %v289_v33  ;;  %v291_v45 = vmul.f32 %v527_v4, %v159_v36  ;;  %vm224_vm8 = vcmp.ge.f32.partialorder %v160_v37, 0.0  ;;  %v292_v46 = vmul.f32 %v527_v4, %v160_v37  ;;  %v40_v32 = vld [vmem:[%s1167_s0 + $0xb8] sm:$0xff] }
   0xd   :  { %417 = vst.msk [vmem:[%s1171_s4 + $0x18] sm:$0xff] %vm413_vm0, %v352_v35  ;;  %v354_v47 = vsel %vm222_vm6, %v158_v34, %v290_v41  ;;  %v161_v48 = vadd.f32 %v521_v2, %v93_v38  ;;  %v162_v49 = vadd.f32 %v521_v2, %v94_v42  ;;  %v95_v50 = vmul.f32 %v516_v1, %v27_v39 }
   0xe   :  { %418 = vst.msk [vmem:[%s1171_s4 + $0x20] sm:$0xff] %vm413_vm0, %v353_v40  ;;  %v355_v52 = vsel %vm223_vm7, %v159_v36, %v291_v45  ;;  %v356_v53 = vsel %vm224_vm8, %v160_v37, %v292_v46  ;;  %v96_v54 = vmul.f32 %v516_v1, %v28_v43  ;;  %v97_v55 = vmul.f32 %v516_v1, %v29_v44 }
   0xf   :  { %419 = vst.msk [vmem:[%s1171_s4 + $0x28] sm:$0xff] %vm413_vm0, %v354_v47  ;;  %vm225_vm9 = vcmp.ge.f32.partialorder %v161_v48, 0.0  ;;  %v293_v58 = vmul.f32 %v527_v4, %v161_v48  ;;  %vm226_vm10 = vcmp.ge.f32.partialorder %v162_v49, 0.0  ;;  %v294_v59 = vmul.f32 %v527_v4, %v162_v49 }
  0x10   :  { %420 = vst.msk [vmem:[%s1171_s4 + $0x30] sm:$0xff] %vm413_vm0, %v355_v52  ;;  %v163_v60 = vadd.f32 %v521_v2, %v95_v50  ;;  %v164_v61 = vadd.f32 %v521_v2, %v96_v54  ;;  %v165_v62 = vadd.f32 %v521_v2, %v97_v55  ;;  %v98_v63 = vmul.f32 %v516_v1, %v30_v51  ;;  %v42_v54 = vld [vmem:[%s1167_s0 + $0xc8] sm:$0xff] }
  0x11   :  { %421 = vst.msk [vmem:[%s1171_s4 + $0x38] sm:$0xff] %vm413_vm0, %v356_v53  ;;  %v357_v0 = vsel %vm225_vm9, %v161_v48, %v293_v58  ;;  %v358_v3 = vsel %vm226_vm10, %v162_v49, %v294_v59  ;;  %v99_v5 = vmul.f32 %v516_v1, %v31_v56  ;;  %v100_v6 = vmul.f32 %v516_v1, %v32_v57  ;;  %v41_v53 = vld [vmem:[%s1167_s0 + $0xc0] sm:$0xff]  ;;  %v43_v57 = vld [vmem:[%s1167_s0 + $0xd0] sm:$0xff]  ;;  %v44_v58 = vld [vmem:[%s1167_s0 + $0xd8] sm:$0xff] }
  0x12   :  { %422 = vst.msk [vmem:[%s1171_s4 + $0x40] sm:$0xff] %vm413_vm0, %v357_v0  ;;  %vm227_vm11 = vcmp.ge.f32.partialorder %v163_v60, 0.0  ;;  %v295_v8 = vmul.f32 %v527_v4, %v163_v60  ;;  %vm228_vm12 = vcmp.ge.f32.partialorder %v164_v61, 0.0  ;;  %v296_v9 = vmul.f32 %v527_v4, %v164_v61 }
  0x13   :  { %423 = vst.msk [vmem:[%s1171_s4 + $0x48] sm:$0xff] %vm413_vm0, %v358_v3  ;;  %vm229_vm13 = vcmp.ge.f32.partialorder %v165_v62, 0.0  ;;  %v297_v10 = vmul.f32 %v527_v4, %v165_v62  ;;  %v166_v11 = vadd.f32 %v521_v2, %v98_v63  ;;  %v167_v12 = vadd.f32 %v521_v2, %v99_v5  ;;  %v46_v5 = vld [vmem:[%s1167_s0 + $0xe8] sm:$0xff] }
  0x14   :  { %v359_v13 = vsel %vm227_vm11, %v163_v60, %v295_v8  ;;  %v360_v14 = vsel %vm228_vm12, %v164_v61, %v296_v9  ;;  %v168_v15 = vadd.f32 %v521_v2, %v100_v6  ;;  %v101_v16 = vmul.f32 %v516_v1, %v33_v7  ;;  %v45_v61 = vld [vmem:[%s1167_s0 + $0xe0] sm:$0xff]  ;;  %v47_v6 = vld [vmem:[%s1167_s0 + $0xf0] sm:$0xff] }
  0x15   :  { %424 = vst.msk [vmem:[%s1171_s4 + $0x50] sm:$0xff] %vm413_vm0, %v359_v13  ;;  %v361_v20 = vsel %vm229_vm13, %v165_v62, %v297_v10  ;;  %vm230_vm14 = vcmp.ge.f32.partialorder %v166_v11, 0.0  ;;  %v298_v21 = vmul.f32 %v527_v4, %v166_v11  ;;  %vm231_vm15 = vcmp.ge.f32.partialorder %v167_v12, 0.0 }
  0x16   :  { %425 = vst.msk [vmem:[%s1171_s4 + $0x58] sm:$0xff] %vm413_vm0, %v360_v14  ;;  %v299_v22 = vmul.f32 %v527_v4, %v167_v12  ;;  %vm232_vm1 = vcmp.ge.f32.partialorder %v168_v15, 0.0  ;;  %v300_v23 = vmul.f32 %v527_v4, %v168_v15  ;;  %v169_v24 = vadd.f32 %v521_v2, %v101_v16 }
  0x17   :  { %426 = vst.msk [vmem:[%s1171_s4 + $0x60] sm:$0xff] %vm413_vm0, %v361_v20  ;;  %v362_v26 = vsel %vm230_vm14, %v166_v11, %v298_v21  ;;  %v102_v27 = vmul.f32 %v516_v1, %v34_v17  ;;  %v103_v28 = vmul.f32 %v516_v1, %v35_v18  ;;  %v104_v29 = vmul.f32 %v516_v1, %v36_v19  ;;  %v48_v21 = vld [vmem:[%s1167_s0 + $0xf8] sm:$0xff] }
  0x18   :  { %427 = vst.msk [vmem:[%s1171_s4 + $0x68] sm:$0xff] %vm413_vm0, %v362_v26  ;;  %v363_v33 = vsel %vm231_vm15, %v167_v12, %v299_v22  ;;  %v364_v34 = vsel %vm232_vm1, %v168_v15, %v300_v23  ;;  %vm233_vm2 = vcmp.ge.f32.partialorder %v169_v24, 0.0  ;;  %v301_v35 = vmul.f32 %v527_v4, %v169_v24 }
  0x19   :  { %428 = vst.msk [vmem:[%s1171_s4 + $0x70] sm:$0xff] %vm413_vm0, %v363_v33  ;;  %v170_v36 = vadd.f32 %v521_v2, %v102_v27  ;;  %v171_v37 = vadd.f32 %v521_v2, %v103_v28  ;;  %v172_v38 = vadd.f32 %v521_v2, %v104_v29  ;;  %v105_v39 = vmul.f32 %v516_v1, %v37_v25  ;;  %v49_v28 = vld [vmem:[%s1167_s0 + $0x100] sm:$0xff]  ;;  %v50_v33 = vld [vmem:[%s1167_s0 + $0x108] sm:$0xff] }
  0x1a   :  { %429 = vst.msk [vmem:[%s1171_s4 + $0x78] sm:$0xff] %vm413_vm0, %v364_v34  ;;  %v365_v40 = vsel %vm233_vm2, %v169_v24, %v301_v35  ;;  %v106_v41 = vmul.f32 %v516_v1, %v38_v30  ;;  %v107_v42 = vmul.f32 %v516_v1, %v39_v31  ;;  %v108_v43 = vmul.f32 %v516_v1, %v40_v32  ;;  %v51_v34 = vld [vmem:[%s1167_s0 + $0x110] sm:$0xff] }
  0x1b   :  { %430 = vst.msk [vmem:[%s1171_s4 + $0x80] sm:$0xff] %vm413_vm0, %v365_v40  ;;  %vm234_vm3 = vcmp.ge.f32.partialorder %v170_v36, 0.0  ;;  %v302_v44 = vmul.f32 %v527_v4, %v170_v36  ;;  %vm235_vm4 = vcmp.ge.f32.partialorder %v171_v37, 0.0  ;;  %v303_v45 = vmul.f32 %v527_v4, %v171_v37  ;;  %v52_v40 = vld [vmem:[%s1167_s0 + $0x118] sm:$0xff] }
  0x1c   :  { %vm236_vm5 = vcmp.ge.f32.partialorder %v172_v38, 0.0  ;;  %v304_v46 = vmul.f32 %v527_v4, %v172_v38  ;;  %v173_v47 = vadd.f32 %v521_v2, %v105_v39  ;;  %v174_v48 = vadd.f32 %v521_v2, %v106_v41  ;;  %v53_v41 = vld [vmem:[%s1167_s0 + $0x120] sm:$0xff] }
  0x1d   :  { %v366_v49 = vsel %vm234_vm3, %v170_v36, %v302_v44  ;;  %v367_v50 = vsel %vm235_vm4, %v171_v37, %v303_v45  ;;  %v175_v51 = vadd.f32 %v521_v2, %v107_v42  ;;  %v176_v52 = vadd.f32 %v521_v2, %v108_v43 }
  0x1e   :  { %431 = vst.msk [vmem:[%s1171_s4 + $0x88] sm:$0xff] %vm413_vm0, %v366_v49  ;;  %v368_v55 = vsel %vm236_vm5, %v172_v38, %v304_v46  ;;  %vm237_vm6 = vcmp.ge.f32.partialorder %v173_v47, 0.0  ;;  %v305_v56 = vmul.f32 %v527_v4, %v173_v47  ;;  %vm238_vm7 = vcmp.ge.f32.partialorder %v174_v48, 0.0  ;;  %v54_v46 = vld [vmem:[%s1167_s0 + $0x128] sm:$0xff] }
  0x1f   :  { %432 = vst.msk [vmem:[%s1171_s4 + $0x90] sm:$0xff] %vm413_vm0, %v367_v50  ;;  %v306_v59 = vmul.f32 %v527_v4, %v174_v48  ;;  %vm239_vm8 = vcmp.ge.f32.partialorder %v175_v51, 0.0  ;;  %v307_v60 = vmul.f32 %v527_v4, %v175_v51  ;;  %vm240_vm9 = vcmp.ge.f32.partialorder %v176_v52, 0.0 }
  0x20   :  { %433 = vst.msk [vmem:[%s1171_s4 + $0x98] sm:$0xff] %vm413_vm0, %v368_v55  ;;  %v369_v62 = vsel %vm237_vm6, %v173_v47, %v305_v56  ;;  %v308_v63 = vmul.f32 %v527_v4, %v176_v52  ;;  %v109_v0 = vmul.f32 %v516_v1, %v41_v53  ;;  %v110_v3 = vmul.f32 %v516_v1, %v42_v54 }
  0x21   :  { %434 = vst.msk [vmem:[%s1171_s4 + $0xa0] sm:$0xff] %vm413_vm0, %v369_v62  ;;  %v370_v7 = vsel %vm238_vm7, %v174_v48, %v306_v59  ;;  %v371_v8 = vsel %vm239_vm8, %v175_v51, %v307_v60  ;;  %v111_v9 = vmul.f32 %v516_v1, %v43_v57  ;;  %v112_v10 = vmul.f32 %v516_v1, %v44_v58  ;;  %v55_v57 = vld [vmem:[%s1167_s0 + $0x130] sm:$0xff]  ;;  %v56_v58 = vld [vmem:[%s1167_s0 + $0x138] sm:$0xff] }
  0x22   :  { %435 = vst.msk [vmem:[%s1171_s4 + $0xa8] sm:$0xff] %vm413_vm0, %v370_v7  ;;  %v372_v11 = vsel %vm240_vm9, %v176_v52, %v308_v63  ;;  %v177_v12 = vadd.f32 %v521_v2, %v109_v0  ;;  %v178_v13 = vadd.f32 %v521_v2, %v110_v3  ;;  %v113_v14 = vmul.f32 %v516_v1, %v45_v61 }
  0x23   :  { %436 = vst.msk [vmem:[%s1171_s4 + $0xb0] sm:$0xff] %vm413_vm0, %v371_v8  ;;  %v179_v15 = vadd.f32 %v521_v2, %v111_v9  ;;  %v180_v16 = vadd.f32 %v521_v2, %v112_v10  ;;  %v114_v17 = vmul.f32 %v516_v1, %v46_v5  ;;  %v115_v18 = vmul.f32 %v516_v1, %v47_v6  ;;  %v57_v8 = vld [vmem:[%s1167_s0 + $0x140] sm:$0xff]  ;;  %v58_v9 = vld [vmem:[%s1167_s0 + $0x148] sm:$0xff] }
  0x24   :  { %437 = vst.msk [vmem:[%s1171_s4 + $0xb8] sm:$0xff] %vm413_vm0, %v372_v11  ;;  %vm241_vm10 = vcmp.ge.f32.partialorder %v177_v12, 0.0  ;;  %v309_v19 = vmul.f32 %v527_v4, %v177_v12  ;;  %vm242_vm11 = vcmp.ge.f32.partialorder %v178_v13, 0.0  ;;  %v310_v20 = vmul.f32 %v527_v4, %v178_v13 }
  0x25   :  { %vm243_vm12 = vcmp.ge.f32.partialorder %v179_v15, 0.0  ;;  %v311_v22 = vmul.f32 %v527_v4, %v179_v15  ;;  %vm244_vm13 = vcmp.ge.f32.partialorder %v180_v16, 0.0  ;;  %v312_v23 = vmul.f32 %v527_v4, %v180_v16 }
  0x26   :  { %v373_v24 = vsel %vm241_vm10, %v177_v12, %v309_v19  ;;  %v374_v25 = vsel %vm242_vm11, %v178_v13, %v310_v20  ;;  %v181_v26 = vadd.f32 %v521_v2, %v113_v14  ;;  %v182_v27 = vadd.f32 %v521_v2, %v114_v17  ;;  %v60_v20 = vld [vmem:[%s1167_s0 + $0x158] sm:$0xff] }
  0x27   :  { %438 = vst.msk [vmem:[%s1171_s4 + $0xc0] sm:$0xff] %vm413_vm0, %v373_v24  ;;  %v375_v29 = vsel %vm243_vm12, %v179_v15, %v311_v22  ;;  %v376_v30 = vsel %vm244_vm13, %v180_v16, %v312_v23  ;;  %v183_v31 = vadd.f32 %v521_v2, %v115_v18  ;;  %v116_v32 = vmul.f32 %v516_v1, %v48_v21  ;;  %v59_v15 = vld [vmem:[%s1167_s0 + $0x150] sm:$0xff]  ;;  %v61_v21 = vld [vmem:[%s1167_s0 + $0x160] sm:$0xff]  ;;  %v62_v22 = vld [vmem:[%s1167_s0 + $0x168] sm:$0xff] }
  0x28   :  { %439 = vst.msk [vmem:[%s1171_s4 + $0xc8] sm:$0xff] %vm413_vm0, %v374_v25  ;;  %vm245_vm14 = vcmp.ge.f32.partialorder %v181_v26, 0.0  ;;  %v313_v35 = vmul.f32 %v527_v4, %v181_v26  ;;  %vm246_vm15 = vcmp.ge.f32.partialorder %v182_v27, 0.0  ;;  %v314_v36 = vmul.f32 %v527_v4, %v182_v27 }
  0x29   :  { %440 = vst.msk [vmem:[%s1171_s4 + $0xd0] sm:$0xff] %vm413_vm0, %v375_v29  ;;  %vm247_vm1 = vcmp.ge.f32.partialorder %v183_v31, 0.0  ;;  %v315_v37 = vmul.f32 %v527_v4, %v183_v31  ;;  %v184_v38 = vadd.f32 %v521_v2, %v116_v32  ;;  %v117_v39 = vmul.f32 %v516_v1, %v49_v28 }
  0x2a   :  { %441 = vst.msk [vmem:[%s1171_s4 + $0xd8] sm:$0xff] %vm413_vm0, %v376_v30  ;;  %v377_v42 = vsel %vm245_vm14, %v181_v26, %v313_v35  ;;  %v378_v43 = vsel %vm246_vm15, %v182_v27, %v314_v36  ;;  %v118_v44 = vmul.f32 %v516_v1, %v50_v33  ;;  %v119_v45 = vmul.f32 %v516_v1, %v51_v34  ;;  %v63_v33 = vld [vmem:[%s1167_s0 + $0x170] sm:$0xff]  ;;  %v64_v34 = vld [vmem:[%s1167_s0 + $0x178] sm:$0xff] }
  0x2b   :  { %442 = vst.msk [vmem:[%s1171_s4 + $0xe0] sm:$0xff] %vm413_vm0, %v377_v42  ;;  %v379_v47 = vsel %vm247_vm1, %v183_v31, %v315_v37  ;;  %vm248_vm2 = vcmp.ge.f32.partialorder %v184_v38, 0.0  ;;  %v316_v48 = vmul.f32 %v527_v4, %v184_v38  ;;  %v185_v49 = vadd.f32 %v521_v2, %v117_v39 }
  0x2c   :  { %443 = vst.msk [vmem:[%s1171_s4 + $0xe8] sm:$0xff] %vm413_vm0, %v378_v43  ;;  %v186_v50 = vadd.f32 %v521_v2, %v118_v44  ;;  %v187_v51 = vadd.f32 %v521_v2, %v119_v45  ;;  %v120_v52 = vmul.f32 %v516_v1, %v52_v40  ;;  %v121_v53 = vmul.f32 %v516_v1, %v53_v41 }
  0x2d   :  { %444 = vst.msk [vmem:[%s1171_s4 + $0xf0] sm:$0xff] %vm413_vm0, %v379_v47  ;;  %v380_v54 = vsel %vm248_vm2, %v184_v38, %v316_v48  ;;  %vm249_vm3 = vcmp.ge.f32.partialorder %v185_v49, 0.0  ;;  %v317_v55 = vmul.f32 %v527_v4, %v185_v49  ;;  %v122_v56 = vmul.f32 %v516_v1, %v54_v46  ;;  %v65_v47 = vld [vmem:[%s1167_s0 + $0x180] sm:$0xff]  ;;  %v66_v48 = vld [vmem:[%s1167_s0 + $0x188] sm:$0xff] }
  0x2e   :  { %445 = vst.msk [vmem:[%s1171_s4 + $0xf8] sm:$0xff] %vm413_vm0, %v380_v54  ;;  %vm250_vm4 = vcmp.ge.f32.partialorder %v186_v50, 0.0  ;;  %v318_v59 = vmul.f32 %v527_v4, %v186_v50  ;;  %vm251_vm5 = vcmp.ge.f32.partialorder %v187_v51, 0.0  ;;  %v319_v60 = vmul.f32 %v527_v4, %v187_v51 }
  0x2f   :  { %v381_v61 = vsel %vm249_vm3, %v185_v49, %v317_v55  ;;  %v188_v62 = vadd.f32 %v521_v2, %v120_v52  ;;  %v189_v63 = vadd.f32 %v521_v2, %v121_v53  ;;  %v190_v0 = vadd.f32 %v521_v2, %v122_v56  ;;  %v67_v55 = vld [vmem:[%s1167_s0 + $0x190] sm:$0xff] }
  0x30   :  { %446 = vst.msk [vmem:[%s1171_s4 + $0x100] sm:$0xff] %vm413_vm0, %v381_v61  ;;  %v382_v3 = vsel %vm250_vm4, %v186_v50, %v318_v59  ;;  %v383_v5 = vsel %vm251_vm5, %v187_v51, %v319_v60  ;;  %v123_v6 = vmul.f32 %v516_v1, %v55_v57  ;;  %v124_v7 = vmul.f32 %v516_v1, %v56_v58  ;;  %v68_v60 = vld [vmem:[%s1167_s0 + $0x198] sm:$0xff]  ;;  %v69_v61 = vld [vmem:[%s1167_s0 + $0x1a0] sm:$0xff] }
  0x31   :  { %447 = vst.msk [vmem:[%s1171_s4 + $0x108] sm:$0xff] %vm413_vm0, %v382_v3  ;;  %vm252_vm6 = vcmp.ge.f32.partialorder %v188_v62, 0.0  ;;  %v320_v10 = vmul.f32 %v527_v4, %v188_v62  ;;  %vm253_vm7 = vcmp.ge.f32.partialorder %v189_v63, 0.0  ;;  %v321_v11 = vmul.f32 %v527_v4, %v189_v63 }
  0x32   :  { %448 = vst.msk [vmem:[%s1171_s4 + $0x110] sm:$0xff] %vm413_vm0, %v383_v5  ;;  %vm254_vm8 = vcmp.ge.f32.partialorder %v190_v0, 0.0  ;;  %v322_v12 = vmul.f32 %v527_v4, %v190_v0  ;;  %v191_v13 = vadd.f32 %v521_v2, %v123_v6  ;;  %v192_v14 = vadd.f32 %v521_v2, %v124_v7 }
  0x33   :  { %v384_v16 = vsel %vm252_vm6, %v188_v62, %v320_v10  ;;  %v385_v17 = vsel %vm253_vm7, %v189_v63, %v321_v11  ;;  %v125_v18 = vmul.f32 %v516_v1, %v57_v8  ;;  %v126_v19 = vmul.f32 %v516_v1, %v58_v9  ;;  %v70_v62 = vld [vmem:[%s1167_s0 + $0x1a8] sm:$0xff] }
  0x34   :  { %449 = vst.msk [vmem:[%s1171_s4 + $0x118] sm:$0xff] %vm413_vm0, %v384_v16  ;;  %v386_v23 = vsel %vm254_vm8, %v190_v0, %v322_v12  ;;  %vm255_vm9 = vcmp.ge.f32.partialorder %v191_v13, 0.0  ;;  %v323_v24 = vmul.f32 %v527_v4, %v191_v13  ;;  %vm256_vm10 = vcmp.ge.f32.partialorder %v192_v14, 0.0  ;;  %v71_v12 = vld [vmem:[%s1167_s0 + $0x1b0] sm:$0xff] }
  0x35   :  { %450 = vst.msk [vmem:[%s1171_s4 + $0x120] sm:$0xff] %vm413_vm0, %v385_v17  ;;  %v324_v25 = vmul.f32 %v527_v4, %v192_v14  ;;  %v193_v26 = vadd.f32 %v521_v2, %v125_v18  ;;  %v194_v27 = vadd.f32 %v521_v2, %v126_v19  ;;  %v127_v28 = vmul.f32 %v516_v1, %v59_v15 }
  0x36   :  { %451 = vst.msk [vmem:[%s1171_s4 + $0x128] sm:$0xff] %vm413_vm0, %v386_v23  ;;  %v387_v29 = vsel %vm255_vm9, %v191_v13, %v323_v24  ;;  %v128_v30 = vmul.f32 %v516_v1, %v60_v20  ;;  %v129_v31 = vmul.f32 %v516_v1, %v61_v21  ;;  %v130_v32 = vmul.f32 %v516_v1, %v62_v22  ;;  %v72_v13 = vld [vmem:[%s1167_s0 + $0x1b8] sm:$0xff] }
  0x37   :  { %452 = vst.msk [vmem:[%s1171_s4 + $0x130] sm:$0xff] %vm413_vm0, %v387_v29  ;;  %v388_v35 = vsel %vm256_vm10, %v192_v14, %v324_v25  ;;  %vm257_vm11 = vcmp.ge.f32.partialorder %v193_v26, 0.0  ;;  %v325_v36 = vmul.f32 %v527_v4, %v193_v26  ;;  %vm258_vm12 = vcmp.ge.f32.partialorder %v194_v27, 0.0 }
  0x38   :  { %453 = vst.msk [vmem:[%s1171_s4 + $0x138] sm:$0xff] %vm413_vm0, %v388_v35  ;;  %v326_v37 = vmul.f32 %v527_v4, %v194_v27  ;;  %v195_v38 = vadd.f32 %v521_v2, %v127_v28  ;;  %v196_v39 = vadd.f32 %v521_v2, %v128_v30  ;;  %v197_v40 = vadd.f32 %v521_v2, %v129_v31 }
  0x39   :  { %v389_v41 = vsel %vm257_vm11, %v193_v26, %v325_v36  ;;  %v198_v42 = vadd.f32 %v521_v2, %v130_v32  ;;  %v131_v43 = vmul.f32 %v516_v1, %v63_v33  ;;  %v132_v44 = vmul.f32 %v516_v1, %v64_v34  ;;  %v73_v26 = vld [vmem:[%s1167_s0 + $0x1c0] sm:$0xff]  ;;  %v75_v34 = vld [vmem:[%s1167_s0 + $0x1d0] sm:$0xff] }
  0x3a   :  { %454 = vst.msk [vmem:[%s1171_s4 + $0x140] sm:$0xff] %vm413_vm0, %v389_v41  ;;  %v390_v45 = vsel %vm258_vm12, %v194_v27, %v326_v37  ;;  %vm259_vm13 = vcmp.ge.f32.partialorder %v195_v38, 0.0  ;;  %v327_v46 = vmul.f32 %v527_v4, %v195_v38  ;;  %vm260_vm14 = vcmp.ge.f32.partialorder %v196_v39, 0.0  ;;  %v74_v27 = vld [vmem:[%s1167_s0 + $0x1c8] sm:$0xff] }
  0x3b   :  { %455 = vst.msk [vmem:[%s1171_s4 + $0x148] sm:$0xff] %vm413_vm0, %v390_v45  ;;  %v328_v49 = vmul.f32 %v527_v4, %v196_v39  ;;  %vm261_vm15 = vcmp.ge.f32.partialorder %v197_v40, 0.0  ;;  %v329_v50 = vmul.f32 %v527_v4, %v197_v40  ;;  %vm262_vm1 = vcmp.ge.f32.partialorder %v198_v42, 0.0  ;;  %v78_v41 = vld [vmem:[%s1167_s0 + $0x1e8] sm:$0xff] }
  0x3c   :  { %v391_v51 = vsel %vm259_vm13, %v195_v38, %v327_v46  ;;  %v330_v52 = vmul.f32 %v527_v4, %v198_v42  ;;  %v199_v53 = vadd.f32 %v521_v2, %v131_v43  ;;  %v200_v54 = vadd.f32 %v521_v2, %v132_v44 }
  0x3d   :  { %456 = vst.msk [vmem:[%s1171_s4 + $0x150] sm:$0xff] %vm413_vm0, %v391_v51  ;;  %v392_v56 = vsel %vm260_vm14, %v196_v39, %v328_v49  ;;  %v393_v57 = vsel %vm261_vm15, %v197_v40, %v329_v50  ;;  %v133_v58 = vmul.f32 %v516_v1, %v65_v47  ;;  %v134_v59 = vmul.f32 %v516_v1, %v66_v48  ;;  %v76_v39 = vld [vmem:[%s1167_s0 + $0x1d8] sm:$0xff]  ;;  %v77_v40 = vld [vmem:[%s1167_s0 + $0x1e0] sm:$0xff] }
  0x3e   :  { %457 = vst.msk [vmem:[%s1171_s4 + $0x158] sm:$0xff] %vm413_vm0, %v392_v56  ;;  %v394_v63 = vsel %vm262_vm1, %v198_v42, %v330_v52  ;;  %vm263_vm2 = vcmp.ge.f32.partialorder %v199_v53, 0.0  ;;  %v331_v0 = vmul.f32 %v527_v4, %v199_v53  ;;  %vm264_vm3 = vcmp.ge.f32.partialorder %v200_v54, 0.0  ;;  %v79_v52 = vld [vmem:[%s1167_s0 + $0x1f0] sm:$0xff] }
  0x3f   :  { %458 = vst.msk [vmem:[%s1171_s4 + $0x160] sm:$0xff] %vm413_vm0, %v393_v57  ;;  %v332_v3 = vmul.f32 %v527_v4, %v200_v54  ;;  %v201_v5 = vadd.f32 %v521_v2, %v133_v58  ;;  %v202_v6 = vadd.f32 %v521_v2, %v134_v59  ;;  %v135_v7 = vmul.f32 %v516_v1, %v67_v55 }
  0x40   :  { %459 = vst.msk [vmem:[%s1171_s4 + $0x168] sm:$0xff] %vm413_vm0, %v394_v63  ;;  %v395_v8 = vsel %vm263_vm2, %v199_v53, %v331_v0  ;;  %v136_v9 = vmul.f32 %v516_v1, %v68_v60  ;;  %v137_v10 = vmul.f32 %v516_v1, %v69_v61  ;;  %v138_v11 = vmul.f32 %v516_v1, %v70_v62  ;;  %v80_v53 = vld [vmem:[%s1167_s0 + $0x1f8] sm:$0xff] }
  0x41   :  { %460 = vst.msk [vmem:[%s1171_s4 + $0x170] sm:$0xff] %vm413_vm0, %v395_v8  ;;  %v396_v14 = vsel %vm264_vm3, %v200_v54, %v332_v3  ;;  %vm265_vm4 = vcmp.ge.f32.partialorder %v201_v5, 0.0  ;;  %v333_v15 = vmul.f32 %v527_v4, %v201_v5  ;;  %vm266_vm5 = vcmp.ge.f32.partialorder %v202_v6, 0.0 }
  0x42   :  { %461 = vst.msk [vmem:[%s1171_s4 + $0x178] sm:$0xff] %vm413_vm0, %v396_v14  ;;  %v334_v16 = vmul.f32 %v527_v4, %v202_v6  ;;  %v203_v17 = vadd.f32 %v521_v2, %v135_v7  ;;  %v204_v18 = vadd.f32 %v521_v2, %v136_v9  ;;  %v205_v19 = vadd.f32 %v521_v2, %v137_v10 }
  0x43   :  { %v397_v20 = vsel %vm265_vm4, %v201_v5, %v333_v15  ;;  %v206_v21 = vadd.f32 %v521_v2, %v138_v11  ;;  %v139_v22 = vmul.f32 %v516_v1, %v71_v12  ;;  %v140_v23 = vmul.f32 %v516_v1, %v72_v13 }
  0x44   :  { %462 = vst.msk [vmem:[%s1171_s4 + $0x180] sm:$0xff] %vm413_vm0, %v397_v20  ;;  %v398_v24 = vsel %vm266_vm5, %v202_v6, %v334_v16  ;;  %vm267_vm6 = vcmp.ge.f32.partialorder %v203_v17, 0.0  ;;  %v335_v25 = vmul.f32 %v527_v4, %v203_v17  ;;  %vm268_vm7 = vcmp.ge.f32.partialorder %v204_v18, 0.0 }
  0x45   :  { %463 = vst.msk [vmem:[%s1171_s4 + $0x188] sm:$0xff] %vm413_vm0, %v398_v24  ;;  %v336_v28 = vmul.f32 %v527_v4, %v204_v18  ;;  %vm269_vm8 = vcmp.ge.f32.partialorder %v205_v19, 0.0  ;;  %v337_v29 = vmul.f32 %v527_v4, %v205_v19  ;;  %vm270_vm9 = vcmp.ge.f32.partialorder %v206_v21, 0.0 }
  0x46   :  { %v399_v30 = vsel %vm267_vm6, %v203_v17, %v335_v25  ;;  %v338_v31 = vmul.f32 %v527_v4, %v206_v21  ;;  %v207_v32 = vadd.f32 %v521_v2, %v139_v22  ;;  %v208_v33 = vadd.f32 %v521_v2, %v140_v23 }
  0x47   :  { %464 = vst.msk [vmem:[%s1171_s4 + $0x190] sm:$0xff] %vm413_vm0, %v399_v30  ;;  %v400_v35 = vsel %vm268_vm7, %v204_v18, %v336_v28  ;;  %v401_v36 = vsel %vm269_vm8, %v205_v19, %v337_v29  ;;  %v141_v37 = vmul.f32 %v516_v1, %v73_v26  ;;  %v142_v38 = vmul.f32 %v516_v1, %v74_v27 }
  0x48   :  { %465 = vst.msk [vmem:[%s1171_s4 + $0x198] sm:$0xff] %vm413_vm0, %v400_v35  ;;  %v402_v42 = vsel %vm270_vm9, %v206_v21, %v338_v31  ;;  %vm271_vm10 = vcmp.ge.f32.partialorder %v207_v32, 0.0  ;;  %v339_v43 = vmul.f32 %v527_v4, %v207_v32  ;;  %vm272_vm11 = vcmp.ge.f32.partialorder %v208_v33, 0.0 }
  0x49   :  { %466 = vst.msk [vmem:[%s1171_s4 + $0x1a0] sm:$0xff] %vm413_vm0, %v401_v36  ;;  %v340_v44 = vmul.f32 %v527_v4, %v208_v33  ;;  %v209_v45 = vadd.f32 %v521_v2, %v141_v37  ;;  %v210_v46 = vadd.f32 %v521_v2, %v142_v38  ;;  %v143_v47 = vmul.f32 %v516_v1, %v75_v34 }
  0x4a   :  { %467 = vst.msk [vmem:[%s1171_s4 + $0x1a8] sm:$0xff] %vm413_vm0, %v402_v42  ;;  %v403_v48 = vsel %vm271_vm10, %v207_v32, %v339_v43  ;;  %v144_v49 = vmul.f32 %v516_v1, %v76_v39  ;;  %v145_v50 = vmul.f32 %v516_v1, %v77_v40  ;;  %v146_v51 = vmul.f32 %v516_v1, %v78_v41 }
  0x4b   :  { %468 = vst.msk [vmem:[%s1171_s4 + $0x1b0] sm:$0xff] %vm413_vm0, %v403_v48  ;;  %v404_v54 = vsel %vm272_vm11, %v208_v33, %v340_v44  ;;  %vm273_vm12 = vcmp.ge.f32.partialorder %v209_v45, 0.0  ;;  %v341_v55 = vmul.f32 %v527_v4, %v209_v45  ;;  %vm274_vm13 = vcmp.ge.f32.partialorder %v210_v46, 0.0 }
  0x4c   :  { %469 = vst.msk [vmem:[%s1171_s4 + $0x1b8] sm:$0xff] %vm413_vm0, %v404_v54  ;;  %v342_v56 = vmul.f32 %v527_v4, %v210_v46  ;;  %v211_v57 = vadd.f32 %v521_v2, %v143_v47  ;;  %v212_v58 = vadd.f32 %v521_v2, %v144_v49  ;;  %v213_v59 = vadd.f32 %v521_v2, %v145_v50 }
  0x4d   :  { %v405_v60 = vsel %vm273_vm12, %v209_v45, %v341_v55  ;;  %v214_v61 = vadd.f32 %v521_v2, %v146_v51  ;;  %v147_v62 = vmul.f32 %v516_v1, %v79_v52  ;;  %v148_v63 = vmul.f32 %v516_v1, %v80_v53 }
  0x4e   :  { %470 = vst.msk [vmem:[%s1171_s4 + $0x1c0] sm:$0xff] %vm413_vm0, %v405_v60  ;;  %v406_v0 = vsel %vm274_vm13, %v210_v46, %v342_v56  ;;  %vm275_vm14 = vcmp.ge.f32.partialorder %v211_v57, 0.0  ;;  %v343_v3 = vmul.f32 %v527_v4, %v211_v57  ;;  %vm276_vm15 = vcmp.ge.f32.partialorder %v212_v58, 0.0 }
  0x4f   :  { %471 = vst.msk [vmem:[%s1171_s4 + $0x1c8] sm:$0xff] %vm413_vm0, %v406_v0  ;;  %v344_v5 = vmul.f32 %v527_v4, %v212_v58  ;;  %vm277_vm1 = vcmp.ge.f32.partialorder %v213_v59, 0.0  ;;  %v345_v1 = vmul.f32 %v527_v4, %v213_v59  ;;  %vm278_vm2 = vcmp.ge.f32.partialorder %v214_v61, 0.0 }
  0x50   :  { %v407_v6 = vsel %vm275_vm14, %v211_v57, %v343_v3  ;;  %v346_v7 = vmul.f32 %v527_v4, %v214_v61  ;;  %v215_v8 = vadd.f32 %v521_v2, %v147_v62  ;;  %v216_v9 = vadd.f32 %v521_v2, %v148_v63 }
  0x51   :  { %472 = vst.msk [vmem:[%s1171_s4 + $0x1d0] sm:$0xff] %vm413_vm0, %v407_v6  ;;  %v408_v10 = vsel %vm276_vm15, %v212_v58, %v344_v5  ;;  %v409_v11 = vsel %vm277_vm1, %v213_v59, %v345_v1 }
  0x52   :  { %473 = vst.msk [vmem:[%s1171_s4 + $0x1d8] sm:$0xff] %vm413_vm0, %v408_v10  ;;  %v410_v12 = vsel %vm278_vm2, %v214_v61, %v346_v7  ;;  %vm279_vm3 = vcmp.ge.f32.partialorder %v215_v8, 0.0  ;;  %v347_v13 = vmul.f32 %v527_v4, %v215_v8  ;;  %vm280_vm4 = vcmp.ge.f32.partialorder %v216_v9, 0.0 }
  0x53   :  { %474 = vst.msk [vmem:[%s1171_s4 + $0x1e0] sm:$0xff] %vm413_vm0, %v409_v11  ;;  %v348_v2 = vmul.f32 %v527_v4, %v216_v9 }
  0x54   :  { %475 = vst.msk [vmem:[%s1171_s4 + $0x1e8] sm:$0xff] %vm413_vm0, %v410_v12  ;;  %v411_v14 = vsel %vm279_vm3, %v215_v8, %v347_v13 }
  0x55   :  { %476 = vst.msk [vmem:[%s1171_s4 + $0x1f0] sm:$0xff] %vm413_vm0, %v411_v14  ;;  %v412_v15 = vsel %vm280_vm4, %v216_v9, %v348_v2 }
  0x56   :  { %477 = vst.msk [vmem:[%s1171_s4 + $0x1f8] sm:$0xff] %vm413_vm0, %v412_v15 }

// kernel: espnet_encoder.40
= control target key start
LH: loop header
LB: loop body
LE: loop exit
PB: predicated region body
PF: predicated region fallthrough
CT: control target
= control target key end

     0   :  { %s1014_s9 = smov 0   ;;  %s1016_s10 = smov 0   ;;  %s1241_s0 = inlined_call_operand.vmem [shape: bf16[9,512,3], index: 0, kind: input, shape index: {}]   ;;  %s1242_s1 = inlined_call_operand.vmem [shape: bf16[9,3,16], index: 1, kind: input, shape index: {}]   ;;  %s1243_s2 = inlined_call_operand.vmem [shape: f32[1,512,16], index: 2, kind: output, shape index: {}]  }
   0x1   :  { %s1018_s11 = smov 0   ;;  %s1020_s12 = smov 0  }
   0x2   :  { %s1022_s13 = smov 0  }
   0x3 LB: > { %s24_s14 = sadd.s32 1, %s987_s11  ;;  %s31_s15 = sadd.s32 1, %s991_s12  ;;  %s995_s13 = sphi %s1022_s13, %s12_s13   ;;  %s991_s12 = sphi %s1020_s12, %s1247_s12   ;;  %s987_s11 = sphi %s1018_s11, %s1246_s11   ;;  %s983_s10 = sphi %s1016_s10, %s1245_s10   ;;  %s979_s9 = sphi %s1014_s9, %s1244_s9  }
   0x4   : > { %p25_p0 = scmp.ge.s32.totalorder %s24_s14, 9  ;;  %p805_p1 = scmp.ge.s32.totalorder %s995_s13, 1 }
   0x5   : > { %p165_p2 = scmp.lt.s32.totalorder %s995_s13, 19 }
   0x6   : > { %s1249_s14 = smov (%p25_p0, %s24_s14), 0  ;;  %s1251_s15 = smov (!%p25_p0, %s31_s15), %s991_s12 }
   0x7   : > { %p166_p3 = pnand %p805_p1, %p165_p2  ;;  %p33_p4 = scmp.ge.s32.totalorder %s1251_s15, 2 }
   0x8   : > { %s806_s16 = sshll.u32 (!%p166_p3), %s983_s10, 5  ;;  %p206_p5 = scmp.lt.s32.totalorder (!%p166_p3), %s979_s9, 8 }
   0x9   : > { %s1253_s15 = smov (%p33_p4, %s1251_s15), 0  ;;  %169 = sbr.rel (%p166_p3) target bundleno = 287 (0x11f), region = 28 }
   0xa   : > { %p208_p6 = scmp.lt.s32.totalorder (!%p166_p3), %s806_s16, 63  ;;  %p812_p7 = scmp.ne.s32.totalorder (!%p166_p3), %s979_s9, 0 }
   0xe   : > { %s207_s17 = scalar_select %p206_p5, %s979_s9, 8 }
   0xf   : > { %s1255_s16 = smov (!%p208_p6, %s806_s16), 63  ;;  %239 = sbr.rel (%p812_p7) target bundleno = 53 (0x35), region = 32 }
  0x10   : > { %s807_s18 = sshll.u32 %s207_s17, 6  ;;  %s809_s19 = sshll.u32 %s207_s17, 1 }
  0x11   : > { %s211_s20 = sadd.s32 %s807_s18, %s1255_s16  ;;  %s1051_s23 = scalar_lea.vmem %s1242_s1, %s809_s19 }
  0x12   : > { %s808_s24 = sshll.u32 %s211_s20, 2  ;;  %s811_s25 = sshll.u32 %s1255_s16, 3 }
  0x13   : > { %s1056_s28 = scalar_lea.vmem %s1241_s0, %s808_s24  ;;  %s1061_s3 = scalar_lea.vmem %s1243_s2, %s811_s25 }
  0x14   : > { %vm240_vm0 = vcmask 130048   ;;  %v997_v0 = vmov 0.0  }
  0x15   : > { %241 = vst.msk [vmem:[#allocation2] sm:$0xff] %vm240_vm0, %v997_v0 }
  0x16   : > { %242 = vst.msk [vmem:[#allocation2 + $0x8] sm:$0xff] %vm240_vm0, %v997_v0 }
  0x17   : > { %243 = vst.msk [vmem:[#allocation2 + $0x10] sm:$0xff] %vm240_vm0, %v997_v0 }
  0x18   : > { %244 = vst.msk [vmem:[#allocation2 + $0x18] sm:$0xff] %vm240_vm0, %v997_v0 }
  0x19   : > { %245 = vst.msk [vmem:[#allocation2 + $0x20] sm:$0xff] %vm240_vm0, %v997_v0 }
  0x1a   : > { %246 = vst.msk [vmem:[#allocation2 + $0x28] sm:$0xff] %vm240_vm0, %v997_v0 }
  0x1b   : > { %247 = vst.msk [vmem:[#allocation2 + $0x30] sm:$0xff] %vm240_vm0, %v997_v0 }
  0x1c   : > { %248 = vst.msk [vmem:[#allocation2 + $0x38] sm:$0xff] %vm240_vm0, %v997_v0 }
  0x1d   : > { %249 = vst.msk [vmem:[#allocation2 + $0x40] sm:$0xff] %vm240_vm0, %v997_v0 }
  0x1e   : > { %250 = vst.msk [vmem:[#allocation2 + $0x48] sm:$0xff] %vm240_vm0, %v997_v0 }
  0x1f   : > { %251 = vst.msk [vmem:[#allocation2 + $0x50] sm:$0xff] %vm240_vm0, %v997_v0 }
  0x20   : > { %252 = vst.msk [vmem:[#allocation2 + $0x58] sm:$0xff] %vm240_vm0, %v997_v0 }
  0x21   : > { %253 = vst.msk [vmem:[#allocation2 + $0x60] sm:$0xff] %vm240_vm0, %v997_v0 }
  0x22   : > { %254 = vst.msk [vmem:[#allocation2 + $0x68] sm:$0xff] %vm240_vm0, %v997_v0 }
  0x23   : > { %255 = vst.msk [vmem:[#allocation2 + $0x70] sm:$0xff] %vm240_vm0, %v997_v0 }
  0x24   : > { %256 = vst.msk [vmem:[#allocation2 + $0x78] sm:$0xff] %vm240_vm0, %v997_v0 }
  0x25   : > { %257 = vst.msk [vmem:[#allocation2 + $0x80] sm:$0xff] %vm240_vm0, %v997_v0 }
  0x26   : > { %258 = vst.msk [vmem:[#allocation2 + $0x88] sm:$0xff] %vm240_vm0, %v997_v0 }
  0x27   : > { %259 = vst.msk [vmem:[#allocation2 + $0x90] sm:$0xff] %vm240_vm0, %v997_v0 }
  0x28   : > { %260 = vst.msk [vmem:[#allocation2 + $0x98] sm:$0xff] %vm240_vm0, %v997_v0 }
  0x29   : > { %261 = vst.msk [vmem:[#allocation2 + $0xa0] sm:$0xff] %vm240_vm0, %v997_v0 }
  0x2a   : > { %262 = vst.msk [vmem:[#allocation2 + $0xa8] sm:$0xff] %vm240_vm0, %v997_v0 }
  0x2b   : > { %263 = vst.msk [vmem:[#allocation2 + $0xb0] sm:$0xff] %vm240_vm0, %v997_v0 }
  0x2c   : > { %264 = vst.msk [vmem:[#allocation2 + $0xb8] sm:$0xff] %vm240_vm0, %v997_v0 }
  0x2d   : > { %265 = vst.msk [vmem:[#allocation2 + $0xc0] sm:$0xff] %vm240_vm0, %v997_v0 }
  0x2e   : > { %266 = vst.msk [vmem:[#allocation2 + $0xc8] sm:$0xff] %vm240_vm0, %v997_v0 }
  0x2f   : > { %267 = vst.msk [vmem:[#allocation2 + $0xd0] sm:$0xff] %vm240_vm0, %v997_v0 }
  0x30   : > { %268 = vst.msk [vmem:[#allocation2 + $0xd8] sm:$0xff] %vm240_vm0, %v997_v0 }
  0x31   : > { %269 = vst.msk [vmem:[#allocation2 + $0xe0] sm:$0xff] %vm240_vm0, %v997_v0 }
  0x32   : > { %270 = vst.msk [vmem:[#allocation2 + $0xe8] sm:$0xff] %vm240_vm0, %v997_v0 }
  0x33   : > { %271 = vst.msk [vmem:[#allocation2 + $0xf0] sm:$0xff] %vm240_vm0, %v997_v0 }
  0x34   : > { %272 = vst.msk [vmem:[#allocation2 + $0xf8] sm:$0xff] %vm240_vm0, %v997_v0 }
  0x35 PF: > { %v337_v1 = vld [vmem:[%s1051_s23] sm:$0x3]  ;;  %vm467_vm1 = vcmask 1040384   ;;  %vm468_vm2 = vcmask 1041408   ;;  %v998_v2 = vmov 65535   ;;  %vm418_vm3 = vcmask 23552  }
  0x36   : > { %v469_v3 = vsel %vm467_vm1, 4294967295, %v998_v2  ;;  %v896_v6 = vld [vmem:[%s1056_s28] sm:$0xff]  ;;  %v897_v10 = vld [vmem:[%s1056_s28 + $0x8] sm:$0xff]  ;;  %v898_v14 = vld [vmem:[%s1056_s28 + $0x10] sm:$0xff]  ;;  %vm595_vm4 = vcmask 130048   ;;  %p893_p8 = scmp.ne.s32.totalorder %s979_s9, 8 }
  0x37   : > { %v470_v4 = vsel %vm468_vm2, %v469_v3, 0  ;;  %v900_v7 = vld [vmem:[%s1056_s28 + $0x20] sm:$0xff]  ;;  %v901_v11 = vld [vmem:[%s1056_s28 + $0x28] sm:$0xff]  ;;  %v902_v15 = vld [vmem:[%s1056_s28 + $0x30] sm:$0xff] }
  0x38   : > { %v472_v5 = vand.u32 %v470_v4, %v337_v1  ;;  %v904_v8 = vld [vmem:[%s1056_s28 + $0x40] sm:$0xff]  ;;  %v905_v12 = vld [vmem:[%s1056_s28 + $0x48] sm:$0xff]  ;;  %v906_v16 = vld [vmem:[%s1056_s28 + $0x50] sm:$0xff] }
  0x39   : > { %v908_v9 = vld [vmem:[%s1056_s28 + $0x60] sm:$0xff]  ;;  %v909_v13 = vld [vmem:[%s1056_s28 + $0x68] sm:$0xff]  ;;  %v910_v17 = vld [vmem:[%s1056_s28 + $0x70] sm:$0xff] }
  0x3a   : > { %481 = vmatpush.bf16.msra.mxu0 %v472_v5  ;;  %912 = vmatpush.bf16.msra.mxu1 %v472_v5  ;;  %v899_v18 = vld [vmem:[%s1056_s28 + $0x18] sm:$0xff]  ;;  %v273_v22 = vld [vmem:[#allocation2] sm:$0xff]  ;;  %v274_v30 = vld [vmem:[#allocation2 + $0x8] sm:$0xff] }
  0x3b   : > { %913 = vmatpush.bf16.msra.mxu2 %v472_v5  ;;  %914 = vmatpush.bf16.msra.mxu3 %v472_v5  ;;  %v903_v19 = vld [vmem:[%s1056_s28 + $0x38] sm:$0xff]  ;;  %v281_v23 = vld [vmem:[#allocation2 + $0x40] sm:$0xff]  ;;  %v282_v31 = vld [vmem:[#allocation2 + $0x48] sm:$0xff] }
  0x3c   : > { %v907_v20 = vld [vmem:[%s1056_s28 + $0x58] sm:$0xff]  ;;  %v289_v28 = vld [vmem:[#allocation2 + $0x80] sm:$0xff]  ;;  %v290_v40 = vld [vmem:[#allocation2 + $0x88] sm:$0xff] }
  0x3d   : > { %877 = vmatmul.msk.bf16.vlgmr.msra.gmra.mxu0 %vm418_vm3, %v896_v6  ;;  %881 = vmatmul.msk.bf16.vlgmr.msra.gmra.mxu1 %vm418_vm3, %v900_v7  ;;  %v911_v21 = vld [vmem:[%s1056_s28 + $0x78] sm:$0xff]  ;;  %v297_v29 = vld [vmem:[#allocation2 + $0xc0] sm:$0xff]  ;;  %v298_v41 = vld [vmem:[#allocation2 + $0xc8] sm:$0xff] }
  0x3e   : > { %885 = vmatmul.msk.bf16.vlgmr.msra.gmra.mxu2 %vm418_vm3, %v904_v8  ;;  %889 = vmatmul.msk.bf16.vlgmr.msra.gmra.mxu3 %vm418_vm3, %v908_v9  ;;  %v275_v42 = vld [vmem:[#allocation2 + $0x10] sm:$0xff]  ;;  %v276_v54 = vld [vmem:[#allocation2 + $0x18] sm:$0xff]  ;;  %v277_v2 = vld [vmem:[#allocation2 + $0x20] sm:$0xff] }
  0x3f   : > { %v283_v43 = vld [vmem:[#allocation2 + $0x50] sm:$0xff]  ;;  %v284_v55 = vld [vmem:[#allocation2 + $0x58] sm:$0xff]  ;;  %v285_v3 = vld [vmem:[#allocation2 + $0x60] sm:$0xff] }
  0x40   : > { %v291_v52 = vld [vmem:[#allocation2 + $0x90] sm:$0xff]  ;;  %v292_v0 = vld [vmem:[#allocation2 + $0x98] sm:$0xff] }
  0x41   : > { %v299_v53 = vld [vmem:[#allocation2 + $0xd0] sm:$0xff]  ;;  %v300_v1 = vld [vmem:[#allocation2 + $0xd8] sm:$0xff] }
  0x4d   : > { %878 = vmatmul.msk.bf16.gmra.mxu0 %vm418_vm3, %v897_v10  ;;  %882 = vmatmul.msk.bf16.gmra.mxu1 %vm418_vm3, %v901_v11 }
  0x4e   : > { %886 = vmatmul.msk.bf16.gmra.mxu2 %vm418_vm3, %v905_v12  ;;  %890 = vmatmul.msk.bf16.gmra.mxu3 %vm418_vm3, %v909_v13  ;;  %v293_v12 = vld [vmem:[#allocation2 + $0xa0] sm:$0xff] }
  0x4f   : > { %v301_v13 = vld [vmem:[#allocation2 + $0xe0] sm:$0xff] }
  0x5d   : > { %879 = vmatmul.msk.bf16.gmra.mxu0 %vm418_vm3, %v898_v14  ;;  %883 = vmatmul.msk.bf16.gmra.mxu1 %vm418_vm3, %v902_v15  ;;  %v278_v14 = vld [vmem:[#allocation2 + $0x28] sm:$0xff] }
  0x5e   : > { %887 = vmatmul.msk.bf16.gmra.mxu2 %vm418_vm3, %v906_v16  ;;  %891 = vmatmul.msk.bf16.gmra.mxu3 %vm418_vm3, %v910_v17  ;;  %v286_v15 = vld [vmem:[#allocation2 + $0x68] sm:$0xff] }
  0x6d   : > { %880 = vmatmul.msk.bf16.gmra.mxu0 %vm418_vm3, %v899_v18  ;;  %884 = vmatmul.msk.bf16.gmra.mxu1 %vm418_vm3, %v903_v19 }
  0x6e   : > { %888 = vmatmul.msk.bf16.gmra.mxu2 %vm418_vm3, %v907_v20  ;;  %892 = vmatmul.msk.bf16.gmra.mxu3 %vm418_vm3, %v911_v21 }
  0xba   : > { %v483_v24 = vpop.f32.mrf.mxu0  ;;  %v503_v25 = vpop.f32.mrf.mxu1 }
  0xbb   : > { %v563_v26 = vadd.f32 %v483_v24, %v273_v22  ;;  %v571_v27 = vadd.f32 %v503_v25, %v281_v23  ;;  %v294_v24 = vld [vmem:[#allocation2 + $0xa8] sm:$0xff] }
  0xbc   : > { %v302_v25 = vld [vmem:[#allocation2 + $0xe8] sm:$0xff] }
  0xbd   : > { %596 = vst.msk [vmem:[#allocation2] sm:$0xff] %vm595_vm4, %v563_v26  ;;  %v279_v26 = vld [vmem:[#allocation2 + $0x30] sm:$0xff] }
  0xbe   : > { %604 = vst.msk [vmem:[#allocation2 + $0x40] sm:$0xff] %vm595_vm4, %v571_v27  ;;  %v287_v27 = vld [vmem:[#allocation2 + $0x70] sm:$0xff] }
  0xc1   : > { %v523_v32 = vpop.f32.mrf.mxu2  ;;  %v543_v33 = vpop.f32.mrf.mxu3 }
  0xc2   : > { %v579_v34 = vadd.f32 %v523_v32, %v289_v28  ;;  %v587_v35 = vadd.f32 %v543_v33, %v297_v29  ;;  %v485_v36 = vpop.f32.mrf.mxu0  ;;  %v505_v37 = vpop.f32.mrf.mxu1 }
  0xc3   : > { %v564_v38 = vadd.f32 %v485_v36, %v274_v30  ;;  %v572_v39 = vadd.f32 %v505_v37, %v282_v31  ;;  %v295_v36 = vld [vmem:[#allocation2 + $0xb0] sm:$0xff] }
  0xc4   : > { %612 = vst.msk [vmem:[#allocation2 + $0x80] sm:$0xff] %vm595_vm4, %v579_v34  ;;  %v303_v37 = vld [vmem:[#allocation2 + $0xf0] sm:$0xff] }
  0xc5   : > { %620 = vst.msk [vmem:[#allocation2 + $0xc0] sm:$0xff] %vm595_vm4, %v587_v35 }
  0xc6   : > { %597 = vst.msk [vmem:[#allocation2 + $0x8] sm:$0xff] %vm595_vm4, %v564_v38  ;;  %v280_v38 = vld [vmem:[#allocation2 + $0x38] sm:$0xff] }
  0xc7   : > { %605 = vst.msk [vmem:[#allocation2 + $0x48] sm:$0xff] %vm595_vm4, %v572_v39  ;;  %v288_v39 = vld [vmem:[#allocation2 + $0x78] sm:$0xff] }
  0xc9   : > { %v525_v44 = vpop.f32.mrf.mxu2  ;;  %v545_v45 = vpop.f32.mrf.mxu3 }
  0xca   : > { %v580_v46 = vadd.f32 %v525_v44, %v290_v40  ;;  %v588_v47 = vadd.f32 %v545_v45, %v298_v41  ;;  %v488_v48 = vpop.f32.mrf.mxu0  ;;  %v508_v49 = vpop.f32.mrf.mxu1 }
  0xcb   : > { %v565_v50 = vadd.f32 %v488_v48, %v275_v42  ;;  %v573_v51 = vadd.f32 %v508_v49, %v283_v43  ;;  %v296_v48 = vld [vmem:[#allocation2 + $0xb8] sm:$0xff] }
  0xcc   : > { %613 = vst.msk [vmem:[#allocation2 + $0x88] sm:$0xff] %vm595_vm4, %v580_v46  ;;  %v304_v49 = vld [vmem:[#allocation2 + $0xf8] sm:$0xff] }
  0xcd   : > { %621 = vst.msk [vmem:[#allocation2 + $0xc8] sm:$0xff] %vm595_vm4, %v588_v47 }
  0xce   : > { %598 = vst.msk [vmem:[#allocation2 + $0x10] sm:$0xff] %vm595_vm4, %v565_v50 }
  0xcf   : > { %606 = vst.msk [vmem:[#allocation2 + $0x50] sm:$0xff] %vm595_vm4, %v573_v51 }
  0xd1   : > { %v528_v56 = vpop.f32.mrf.mxu2  ;;  %v548_v57 = vpop.f32.mrf.mxu3 }
  0xd2   : > { %v581_v58 = vadd.f32 %v528_v56, %v291_v52  ;;  %v589_v59 = vadd.f32 %v548_v57, %v299_v53  ;;  %v490_v60 = vpop.f32.mrf.mxu0  ;;  %v510_v61 = vpop.f32.mrf.mxu1 }
  0xd3   : > { %v566_v62 = vadd.f32 %v490_v60, %v276_v54  ;;  %v574_v63 = vadd.f32 %v510_v61, %v284_v55 }
  0xd4   : > { %614 = vst.msk [vmem:[#allocation2 + $0x90] sm:$0xff] %vm595_vm4, %v581_v58 }
  0xd5   : > { %622 = vst.msk [vmem:[#allocation2 + $0xd0] sm:$0xff] %vm595_vm4, %v589_v59 }
  0xd6   : > { %599 = vst.msk [vmem:[#allocation2 + $0x18] sm:$0xff] %vm595_vm4, %v566_v62 }
  0xd7   : > { %607 = vst.msk [vmem:[#allocation2 + $0x58] sm:$0xff] %vm595_vm4, %v574_v63 }
  0xd9   : > { %v530_v4 = vpop.f32.mrf.mxu2  ;;  %v550_v5 = vpop.f32.mrf.mxu3 }
  0xda   : > { %v582_v6 = vadd.f32 %v530_v4, %v292_v0  ;;  %v590_v7 = vadd.f32 %v550_v5, %v300_v1  ;;  %v493_v8 = vpop.f32.mrf.mxu0  ;;  %v513_v9 = vpop.f32.mrf.mxu1 }
  0xdb   : > { %v567_v10 = vadd.f32 %v493_v8, %v277_v2  ;;  %v575_v11 = vadd.f32 %v513_v9, %v285_v3 }
  0xdc   : > { %615 = vst.msk [vmem:[#allocation2 + $0x98] sm:$0xff] %vm595_vm4, %v582_v6 }
  0xdd   : > { %623 = vst.msk [vmem:[#allocation2 + $0xd8] sm:$0xff] %vm595_vm4, %v590_v7 }
  0xde   : > { %600 = vst.msk [vmem:[#allocation2 + $0x20] sm:$0xff] %vm595_vm4, %v567_v10 }
  0xdf   : > { %608 = vst.msk [vmem:[#allocation2 + $0x60] sm:$0xff] %vm595_vm4, %v575_v11 }
  0xe1   : > { %v533_v16 = vpop.f32.mrf.mxu2  ;;  %v553_v17 = vpop.f32.mrf.mxu3 }
  0xe2   : > { %v583_v18 = vadd.f32 %v533_v16, %v293_v12  ;;  %v591_v19 = vadd.f32 %v553_v17, %v301_v13  ;;  %v495_v20 = vpop.f32.mrf.mxu0  ;;  %v515_v21 = vpop.f32.mrf.mxu1 }
  0xe3   : > { %v568_v22 = vadd.f32 %v495_v20, %v278_v14  ;;  %v576_v23 = vadd.f32 %v515_v21, %v286_v15 }
  0xe4   : > { %616 = vst.msk [vmem:[#allocation2 + $0xa0] sm:$0xff] %vm595_vm4, %v583_v18 }
  0xe5   : > { %624 = vst.msk [vmem:[#allocation2 + $0xe0] sm:$0xff] %vm595_vm4, %v591_v19 }
  0xe6   : > { %601 = vst.msk [vmem:[#allocation2 + $0x28] sm:$0xff] %vm595_vm4, %v568_v22 }
  0xe7   : > { %609 = vst.msk [vmem:[#allocation2 + $0x68] sm:$0xff] %vm595_vm4, %v576_v23 }
  0xe9   : > { %v535_v28 = vpop.f32.mrf.mxu2  ;;  %v555_v29 = vpop.f32.mrf.mxu3 }
  0xea   : > { %v584_v30 = vadd.f32 %v535_v28, %v294_v24  ;;  %v592_v31 = vadd.f32 %v555_v29, %v302_v25  ;;  %v498_v32 = vpop.f32.mrf.mxu0  ;;  %v518_v33 = vpop.f32.mrf.mxu1 }
  0xeb   : > { %v569_v34 = vadd.f32 %v498_v32, %v279_v26  ;;  %v577_v35 = vadd.f32 %v518_v33, %v287_v27 }
  0xec   : > { %617 = vst.msk [vmem:[#allocation2 + $0xa8] sm:$0xff] %vm595_vm4, %v584_v30 }
  0xed   : > { %625 = vst.msk [vmem:[#allocation2 + $0xe8] sm:$0xff] %vm595_vm4, %v592_v31 }
  0xee   : > { %602 = vst.msk [vmem:[#allocation2 + $0x30] sm:$0xff] %vm595_vm4, %v569_v34 }
  0xef   : > { %610 = vst.msk [vmem:[#allocation2 + $0x70] sm:$0xff] %vm595_vm4, %v577_v35 }
  0xf1   : > { %v538_v40 = vpop.f32.mrf.mxu2  ;;  %v558_v41 = vpop.f32.mrf.mxu3 }
  0xf2   : > { %v585_v42 = vadd.f32 %v538_v40, %v295_v36  ;;  %v593_v43 = vadd.f32 %v558_v41, %v303_v37  ;;  %v500_v44 = vpop.f32.mrf.mxu0  ;;  %v520_v45 = vpop.f32.mrf.mxu1 }
  0xf3   : > { %v570_v46 = vadd.f32 %v500_v44, %v280_v38  ;;  %v578_v47 = vadd.f32 %v520_v45, %v288_v39 }
  0xf4   : > { %618 = vst.msk [vmem:[#allocation2 + $0xb0] sm:$0xff] %vm595_vm4, %v585_v42 }
  0xf5   : > { %626 = vst.msk [vmem:[#allocation2 + $0xf0] sm:$0xff] %vm595_vm4, %v593_v43 }
  0xf6   : > { %603 = vst.msk [vmem:[#allocation2 + $0x38] sm:$0xff] %vm595_vm4, %v570_v46 }
  0xf7   : > { %611 = vst.msk [vmem:[#allocation2 + $0x78] sm:$0xff] %vm595_vm4, %v578_v47 }
  0xf9   : > { %v540_v50 = vpop.f32.mrf.mxu2  ;;  %v560_v51 = vpop.f32.mrf.mxu3  ;;  %631 = sbr.rel (%p893_p8) target bundleno = 287 (0x11f), region = 36 }
  0xfa   : > { %v586_v52 = vadd.f32 %v540_v50, %v296_v48  ;;  %v594_v53 = vadd.f32 %v560_v51, %v304_v49 }
  0xfc   : > { %619 = vst.msk [vmem:[#allocation2 + $0xb8] sm:$0xff] %vm595_vm4, %v586_v52 }
  0xfd   : > { %627 = vst.msk [vmem:[#allocation2 + $0xf8] sm:$0xff] %vm595_vm4, %v594_v53 }
  0xfe   : > { %v632_v54 = vld [vmem:[#allocation2] sm:$0xff]  ;;  %v633_v55 = vld [vmem:[#allocation2 + $0x8] sm:$0xff]  ;;  %v634_v56 = vld [vmem:[#allocation2 + $0x10] sm:$0xff] }
  0xff   : > { %664 = vst.msk [vmem:[%s1061_s3] sm:$0xff] %vm595_vm4, %v632_v54  ;;  %v635_v57 = vld [vmem:[#allocation2 + $0x18] sm:$0xff]  ;;  %v636_v58 = vld [vmem:[#allocation2 + $0x20] sm:$0xff]  ;;  %v637_v59 = vld [vmem:[#allocation2 + $0x28] sm:$0xff] }
 0x100   : > { %665 = vst.msk [vmem:[%s1061_s3 + $0x8] sm:$0xff] %vm595_vm4, %v633_v55  ;;  %v638_v60 = vld [vmem:[#allocation2 + $0x30] sm:$0xff]  ;;  %v639_v61 = vld [vmem:[#allocation2 + $0x38] sm:$0xff]  ;;  %v640_v62 = vld [vmem:[#allocation2 + $0x40] sm:$0xff] }
 0x101   : > { %666 = vst.msk [vmem:[%s1061_s3 + $0x10] sm:$0xff] %vm595_vm4, %v634_v56  ;;  %v641_v63 = vld [vmem:[#allocation2 + $0x48] sm:$0xff]  ;;  %v642_v0 = vld [vmem:[#allocation2 + $0x50] sm:$0xff]  ;;  %v643_v1 = vld [vmem:[#allocation2 + $0x58] sm:$0xff] }
 0x102   : > { %667 = vst.msk [vmem:[%s1061_s3 + $0x18] sm:$0xff] %vm595_vm4, %v635_v57  ;;  %v644_v2 = vld [vmem:[#allocation2 + $0x60] sm:$0xff]  ;;  %v645_v3 = vld [vmem:[#allocation2 + $0x68] sm:$0xff]  ;;  %v646_v4 = vld [vmem:[#allocation2 + $0x70] sm:$0xff] }
 0x103   : > { %668 = vst.msk [vmem:[%s1061_s3 + $0x20] sm:$0xff] %vm595_vm4, %v636_v58  ;;  %v647_v5 = vld [vmem:[#allocation2 + $0x78] sm:$0xff]  ;;  %v648_v6 = vld [vmem:[#allocation2 + $0x80] sm:$0xff]  ;;  %v649_v7 = vld [vmem:[#allocation2 + $0x88] sm:$0xff] }
 0x104   : > { %669 = vst.msk [vmem:[%s1061_s3 + $0x28] sm:$0xff] %vm595_vm4, %v637_v59  ;;  %v650_v8 = vld [vmem:[#allocation2 + $0x90] sm:$0xff]  ;;  %v651_v9 = vld [vmem:[#allocation2 + $0x98] sm:$0xff]  ;;  %v652_v10 = vld [vmem:[#allocation2 + $0xa0] sm:$0xff] }
 0x105   : > { %670 = vst.msk [vmem:[%s1061_s3 + $0x30] sm:$0xff] %vm595_vm4, %v638_v60  ;;  %v653_v11 = vld [vmem:[#allocation2 + $0xa8] sm:$0xff]  ;;  %v654_v12 = vld [vmem:[#allocation2 + $0xb0] sm:$0xff]  ;;  %v655_v13 = vld [vmem:[#allocation2 + $0xb8] sm:$0xff] }
 0x106   : > { %671 = vst.msk [vmem:[%s1061_s3 + $0x38] sm:$0xff] %vm595_vm4, %v639_v61  ;;  %v656_v14 = vld [vmem:[#allocation2 + $0xc0] sm:$0xff]  ;;  %v657_v15 = vld [vmem:[#allocation2 + $0xc8] sm:$0xff]  ;;  %v658_v16 = vld [vmem:[#allocation2 + $0xd0] sm:$0xff] }
 0x107   : > { %672 = vst.msk [vmem:[%s1061_s3 + $0x40] sm:$0xff] %vm595_vm4, %v640_v62  ;;  %v659_v17 = vld [vmem:[#allocation2 + $0xd8] sm:$0xff]  ;;  %v660_v18 = vld [vmem:[#allocation2 + $0xe0] sm:$0xff]  ;;  %v661_v19 = vld [vmem:[#allocation2 + $0xe8] sm:$0xff] }
 0x108   : > { %673 = vst.msk [vmem:[%s1061_s3 + $0x48] sm:$0xff] %vm595_vm4, %v641_v63  ;;  %v662_v20 = vld [vmem:[#allocation2 + $0xf0] sm:$0xff]  ;;  %v663_v21 = vld [vmem:[#allocation2 + $0xf8] sm:$0xff] }
 0x109   : > { %674 = vst.msk [vmem:[%s1061_s3 + $0x50] sm:$0xff] %vm595_vm4, %v642_v0 }
 0x10a   : > { %675 = vst.msk [vmem:[%s1061_s3 + $0x58] sm:$0xff] %vm595_vm4, %v643_v1 }
 0x10b   : > { %676 = vst.msk [vmem:[%s1061_s3 + $0x60] sm:$0xff] %vm595_vm4, %v644_v2 }
 0x10c   : > { %677 = vst.msk [vmem:[%s1061_s3 + $0x68] sm:$0xff] %vm595_vm4, %v645_v3 }
 0x10d   : > { %678 = vst.msk [vmem:[%s1061_s3 + $0x70] sm:$0xff] %vm595_vm4, %v646_v4 }
 0x10e   : > { %679 = vst.msk [vmem:[%s1061_s3 + $0x78] sm:$0xff] %vm595_vm4, %v647_v5 }
 0x10f   : > { %680 = vst.msk [vmem:[%s1061_s3 + $0x80] sm:$0xff] %vm595_vm4, %v648_v6 }
 0x110   : > { %681 = vst.msk [vmem:[%s1061_s3 + $0x88] sm:$0xff] %vm595_vm4, %v649_v7 }
 0x111   : > { %682 = vst.msk [vmem:[%s1061_s3 + $0x90] sm:$0xff] %vm595_vm4, %v650_v8 }
 0x112   : > { %683 = vst.msk [vmem:[%s1061_s3 + $0x98] sm:$0xff] %vm595_vm4, %v651_v9 }
 0x113   : > { %684 = vst.msk [vmem:[%s1061_s3 + $0xa0] sm:$0xff] %vm595_vm4, %v652_v10 }
 0x114   : > { %685 = vst.msk [vmem:[%s1061_s3 + $0xa8] sm:$0xff] %vm595_vm4, %v653_v11 }
 0x115   : > { %686 = vst.msk [vmem:[%s1061_s3 + $0xb0] sm:$0xff] %vm595_vm4, %v654_v12 }
 0x116   : > { %687 = vst.msk [vmem:[%s1061_s3 + $0xb8] sm:$0xff] %vm595_vm4, %v655_v13 }
 0x117   : > { %688 = vst.msk [vmem:[%s1061_s3 + $0xc0] sm:$0xff] %vm595_vm4, %v656_v14 }
 0x118   : > { %689 = vst.msk [vmem:[%s1061_s3 + $0xc8] sm:$0xff] %vm595_vm4, %v657_v15 }
 0x119   : > { %690 = vst.msk [vmem:[%s1061_s3 + $0xd0] sm:$0xff] %vm595_vm4, %v658_v16 }
 0x11a   : > { %691 = vst.msk [vmem:[%s1061_s3 + $0xd8] sm:$0xff] %vm595_vm4, %v659_v17 }
 0x11b   : > { %692 = vst.msk [vmem:[%s1061_s3 + $0xe0] sm:$0xff] %vm595_vm4, %v660_v18 }
 0x11c   : > { %693 = vst.msk [vmem:[%s1061_s3 + $0xe8] sm:$0xff] %vm595_vm4, %v661_v19 }
 0x11d   : > { %694 = vst.msk [vmem:[%s1061_s3 + $0xf0] sm:$0xff] %vm595_vm4, %v662_v20 }
 0x11e   : > { %695 = vst.msk [vmem:[%s1061_s3 + $0xf8] sm:$0xff] %vm595_vm4, %v663_v21 }
 0x11f PF: > { %s12_s13 = sadd.s32 1, %s995_s13   ;;  %s1244_s9 = smov %s987_s11 }
 0x120   : > { %p9_p9 = scmp.ge.s32.totalorder %s12_s13, 20   ;;  %s1245_s10 = smov %s991_s12 }
 0x121   : > { %s1246_s11 = smov %s1249_s14  ;;  %s1247_s12 = smov %s1253_s15 }
 0x122   :  { %11 = sbr.rel (!%p9_p9) target bundleno = 3 (0x3), region = 69 }

// kernel: espnet_encoder.43
= control target key start
LH: loop header
LB: loop body
LE: loop exit
PB: predicated region body
PF: predicated region fallthrough
CT: control target
= control target key end

     0   :  { %vm88_vm0 = vcmask 392192   ;;  %s263_s0 = inlined_call_operand.vmem [shape: f32[9,32,48], index: 0, kind: input, shape index: {}]   ;;  %s264_s1 = inlined_call_operand.vmem [shape: f32[32,48], index: 1, kind: output, shape index: {}]  }
   0x1   :  { %v8_v0 = vld [vmem:[%s263_s0] sm:$0xff]  ;;  %v9_v6 = vld [vmem:[%s263_s0 + $0x8] sm:$0xff]  ;;  %v10_v15 = vld [vmem:[%s263_s0 + $0x10] sm:$0xff] }
   0x2   :  { %v97_v1 = vld [vmem:[%s263_s0 + $0x20] sm:$0xff]  ;;  %v98_v7 = vld [vmem:[%s263_s0 + $0x28] sm:$0xff]  ;;  %v99_v16 = vld [vmem:[%s263_s0 + $0x30] sm:$0xff] }
   0x3   :  { %v101_v2 = vld [vmem:[%s263_s0 + $0x40] sm:$0xff]  ;;  %v17_v3 = vadd.f32 %v97_v1, %v8_v0  ;;  %v102_v8 = vld [vmem:[%s263_s0 + $0x48] sm:$0xff]  ;;  %v18_v10 = vadd.f32 %v98_v7, %v9_v6  ;;  %v103_v17 = vld [vmem:[%s263_s0 + $0x50] sm:$0xff]  ;;  %v19_v20 = vadd.f32 %v99_v16, %v10_v15 }
   0x4   :  { %v105_v4 = vld [vmem:[%s263_s0 + $0x60] sm:$0xff]  ;;  %v106_v13 = vld [vmem:[%s263_s0 + $0x68] sm:$0xff]  ;;  %v107_v24 = vld [vmem:[%s263_s0 + $0x70] sm:$0xff] }
   0x5   :  { %v26_v5 = vadd.f32 %v101_v2, %v17_v3  ;;  %v109_v9 = vld [vmem:[%s263_s0 + $0x80] sm:$0xff]  ;;  %v27_v14 = vadd.f32 %v102_v8, %v18_v10  ;;  %v110_v19 = vld [vmem:[%s263_s0 + $0x88] sm:$0xff]  ;;  %v28_v26 = vadd.f32 %v103_v17, %v19_v20  ;;  %v11_v27 = vld [vmem:[%s263_s0 + $0x18] sm:$0xff] }
   0x6   :  { %v113_v12 = vld [vmem:[%s263_s0 + $0xa0] sm:$0xff]  ;;  %v114_v23 = vld [vmem:[%s263_s0 + $0xa8] sm:$0xff]  ;;  %v100_v28 = vld [vmem:[%s263_s0 + $0x38] sm:$0xff] }
   0x7   :  { %v35_v11 = vadd.f32 %v105_v4, %v26_v5  ;;  %v117_v21 = vld [vmem:[%s263_s0 + $0xc0] sm:$0xff]  ;;  %v36_v22 = vadd.f32 %v106_v13, %v27_v14  ;;  %v104_v29 = vld [vmem:[%s263_s0 + $0x58] sm:$0xff]  ;;  %v111_v32 = vld [vmem:[%s263_s0 + $0x90] sm:$0xff]  ;;  %v20_v33 = vadd.f32 %v100_v28, %v11_v27  ;;  %v37_v36 = vadd.f32 %v107_v24, %v28_v26 }
   0x8   :  { %v121_v30 = vld [vmem:[%s263_s0 + $0xe0] sm:$0xff]  ;;  %v118_v35 = vld [vmem:[%s263_s0 + $0xc8] sm:$0xff]  ;;  %v108_v37 = vld [vmem:[%s263_s0 + $0x78] sm:$0xff] }
   0x9   :  { %v44_v18 = vadd.f32 %v109_v9, %v35_v11  ;;  %v45_v31 = vadd.f32 %v110_v19, %v36_v22  ;;  %v125_v38 = vld [vmem:[%s263_s0 + $0x100] sm:$0xff]  ;;  %v115_v40 = vld [vmem:[%s263_s0 + $0xb0] sm:$0xff]  ;;  %v29_v41 = vadd.f32 %v104_v29, %v20_v33  ;;  %v122_v43 = vld [vmem:[%s263_s0 + $0xe8] sm:$0xff]  ;;  %v46_v44 = vadd.f32 %v111_v32, %v37_v36 }
   0xa   :  { %v112_v45 = vld [vmem:[%s263_s0 + $0x98] sm:$0xff]  ;;  %v119_v47 = vld [vmem:[%s263_s0 + $0xd0] sm:$0xff]  ;;  %v126_v50 = vld [vmem:[%s263_s0 + $0x108] sm:$0xff] }
   0xb   :  { %v53_v25 = vadd.f32 %v113_v12, %v44_v18  ;;  %v54_v39 = vadd.f32 %v114_v23, %v45_v31  ;;  %v38_v48 = vadd.f32 %v108_v37, %v29_v41  ;;  %v55_v51 = vadd.f32 %v115_v40, %v46_v44  ;;  %v116_v52 = vld [vmem:[%s263_s0 + $0xb8] sm:$0xff]  ;;  %v123_v54 = vld [vmem:[%s263_s0 + $0xf0] sm:$0xff] }
   0xc   :  { %v120_v58 = vld [vmem:[%s263_s0 + $0xd8] sm:$0xff]  ;;  %v127_v60 = vld [vmem:[%s263_s0 + $0x110] sm:$0xff] }
   0xd   :  { %v62_v34 = vadd.f32 %v117_v21, %v53_v25  ;;  %v63_v46 = vadd.f32 %v118_v35, %v54_v39  ;;  %v47_v55 = vadd.f32 %v112_v45, %v38_v48  ;;  %v64_v57 = vadd.f32 %v119_v47, %v55_v51  ;;  %v124_v63 = vld [vmem:[%s263_s0 + $0xf8] sm:$0xff] }
   0xe   :  { %v128_v3 = vld [vmem:[%s263_s0 + $0x118] sm:$0xff] }
   0xf   :  { %v71_v42 = vadd.f32 %v121_v30, %v62_v34  ;;  %v72_v53 = vadd.f32 %v122_v43, %v63_v46  ;;  %v56_v61 = vadd.f32 %v116_v52, %v47_v55  ;;  %v73_v62 = vadd.f32 %v123_v54, %v64_v57 }
  0x11   :  { %v80_v49 = vadd.f32 %v125_v38, %v71_v42  ;;  %v81_v59 = vadd.f32 %v126_v50, %v72_v53  ;;  %v65_v1 = vadd.f32 %v120_v58, %v56_v61  ;;  %v82_v2 = vadd.f32 %v127_v60, %v73_v62 }
  0x13   :  { %v84_v56 = vmul.f32 0.11111111, %v80_v49  ;;  %v85_v0 = vmul.f32 0.11111111, %v81_v59  ;;  %v74_v4 = vadd.f32 %v124_v63, %v65_v1  ;;  %v86_v5 = vmul.f32 0.11111111, %v82_v2 }
  0x15   :  { %89 = vst.msk [vmem:[%s264_s1] sm:$0xff] %vm88_vm0, %v84_v56  ;;  %v83_v6 = vadd.f32 %v128_v3, %v74_v4 }
  0x16   :  { %90 = vst.msk [vmem:[%s264_s1 + $0x8] sm:$0xff] %vm88_vm0, %v85_v0 }
  0x17   :  { %91 = vst.msk [vmem:[%s264_s1 + $0x10] sm:$0xff] %vm88_vm0, %v86_v5  ;;  %v87_v7 = vmul.f32 0.11111111, %v83_v6 }
  0x19   :  { %92 = vst.msk [vmem:[%s264_s1 + $0x18] sm:$0xff] %vm88_vm0, %v87_v7 }

// kernel: espnet_encoder.45
= control target key start
LH: loop header
LB: loop body
LE: loop exit
PB: predicated region body
PF: predicated region fallthrough
CT: control target
= control target key end

     0   :  { %vm12_vm0 = vcmask 154624   ;;  %v421_v0 = vmov 0.0   ;;  %vm214_vm1 = vcmask 147456   ;;  %s768_s0 = inlined_call_operand.vmem [shape: f32[512,19], index: 0, kind: input, shape index: {}]   ;;  %s769_s1 = inlined_call_operand.vmem [shape: f32[8,19], index: 1, kind: output, shape index: {}]  }
   0x1   :  { %13 = vst.msk [vmem:[%s769_s1] sm:$0xff] %vm12_vm0, %v421_v0  ;;  %v14_v1 = vld [vmem:[%s768_s0] sm:$0xff]  ;;  %v15_v2 = vld [vmem:[%s768_s0 + $0x8] sm:$0xff]  ;;  %v16_v3 = vld [vmem:[%s768_s0 + $0x10] sm:$0xff] }
   0x2   :  { %v80_v4 = vsel %vm12_vm0, %v14_v1, 0.0  ;;  %v81_v5 = vsel %vm12_vm0, %v15_v2, 0.0  ;;  %v83_v6 = vsel %vm12_vm0, %v16_v3, 0.0  ;;  %v17_v7 = vld [vmem:[%s768_s0 + $0x18] sm:$0xff]  ;;  %v18_v10 = vld [vmem:[%s768_s0 + $0x20] sm:$0xff]  ;;  %v19_v13 = vld [vmem:[%s768_s0 + $0x28] sm:$0xff]  ;;  %v217_v21 = vmul.f32 %v14_v1, %v14_v1 }
   0x3   :  { %v82_v8 = vadd.f32 %v81_v5, %v80_v4  ;;  %v85_v9 = vsel %vm12_vm0, %v17_v7, 0.0  ;;  %v87_v12 = vsel %vm12_vm0, %v18_v10, 0.0  ;;  %v89_v15 = vsel %vm12_vm0, %v19_v13, 0.0  ;;  %v20_v16 = vld [vmem:[%s768_s0 + $0x30] sm:$0xff]  ;;  %v21_v19 = vld [vmem:[%s768_s0 + $0x38] sm:$0xff]  ;;  %v22_v25 = vld [vmem:[%s768_s0 + $0x40] sm:$0xff] }
   0x4   :  { %v91_v18 = vsel %vm12_vm0, %v20_v16, 0.0  ;;  %v93_v22 = vsel %vm12_vm0, %v21_v19, 0.0  ;;  %v218_v23 = vmul.f32 %v15_v2, %v15_v2  ;;  %v219_v24 = vmul.f32 %v16_v3, %v16_v3  ;;  %v23_v29 = vld [vmem:[%s768_s0 + $0x48] sm:$0xff]  ;;  %v24_v36 = vld [vmem:[%s768_s0 + $0x50] sm:$0xff]  ;;  %v25_v42 = vld [vmem:[%s768_s0 + $0x58] sm:$0xff] }
   0x5   :  { %v84_v11 = vadd.f32 %v83_v6, %v82_v8  ;;  %v95_v27 = vsel %vm12_vm0, %v22_v25, 0.0  ;;  %v220_v28 = vmul.f32 %v17_v7, %v17_v7  ;;  %v281_v31 = vsel %vm12_vm0, %v217_v21, 0.0  ;;  %v26_v48 = vld [vmem:[%s768_s0 + $0x60] sm:$0xff]  ;;  %v27_v54 = vld [vmem:[%s768_s0 + $0x68] sm:$0xff]  ;;  %v28_v60 = vld [vmem:[%s768_s0 + $0x70] sm:$0xff] }
   0x6   :  { %v97_v32 = vsel %vm12_vm0, %v23_v29, 0.0  ;;  %v221_v33 = vmul.f32 %v18_v10, %v18_v10  ;;  %v282_v34 = vsel %vm12_vm0, %v218_v23, 0.0  ;;  %v284_v35 = vsel %vm12_vm0, %v219_v24, 0.0  ;;  %v29_v2 = vld [vmem:[%s768_s0 + $0x78] sm:$0xff]  ;;  %v30_v8 = vld [vmem:[%s768_s0 + $0x80] sm:$0xff] }
   0x7   :  { %v86_v14 = vadd.f32 %v85_v9, %v84_v11  ;;  %v283_v38 = vadd.f32 %v282_v34, %v281_v31  ;;  %v99_v39 = vsel %vm12_vm0, %v24_v36, 0.0  ;;  %v222_v40 = vmul.f32 %v19_v13, %v19_v13 }
   0x8   :  { %v286_v41 = vsel %vm12_vm0, %v220_v28, 0.0  ;;  %v101_v45 = vsel %vm12_vm0, %v25_v42, 0.0  ;;  %v223_v46 = vmul.f32 %v20_v16, %v20_v16  ;;  %v288_v47 = vsel %vm12_vm0, %v221_v33, 0.0 }
   0x9   :  { %v88_v17 = vadd.f32 %v87_v12, %v86_v14  ;;  %v285_v44 = vadd.f32 %v284_v35, %v283_v38  ;;  %v103_v51 = vsel %vm12_vm0, %v26_v48, 0.0  ;;  %v224_v52 = vmul.f32 %v21_v19, %v21_v19  ;;  %v31_v14 = vld [vmem:[%s768_s0 + $0x88] sm:$0xff] }
   0xa   :  { %v290_v53 = vsel %vm12_vm0, %v222_v40, 0.0  ;;  %v105_v57 = vsel %vm12_vm0, %v27_v54, 0.0  ;;  %v225_v58 = vmul.f32 %v22_v25, %v22_v25  ;;  %v292_v59 = vsel %vm12_vm0, %v223_v46, 0.0  ;;  %v35_v38 = vld [vmem:[%s768_s0 + $0xa8] sm:$0xff] }
   0xb   :  { %v90_v20 = vadd.f32 %v89_v15, %v88_v17  ;;  %v287_v50 = vadd.f32 %v286_v41, %v285_v44  ;;  %v107_v63 = vsel %vm12_vm0, %v28_v60, 0.0  ;;  %v226_v0 = vmul.f32 %v23_v29, %v23_v29  ;;  %v36_v44 = vld [vmem:[%s768_s0 + $0xb0] sm:$0xff] }
   0xc   :  { %v294_v1 = vsel %vm12_vm0, %v224_v52, 0.0  ;;  %v109_v5 = vsel %vm12_vm0, %v29_v2, 0.0  ;;  %v227_v6 = vmul.f32 %v24_v36, %v24_v36  ;;  %v296_v7 = vsel %vm12_vm0, %v225_v58, 0.0 }
   0xd   :  { %v92_v26 = vadd.f32 %v91_v18, %v90_v20  ;;  %v289_v56 = vadd.f32 %v288_v47, %v287_v50  ;;  %v111_v11 = vsel %vm12_vm0, %v30_v8, 0.0  ;;  %v228_v12 = vmul.f32 %v25_v42, %v25_v42  ;;  %v32_v20 = vld [vmem:[%s768_s0 + $0x90] sm:$0xff]  ;;  %v37_v50 = vld [vmem:[%s768_s0 + $0xb8] sm:$0xff] }
   0xe   :  { %v298_v13 = vsel %vm12_vm0, %v226_v0, 0.0  ;;  %v113_v17 = vsel %vm12_vm0, %v31_v14, 0.0  ;;  %v229_v18 = vmul.f32 %v26_v48, %v26_v48  ;;  %v300_v19 = vsel %vm12_vm0, %v227_v6, 0.0 }
   0xf   :  { %v94_v30 = vadd.f32 %v93_v22, %v92_v26  ;;  %v291_v62 = vadd.f32 %v290_v53, %v289_v56  ;;  %v115_v23 = vsel %vm12_vm0, %v32_v20, 0.0  ;;  %v230_v24 = vmul.f32 %v27_v54, %v27_v54  ;;  %v33_v26 = vld [vmem:[%s768_s0 + $0x98] sm:$0xff]  ;;  %v38_v56 = vld [vmem:[%s768_s0 + $0xc0] sm:$0xff] }
  0x10   :  { %v302_v25 = vsel %vm12_vm0, %v228_v12, 0.0  ;;  %v117_v29 = vsel %vm12_vm0, %v33_v26, 0.0  ;;  %v304_v31 = vsel %vm12_vm0, %v229_v18, 0.0  ;;  %v232_v36 = vmul.f32 %v29_v2, %v29_v2 }
  0x11   :  { %v96_v37 = vadd.f32 %v95_v27, %v94_v30  ;;  %v293_v4 = vadd.f32 %v292_v59, %v291_v62  ;;  %v231_v30 = vmul.f32 %v28_v60, %v28_v60  ;;  %v121_v41 = vsel %vm12_vm0, %v35_v38, 0.0  ;;  %v39_v62 = vld [vmem:[%s768_s0 + $0xc8] sm:$0xff] }
  0x12   :  { %v233_v42 = vmul.f32 %v30_v8, %v30_v8  ;;  %v123_v47 = vsel %vm12_vm0, %v36_v44, 0.0  ;;  %v234_v48 = vmul.f32 %v31_v14, %v31_v14  ;;  %v125_v53 = vsel %vm12_vm0, %v37_v50, 0.0 }
  0x13   :  { %v98_v43 = vadd.f32 %v97_v32, %v96_v37  ;;  %v295_v10 = vadd.f32 %v294_v1, %v293_v4  ;;  %v34_v32 = vld [vmem:[%s768_s0 + $0xa0] sm:$0xff]  ;;  %v306_v37 = vsel %vm12_vm0, %v230_v24, 0.0  ;;  %v235_v54 = vmul.f32 %v32_v20, %v32_v20  ;;  %v40_v4 = vld [vmem:[%s768_s0 + $0xd0] sm:$0xff] }
  0x14   :  { %v119_v35 = vsel %vm12_vm0, %v34_v32, 0.0  ;;  %v127_v59 = vsel %vm12_vm0, %v38_v56, 0.0  ;;  %v236_v60 = vmul.f32 %v33_v26, %v33_v26  ;;  %v129_v1 = vsel %vm12_vm0, %v39_v62, 0.0 }
  0x15   :  { %v100_v49 = vadd.f32 %v99_v39, %v98_v43  ;;  %v297_v16 = vadd.f32 %v296_v7, %v295_v10  ;;  %v308_v43 = vsel %vm12_vm0, %v231_v30, 0.0  ;;  %v237_v2 = vmul.f32 %v34_v32, %v34_v32  ;;  %v41_v10 = vld [vmem:[%s768_s0 + $0xd8] sm:$0xff] }
  0x16   :  { %v131_v7 = vsel %vm12_vm0, %v40_v4, 0.0  ;;  %v238_v8 = vmul.f32 %v35_v38, %v35_v38  ;;  %v239_v14 = vmul.f32 %v36_v44, %v36_v44  ;;  %v240_v20 = vmul.f32 %v37_v50, %v37_v50 }
  0x17   :  { %v102_v55 = vadd.f32 %v101_v45, %v100_v49  ;;  %v299_v22 = vadd.f32 %v298_v13, %v297_v16  ;;  %v310_v49 = vsel %vm12_vm0, %v232_v36, 0.0  ;;  %v133_v13 = vsel %vm12_vm0, %v41_v10, 0.0  ;;  %v42_v16 = vld [vmem:[%s768_s0 + $0xe0] sm:$0xff] }
  0x18   :  { %v241_v26 = vmul.f32 %v38_v56, %v38_v56  ;;  %v242_v32 = vmul.f32 %v39_v62, %v39_v62  ;;  %v243_v38 = vmul.f32 %v40_v4, %v40_v4  ;;  %v244_v44 = vmul.f32 %v41_v10, %v41_v10 }
  0x19   :  { %v104_v61 = vadd.f32 %v103_v51, %v102_v55  ;;  %v301_v28 = vadd.f32 %v300_v19, %v299_v22  ;;  %v312_v55 = vsel %vm12_vm0, %v233_v42, 0.0  ;;  %v135_v19 = vsel %vm12_vm0, %v42_v16, 0.0  ;;  %v43_v22 = vld [vmem:[%s768_s0 + $0xe8] sm:$0xff] }
  0x1a   :  { %v245_v50 = vmul.f32 %v42_v16, %v42_v16  ;;  %v246_v56 = vmul.f32 %v43_v22, %v43_v22 }
  0x1b   :  { %v106_v3 = vadd.f32 %v105_v57, %v104_v61  ;;  %v303_v34 = vadd.f32 %v302_v25, %v301_v28  ;;  %v314_v61 = vsel %vm12_vm0, %v234_v48, 0.0  ;;  %v137_v25 = vsel %vm12_vm0, %v43_v22, 0.0  ;;  %v44_v28 = vld [vmem:[%s768_s0 + $0xf0] sm:$0xff] }
  0x1c   :  { %v247_v62 = vmul.f32 %v44_v28, %v44_v28 }
  0x1d   :  { %v108_v9 = vadd.f32 %v107_v63, %v106_v3  ;;  %v305_v40 = vadd.f32 %v304_v31, %v303_v34  ;;  %v316_v3 = vsel %vm12_vm0, %v235_v54, 0.0  ;;  %v139_v31 = vsel %vm12_vm0, %v44_v28, 0.0  ;;  %v45_v34 = vld [vmem:[%s768_s0 + $0xf8] sm:$0xff] }
  0x1e   :  { %v248_v4 = vmul.f32 %v45_v34, %v45_v34 }
  0x1f   :  { %v110_v15 = vadd.f32 %v109_v5, %v108_v9  ;;  %v307_v46 = vadd.f32 %v306_v37, %v305_v40  ;;  %v318_v9 = vsel %vm12_vm0, %v236_v60, 0.0  ;;  %v141_v37 = vsel %vm12_vm0, %v45_v34, 0.0  ;;  %v46_v40 = vld [vmem:[%s768_s0 + $0x100] sm:$0xff] }
  0x20   :  { %v249_v10 = vmul.f32 %v46_v40, %v46_v40 }
  0x21   :  { %v112_v21 = vadd.f32 %v111_v11, %v110_v15  ;;  %v309_v52 = vadd.f32 %v308_v43, %v307_v46  ;;  %v320_v15 = vsel %vm12_vm0, %v237_v2, 0.0  ;;  %v143_v43 = vsel %vm12_vm0, %v46_v40, 0.0  ;;  %v47_v46 = vld [vmem:[%s768_s0 + $0x108] sm:$0xff] }
  0x22   :  { %v250_v16 = vmul.f32 %v47_v46, %v47_v46 }
  0x23   :  { %v114_v27 = vadd.f32 %v113_v17, %v112_v21  ;;  %v311_v58 = vadd.f32 %v310_v49, %v309_v52  ;;  %v322_v21 = vsel %vm12_vm0, %v238_v8, 0.0  ;;  %v145_v49 = vsel %vm12_vm0, %v47_v46, 0.0  ;;  %v48_v52 = vld [vmem:[%s768_s0 + $0x110] sm:$0xff] }
  0x24   :  { %v251_v22 = vmul.f32 %v48_v52, %v48_v52 }
  0x25   :  { %v116_v33 = vadd.f32 %v115_v23, %v114_v27  ;;  %v313_v0 = vadd.f32 %v312_v55, %v311_v58  ;;  %v324_v27 = vsel %vm12_vm0, %v239_v14, 0.0  ;;  %v147_v55 = vsel %vm12_vm0, %v48_v52, 0.0  ;;  %v49_v58 = vld [vmem:[%s768_s0 + $0x118] sm:$0xff] }
  0x26   :  { %v252_v28 = vmul.f32 %v49_v58, %v49_v58 }
  0x27   :  { %v118_v39 = vadd.f32 %v117_v29, %v116_v33  ;;  %v315_v6 = vadd.f32 %v314_v61, %v313_v0  ;;  %v326_v33 = vsel %vm12_vm0, %v240_v20, 0.0  ;;  %v149_v61 = vsel %vm12_vm0, %v49_v58, 0.0  ;;  %v50_v0 = vld [vmem:[%s768_s0 + $0x120] sm:$0xff] }
  0x28   :  { %v253_v34 = vmul.f32 %v50_v0, %v50_v0 }
  0x29   :  { %v120_v45 = vadd.f32 %v119_v35, %v118_v39  ;;  %v317_v12 = vadd.f32 %v316_v3, %v315_v6  ;;  %v328_v39 = vsel %vm12_vm0, %v241_v26, 0.0  ;;  %v151_v3 = vsel %vm12_vm0, %v50_v0, 0.0  ;;  %v51_v6 = vld [vmem:[%s768_s0 + $0x128] sm:$0xff] }
  0x2a   :  { %v254_v40 = vmul.f32 %v51_v6, %v51_v6 }
  0x2b   :  { %v122_v51 = vadd.f32 %v121_v41, %v120_v45  ;;  %v319_v18 = vadd.f32 %v318_v9, %v317_v12  ;;  %v330_v45 = vsel %vm12_vm0, %v242_v32, 0.0  ;;  %v153_v9 = vsel %vm12_vm0, %v51_v6, 0.0  ;;  %v52_v12 = vld [vmem:[%s768_s0 + $0x130] sm:$0xff] }
  0x2c   :  { %v255_v46 = vmul.f32 %v52_v12, %v52_v12 }
  0x2d   :  { %v124_v57 = vadd.f32 %v123_v47, %v122_v51  ;;  %v321_v24 = vadd.f32 %v320_v15, %v319_v18  ;;  %v332_v51 = vsel %vm12_vm0, %v243_v38, 0.0  ;;  %v155_v15 = vsel %vm12_vm0, %v52_v12, 0.0  ;;  %v53_v18 = vld [vmem:[%s768_s0 + $0x138] sm:$0xff] }
  0x2e   :  { %v256_v52 = vmul.f32 %v53_v18, %v53_v18 }
  0x2f   :  { %v126_v63 = vadd.f32 %v125_v53, %v124_v57  ;;  %v323_v30 = vadd.f32 %v322_v21, %v321_v24  ;;  %v334_v57 = vsel %vm12_vm0, %v244_v44, 0.0  ;;  %v157_v21 = vsel %vm12_vm0, %v53_v18, 0.0  ;;  %v54_v24 = vld [vmem:[%s768_s0 + $0x140] sm:$0xff] }
  0x30   :  { %v257_v58 = vmul.f32 %v54_v24, %v54_v24 }
  0x31   :  { %v128_v5 = vadd.f32 %v127_v59, %v126_v63  ;;  %v325_v36 = vadd.f32 %v324_v27, %v323_v30  ;;  %v336_v63 = vsel %vm12_vm0, %v245_v50, 0.0  ;;  %v159_v27 = vsel %vm12_vm0, %v54_v24, 0.0  ;;  %v55_v30 = vld [vmem:[%s768_s0 + $0x148] sm:$0xff] }
  0x32   :  { %v258_v0 = vmul.f32 %v55_v30, %v55_v30 }
  0x33   :  { %v130_v11 = vadd.f32 %v129_v1, %v128_v5  ;;  %v327_v42 = vadd.f32 %v326_v33, %v325_v36  ;;  %v338_v5 = vsel %vm12_vm0, %v246_v56, 0.0  ;;  %v161_v33 = vsel %vm12_vm0, %v55_v30, 0.0  ;;  %v56_v36 = vld [vmem:[%s768_s0 + $0x150] sm:$0xff] }
  0x34   :  { %v259_v6 = vmul.f32 %v56_v36, %v56_v36 }
  0x35   :  { %v132_v17 = vadd.f32 %v131_v7, %v130_v11  ;;  %v329_v48 = vadd.f32 %v328_v39, %v327_v42  ;;  %v340_v11 = vsel %vm12_vm0, %v247_v62, 0.0  ;;  %v163_v39 = vsel %vm12_vm0, %v56_v36, 0.0  ;;  %v57_v42 = vld [vmem:[%s768_s0 + $0x158] sm:$0xff] }
  0x36   :  { %v260_v12 = vmul.f32 %v57_v42, %v57_v42 }
  0x37   :  { %v134_v23 = vadd.f32 %v133_v13, %v132_v17  ;;  %v331_v54 = vadd.f32 %v330_v45, %v329_v48  ;;  %v342_v17 = vsel %vm12_vm0, %v248_v4, 0.0  ;;  %v165_v45 = vsel %vm12_vm0, %v57_v42, 0.0  ;;  %v58_v48 = vld [vmem:[%s768_s0 + $0x160] sm:$0xff] }
  0x38   :  { %v261_v18 = vmul.f32 %v58_v48, %v58_v48 }
  0x39   :  { %v136_v29 = vadd.f32 %v135_v19, %v134_v23  ;;  %v333_v60 = vadd.f32 %v332_v51, %v331_v54  ;;  %v344_v23 = vsel %vm12_vm0, %v249_v10, 0.0  ;;  %v167_v51 = vsel %vm12_vm0, %v58_v48, 0.0  ;;  %v59_v54 = vld [vmem:[%s768_s0 + $0x168] sm:$0xff] }
  0x3a   :  { %v262_v24 = vmul.f32 %v59_v54, %v59_v54 }
  0x3b   :  { %v138_v35 = vadd.f32 %v137_v25, %v136_v29  ;;  %v335_v2 = vadd.f32 %v334_v57, %v333_v60  ;;  %v346_v29 = vsel %vm12_vm0, %v250_v16, 0.0  ;;  %v169_v57 = vsel %vm12_vm0, %v59_v54, 0.0  ;;  %v60_v60 = vld [vmem:[%s768_s0 + $0x170] sm:$0xff] }
  0x3c   :  { %v263_v30 = vmul.f32 %v60_v60, %v60_v60 }
  0x3d   :  { %v140_v41 = vadd.f32 %v139_v31, %v138_v35  ;;  %v337_v8 = vadd.f32 %v336_v63, %v335_v2  ;;  %v348_v35 = vsel %vm12_vm0, %v251_v22, 0.0  ;;  %v171_v63 = vsel %vm12_vm0, %v60_v60, 0.0  ;;  %v61_v2 = vld [vmem:[%s768_s0 + $0x178] sm:$0xff] }
  0x3e   :  { %v264_v36 = vmul.f32 %v61_v2, %v61_v2 }
  0x3f   :  { %v142_v47 = vadd.f32 %v141_v37, %v140_v41  ;;  %v339_v14 = vadd.f32 %v338_v5, %v337_v8  ;;  %v350_v41 = vsel %vm12_vm0, %v252_v28, 0.0  ;;  %v173_v5 = vsel %vm12_vm0, %v61_v2, 0.0  ;;  %v62_v8 = vld [vmem:[%s768_s0 + $0x180] sm:$0xff] }
  0x40   :  { %v265_v42 = vmul.f32 %v62_v8, %v62_v8 }
  0x41   :  { %v144_v53 = vadd.f32 %v143_v43, %v142_v47  ;;  %v341_v20 = vadd.f32 %v340_v11, %v339_v14  ;;  %v352_v47 = vsel %vm12_vm0, %v253_v34, 0.0  ;;  %v175_v11 = vsel %vm12_vm0, %v62_v8, 0.0  ;;  %v63_v14 = vld [vmem:[%s768_s0 + $0x188] sm:$0xff] }
  0x42   :  { %v266_v48 = vmul.f32 %v63_v14, %v63_v14 }
  0x43   :  { %v146_v59 = vadd.f32 %v145_v49, %v144_v53  ;;  %v343_v26 = vadd.f32 %v342_v17, %v341_v20  ;;  %v354_v53 = vsel %vm12_vm0, %v254_v40, 0.0  ;;  %v177_v17 = vsel %vm12_vm0, %v63_v14, 0.0  ;;  %v64_v20 = vld [vmem:[%s768_s0 + $0x190] sm:$0xff] }
  0x44   :  { %v267_v54 = vmul.f32 %v64_v20, %v64_v20 }
  0x45   :  { %v148_v1 = vadd.f32 %v147_v55, %v146_v59  ;;  %v345_v32 = vadd.f32 %v344_v23, %v343_v26  ;;  %v356_v59 = vsel %vm12_vm0, %v255_v46, 0.0  ;;  %v179_v23 = vsel %vm12_vm0, %v64_v20, 0.0  ;;  %v65_v26 = vld [vmem:[%s768_s0 + $0x198] sm:$0xff] }
  0x46   :  { %v268_v60 = vmul.f32 %v65_v26, %v65_v26 }
  0x47   :  { %v150_v7 = vadd.f32 %v149_v61, %v148_v1  ;;  %v347_v38 = vadd.f32 %v346_v29, %v345_v32  ;;  %v358_v1 = vsel %vm12_vm0, %v256_v52, 0.0  ;;  %v181_v29 = vsel %vm12_vm0, %v65_v26, 0.0  ;;  %v66_v32 = vld [vmem:[%s768_s0 + $0x1a0] sm:$0xff] }
  0x48   :  { %v269_v2 = vmul.f32 %v66_v32, %v66_v32 }
  0x49   :  { %v152_v13 = vadd.f32 %v151_v3, %v150_v7  ;;  %v349_v44 = vadd.f32 %v348_v35, %v347_v38  ;;  %v360_v7 = vsel %vm12_vm0, %v257_v58, 0.0  ;;  %v183_v35 = vsel %vm12_vm0, %v66_v32, 0.0  ;;  %v67_v38 = vld [vmem:[%s768_s0 + $0x1a8] sm:$0xff] }
  0x4a   :  { %v270_v8 = vmul.f32 %v67_v38, %v67_v38 }
  0x4b   :  { %v154_v19 = vadd.f32 %v153_v9, %v152_v13  ;;  %v351_v50 = vadd.f32 %v350_v41, %v349_v44  ;;  %v362_v13 = vsel %vm12_vm0, %v258_v0, 0.0  ;;  %v185_v41 = vsel %vm12_vm0, %v67_v38, 0.0  ;;  %v68_v44 = vld [vmem:[%s768_s0 + $0x1b0] sm:$0xff] }
  0x4c   :  { %v271_v14 = vmul.f32 %v68_v44, %v68_v44 }
  0x4d   :  { %v156_v25 = vadd.f32 %v155_v15, %v154_v19  ;;  %v353_v56 = vadd.f32 %v352_v47, %v351_v50  ;;  %v364_v19 = vsel %vm12_vm0, %v259_v6, 0.0  ;;  %v187_v47 = vsel %vm12_vm0, %v68_v44, 0.0  ;;  %v69_v50 = vld [vmem:[%s768_s0 + $0x1b8] sm:$0xff] }
  0x4e   :  { %v272_v20 = vmul.f32 %v69_v50, %v69_v50 }
  0x4f   :  { %v158_v31 = vadd.f32 %v157_v21, %v156_v25  ;;  %v355_v62 = vadd.f32 %v354_v53, %v353_v56  ;;  %v366_v25 = vsel %vm12_vm0, %v260_v12, 0.0  ;;  %v189_v53 = vsel %vm12_vm0, %v69_v50, 0.0  ;;  %v70_v56 = vld [vmem:[%s768_s0 + $0x1c0] sm:$0xff] }
  0x50   :  { %v273_v26 = vmul.f32 %v70_v56, %v70_v56 }
  0x51   :  { %v160_v37 = vadd.f32 %v159_v27, %v158_v31  ;;  %v357_v4 = vadd.f32 %v356_v59, %v355_v62  ;;  %v368_v31 = vsel %vm12_vm0, %v261_v18, 0.0  ;;  %v191_v59 = vsel %vm12_vm0, %v70_v56, 0.0  ;;  %v71_v62 = vld [vmem:[%s768_s0 + $0x1c8] sm:$0xff] }
  0x52   :  { %v274_v32 = vmul.f32 %v71_v62, %v71_v62 }
  0x53   :  { %v162_v43 = vadd.f32 %v161_v33, %v160_v37  ;;  %v359_v10 = vadd.f32 %v358_v1, %v357_v4  ;;  %v370_v37 = vsel %vm12_vm0, %v262_v24, 0.0  ;;  %v193_v1 = vsel %vm12_vm0, %v71_v62, 0.0  ;;  %v72_v4 = vld [vmem:[%s768_s0 + $0x1d0] sm:$0xff] }
  0x54   :  { %v275_v38 = vmul.f32 %v72_v4, %v72_v4 }
  0x55   :  { %v164_v49 = vadd.f32 %v163_v39, %v162_v43  ;;  %v361_v16 = vadd.f32 %v360_v7, %v359_v10  ;;  %v372_v43 = vsel %vm12_vm0, %v263_v30, 0.0  ;;  %v195_v7 = vsel %vm12_vm0, %v72_v4, 0.0  ;;  %v73_v10 = vld [vmem:[%s768_s0 + $0x1d8] sm:$0xff] }
  0x57   :  { %v166_v55 = vadd.f32 %v165_v45, %v164_v49  ;;  %v363_v22 = vadd.f32 %v362_v13, %v361_v16  ;;  %v374_v49 = vsel %vm12_vm0, %v264_v36, 0.0  ;;  %v197_v13 = vsel %vm12_vm0, %v73_v10, 0.0  ;;  %v74_v16 = vld [vmem:[%s768_s0 + $0x1e0] sm:$0xff] }
  0x59   :  { %v168_v61 = vadd.f32 %v167_v51, %v166_v55  ;;  %v365_v28 = vadd.f32 %v364_v19, %v363_v22  ;;  %v376_v55 = vsel %vm12_vm0, %v265_v42, 0.0  ;;  %v199_v19 = vsel %vm12_vm0, %v74_v16, 0.0  ;;  %v75_v22 = vld [vmem:[%s768_s0 + $0x1e8] sm:$0xff] }
  0x5a   :  { %v276_v42 = vmul.f32 %v73_v10, %v73_v10  ;;  %v278_v50 = vmul.f32 %v75_v22, %v75_v22 }
  0x5b   :  { %v170_v3 = vadd.f32 %v169_v57, %v168_v61  ;;  %v367_v34 = vadd.f32 %v366_v25, %v365_v28  ;;  %v378_v61 = vsel %vm12_vm0, %v266_v48, 0.0  ;;  %v201_v25 = vsel %vm12_vm0, %v75_v22, 0.0  ;;  %v76_v28 = vld [vmem:[%s768_s0 + $0x1f0] sm:$0xff] }
  0x5d   :  { %v172_v9 = vadd.f32 %v171_v63, %v170_v3  ;;  %v369_v40 = vadd.f32 %v368_v31, %v367_v34  ;;  %v380_v3 = vsel %vm12_vm0, %v267_v54, 0.0  ;;  %v203_v31 = vsel %vm12_vm0, %v76_v28, 0.0  ;;  %v77_v34 = vld [vmem:[%s768_s0 + $0x1f8] sm:$0xff] }
  0x5e   :  { %v279_v54 = vmul.f32 %v76_v28, %v76_v28 }
  0x5f   :  { %v174_v15 = vadd.f32 %v173_v5, %v172_v9  ;;  %v371_v46 = vadd.f32 %v370_v37, %v369_v40  ;;  %v382_v9 = vsel %vm12_vm0, %v268_v60, 0.0  ;;  %v205_v37 = vsel %vm12_vm0, %v77_v34, 0.0 }
  0x60   :  { %v404_v62 = vsel %vm12_vm0, %v279_v54, 0.0 }
  0x61   :  { %v176_v21 = vadd.f32 %v175_v11, %v174_v15  ;;  %v373_v52 = vadd.f32 %v372_v43, %v371_v46  ;;  %v384_v15 = vsel %vm12_vm0, %v269_v2, 0.0  ;;  %v394_v43 = vsel %vm12_vm0, %v274_v32, 0.0 }
  0x62   :  { %v277_v46 = vmul.f32 %v74_v16, %v74_v16 }
  0x63   :  { %v178_v27 = vadd.f32 %v177_v17, %v176_v21  ;;  %v375_v58 = vadd.f32 %v374_v49, %v373_v52  ;;  %v386_v21 = vsel %vm12_vm0, %v270_v8, 0.0 }
  0x65   :  { %v180_v33 = vadd.f32 %v179_v23, %v178_v27  ;;  %v377_v0 = vadd.f32 %v376_v55, %v375_v58  ;;  %v388_v27 = vsel %vm12_vm0, %v271_v14, 0.0  ;;  %v400_v55 = vsel %vm12_vm0, %v277_v46, 0.0 }
  0x66   :  { %v280_v58 = vmul.f32 %v77_v34, %v77_v34 }
  0x67   :  { %v182_v39 = vadd.f32 %v181_v29, %v180_v33  ;;  %v379_v6 = vadd.f32 %v378_v61, %v377_v0  ;;  %v390_v33 = vsel %vm12_vm0, %v272_v20, 0.0 }
  0x68   :  { %v406_v2 = vsel %vm12_vm0, %v280_v58, 0.0 }
  0x69   :  { %v184_v45 = vadd.f32 %v183_v35, %v182_v39  ;;  %v381_v12 = vadd.f32 %v380_v3, %v379_v6  ;;  %v392_v39 = vsel %vm12_vm0, %v273_v26, 0.0 }
  0x6b   :  { %v186_v51 = vadd.f32 %v185_v41, %v184_v45  ;;  %v383_v18 = vadd.f32 %v382_v9, %v381_v12  ;;  %v216_v12 = vld [vmem:[%s769_s1 + $0x1] sm:$0x1] }
  0x6d   :  { %v188_v57 = vadd.f32 %v187_v47, %v186_v51  ;;  %v385_v24 = vadd.f32 %v384_v15, %v383_v18  ;;  %v396_v47 = vsel %vm12_vm0, %v275_v38, 0.0  ;;  %v398_v51 = vsel %vm12_vm0, %v276_v42, 0.0 }
  0x6f   :  { %v190_v63 = vadd.f32 %v189_v53, %v188_v57  ;;  %v387_v30 = vadd.f32 %v386_v21, %v385_v24 }
  0x71   :  { %v192_v5 = vadd.f32 %v191_v59, %v190_v63  ;;  %v389_v36 = vadd.f32 %v388_v27, %v387_v30  ;;  %v402_v59 = vsel %vm12_vm0, %v278_v50, 0.0 }
  0x73   :  { %v194_v11 = vadd.f32 %v193_v1, %v192_v5  ;;  %v391_v41 = vadd.f32 %v390_v33, %v389_v36  ;;  %v78_v1 = vld [vmem:[%s769_s1] sm:$0x1] }
  0x75   :  { %v196_v17 = vadd.f32 %v195_v7, %v194_v11  ;;  %v393_v45 = vadd.f32 %v392_v39, %v391_v41 }
  0x77   :  { %v198_v23 = vadd.f32 %v197_v13, %v196_v17  ;;  %v395_v49 = vadd.f32 %v394_v43, %v393_v45 }
  0x79   :  { %v200_v29 = vadd.f32 %v199_v19, %v198_v23  ;;  %v397_v53 = vadd.f32 %v396_v47, %v395_v49 }
  0x7b   :  { %v202_v35 = vadd.f32 %v201_v25, %v200_v29  ;;  %v399_v57 = vadd.f32 %v398_v51, %v397_v53 }
  0x7d   :  { %v204_v40 = vadd.f32 %v203_v31, %v202_v35  ;;  %v401_v61 = vadd.f32 %v400_v55, %v399_v57 }
  0x7f   :  { %v206_v44 = vadd.f32 %v205_v37, %v204_v40  ;;  %v403_v0 = vadd.f32 %v402_v59, %v401_v61 }
  0x81   :  { %v207_v48 = vrot.slane %v206_v44, 4  ;;  %v405_v4 = vadd.f32 %v404_v62, %v403_v0 }
  0x83   :  { %v208_v52 = vadd.f32 %v207_v48, %v206_v44  ;;  %v407_v6 = vadd.f32 %v406_v2, %v405_v4 }
  0x85   :  { %v209_v56 = vrot.slane %v208_v52, 2  ;;  %v408_v7 = vrot.slane %v407_v6, 4 }
  0x87   :  { %v210_v60 = vadd.f32 %v209_v56, %v208_v52  ;;  %v409_v8 = vadd.f32 %v408_v7, %v407_v6 }
  0x89   :  { %v211_v63 = vrot.slane %v210_v60, 1  ;;  %v410_v9 = vrot.slane %v409_v8, 2 }
  0x8b   :  { %v212_v3 = vadd.f32 %v211_v63, %v210_v60  ;;  %v411_v10 = vadd.f32 %v410_v9, %v409_v8 }
  0x8d   :  { %v213_v5 = vadd.f32 %v212_v3, %v78_v1  ;;  %v412_v11 = vrot.slane %v411_v10, 1 }
  0x8f   :  { %215 = vst.msk [vmem:[%s769_s1] sm:$0x1] %vm214_vm1, %v213_v5  ;;  %v413_v13 = vadd.f32 %v412_v11, %v411_v10 }
  0x91   :  { %v414_v14 = vadd.f32 %v413_v13, %v216_v12 }
  0x93   :  { %415 = vst.msk [vmem:[%s769_s1 + $0x1] sm:$0x1] %vm214_vm1, %v414_v14 }

// kernel: espnet_encoder.46
= control target key start
LH: loop header
LB: loop body
LE: loop exit
PB: predicated region body
PF: predicated region fallthrough
CT: control target
= control target key end

     0   :  { %vm413_vm0 = vcmask 154624   ;;  %s1167_s0 = inlined_call_operand.vmem [shape: f32[512,19], index: 0, kind: input, shape index: {}]   ;;  %s1168_s1 = inlined_call_operand.vmem [shape: f32[1,19], index: 1, kind: input, shape index: {}]   ;;  %s1169_s2 = inlined_call_operand.vmem [shape: f32[1,19], index: 2, kind: input, shape index: {}]   ;;  %s1170_s3 = inlined_call_operand.vmem [shape: f32[1,19], index: 3, kind: input, shape index: {}]   ;;  %s1171_s4 = inlined_call_operand.vmem [shape: f32[512,19], index: 4, kind: output, shape index: {}]  }
   0x1   :  { %v17_v0 = vld [vmem:[%s1167_s0] sm:$0xff]  ;;  %v18_v5 = vld [vmem:[%s1167_s0 + $0x8] sm:$0xff]  ;;  %v19_v6 = vld [vmem:[%s1167_s0 + $0x10] sm:$0xff] }
   0x2   :  { %v516_v1 = vld [vmem:[%s1168_s1] ss:$0 sm:$0xff]  ;;  %v20_v9 = vld [vmem:[%s1167_s0 + $0x18] sm:$0xff]  ;;  %v22_v11 = vld [vmem:[%s1167_s0 + $0x28] sm:$0xff] }
   0x3   :  { %v521_v2 = vld [vmem:[%s1169_s2] ss:$0 sm:$0xff]  ;;  %v85_v3 = vmul.f32 %v516_v1, %v17_v0  ;;  %v86_v7 = vmul.f32 %v516_v1, %v18_v5  ;;  %v87_v8 = vmul.f32 %v516_v1, %v19_v6  ;;  %v88_v13 = vmul.f32 %v516_v1, %v20_v9  ;;  %v23_v16 = vld [vmem:[%s1167_s0 + $0x30] sm:$0xff]  ;;  %v24_v17 = vld [vmem:[%s1167_s0 + $0x38] sm:$0xff] }
   0x4   :  { %v527_v4 = vld [vmem:[%s1170_s3] ss:$0 sm:$0xff]  ;;  %v90_v15 = vmul.f32 %v516_v1, %v22_v11  ;;  %v91_v20 = vmul.f32 %v516_v1, %v23_v16  ;;  %v92_v21 = vmul.f32 %v516_v1, %v24_v17  ;;  %v26_v30 = vld [vmem:[%s1167_s0 + $0x48] sm:$0xff]  ;;  %v27_v39 = vld [vmem:[%s1167_s0 + $0x50] sm:$0xff] }
   0x5   :  { %v21_v10 = vld [vmem:[%s1167_s0 + $0x20] sm:$0xff]  ;;  %v153_v12 = vadd.f32 %v521_v2, %v85_v3  ;;  %v154_v18 = vadd.f32 %v521_v2, %v86_v7  ;;  %v155_v19 = vadd.f32 %v521_v2, %v87_v8  ;;  %v156_v23 = vadd.f32 %v521_v2, %v88_v13  ;;  %v28_v43 = vld [vmem:[%s1167_s0 + $0x58] sm:$0xff]  ;;  %v30_v51 = vld [vmem:[%s1167_s0 + $0x68] sm:$0xff] }
   0x6   :  { %v89_v14 = vmul.f32 %v516_v1, %v21_v10  ;;  %v25_v27 = vld [vmem:[%s1167_s0 + $0x40] sm:$0xff]  ;;  %v158_v34 = vadd.f32 %v521_v2, %v90_v15  ;;  %v159_v36 = vadd.f32 %v521_v2, %v91_v20  ;;  %v160_v37 = vadd.f32 %v521_v2, %v92_v21  ;;  %v31_v56 = vld [vmem:[%s1167_s0 + $0x70] sm:$0xff]  ;;  %v32_v57 = vld [vmem:[%s1167_s0 + $0x78] sm:$0xff] }
   0x7   :  { %vm217_vm1 = vcmp.ge.f32.partialorder %v153_v12, 0.0  ;;  %v285_v22 = vmul.f32 %v527_v4, %v153_v12  ;;  %vm218_vm2 = vcmp.ge.f32.partialorder %v154_v18, 0.0  ;;  %v286_v25 = vmul.f32 %v527_v4, %v154_v18  ;;  %v29_v44 = vld [vmem:[%s1167_s0 + $0x60] sm:$0xff]  ;;  %v34_v17 = vld [vmem:[%s1167_s0 + $0x88] sm:$0xff] }
   0x8   :  { %v157_v24 = vadd.f32 %v521_v2, %v89_v14  ;;  %vm219_vm3 = vcmp.ge.f32.partialorder %v155_v19, 0.0  ;;  %v287_v26 = vmul.f32 %v527_v4, %v155_v19  ;;  %vm220_vm4 = vcmp.ge.f32.partialorder %v156_v23, 0.0  ;;  %v33_v7 = vld [vmem:[%s1167_s0 + $0x80] sm:$0xff] }
   0x9   :  { %v349_v28 = vsel %vm217_vm1, %v153_v12, %v285_v22  ;;  %v288_v29 = vmul.f32 %v527_v4, %v156_v23  ;;  %v350_v31 = vsel %vm218_vm2, %v154_v18, %v286_v25  ;;  %v93_v38 = vmul.f32 %v516_v1, %v25_v27  ;;  %v35_v18 = vld [vmem:[%s1167_s0 + $0x90] sm:$0xff]  ;;  %v37_v25 = vld [vmem:[%s1167_s0 + $0xa0] sm:$0xff] }
   0xa   :  { %vm221_vm5 = vcmp.ge.f32.partialorder %v157_v24, 0.0  ;;  %414 = vst.msk [vmem:[%s1171_s4] sm:$0xff] %vm413_vm0, %v349_v28  ;;  %v351_v32 = vsel %vm219_vm3, %v155_v19, %v287_v26  ;;  %v289_v33 = vmul.f32 %v527_v4, %v157_v24  ;;  %vm222_vm6 = vcmp.ge.f32.partialorder %v158_v34, 0.0  ;;  %v36_v19 = vld [vmem:[%s1167_s0 + $0x98] sm:$0xff] }
   0xb   :  { %415 = vst.msk [vmem:[%s1171_s4 + $0x8] sm:$0xff] %vm413_vm0, %v350_v31  ;;  %v352_v35 = vsel %vm220_vm4, %v156_v23, %v288_v29  ;;  %v290_v41 = vmul.f32 %v527_v4, %v158_v34  ;;  %v94_v42 = vmul.f32 %v516_v1, %v26_v30  ;;  %vm223_vm7 = vcmp.ge.f32.partialorder %v159_v36, 0.0  ;;  %v38_v30 = vld [vmem:[%s1167_s0 + $0xa8] sm:$0xff]  ;;  %v39_v31 = vld [vmem:[%s1167_s0 + $0xb0] sm:$0xff] }
   0xc   :  { %416 = vst.msk [vmem:[%s1171_s4 + $0x10] sm:$0xff] %vm413_vm0, %v351_v32  ;;  %v353_v40 = vsel %vm221_vm5, %v157_v24, %v289_v33  ;;  %v291_v45 = vmul.f32 %v527_v4, %v159_v36  ;;  %vm224_vm8 = vcmp.ge.f32.partialorder %v160_v37, 0.0  ;;  %v292_v46 = vmul.f32 %v527_v4, %v160_v37  ;;  %v40_v32 = vld [vmem:[%s1167_s0 + $0xb8] sm:$0xff] }
   0xd   :  { %417 = vst.msk [vmem:[%s1171_s4 + $0x18] sm:$0xff] %vm413_vm0, %v352_v35  ;;  %v354_v47 = vsel %vm222_vm6, %v158_v34, %v290_v41  ;;  %v161_v48 = vadd.f32 %v521_v2, %v93_v38  ;;  %v162_v49 = vadd.f32 %v521_v2, %v94_v42  ;;  %v95_v50 = vmul.f32 %v516_v1, %v27_v39 }
   0xe   :  { %418 = vst.msk [vmem:[%s1171_s4 + $0x20] sm:$0xff] %vm413_vm0, %v353_v40  ;;  %v355_v52 = vsel %vm223_vm7, %v159_v36, %v291_v45  ;;  %v356_v53 = vsel %vm224_vm8, %v160_v37, %v292_v46  ;;  %v96_v54 = vmul.f32 %v516_v1, %v28_v43  ;;  %v97_v55 = vmul.f32 %v516_v1, %v29_v44 }
   0xf   :  { %419 = vst.msk [vmem:[%s1171_s4 + $0x28] sm:$0xff] %vm413_vm0, %v354_v47  ;;  %vm225_vm9 = vcmp.ge.f32.partialorder %v161_v48, 0.0  ;;  %v293_v58 = vmul.f32 %v527_v4, %v161_v48  ;;  %vm226_vm10 = vcmp.ge.f32.partialorder %v162_v49, 0.0  ;;  %v294_v59 = vmul.f32 %v527_v4, %v162_v49 }
  0x10   :  { %420 = vst.msk [vmem:[%s1171_s4 + $0x30] sm:$0xff] %vm413_vm0, %v355_v52  ;;  %v163_v60 = vadd.f32 %v521_v2, %v95_v50  ;;  %v164_v61 = vadd.f32 %v521_v2, %v96_v54  ;;  %v165_v62 = vadd.f32 %v521_v2, %v97_v55  ;;  %v98_v63 = vmul.f32 %v516_v1, %v30_v51  ;;  %v42_v54 = vld [vmem:[%s1167_s0 + $0xc8] sm:$0xff] }
  0x11   :  { %421 = vst.msk [vmem:[%s1171_s4 + $0x38] sm:$0xff] %vm413_vm0, %v356_v53  ;;  %v357_v0 = vsel %vm225_vm9, %v161_v48, %v293_v58  ;;  %v358_v3 = vsel %vm226_vm10, %v162_v49, %v294_v59  ;;  %v99_v5 = vmul.f32 %v516_v1, %v31_v56  ;;  %v100_v6 = vmul.f32 %v516_v1, %v32_v57  ;;  %v41_v53 = vld [vmem:[%s1167_s0 + $0xc0] sm:$0xff]  ;;  %v43_v57 = vld [vmem:[%s1167_s0 + $0xd0] sm:$0xff]  ;;  %v44_v58 = vld [vmem:[%s1167_s0 + $0xd8] sm:$0xff] }
  0x12   :  { %422 = vst.msk [vmem:[%s1171_s4 + $0x40] sm:$0xff] %vm413_vm0, %v357_v0  ;;  %vm227_vm11 = vcmp.ge.f32.partialorder %v163_v60, 0.0  ;;  %v295_v8 = vmul.f32 %v527_v4, %v163_v60  ;;  %vm228_vm12 = vcmp.ge.f32.partialorder %v164_v61, 0.0  ;;  %v296_v9 = vmul.f32 %v527_v4, %v164_v61 }
  0x13   :  { %423 = vst.msk [vmem:[%s1171_s4 + $0x48] sm:$0xff] %vm413_vm0, %v358_v3  ;;  %vm229_vm13 = vcmp.ge.f32.partialorder %v165_v62, 0.0  ;;  %v297_v10 = vmul.f32 %v527_v4, %v165_v62  ;;  %v166_v11 = vadd.f32 %v521_v2, %v98_v63  ;;  %v167_v12 = vadd.f32 %v521_v2, %v99_v5  ;;  %v46_v5 = vld [vmem:[%s1167_s0 + $0xe8] sm:$0xff] }
  0x14   :  { %v359_v13 = vsel %vm227_vm11, %v163_v60, %v295_v8  ;;  %v360_v14 = vsel %vm228_vm12, %v164_v61, %v296_v9  ;;  %v168_v15 = vadd.f32 %v521_v2, %v100_v6  ;;  %v101_v16 = vmul.f32 %v516_v1, %v33_v7  ;;  %v45_v61 = vld [vmem:[%s1167_s0 + $0xe0] sm:$0xff]  ;;  %v47_v6 = vld [vmem:[%s1167_s0 + $0xf0] sm:$0xff] }
  0x15   :  { %424 = vst.msk [vmem:[%s1171_s4 + $0x50] sm:$0xff] %vm413_vm0, %v359_v13  ;;  %v361_v20 = vsel %vm229_vm13, %v165_v62, %v297_v10  ;;  %vm230_vm14 = vcmp.ge.f32.partialorder %v166_v11, 0.0  ;;  %v298_v21 = vmul.f32 %v527_v4, %v166_v11  ;;  %vm231_vm15 = vcmp.ge.f32.partialorder %v167_v12, 0.0 }
  0x16   :  { %425 = vst.msk [vmem:[%s1171_s4 + $0x58] sm:$0xff] %vm413_vm0, %v360_v14  ;;  %v299_v22 = vmul.f32 %v527_v4, %v167_v12  ;;  %vm232_vm1 = vcmp.ge.f32.partialorder %v168_v15, 0.0  ;;  %v300_v23 = vmul.f32 %v527_v4, %v168_v15  ;;  %v169_v24 = vadd.f32 %v521_v2, %v101_v16 }
  0x17   :  { %426 = vst.msk [vmem:[%s1171_s4 + $0x60] sm:$0xff] %vm413_vm0, %v361_v20  ;;  %v362_v26 = vsel %vm230_vm14, %v166_v11, %v298_v21  ;;  %v102_v27 = vmul.f32 %v516_v1, %v34_v17  ;;  %v103_v28 = vmul.f32 %v516_v1, %v35_v18  ;;  %v104_v29 = vmul.f32 %v516_v1, %v36_v19  ;;  %v48_v21 = vld [vmem:[%s1167_s0 + $0xf8] sm:$0xff] }
  0x18   :  { %427 = vst.msk [vmem:[%s1171_s4 + $0x68] sm:$0xff] %vm413_vm0, %v362_v26  ;;  %v363_v33 = vsel %vm231_vm15, %v167_v12, %v299_v22  ;;  %v364_v34 = vsel %vm232_vm1, %v168_v15, %v300_v23  ;;  %vm233_vm2 = vcmp.ge.f32.partialorder %v169_v24, 0.0  ;;  %v301_v35 = vmul.f32 %v527_v4, %v169_v24 }
  0x19   :  { %428 = vst.msk [vmem:[%s1171_s4 + $0x70] sm:$0xff] %vm413_vm0, %v363_v33  ;;  %v170_v36 = vadd.f32 %v521_v2, %v102_v27  ;;  %v171_v37 = vadd.f32 %v521_v2, %v103_v28  ;;  %v172_v38 = vadd.f32 %v521_v2, %v104_v29  ;;  %v105_v39 = vmul.f32 %v516_v1, %v37_v25  ;;  %v49_v28 = vld [vmem:[%s1167_s0 + $0x100] sm:$0xff]  ;;  %v50_v33 = vld [vmem:[%s1167_s0 + $0x108] sm:$0xff] }
  0x1a   :  { %429 = vst.msk [vmem:[%s1171_s4 + $0x78] sm:$0xff] %vm413_vm0, %v364_v34  ;;  %v365_v40 = vsel %vm233_vm2, %v169_v24, %v301_v35  ;;  %v106_v41 = vmul.f32 %v516_v1, %v38_v30  ;;  %v107_v42 = vmul.f32 %v516_v1, %v39_v31  ;;  %v108_v43 = vmul.f32 %v516_v1, %v40_v32  ;;  %v51_v34 = vld [vmem:[%s1167_s0 + $0x110] sm:$0xff] }
  0x1b   :  { %430 = vst.msk [vmem:[%s1171_s4 + $0x80] sm:$0xff] %vm413_vm0, %v365_v40  ;;  %vm234_vm3 = vcmp.ge.f32.partialorder %v170_v36, 0.0  ;;  %v302_v44 = vmul.f32 %v527_v4, %v170_v36  ;;  %vm235_vm4 = vcmp.ge.f32.partialorder %v171_v37, 0.0  ;;  %v303_v45 = vmul.f32 %v527_v4, %v171_v37  ;;  %v52_v40 = vld [vmem:[%s1167_s0 + $0x118] sm:$0xff] }
  0x1c   :  { %vm236_vm5 = vcmp.ge.f32.partialorder %v172_v38, 0.0  ;;  %v304_v46 = vmul.f32 %v527_v4, %v172_v38  ;;  %v173_v47 = vadd.f32 %v521_v2, %v105_v39  ;;  %v174_v48 = vadd.f32 %v521_v2, %v106_v41  ;;  %v53_v41 = vld [vmem:[%s1167_s0 + $0x120] sm:$0xff] }
  0x1d   :  { %v366_v49 = vsel %vm234_vm3, %v170_v36, %v302_v44  ;;  %v367_v50 = vsel %vm235_vm4, %v171_v37, %v303_v45  ;;  %v175_v51 = vadd.f32 %v521_v2, %v107_v42  ;;  %v176_v52 = vadd.f32 %v521_v2, %v108_v43 }
  0x1e   :  { %431 = vst.msk [vmem:[%s1171_s4 + $0x88] sm:$0xff] %vm413_vm0, %v366_v49  ;;  %v368_v55 = vsel %vm236_vm5, %v172_v38, %v304_v46  ;;  %vm237_vm6 = vcmp.ge.f32.partialorder %v173_v47, 0.0  ;;  %v305_v56 = vmul.f32 %v527_v4, %v173_v47  ;;  %vm238_vm7 = vcmp.ge.f32.partialorder %v174_v48, 0.0  ;;  %v54_v46 = vld [vmem:[%s1167_s0 + $0x128] sm:$0xff] }
  0x1f   :  { %432 = vst.msk [vmem:[%s1171_s4 + $0x90] sm:$0xff] %vm413_vm0, %v367_v50  ;;  %v306_v59 = vmul.f32 %v527_v4, %v174_v48  ;;  %vm239_vm8 = vcmp.ge.f32.partialorder %v175_v51, 0.0  ;;  %v307_v60 = vmul.f32 %v527_v4, %v175_v51  ;;  %vm240_vm9 = vcmp.ge.f32.partialorder %v176_v52, 0.0 }
  0x20   :  { %433 = vst.msk [vmem:[%s1171_s4 + $0x98] sm:$0xff] %vm413_vm0, %v368_v55  ;;  %v369_v62 = vsel %vm237_vm6, %v173_v47, %v305_v56  ;;  %v308_v63 = vmul.f32 %v527_v4, %v176_v52  ;;  %v109_v0 = vmul.f32 %v516_v1, %v41_v53  ;;  %v110_v3 = vmul.f32 %v516_v1, %v42_v54 }
  0x21   :  { %434 = vst.msk [vmem:[%s1171_s4 + $0xa0] sm:$0xff] %vm413_vm0, %v369_v62  ;;  %v370_v7 = vsel %vm238_vm7, %v174_v48, %v306_v59  ;;  %v371_v8 = vsel %vm239_vm8, %v175_v51, %v307_v60  ;;  %v111_v9 = vmul.f32 %v516_v1, %v43_v57  ;;  %v112_v10 = vmul.f32 %v516_v1, %v44_v58  ;;  %v55_v57 = vld [vmem:[%s1167_s0 + $0x130] sm:$0xff]  ;;  %v56_v58 = vld [vmem:[%s1167_s0 + $0x138] sm:$0xff] }
  0x22   :  { %435 = vst.msk [vmem:[%s1171_s4 + $0xa8] sm:$0xff] %vm413_vm0, %v370_v7  ;;  %v372_v11 = vsel %vm240_vm9, %v176_v52, %v308_v63  ;;  %v177_v12 = vadd.f32 %v521_v2, %v109_v0  ;;  %v178_v13 = vadd.f32 %v521_v2, %v110_v3  ;;  %v113_v14 = vmul.f32 %v516_v1, %v45_v61 }
  0x23   :  { %436 = vst.msk [vmem:[%s1171_s4 + $0xb0] sm:$0xff] %vm413_vm0, %v371_v8  ;;  %v179_v15 = vadd.f32 %v521_v2, %v111_v9  ;;  %v180_v16 = vadd.f32 %v521_v2, %v112_v10  ;;  %v114_v17 = vmul.f32 %v516_v1, %v46_v5  ;;  %v115_v18 = vmul.f32 %v516_v1, %v47_v6  ;;  %v57_v8 = vld [vmem:[%s1167_s0 + $0x140] sm:$0xff]  ;;  %v58_v9 = vld [vmem:[%s1167_s0 + $0x148] sm:$0xff] }
  0x24   :  { %437 = vst.msk [vmem:[%s1171_s4 + $0xb8] sm:$0xff] %vm413_vm0, %v372_v11  ;;  %vm241_vm10 = vcmp.ge.f32.partialorder %v177_v12, 0.0  ;;  %v309_v19 = vmul.f32 %v527_v4, %v177_v12  ;;  %vm242_vm11 = vcmp.ge.f32.partialorder %v178_v13, 0.0  ;;  %v310_v20 = vmul.f32 %v527_v4, %v178_v13 }
  0x25   :  { %vm243_vm12 = vcmp.ge.f32.partialorder %v179_v15, 0.0  ;;  %v311_v22 = vmul.f32 %v527_v4, %v179_v15  ;;  %vm244_vm13 = vcmp.ge.f32.partialorder %v180_v16, 0.0  ;;  %v312_v23 = vmul.f32 %v527_v4, %v180_v16 }
  0x26   :  { %v373_v24 = vsel %vm241_vm10, %v177_v12, %v309_v19  ;;  %v374_v25 = vsel %vm242_vm11, %v178_v13, %v310_v20  ;;  %v181_v26 = vadd.f32 %v521_v2, %v113_v14  ;;  %v182_v27 = vadd.f32 %v521_v2, %v114_v17  ;;  %v60_v20 = vld [vmem:[%s1167_s0 + $0x158] sm:$0xff] }
  0x27   :  { %438 = vst.msk [vmem:[%s1171_s4 + $0xc0] sm:$0xff] %vm413_vm0, %v373_v24  ;;  %v375_v29 = vsel %vm243_vm12, %v179_v15, %v311_v22  ;;  %v376_v30 = vsel %vm244_vm13, %v180_v16, %v312_v23  ;;  %v183_v31 = vadd.f32 %v521_v2, %v115_v18  ;;  %v116_v32 = vmul.f32 %v516_v1, %v48_v21  ;;  %v59_v15 = vld [vmem:[%s1167_s0 + $0x150] sm:$0xff]  ;;  %v61_v21 = vld [vmem:[%s1167_s0 + $0x160] sm:$0xff]  ;;  %v62_v22 = vld [vmem:[%s1167_s0 + $0x168] sm:$0xff] }
  0x28   :  { %439 = vst.msk [vmem:[%s1171_s4 + $0xc8] sm:$0xff] %vm413_vm0, %v374_v25  ;;  %vm245_vm14 = vcmp.ge.f32.partialorder %v181_v26, 0.0  ;;  %v313_v35 = vmul.f32 %v527_v4, %v181_v26  ;;  %vm246_vm15 = vcmp.ge.f32.partialorder %v182_v27, 0.0  ;;  %v314_v36 = vmul.f32 %v527_v4, %v182_v27 }
  0x29   :  { %440 = vst.msk [vmem:[%s1171_s4 + $0xd0] sm:$0xff] %vm413_vm0, %v375_v29  ;;  %vm247_vm1 = vcmp.ge.f32.partialorder %v183_v31, 0.0  ;;  %v315_v37 = vmul.f32 %v527_v4, %v183_v31  ;;  %v184_v38 = vadd.f32 %v521_v2, %v116_v32  ;;  %v117_v39 = vmul.f32 %v516_v1, %v49_v28 }
  0x2a   :  { %441 = vst.msk [vmem:[%s1171_s4 + $0xd8] sm:$0xff] %vm413_vm0, %v376_v30  ;;  %v377_v42 = vsel %vm245_vm14, %v181_v26, %v313_v35  ;;  %v378_v43 = vsel %vm246_vm15, %v182_v27, %v314_v36  ;;  %v118_v44 = vmul.f32 %v516_v1, %v50_v33  ;;  %v119_v45 = vmul.f32 %v516_v1, %v51_v34  ;;  %v63_v33 = vld [vmem:[%s1167_s0 + $0x170] sm:$0xff]  ;;  %v64_v34 = vld [vmem:[%s1167_s0 + $0x178] sm:$0xff] }
  0x2b   :  { %442 = vst.msk [vmem:[%s1171_s4 + $0xe0] sm:$0xff] %vm413_vm0, %v377_v42  ;;  %v379_v47 = vsel %vm247_vm1, %v183_v31, %v315_v37  ;;  %vm248_vm2 = vcmp.ge.f32.partialorder %v184_v38, 0.0  ;;  %v316_v48 = vmul.f32 %v527_v4, %v184_v38  ;;  %v185_v49 = vadd.f32 %v521_v2, %v117_v39 }
  0x2c   :  { %443 = vst.msk [vmem:[%s1171_s4 + $0xe8] sm:$0xff] %vm413_vm0, %v378_v43  ;;  %v186_v50 = vadd.f32 %v521_v2, %v118_v44  ;;  %v187_v51 = vadd.f32 %v521_v2, %v119_v45  ;;  %v120_v52 = vmul.f32 %v516_v1, %v52_v40  ;;  %v121_v53 = vmul.f32 %v516_v1, %v53_v41 }
  0x2d   :  { %444 = vst.msk [vmem:[%s1171_s4 + $0xf0] sm:$0xff] %vm413_vm0, %v379_v47  ;;  %v380_v54 = vsel %vm248_vm2, %v184_v38, %v316_v48  ;;  %vm249_vm3 = vcmp.ge.f32.partialorder %v185_v49, 0.0  ;;  %v317_v55 = vmul.f32 %v527_v4, %v185_v49  ;;  %v122_v56 = vmul.f32 %v516_v1, %v54_v46  ;;  %v65_v47 = vld [vmem:[%s1167_s0 + $0x180] sm:$0xff]  ;;  %v66_v48 = vld [vmem:[%s1167_s0 + $0x188] sm:$0xff] }
  0x2e   :  { %445 = vst.msk [vmem:[%s1171_s4 + $0xf8] sm:$0xff] %vm413_vm0, %v380_v54  ;;  %vm250_vm4 = vcmp.ge.f32.partialorder %v186_v50, 0.0  ;;  %v318_v59 = vmul.f32 %v527_v4, %v186_v50  ;;  %vm251_vm5 = vcmp.ge.f32.partialorder %v187_v51, 0.0  ;;  %v319_v60 = vmul.f32 %v527_v4, %v187_v51 }
  0x2f   :  { %v381_v61 = vsel %vm249_vm3, %v185_v49, %v317_v55  ;;  %v188_v62 = vadd.f32 %v521_v2, %v120_v52  ;;  %v189_v63 = vadd.f32 %v521_v2, %v121_v53  ;;  %v190_v0 = vadd.f32 %v521_v2, %v122_v56  ;;  %v67_v55 = vld [vmem:[%s1167_s0 + $0x190] sm:$0xff] }
  0x30   :  { %446 = vst.msk [vmem:[%s1171_s4 + $0x100] sm:$0xff] %vm413_vm0, %v381_v61  ;;  %v382_v3 = vsel %vm250_vm4, %v186_v50, %v318_v59  ;;  %v383_v5 = vsel %vm251_vm5, %v187_v51, %v319_v60  ;;  %v123_v6 = vmul.f32 %v516_v1, %v55_v57  ;;  %v124_v7 = vmul.f32 %v516_v1, %v56_v58  ;;  %v68_v60 = vld [vmem:[%s1167_s0 + $0x198] sm:$0xff]  ;;  %v69_v61 = vld [vmem:[%s1167_s0 + $0x1a0] sm:$0xff] }
  0x31   :  { %447 = vst.msk [vmem:[%s1171_s4 + $0x108] sm:$0xff] %vm413_vm0, %v382_v3  ;;  %vm252_vm6 = vcmp.ge.f32.partialorder %v188_v62, 0.0  ;;  %v320_v10 = vmul.f32 %v527_v4, %v188_v62  ;;  %vm253_vm7 = vcmp.ge.f32.partialorder %v189_v63, 0.0  ;;  %v321_v11 = vmul.f32 %v527_v4, %v189_v63 }
  0x32   :  { %448 = vst.msk [vmem:[%s1171_s4 + $0x110] sm:$0xff] %vm413_vm0, %v383_v5  ;;  %vm254_vm8 = vcmp.ge.f32.partialorder %v190_v0, 0.0  ;;  %v322_v12 = vmul.f32 %v527_v4, %v190_v0  ;;  %v191_v13 = vadd.f32 %v521_v2, %v123_v6  ;;  %v192_v14 = vadd.f32 %v521_v2, %v124_v7 }
  0x33   :  { %v384_v16 = vsel %vm252_vm6, %v188_v62, %v320_v10  ;;  %v385_v17 = vsel %vm253_vm7, %v189_v63, %v321_v11  ;;  %v125_v18 = vmul.f32 %v516_v1, %v57_v8  ;;  %v126_v19 = vmul.f32 %v516_v1, %v58_v9  ;;  %v70_v62 = vld [vmem:[%s1167_s0 + $0x1a8] sm:$0xff] }
  0x34   :  { %449 = vst.msk [vmem:[%s1171_s4 + $0x118] sm:$0xff] %vm413_vm0, %v384_v16  ;;  %v386_v23 = vsel %vm254_vm8, %v190_v0, %v322_v12  ;;  %vm255_vm9 = vcmp.ge.f32.partialorder %v191_v13, 0.0  ;;  %v323_v24 = vmul.f32 %v527_v4, %v191_v13  ;;  %vm256_vm10 = vcmp.ge.f32.partialorder %v192_v14, 0.0  ;;  %v71_v12 = vld [vmem:[%s1167_s0 + $0x1b0] sm:$0xff] }
  0x35   :  { %450 = vst.msk [vmem:[%s1171_s4 + $0x120] sm:$0xff] %vm413_vm0, %v385_v17  ;;  %v324_v25 = vmul.f32 %v527_v4, %v192_v14  ;;  %v193_v26 = vadd.f32 %v521_v2, %v125_v18  ;;  %v194_v27 = vadd.f32 %v521_v2, %v126_v19  ;;  %v127_v28 = vmul.f32 %v516_v1, %v59_v15 }
  0x36   :  { %451 = vst.msk [vmem:[%s1171_s4 + $0x128] sm:$0xff] %vm413_vm0, %v386_v23  ;;  %v387_v29 = vsel %vm255_vm9, %v191_v13, %v323_v24  ;;  %v128_v30 = vmul.f32 %v516_v1, %v60_v20  ;;  %v129_v31 = vmul.f32 %v516_v1, %v61_v21  ;;  %v130_v32 = vmul.f32 %v516_v1, %v62_v22  ;;  %v72_v13 = vld [vmem:[%s1167_s0 + $0x1b8] sm:$0xff] }
  0x37   :  { %452 = vst.msk [vmem:[%s1171_s4 + $0x130] sm:$0xff] %vm413_vm0, %v387_v29  ;;  %v388_v35 = vsel %vm256_vm10, %v192_v14, %v324_v25  ;;  %vm257_vm11 = vcmp.ge.f32.partialorder %v193_v26, 0.0  ;;  %v325_v36 = vmul.f32 %v527_v4, %v193_v26  ;;  %vm258_vm12 = vcmp.ge.f32.partialorder %v194_v27, 0.0 }
  0x38   :  { %453 = vst.msk [vmem:[%s1171_s4 + $0x138] sm:$0xff] %vm413_vm0, %v388_v35  ;;  %v326_v37 = vmul.f32 %v527_v4, %v194_v27  ;;  %v195_v38 = vadd.f32 %v521_v2, %v127_v28  ;;  %v196_v39 = vadd.f32 %v521_v2, %v128_v30  ;;  %v197_v40 = vadd.f32 %v521_v2, %v129_v31 }
  0x39   :  { %v389_v41 = vsel %vm257_vm11, %v193_v26, %v325_v36  ;;  %v198_v42 = vadd.f32 %v521_v2, %v130_v32  ;;  %v131_v43 = vmul.f32 %v516_v1, %v63_v33  ;;  %v132_v44 = vmul.f32 %v516_v1, %v64_v34  ;;  %v73_v26 = vld [vmem:[%s1167_s0 + $0x1c0] sm:$0xff]  ;;  %v75_v34 = vld [vmem:[%s1167_s0 + $0x1d0] sm:$0xff] }
  0x3a   :  { %454 = vst.msk [vmem:[%s1171_s4 + $0x140] sm:$0xff] %vm413_vm0, %v389_v41  ;;  %v390_v45 = vsel %vm258_vm12, %v194_v27, %v326_v37  ;;  %vm259_vm13 = vcmp.ge.f32.partialorder %v195_v38, 0.0  ;;  %v327_v46 = vmul.f32 %v527_v4, %v195_v38  ;;  %vm260_vm14 = vcmp.ge.f32.partialorder %v196_v39, 0.0  ;;  %v74_v27 = vld [vmem:[%s1167_s0 + $0x1c8] sm:$0xff] }
  0x3b   :  { %455 = vst.msk [vmem:[%s1171_s4 + $0x148] sm:$0xff] %vm413_vm0, %v390_v45  ;;  %v328_v49 = vmul.f32 %v527_v4, %v196_v39  ;;  %vm261_vm15 = vcmp.ge.f32.partialorder %v197_v40, 0.0  ;;  %v329_v50 = vmul.f32 %v527_v4, %v197_v40  ;;  %vm262_vm1 = vcmp.ge.f32.partialorder %v198_v42, 0.0  ;;  %v78_v41 = vld [vmem:[%s1167_s0 + $0x1e8] sm:$0xff] }
  0x3c   :  { %v391_v51 = vsel %vm259_vm13, %v195_v38, %v327_v46  ;;  %v330_v52 = vmul.f32 %v527_v4, %v198_v42  ;;  %v199_v53 = vadd.f32 %v521_v2, %v131_v43  ;;  %v200_v54 = vadd.f32 %v521_v2, %v132_v44 }
  0x3d   :  { %456 = vst.msk [vmem:[%s1171_s4 + $0x150] sm:$0xff] %vm413_vm0, %v391_v51  ;;  %v392_v56 = vsel %vm260_vm14, %v196_v39, %v328_v49  ;;  %v393_v57 = vsel %vm261_vm15, %v197_v40, %v329_v50  ;;  %v133_v58 = vmul.f32 %v516_v1, %v65_v47  ;;  %v134_v59 = vmul.f32 %v516_v1, %v66_v48  ;;  %v76_v39 = vld [vmem:[%s1167_s0 + $0x1d8] sm:$0xff]  ;;  %v77_v40 = vld [vmem:[%s1167_s0 + $0x1e0] sm:$0xff] }
  0x3e   :  { %457 = vst.msk [vmem:[%s1171_s4 + $0x158] sm:$0xff] %vm413_vm0, %v392_v56  ;;  %v394_v63 = vsel %vm262_vm1, %v198_v42, %v330_v52  ;;  %vm263_vm2 = vcmp.ge.f32.partialorder %v199_v53, 0.0  ;;  %v331_v0 = vmul.f32 %v527_v4, %v199_v53  ;;  %vm264_vm3 = vcmp.ge.f32.partialorder %v200_v54, 0.0  ;;  %v79_v52 = vld [vmem:[%s1167_s0 + $0x1f0] sm:$0xff] }
  0x3f   :  { %458 = vst.msk [vmem:[%s1171_s4 + $0x160] sm:$0xff] %vm413_vm0, %v393_v57  ;;  %v332_v3 = vmul.f32 %v527_v4, %v200_v54  ;;  %v201_v5 = vadd.f32 %v521_v2, %v133_v58  ;;  %v202_v6 = vadd.f32 %v521_v2, %v134_v59  ;;  %v135_v7 = vmul.f32 %v516_v1, %v67_v55 }
  0x40   :  { %459 = vst.msk [vmem:[%s1171_s4 + $0x168] sm:$0xff] %vm413_vm0, %v394_v63  ;;  %v395_v8 = vsel %vm263_vm2, %v199_v53, %v331_v0  ;;  %v136_v9 = vmul.f32 %v516_v1, %v68_v60  ;;  %v137_v10 = vmul.f32 %v516_v1, %v69_v61  ;;  %v138_v11 = vmul.f32 %v516_v1, %v70_v62  ;;  %v80_v53 = vld [vmem:[%s1167_s0 + $0x1f8] sm:$0xff] }
  0x41   :  { %460 = vst.msk [vmem:[%s1171_s4 + $0x170] sm:$0xff] %vm413_vm0, %v395_v8  ;;  %v396_v14 = vsel %vm264_vm3, %v200_v54, %v332_v3  ;;  %vm265_vm4 = vcmp.ge.f32.partialorder %v201_v5, 0.0  ;;  %v333_v15 = vmul.f32 %v527_v4, %v201_v5  ;;  %vm266_vm5 = vcmp.ge.f32.partialorder %v202_v6, 0.0 }
  0x42   :  { %461 = vst.msk [vmem:[%s1171_s4 + $0x178] sm:$0xff] %vm413_vm0, %v396_v14  ;;  %v334_v16 = vmul.f32 %v527_v4, %v202_v6  ;;  %v203_v17 = vadd.f32 %v521_v2, %v135_v7  ;;  %v204_v18 = vadd.f32 %v521_v2, %v136_v9  ;;  %v205_v19 = vadd.f32 %v521_v2, %v137_v10 }
  0x43   :  { %v397_v20 = vsel %vm265_vm4, %v201_v5, %v333_v15  ;;  %v206_v21 = vadd.f32 %v521_v2, %v138_v11  ;;  %v139_v22 = vmul.f32 %v516_v1, %v71_v12  ;;  %v140_v23 = vmul.f32 %v516_v1, %v72_v13 }
  0x44   :  { %462 = vst.msk [vmem:[%s1171_s4 + $0x180] sm:$0xff] %vm413_vm0, %v397_v20  ;;  %v398_v24 = vsel %vm266_vm5, %v202_v6, %v334_v16  ;;  %vm267_vm6 = vcmp.ge.f32.partialorder %v203_v17, 0.0  ;;  %v335_v25 = vmul.f32 %v527_v4, %v203_v17  ;;  %vm268_vm7 = vcmp.ge.f32.partialorder %v204_v18, 0.0 }
  0x45   :  { %463 = vst.msk [vmem:[%s1171_s4 + $0x188] sm:$0xff] %vm413_vm0, %v398_v24  ;;  %v336_v28 = vmul.f32 %v527_v4, %v204_v18  ;;  %vm269_vm8 = vcmp.ge.f32.partialorder %v205_v19, 0.0  ;;  %v337_v29 = vmul.f32 %v527_v4, %v205_v19  ;;  %vm270_vm9 = vcmp.ge.f32.partialorder %v206_v21, 0.0 }
  0x46   :  { %v399_v30 = vsel %vm267_vm6, %v203_v17, %v335_v25  ;;  %v338_v31 = vmul.f32 %v527_v4, %v206_v21  ;;  %v207_v32 = vadd.f32 %v521_v2, %v139_v22  ;;  %v208_v33 = vadd.f32 %v521_v2, %v140_v23 }
  0x47   :  { %464 = vst.msk [vmem:[%s1171_s4 + $0x190] sm:$0xff] %vm413_vm0, %v399_v30  ;;  %v400_v35 = vsel %vm268_vm7, %v204_v18, %v336_v28  ;;  %v401_v36 = vsel %vm269_vm8, %v205_v19, %v337_v29  ;;  %v141_v37 = vmul.f32 %v516_v1, %v73_v26  ;;  %v142_v38 = vmul.f32 %v516_v1, %v74_v27 }
  0x48   :  { %465 = vst.msk [vmem:[%s1171_s4 + $0x198] sm:$0xff] %vm413_vm0, %v400_v35  ;;  %v402_v42 = vsel %vm270_vm9, %v206_v21, %v338_v31  ;;  %vm271_vm10 = vcmp.ge.f32.partialorder %v207_v32, 0.0  ;;  %v339_v43 = vmul.f32 %v527_v4, %v207_v32  ;;  %vm272_vm11 = vcmp.ge.f32.partialorder %v208_v33, 0.0 }
  0x49   :  { %466 = vst.msk [vmem:[%s1171_s4 + $0x1a0] sm:$0xff] %vm413_vm0, %v401_v36  ;;  %v340_v44 = vmul.f32 %v527_v4, %v208_v33  ;;  %v209_v45 = vadd.f32 %v521_v2, %v141_v37  ;;  %v210_v46 = vadd.f32 %v521_v2, %v142_v38  ;;  %v143_v47 = vmul.f32 %v516_v1, %v75_v34 }
  0x4a   :  { %467 = vst.msk [vmem:[%s1171_s4 + $0x1a8] sm:$0xff] %vm413_vm0, %v402_v42  ;;  %v403_v48 = vsel %vm271_vm10, %v207_v32, %v339_v43  ;;  %v144_v49 = vmul.f32 %v516_v1, %v76_v39  ;;  %v145_v50 = vmul.f32 %v516_v1, %v77_v40  ;;  %v146_v51 = vmul.f32 %v516_v1, %v78_v41 }
  0x4b   :  { %468 = vst.msk [vmem:[%s1171_s4 + $0x1b0] sm:$0xff] %vm413_vm0, %v403_v48  ;;  %v404_v54 = vsel %vm272_vm11, %v208_v33, %v340_v44  ;;  %vm273_vm12 = vcmp.ge.f32.partialorder %v209_v45, 0.0  ;;  %v341_v55 = vmul.f32 %v527_v4, %v209_v45  ;;  %vm274_vm13 = vcmp.ge.f32.partialorder %v210_v46, 0.0 }
  0x4c   :  { %469 = vst.msk [vmem:[%s1171_s4 + $0x1b8] sm:$0xff] %vm413_vm0, %v404_v54  ;;  %v342_v56 = vmul.f32 %v527_v4, %v210_v46  ;;  %v211_v57 = vadd.f32 %v521_v2, %v143_v47  ;;  %v212_v58 = vadd.f32 %v521_v2, %v144_v49  ;;  %v213_v59 = vadd.f32 %v521_v2, %v145_v50 }
  0x4d   :  { %v405_v60 = vsel %vm273_vm12, %v209_v45, %v341_v55  ;;  %v214_v61 = vadd.f32 %v521_v2, %v146_v51  ;;  %v147_v62 = vmul.f32 %v516_v1, %v79_v52  ;;  %v148_v63 = vmul.f32 %v516_v1, %v80_v53 }
  0x4e   :  { %470 = vst.msk [vmem:[%s1171_s4 + $0x1c0] sm:$0xff] %vm413_vm0, %v405_v60  ;;  %v406_v0 = vsel %vm274_vm13, %v210_v46, %v342_v56  ;;  %vm275_vm14 = vcmp.ge.f32.partialorder %v211_v57, 0.0  ;;  %v343_v3 = vmul.f32 %v527_v4, %v211_v57  ;;  %vm276_vm15 = vcmp.ge.f32.partialorder %v212_v58, 0.0 }
  0x4f   :  { %471 = vst.msk [vmem:[%s1171_s4 + $0x1c8] sm:$0xff] %vm413_vm0, %v406_v0  ;;  %v344_v5 = vmul.f32 %v527_v4, %v212_v58  ;;  %vm277_vm1 = vcmp.ge.f32.partialorder %v213_v59, 0.0  ;;  %v345_v1 = vmul.f32 %v527_v4, %v213_v59  ;;  %vm278_vm2 = vcmp.ge.f32.partialorder %v214_v61, 0.0 }
  0x50   :  { %v407_v6 = vsel %vm275_vm14, %v211_v57, %v343_v3  ;;  %v346_v7 = vmul.f32 %v527_v4, %v214_v61  ;;  %v215_v8 = vadd.f32 %v521_v2, %v147_v62  ;;  %v216_v9 = vadd.f32 %v521_v2, %v148_v63 }
  0x51   :  { %472 = vst.msk [vmem:[%s1171_s4 + $0x1d0] sm:$0xff] %vm413_vm0, %v407_v6  ;;  %v408_v10 = vsel %vm276_vm15, %v212_v58, %v344_v5  ;;  %v409_v11 = vsel %vm277_vm1, %v213_v59, %v345_v1 }
  0x52   :  { %473 = vst.msk [vmem:[%s1171_s4 + $0x1d8] sm:$0xff] %vm413_vm0, %v408_v10  ;;  %v410_v12 = vsel %vm278_vm2, %v214_v61, %v346_v7  ;;  %vm279_vm3 = vcmp.ge.f32.partialorder %v215_v8, 0.0  ;;  %v347_v13 = vmul.f32 %v527_v4, %v215_v8  ;;  %vm280_vm4 = vcmp.ge.f32.partialorder %v216_v9, 0.0 }
  0x53   :  { %474 = vst.msk [vmem:[%s1171_s4 + $0x1e0] sm:$0xff] %vm413_vm0, %v409_v11  ;;  %v348_v2 = vmul.f32 %v527_v4, %v216_v9 }
  0x54   :  { %475 = vst.msk [vmem:[%s1171_s4 + $0x1e8] sm:$0xff] %vm413_vm0, %v410_v12  ;;  %v411_v14 = vsel %vm279_vm3, %v215_v8, %v347_v13 }
  0x55   :  { %476 = vst.msk [vmem:[%s1171_s4 + $0x1f0] sm:$0xff] %vm413_vm0, %v411_v14  ;;  %v412_v15 = vsel %vm280_vm4, %v216_v9, %v348_v2 }
  0x56   :  { %477 = vst.msk [vmem:[%s1171_s4 + $0x1f8] sm:$0xff] %vm413_vm0, %v412_v15 }

// kernel: espnet_encoder.47
= control target key start
LH: loop header
LB: loop body
LE: loop exit
PB: predicated region body
PF: predicated region fallthrough
CT: control target
= control target key end

     0   :  { %s734_s9 = smov 0   ;;  %s736_s10 = smov 0   ;;  %s891_s0 = inlined_call_operand.vmem [shape: bf16[9,128,19], index: 0, kind: input, shape index: {}]   ;;  %s892_s1 = inlined_call_operand.vmem [shape: bf16[9,19,12], index: 1, kind: input, shape index: {}]   ;;  %s893_s2 = inlined_call_operand.vmem [shape: f32[1,128,12], index: 2, kind: output, shape index: {}]  }
   0x1   :  { %s738_s11 = smov 0  }
   0x2 LB: > { %s24_s12 = sadd.s32 1, %s711_s10  ;;  %p596_p0 = scmp.ge.s32.totalorder %s715_s11, 1  ;;  %s715_s11 = sphi %s738_s11, %s12_s11   ;;  %s711_s10 = sphi %s736_s10, %s895_s10   ;;  %s707_s9 = sphi %s734_s9, %s894_s9  }
   0x3   : > { %p25_p1 = scmp.ge.s32.totalorder %s24_s12, 9  ;;  %p166_p2 = scmp.lt.s32.totalorder %s715_s11, 10 }
   0x5   : > { %s897_s12 = smov (%p25_p1, %s24_s12), 0  ;;  %p167_p3 = pnand %p596_p0, %p166_p2 }
   0x6   : > { %p208_p4 = scmp.lt.s32.totalorder (!%p167_p3), %s707_s9, 8  ;;  %p600_p5 = scmp.ne.s32.totalorder (!%p167_p3), %s707_s9, 0 }
   0x7   : > { %170 = sbr.rel (%p167_p3) target bundleno = 227 (0xe3), region = 28 }
   0xc   : > { %s209_s13 = scalar_select %p208_p4, %s707_s9, 8 }
   0xd   : > { %242 = sbr.rel (%p600_p5) target bundleno = 35 (0x23), region = 32 }
   0xe   : > { %s650_s14 = sshll.u32 %s209_s13, 6  ;;  %s666_s15 = smul.u32 12, %s209_s13 }
   0xf   : > { %s759_s18 = scalar_lea.vmem %s891_s0, %s650_s14 }
  0x10   : > { %s764_s21 = scalar_lea.vmem %s892_s1, %s666_s15 }
  0x12   : > { %vm243_vm0 = vcmask 97280   ;;  %v717_v0 = vmov 0.0  }
  0x13   : > { %244 = vst.msk [vmem:[#allocation2] sm:$0xff] %vm243_vm0, %v717_v0 }
  0x14   : > { %245 = vst.msk [vmem:[#allocation2 + $0x8] sm:$0xff] %vm243_vm0, %v717_v0 }
  0x15   : > { %246 = vst.msk [vmem:[#allocation2 + $0x10] sm:$0xff] %vm243_vm0, %v717_v0 }
  0x16   : > { %247 = vst.msk [vmem:[#allocation2 + $0x18] sm:$0xff] %vm243_vm0, %v717_v0 }
  0x17   : > { %248 = vst.msk [vmem:[#allocation2 + $0x20] sm:$0xff] %vm243_vm0, %v717_v0 }
  0x18   : > { %249 = vst.msk [vmem:[#allocation2 + $0x28] sm:$0xff] %vm243_vm0, %v717_v0 }
  0x19   : > { %250 = vst.msk [vmem:[#allocation2 + $0x30] sm:$0xff] %vm243_vm0, %v717_v0 }
  0x1a   : > { %251 = vst.msk [vmem:[#allocation2 + $0x38] sm:$0xff] %vm243_vm0, %v717_v0 }
  0x1b   : > { %252 = vst.msk [vmem:[#allocation2 + $0x40] sm:$0xff] %vm243_vm0, %v717_v0 }
  0x1c   : > { %253 = vst.msk [vmem:[#allocation2 + $0x48] sm:$0xff] %vm243_vm0, %v717_v0 }
  0x1d   : > { %254 = vst.msk [vmem:[#allocation2 + $0x50] sm:$0xff] %vm243_vm0, %v717_v0 }
  0x1e   : > { %255 = vst.msk [vmem:[#allocation2 + $0x58] sm:$0xff] %vm243_vm0, %v717_v0 }
  0x1f   : > { %256 = vst.msk [vmem:[#allocation2 + $0x60] sm:$0xff] %vm243_vm0, %v717_v0 }
  0x20   : > { %257 = vst.msk [vmem:[#allocation2 + $0x68] sm:$0xff] %vm243_vm0, %v717_v0 }
  0x21   : > { %258 = vst.msk [vmem:[#allocation2 + $0x70] sm:$0xff] %vm243_vm0, %v717_v0 }
  0x22   : > { %259 = vst.msk [vmem:[#allocation2 + $0x78] sm:$0xff] %vm243_vm0, %v717_v0 }
  0x23 PF: > { %v294_v1 = vld [vmem:[%s764_s21 + $0x8] sm:$0x3]  ;;  %vm369_vm1 = vcmask 1040384   ;;  %vm370_vm2 = vcmask 1041408   ;;  %v718_v3 = vmov 65535   ;;  %v659_v8 = vld [vmem:[%s764_s21] sm:$0xff] }
  0x24   : > { %v340_v2 = vunpack.c.l.b16 %v294_v1  ;;  %v371_v4 = vsel %vm369_vm1, 4294967295, %v718_v3  ;;  %v651_v9 = vld [vmem:[%s759_s18] sm:$0xff]  ;;  %v653_v10 = vld [vmem:[%s759_s18 + $0x10] sm:$0xff]  ;;  %vm344_vm3 = vcmask 154624   ;;  %v652_v13 = vld [vmem:[%s759_s18 + $0x8] sm:$0xff]  ;;  %vm441_vm4 = vcmask 97280  }
  0x25   : > { %v372_v5 = vsel %vm370_vm2, %v371_v4, 0  ;;  %v655_v11 = vld [vmem:[%s759_s18 + $0x20] sm:$0xff]  ;;  %v657_v12 = vld [vmem:[%s759_s18 + $0x30] sm:$0xff]  ;;  %v654_v14 = vld [vmem:[%s759_s18 + $0x18] sm:$0xff]  ;;  %p645_p6 = scmp.ne.s32.totalorder %s707_s9, 8 }
  0x26   : > { %v342_v6 = vpack.c.b16 %v340_v2, %v340_v2  ;;  %v656_v15 = vld [vmem:[%s759_s18 + $0x28] sm:$0xff]  ;;  %v658_v16 = vld [vmem:[%s759_s18 + $0x38] sm:$0xff]  ;;  %v260_v17 = vld [vmem:[#allocation2] sm:$0xff] }
  0x27   : > { %v264_v18 = vld [vmem:[#allocation2 + $0x20] sm:$0xff]  ;;  %v261_v25 = vld [vmem:[#allocation2 + $0x8] sm:$0xff]  ;;  %v262_v37 = vld [vmem:[#allocation2 + $0x10] sm:$0xff] }
  0x28   : > { %v374_v7 = vand.u32 %v372_v5, %v342_v6  ;;  %v268_v23 = vld [vmem:[#allocation2 + $0x40] sm:$0xff]  ;;  %v265_v26 = vld [vmem:[#allocation2 + $0x28] sm:$0xff]  ;;  %v266_v38 = vld [vmem:[#allocation2 + $0x30] sm:$0xff] }
  0x29   : > { %v272_v24 = vld [vmem:[#allocation2 + $0x60] sm:$0xff]  ;;  %v269_v35 = vld [vmem:[#allocation2 + $0x48] sm:$0xff]  ;;  %v270_v47 = vld [vmem:[#allocation2 + $0x50] sm:$0xff] }
  0x2a   : > { %382 = vmatpush.bf16.msra.mxu0 %v374_v7  ;;  %660 = vmatpush.bf16.msra.mxu1 %v374_v7  ;;  %v273_v36 = vld [vmem:[#allocation2 + $0x68] sm:$0xff]  ;;  %v274_v48 = vld [vmem:[#allocation2 + $0x70] sm:$0xff]  ;;  %v263_v49 = vld [vmem:[#allocation2 + $0x18] sm:$0xff] }
  0x2b   : > { %661 = vmatpush.bf16.msra.mxu2 %v374_v7  ;;  %662 = vmatpush.bf16.msra.mxu3 %v374_v7  ;;  %v267_v50 = vld [vmem:[#allocation2 + $0x38] sm:$0xff] }
  0x2c   : > { %v271_v59 = vld [vmem:[#allocation2 + $0x58] sm:$0xff] }
  0x2d   : > { %v275_v60 = vld [vmem:[#allocation2 + $0x78] sm:$0xff] }
  0x2e   : > { %383 = vmatpush.bf16.msra.mxu0 %v659_v8  ;;  %663 = vmatpush.bf16.msra.mxu1 %v659_v8 }
  0x2f   : > { %664 = vmatpush.bf16.msra.mxu2 %v659_v8  ;;  %665 = vmatpush.bf16.msra.mxu3 %v659_v8 }
  0x31   : > { %637 = vmatmul.msk.bf16.vlgmr.msra.gmra.mxu0 %vm344_vm3, %v651_v9  ;;  %639 = vmatmul.msk.bf16.vlgmr.msra.gmra.mxu1 %vm344_vm3, %v653_v10 }
  0x32   : > { %641 = vmatmul.msk.bf16.vlgmr.msra.gmra.mxu2 %vm344_vm3, %v655_v11  ;;  %643 = vmatmul.msk.bf16.vlgmr.msra.gmra.mxu3 %vm344_vm3, %v657_v12 }
  0x41   : > { %638 = vmatmul.msk.bf16.gmra.mxu0 %vm344_vm3, %v652_v13  ;;  %640 = vmatmul.msk.bf16.gmra.mxu1 %vm344_vm3, %v654_v14 }
  0x42   : > { %642 = vmatmul.msk.bf16.gmra.mxu2 %vm344_vm3, %v656_v15  ;;  %644 = vmatmul.msk.bf16.gmra.mxu3 %vm344_vm3, %v658_v16 }
  0xae   : > { %v385_v19 = vpop.f32.mrf.mxu0  ;;  %v395_v20 = vpop.f32.mrf.mxu1 }
  0xaf   : > { %v425_v21 = vadd.f32 %v385_v19, %v260_v17  ;;  %v429_v22 = vadd.f32 %v395_v20, %v264_v18 }
  0xb1   : > { %442 = vst.msk [vmem:[#allocation2] sm:$0xff] %vm441_vm4, %v425_v21 }
  0xb2   : > { %446 = vst.msk [vmem:[#allocation2 + $0x20] sm:$0xff] %vm441_vm4, %v429_v22 }
  0xb5   : > { %v405_v27 = vpop.f32.mrf.mxu2  ;;  %v415_v28 = vpop.f32.mrf.mxu3 }
  0xb6   : > { %v433_v29 = vadd.f32 %v405_v27, %v268_v23  ;;  %v437_v30 = vadd.f32 %v415_v28, %v272_v24  ;;  %v387_v31 = vpop.f32.mrf.mxu0  ;;  %v397_v32 = vpop.f32.mrf.mxu1 }
  0xb7   : > { %v426_v33 = vadd.f32 %v387_v31, %v261_v25  ;;  %v430_v34 = vadd.f32 %v397_v32, %v265_v26 }
  0xb8   : > { %450 = vst.msk [vmem:[#allocation2 + $0x40] sm:$0xff] %vm441_vm4, %v433_v29 }
  0xb9   : > { %454 = vst.msk [vmem:[#allocation2 + $0x60] sm:$0xff] %vm441_vm4, %v437_v30 }
  0xba   : > { %443 = vst.msk [vmem:[#allocation2 + $0x8] sm:$0xff] %vm441_vm4, %v426_v33 }
  0xbb   : > { %447 = vst.msk [vmem:[#allocation2 + $0x28] sm:$0xff] %vm441_vm4, %v430_v34 }
  0xbd   : > { %v407_v39 = vpop.f32.mrf.mxu2  ;;  %v417_v40 = vpop.f32.mrf.mxu3 }
  0xbe   : > { %v434_v41 = vadd.f32 %v407_v39, %v269_v35  ;;  %v438_v42 = vadd.f32 %v417_v40, %v273_v36  ;;  %v390_v43 = vpop.f32.mrf.mxu0  ;;  %v400_v44 = vpop.f32.mrf.mxu1 }
  0xbf   : > { %v427_v45 = vadd.f32 %v390_v43, %v262_v37  ;;  %v431_v46 = vadd.f32 %v400_v44, %v266_v38 }
  0xc0   : > { %451 = vst.msk [vmem:[#allocation2 + $0x48] sm:$0xff] %vm441_vm4, %v434_v41 }
  0xc1   : > { %455 = vst.msk [vmem:[#allocation2 + $0x68] sm:$0xff] %vm441_vm4, %v438_v42 }
  0xc2   : > { %444 = vst.msk [vmem:[#allocation2 + $0x10] sm:$0xff] %vm441_vm4, %v427_v45 }
  0xc3   : > { %448 = vst.msk [vmem:[#allocation2 + $0x30] sm:$0xff] %vm441_vm4, %v431_v46 }
  0xc5   : > { %v410_v51 = vpop.f32.mrf.mxu2  ;;  %v420_v52 = vpop.f32.mrf.mxu3 }
  0xc6   : > { %v435_v53 = vadd.f32 %v410_v51, %v270_v47  ;;  %v439_v54 = vadd.f32 %v420_v52, %v274_v48  ;;  %v392_v55 = vpop.f32.mrf.mxu0  ;;  %v402_v56 = vpop.f32.mrf.mxu1 }
  0xc7   : > { %v428_v57 = vadd.f32 %v392_v55, %v263_v49  ;;  %v432_v58 = vadd.f32 %v402_v56, %v267_v50 }
  0xc8   : > { %452 = vst.msk [vmem:[#allocation2 + $0x50] sm:$0xff] %vm441_vm4, %v435_v53 }
  0xc9   : > { %456 = vst.msk [vmem:[#allocation2 + $0x70] sm:$0xff] %vm441_vm4, %v439_v54 }
  0xca   : > { %445 = vst.msk [vmem:[#allocation2 + $0x18] sm:$0xff] %vm441_vm4, %v428_v57 }
  0xcb   : > { %449 = vst.msk [vmem:[#allocation2 + $0x38] sm:$0xff] %vm441_vm4, %v432_v58 }
  0xcd   : > { %v412_v61 = vpop.f32.mrf.mxu2  ;;  %v422_v62 = vpop.f32.mrf.mxu3  ;;  %461 = sbr.rel (%p645_p6) target bundleno = 227 (0xe3), region = 36 }
  0xce   : > { %v436_v63 = vadd.f32 %v412_v61, %v271_v59  ;;  %v440_v0 = vadd.f32 %v422_v62, %v275_v60 }
  0xd0   : > { %453 = vst.msk [vmem:[#allocation2 + $0x58] sm:$0xff] %vm441_vm4, %v436_v63 }
  0xd1   : > { %457 = vst.msk [vmem:[#allocation2 + $0x78] sm:$0xff] %vm441_vm4, %v440_v0 }
  0xd2   : > { %v462_v1 = vld [vmem:[#allocation2] sm:$0xff]  ;;  %v463_v2 = vld [vmem:[#allocation2 + $0x8] sm:$0xff]  ;;  %v464_v3 = vld [vmem:[#allocation2 + $0x10] sm:$0xff] }
  0xd3   : > { %478 = vst.msk [vmem:[%s893_s2] sm:$0xff] %vm441_vm4, %v462_v1  ;;  %v465_v4 = vld [vmem:[#allocation2 + $0x18] sm:$0xff]  ;;  %v466_v5 = vld [vmem:[#allocation2 + $0x20] sm:$0xff]  ;;  %v467_v6 = vld [vmem:[#allocation2 + $0x28] sm:$0xff] }
  0xd4   : > { %479 = vst.msk [vmem:[%s893_s2 + $0x8] sm:$0xff] %vm441_vm4, %v463_v2  ;;  %v468_v7 = vld [vmem:[#allocation2 + $0x30] sm:$0xff]  ;;  %v469_v8 = vld [vmem:[#allocation2 + $0x38] sm:$0xff]  ;;  %v470_v9 = vld [vmem:[#allocation2 + $0x40] sm:$0xff] }
  0xd5   : > { %480 = vst.msk [vmem:[%s893_s2 + $0x10] sm:$0xff] %vm441_vm4, %v464_v3  ;;  %v471_v10 = vld [vmem:[#allocation2 + $0x48] sm:$0xff]  ;;  %v472_v11 = vld [vmem:[#allocation2 + $0x50] sm:$0xff]  ;;  %v474_v13 = vld [vmem:[#allocation2 + $0x60] sm:$0xff] }
  0xd6   : > { %481 = vst.msk [vmem:[%s893_s2 + $0x18] sm:$0xff] %vm441_vm4, %v465_v4  ;;  %v475_v14 = vld [vmem:[#allocation2 + $0x68] sm:$0xff]  ;;  %v476_v15 = vld [vmem:[#allocation2 + $0x70] sm:$0xff] }
  0xd7   : > { %482 = vst.msk [vmem:[%s893_s2 + $0x20] sm:$0xff] %vm441_vm4, %v466_v5  ;;  %v473_v12 = vld [vmem:[#allocation2 + $0x58] sm:$0xff] }
  0xd8   : > { %483 = vst.msk [vmem:[%s893_s2 + $0x28] sm:$0xff] %vm441_vm4, %v467_v6  ;;  %v477_v16 = vld [vmem:[#allocation2 + $0x78] sm:$0xff] }
  0xd9   : > { %484 = vst.msk [vmem:[%s893_s2 + $0x30] sm:$0xff] %vm441_vm4, %v468_v7 }
  0xda   : > { %485 = vst.msk [vmem:[%s893_s2 + $0x38] sm:$0xff] %vm441_vm4, %v469_v8 }
  0xdb   : > { %486 = vst.msk [vmem:[%s893_s2 + $0x40] sm:$0xff] %vm441_vm4, %v470_v9 }
  0xdc   : > { %487 = vst.msk [vmem:[%s893_s2 + $0x48] sm:$0xff] %vm441_vm4, %v471_v10 }
  0xdd   : > { %488 = vst.msk [vmem:[%s893_s2 + $0x50] sm:$0xff] %vm441_vm4, %v472_v11 }
  0xde   : > { %489 = vst.msk [vmem:[%s893_s2 + $0x58] sm:$0xff] %vm441_vm4, %v473_v12 }
  0xdf   : > { %490 = vst.msk [vmem:[%s893_s2 + $0x60] sm:$0xff] %vm441_vm4, %v474_v13 }
  0xe0   : > { %491 = vst.msk [vmem:[%s893_s2 + $0x68] sm:$0xff] %vm441_vm4, %v475_v14 }
  0xe1   : > { %492 = vst.msk [vmem:[%s893_s2 + $0x70] sm:$0xff] %vm441_vm4, %v476_v15 }
  0xe2   : > { %493 = vst.msk [vmem:[%s893_s2 + $0x78] sm:$0xff] %vm441_vm4, %v477_v16 }
  0xe3 PF: > { %s12_s11 = sadd.s32 1, %s715_s11   ;;  %s894_s9 = smov %s711_s10 }
  0xe4   : > { %p9_p7 = scmp.ge.s32.totalorder %s12_s11, 11   ;;  %s895_s10 = smov %s897_s12 }
  0xe6   :  { %11 = sbr.rel (!%p9_p7) target bundleno = 2 (0x2), region = 69 }

// kernel: espnet_encoder.49
= control target key start
LH: loop header
LB: loop body
LE: loop exit
PB: predicated region body
PF: predicated region fallthrough
CT: control target
= control target key end

     0   :  { %vm12_vm0 = vcmask 523264   ;;  %v133_v0 = vmov 0.0   ;;  %vm70_vm1 = vcmask 516096   ;;  %s240_s1 = inlined_call_operand.vmem [shape: f32[8,64], index: 1, kind: output, shape index: {}]   ;;  %s241_s0 = inlined_call_operand.vmem [shape: f32[128,64], index: 0, kind: input, shape index: {}]  }
   0x1   :  { %13 = vst.msk [vmem:[%s240_s1] sm:$0xff] %vm12_vm0, %v133_v0  ;;  %v14_v1 = vld [vmem:[%s241_s0] sm:$0xff]  ;;  %v15_v2 = vld [vmem:[%s241_s0 + $0x8] sm:$0xff]  ;;  %v16_v3 = vld [vmem:[%s241_s0 + $0x10] sm:$0xff] }
   0x2   :  { %v32_v4 = vsel %vm12_vm0, %v14_v1, 0.0  ;;  %v33_v5 = vsel %vm12_vm0, %v15_v2, 0.0  ;;  %v35_v6 = vsel %vm12_vm0, %v16_v3, 0.0  ;;  %v17_v7 = vld [vmem:[%s241_s0 + $0x18] sm:$0xff]  ;;  %v18_v10 = vld [vmem:[%s241_s0 + $0x20] sm:$0xff]  ;;  %v19_v13 = vld [vmem:[%s241_s0 + $0x28] sm:$0xff]  ;;  %v73_v15 = vmul.f32 %v14_v1, %v14_v1 }
   0x3   :  { %v34_v8 = vadd.f32 %v33_v5, %v32_v4  ;;  %v37_v9 = vsel %vm12_vm0, %v17_v7, 0.0  ;;  %v39_v12 = vsel %vm12_vm0, %v18_v10, 0.0  ;;  %v74_v16 = vmul.f32 %v15_v2, %v15_v2  ;;  %v20_v19 = vld [vmem:[%s241_s0 + $0x30] sm:$0xff]  ;;  %v21_v24 = vld [vmem:[%s241_s0 + $0x38] sm:$0xff]  ;;  %v22_v31 = vld [vmem:[%s241_s0 + $0x40] sm:$0xff] }
   0x4   :  { %v75_v17 = vmul.f32 %v16_v3, %v16_v3  ;;  %v41_v18 = vsel %vm12_vm0, %v19_v13, 0.0  ;;  %v76_v21 = vmul.f32 %v17_v7, %v17_v7  ;;  %v43_v22 = vsel %vm12_vm0, %v20_v19, 0.0  ;;  %v23_v37 = vld [vmem:[%s241_s0 + $0x48] sm:$0xff]  ;;  %v24_v43 = vld [vmem:[%s241_s0 + $0x50] sm:$0xff]  ;;  %v25_v49 = vld [vmem:[%s241_s0 + $0x58] sm:$0xff] }
   0x5   :  { %v36_v11 = vadd.f32 %v35_v6, %v34_v8  ;;  %v77_v23 = vmul.f32 %v18_v10, %v18_v10  ;;  %v89_v26 = vsel %vm12_vm0, %v73_v15, 0.0  ;;  %v90_v27 = vsel %vm12_vm0, %v74_v16, 0.0  ;;  %v26_v55 = vld [vmem:[%s241_s0 + $0x60] sm:$0xff]  ;;  %v27_v61 = vld [vmem:[%s241_s0 + $0x68] sm:$0xff]  ;;  %v28_v3 = vld [vmem:[%s241_s0 + $0x70] sm:$0xff] }
   0x6   :  { %v92_v28 = vsel %vm12_vm0, %v75_v17, 0.0  ;;  %v45_v29 = vsel %vm12_vm0, %v21_v24, 0.0  ;;  %v91_v30 = vadd.f32 %v90_v27, %v89_v26  ;;  %v78_v33 = vmul.f32 %v19_v13, %v19_v13 }
   0x7   :  { %v38_v14 = vadd.f32 %v37_v9, %v36_v11  ;;  %v94_v34 = vsel %vm12_vm0, %v76_v21, 0.0  ;;  %v47_v35 = vsel %vm12_vm0, %v22_v31, 0.0  ;;  %v79_v39 = vmul.f32 %v20_v19, %v20_v19  ;;  %v29_v9 = vld [vmem:[%s241_s0 + $0x78] sm:$0xff] }
   0x8   :  { %v93_v36 = vadd.f32 %v92_v28, %v91_v30  ;;  %v96_v40 = vsel %vm12_vm0, %v77_v23, 0.0  ;;  %v49_v41 = vsel %vm12_vm0, %v23_v37, 0.0  ;;  %v80_v45 = vmul.f32 %v21_v24, %v21_v24 }
   0x9   :  { %v40_v20 = vadd.f32 %v39_v12, %v38_v14  ;;  %v98_v46 = vsel %vm12_vm0, %v78_v33, 0.0  ;;  %v51_v47 = vsel %vm12_vm0, %v24_v43, 0.0  ;;  %v81_v51 = vmul.f32 %v22_v31, %v22_v31 }
   0xa   :  { %v95_v42 = vadd.f32 %v94_v34, %v93_v36  ;;  %v100_v52 = vsel %vm12_vm0, %v79_v39, 0.0  ;;  %v53_v53 = vsel %vm12_vm0, %v25_v49, 0.0  ;;  %v82_v57 = vmul.f32 %v23_v37, %v23_v37  ;;  %v30_v36 = vld [vmem:[%s240_s1] sm:$0x1] }
   0xb   :  { %v42_v25 = vadd.f32 %v41_v18, %v40_v20  ;;  %v102_v58 = vsel %vm12_vm0, %v80_v45, 0.0  ;;  %v55_v59 = vsel %vm12_vm0, %v26_v55, 0.0  ;;  %v83_v63 = vmul.f32 %v24_v43, %v24_v43 }
   0xc   :  { %v97_v48 = vadd.f32 %v96_v40, %v95_v42  ;;  %v104_v0 = vsel %vm12_vm0, %v81_v51, 0.0  ;;  %v57_v1 = vsel %vm12_vm0, %v27_v61, 0.0  ;;  %v84_v5 = vmul.f32 %v25_v49, %v25_v49 }
   0xd   :  { %v44_v32 = vadd.f32 %v43_v22, %v42_v25  ;;  %v106_v6 = vsel %vm12_vm0, %v82_v57, 0.0  ;;  %v59_v7 = vsel %vm12_vm0, %v28_v3, 0.0  ;;  %v85_v11 = vmul.f32 %v26_v55, %v26_v55 }
   0xe   :  { %v99_v54 = vadd.f32 %v98_v46, %v97_v48  ;;  %v108_v12 = vsel %vm12_vm0, %v83_v63, 0.0  ;;  %v61_v13 = vsel %vm12_vm0, %v29_v9, 0.0  ;;  %v86_v16 = vmul.f32 %v27_v61, %v27_v61 }
   0xf   :  { %v46_v38 = vadd.f32 %v45_v29, %v44_v32  ;;  %v110_v17 = vsel %vm12_vm0, %v84_v5, 0.0  ;;  %v87_v20 = vmul.f32 %v28_v3, %v28_v3  ;;  %v112_v21 = vsel %vm12_vm0, %v85_v11, 0.0 }
  0x10   :  { %v101_v60 = vadd.f32 %v100_v52, %v99_v54  ;;  %v88_v24 = vmul.f32 %v29_v9, %v29_v9  ;;  %v114_v25 = vsel %vm12_vm0, %v86_v16, 0.0 }
  0x11   :  { %v48_v44 = vadd.f32 %v47_v35, %v46_v38  ;;  %v116_v28 = vsel %vm12_vm0, %v87_v20, 0.0 }
  0x12   :  { %v103_v2 = vadd.f32 %v102_v58, %v101_v60  ;;  %v118_v31 = vsel %vm12_vm0, %v88_v24, 0.0 }
  0x13   :  { %v50_v50 = vadd.f32 %v49_v41, %v48_v44  ;;  %v72_v44 = vld [vmem:[%s240_s1 + $0x1] sm:$0x1] }
  0x14   :  { %v105_v8 = vadd.f32 %v104_v0, %v103_v2 }
  0x15   :  { %v52_v56 = vadd.f32 %v51_v47, %v50_v50 }
  0x16   :  { %v107_v14 = vadd.f32 %v106_v6, %v105_v8 }
  0x17   :  { %v54_v62 = vadd.f32 %v53_v53, %v52_v56 }
  0x18   :  { %v109_v18 = vadd.f32 %v108_v12, %v107_v14 }
  0x19   :  { %v56_v4 = vadd.f32 %v55_v59, %v54_v62 }
  0x1a   :  { %v111_v22 = vadd.f32 %v110_v17, %v109_v18 }
  0x1b   :  { %v58_v10 = vadd.f32 %v57_v1, %v56_v4 }
  0x1c   :  { %v113_v26 = vadd.f32 %v112_v21, %v111_v22 }
  0x1d   :  { %v60_v15 = vadd.f32 %v59_v7, %v58_v10 }
  0x1e   :  { %v115_v29 = vadd.f32 %v114_v25, %v113_v26 }
  0x1f   :  { %v62_v19 = vadd.f32 %v61_v13, %v60_v15 }
  0x20   :  { %v117_v32 = vadd.f32 %v116_v28, %v115_v29 }
  0x21   :  { %v63_v23 = vrot.slane %v62_v19, 4 }
  0x22   :  { %v119_v34 = vadd.f32 %v118_v31, %v117_v32 }
  0x23   :  { %v64_v27 = vadd.f32 %v63_v23, %v62_v19 }
  0x24   :  { %v120_v37 = vrot.slane %v119_v34, 4 }
  0x25   :  { %v65_v30 = vrot.slane %v64_v27, 2 }
  0x26   :  { %v121_v39 = vadd.f32 %v120_v37, %v119_v34 }
  0x27   :  { %v66_v33 = vadd.f32 %v65_v30, %v64_v27 }
  0x28   :  { %v122_v41 = vrot.slane %v121_v39, 2 }
  0x29   :  { %v67_v35 = vrot.slane %v66_v33, 1 }
  0x2a   :  { %v123_v42 = vadd.f32 %v122_v41, %v121_v39 }
  0x2b   :  { %v68_v38 = vadd.f32 %v67_v35, %v66_v33 }
  0x2c   :  { %v124_v43 = vrot.slane %v123_v42, 1 }
  0x2d   :  { %v69_v40 = vadd.f32 %v68_v38, %v30_v36 }
  0x2e   :  { %v125_v45 = vadd.f32 %v124_v43, %v123_v42 }
  0x2f   :  { %71 = vst.msk [vmem:[%s240_s1] sm:$0x1] %vm70_vm1, %v69_v40 }
  0x30   :  { %v126_v46 = vadd.f32 %v125_v45, %v72_v44 }
  0x32   :  { %127 = vst.msk [vmem:[%s240_s1 + $0x1] sm:$0x1] %vm70_vm1, %v126_v46 }

// kernel: espnet_encoder.48
= control target key start
LH: loop header
LB: loop body
LE: loop exit
PB: predicated region body
PF: predicated region fallthrough
CT: control target
= control target key end

     0   :  { %s762_s9 = smov 0   ;;  %s764_s10 = smov 0   ;;  %s905_s0 = inlined_call_operand.vmem [shape: bf16[45,128,12], index: 0, kind: input, shape index: {}]   ;;  %s906_s1 = inlined_call_operand.vmem [shape: bf16[45,12,16], index: 1, kind: input, shape index: {}]   ;;  %s907_s2 = inlined_call_operand.vmem [shape: f32[5,128,16], index: 2, kind: output, shape index: {}]  }
   0x1   :  { %s766_s11 = smov 0   ;;  %s768_s12 = smov 0  }
   0x2   :  { %s770_s13 = smov 0  }
   0x3 LB: > { %s24_s14 = sadd.s32 1, %s736_s11  ;;  %s27_s15 = sadd.s32 1, %s740_s12  ;;  %s744_s13 = sphi %s770_s13, %s12_s13   ;;  %s740_s12 = sphi %s768_s12, %s911_s12   ;;  %s736_s11 = sphi %s766_s11, %s910_s11   ;;  %s732_s10 = sphi %s764_s10, %s909_s10   ;;  %s728_s9 = sphi %s762_s9, %s908_s9  }
   0x4   : > { %p25_p0 = scmp.ge.s32.totalorder %s24_s14, 9  ;;  %p595_p1 = scmp.ge.s32.totalorder %s744_s13, 1 }
   0x5   : > { %p166_p2 = scmp.lt.s32.totalorder %s744_s13, 46 }
   0x6   : > { %s913_s14 = smov (%p25_p0, %s24_s14), 0  ;;  %s915_s15 = smov (!%p25_p0, %s27_s15), %s740_s12 }
   0x7   : > { %p167_p3 = pnand %p595_p1, %p166_p2  ;;  %p29_p4 = scmp.ge.s32.totalorder %s915_s15, 5 }
   0x8   : > { %s205_s16 = smul.u32 (!%p167_p3), 9, %s732_s10  ;;  %p229_p5 = scmp.lt.s32.totalorder (!%p167_p3), %s732_s10, 4 }
   0x9   : > { %s917_s15 = smov (%p29_p4, %s915_s15), 0  ;;  %170 = sbr.rel (%p167_p3) target bundleno = 225 (0xe1), region = 28 }
   0xa   : > { %s206_s17 = sadd.s32 (!%p167_p3), %s728_s9, %s205_s16  ;;  %p602_p7 = scmp.ne.s32.totalorder (!%p167_p3), %s728_s9, 0 }
   0xb   : > { %p208_p6 = scmp.lt.s32.totalorder (!%p167_p3), %s206_s17, 44 }
   0xe   : > { %s919_s10 = smov (!%p229_p5, %s732_s10), 4  ;;  %s921_s17 = smov (!%p208_p6, %s206_s17), 44 }
   0xf   : > { %s652_s18 = sshll.u32 %s919_s10, 7  ;;  %s650_s19 = sshll.u32 %s921_s17, 6 }
  0x10   : > { %s651_s20 = sshll.u32 %s921_s17, 3  ;;  %s798_s23 = scalar_lea.vmem %s905_s0, %s650_s19 }
  0x11   : > { %s225_s26 = scalar_lea.vmem %s906_s1, %s651_s20  ;;  %s806_s29 = scalar_lea.vmem %s907_s2, %s652_s18 }
  0x12   : > { %242 = sbr.rel (%p602_p7) target bundleno = 40 (0x28), region = 32 }
  0x17   : > { %vm243_vm0 = vcmask 130048   ;;  %v746_v0 = vmov 0.0  }
  0x18   : > { %244 = vst.msk [vmem:[#allocation2] sm:$0xff] %vm243_vm0, %v746_v0 }
  0x19   : > { %245 = vst.msk [vmem:[#allocation2 + $0x8] sm:$0xff] %vm243_vm0, %v746_v0 }
  0x1a   : > { %246 = vst.msk [vmem:[#allocation2 + $0x10] sm:$0xff] %vm243_vm0, %v746_v0 }
  0x1b   : > { %247 = vst.msk [vmem:[#allocation2 + $0x18] sm:$0xff] %vm243_vm0, %v746_v0 }
  0x1c   : > { %248 = vst.msk [vmem:[#allocation2 + $0x20] sm:$0xff] %vm243_vm0, %v746_v0 }
  0x1d   : > { %249 = vst.msk [vmem:[#allocation2 + $0x28] sm:$0xff] %vm243_vm0, %v746_v0 }
  0x1e   : > { %250 = vst.msk [vmem:[#allocation2 + $0x30] sm:$0xff] %vm243_vm0, %v746_v0 }
  0x1f   : > { %251 = vst.msk [vmem:[#allocation2 + $0x38] sm:$0xff] %vm243_vm0, %v746_v0 }
  0x20   : > { %252 = vst.msk [vmem:[#allocation2 + $0x40] sm:$0xff] %vm243_vm0, %v746_v0 }
  0x21   : > { %253 = vst.msk [vmem:[#allocation2 + $0x48] sm:$0xff] %vm243_vm0, %v746_v0 }
  0x22   : > { %254 = vst.msk [vmem:[#allocation2 + $0x50] sm:$0xff] %vm243_vm0, %v746_v0 }
  0x23   : > { %255 = vst.msk [vmem:[#allocation2 + $0x58] sm:$0xff] %vm243_vm0, %v746_v0 }
  0x24   : > { %256 = vst.msk [vmem:[#allocation2 + $0x60] sm:$0xff] %vm243_vm0, %v746_v0 }
  0x25   : > { %257 = vst.msk [vmem:[#allocation2 + $0x68] sm:$0xff] %vm243_vm0, %v746_v0 }
  0x26   : > { %258 = vst.msk [vmem:[#allocation2 + $0x70] sm:$0xff] %vm243_vm0, %v746_v0 }
  0x27   : > { %259 = vst.msk [vmem:[#allocation2 + $0x78] sm:$0xff] %vm243_vm0, %v746_v0 }
  0x28 PF: > { %v637_v1 = vld [vmem:[%s225_s26] sm:$0xf]  ;;  %v661_v2 = vld [vmem:[%s225_s26] sm:$0x30]  ;;  %vm364_vm1 = vcmask 1045504   ;;  %v655_v6 = vld [vmem:[%s798_s23 + $0x10] sm:$0xff] }
  0x29   : > { %v638_v3 = vor.u32 %v661_v2, %v637_v1  ;;  %v653_v5 = vld [vmem:[%s798_s23] sm:$0xff]  ;;  %vm339_vm2 = vcmask 97280   ;;  %v659_v8 = vld [vmem:[%s798_s23 + $0x30] sm:$0xff]  ;;  %v654_v9 = vld [vmem:[%s798_s23 + $0x8] sm:$0xff]  ;;  %vm433_vm3 = vcmask 130048   ;;  %p647_p8 = scmp.ne.s32.totalorder %s728_s9, 8 }
  0x2a   : > { %v657_v7 = vld [vmem:[%s798_s23 + $0x20] sm:$0xff]  ;;  %v656_v10 = vld [vmem:[%s798_s23 + $0x18] sm:$0xff]  ;;  %v658_v11 = vld [vmem:[%s798_s23 + $0x28] sm:$0xff] }
  0x2b   : > { %v366_v4 = vsel %vm364_vm1, %v638_v3, 0  ;;  %v660_v12 = vld [vmem:[%s798_s23 + $0x38] sm:$0xff]  ;;  %v260_v13 = vld [vmem:[#allocation2] sm:$0xff]  ;;  %v261_v21 = vld [vmem:[#allocation2 + $0x8] sm:$0xff] }
  0x2c   : > { %375 = vmatpush.bf16.msra.mxu0 %v366_v4  ;;  %662 = vmatpush.bf16.msra.mxu1 %v366_v4  ;;  %v264_v14 = vld [vmem:[#allocation2 + $0x20] sm:$0xff]  ;;  %v265_v22 = vld [vmem:[#allocation2 + $0x28] sm:$0xff]  ;;  %v262_v33 = vld [vmem:[#allocation2 + $0x10] sm:$0xff] }
  0x2d   : > { %663 = vmatpush.bf16.msra.mxu2 %v366_v4  ;;  %664 = vmatpush.bf16.msra.mxu3 %v366_v4  ;;  %v268_v19 = vld [vmem:[#allocation2 + $0x40] sm:$0xff]  ;;  %v269_v31 = vld [vmem:[#allocation2 + $0x48] sm:$0xff]  ;;  %v266_v34 = vld [vmem:[#allocation2 + $0x30] sm:$0xff] }
  0x2e   : > { %v272_v20 = vld [vmem:[#allocation2 + $0x60] sm:$0xff]  ;;  %v273_v32 = vld [vmem:[#allocation2 + $0x68] sm:$0xff]  ;;  %v270_v43 = vld [vmem:[#allocation2 + $0x50] sm:$0xff] }
  0x2f   : > { %639 = vmatmul.msk.bf16.vlgmr.msra.gmra.mxu0 %vm339_vm2, %v653_v5  ;;  %641 = vmatmul.msk.bf16.vlgmr.msra.gmra.mxu1 %vm339_vm2, %v655_v6  ;;  %v274_v44 = vld [vmem:[#allocation2 + $0x70] sm:$0xff]  ;;  %v263_v45 = vld [vmem:[#allocation2 + $0x18] sm:$0xff] }
  0x30   : > { %643 = vmatmul.msk.bf16.vlgmr.msra.gmra.mxu2 %vm339_vm2, %v657_v7  ;;  %645 = vmatmul.msk.bf16.vlgmr.msra.gmra.mxu3 %vm339_vm2, %v659_v8  ;;  %v267_v46 = vld [vmem:[#allocation2 + $0x38] sm:$0xff] }
  0x31   : > { %v271_v55 = vld [vmem:[#allocation2 + $0x58] sm:$0xff] }
  0x32   : > { %v275_v56 = vld [vmem:[#allocation2 + $0x78] sm:$0xff] }
  0x3f   : > { %640 = vmatmul.msk.bf16.gmra.mxu0 %vm339_vm2, %v654_v9  ;;  %642 = vmatmul.msk.bf16.gmra.mxu1 %vm339_vm2, %v656_v10 }
  0x40   : > { %644 = vmatmul.msk.bf16.gmra.mxu2 %vm339_vm2, %v658_v11  ;;  %646 = vmatmul.msk.bf16.gmra.mxu3 %vm339_vm2, %v660_v12 }
  0xac   : > { %v377_v15 = vpop.f32.mrf.mxu0  ;;  %v387_v16 = vpop.f32.mrf.mxu1 }
  0xad   : > { %v417_v17 = vadd.f32 %v377_v15, %v260_v13  ;;  %v421_v18 = vadd.f32 %v387_v16, %v264_v14 }
  0xaf   : > { %434 = vst.msk [vmem:[#allocation2] sm:$0xff] %vm433_vm3, %v417_v17 }
  0xb0   : > { %438 = vst.msk [vmem:[#allocation2 + $0x20] sm:$0xff] %vm433_vm3, %v421_v18 }
  0xb3   : > { %v397_v23 = vpop.f32.mrf.mxu2  ;;  %v407_v24 = vpop.f32.mrf.mxu3 }
  0xb4   : > { %v425_v25 = vadd.f32 %v397_v23, %v268_v19  ;;  %v429_v26 = vadd.f32 %v407_v24, %v272_v20  ;;  %v379_v27 = vpop.f32.mrf.mxu0  ;;  %v389_v28 = vpop.f32.mrf.mxu1 }
  0xb5   : > { %v418_v29 = vadd.f32 %v379_v27, %v261_v21  ;;  %v422_v30 = vadd.f32 %v389_v28, %v265_v22 }
  0xb6   : > { %442 = vst.msk [vmem:[#allocation2 + $0x40] sm:$0xff] %vm433_vm3, %v425_v25 }
  0xb7   : > { %446 = vst.msk [vmem:[#allocation2 + $0x60] sm:$0xff] %vm433_vm3, %v429_v26 }
  0xb8   : > { %435 = vst.msk [vmem:[#allocation2 + $0x8] sm:$0xff] %vm433_vm3, %v418_v29 }
  0xb9   : > { %439 = vst.msk [vmem:[#allocation2 + $0x28] sm:$0xff] %vm433_vm3, %v422_v30 }
  0xbb   : > { %v399_v35 = vpop.f32.mrf.mxu2  ;;  %v409_v36 = vpop.f32.mrf.mxu3 }
  0xbc   : > { %v426_v37 = vadd.f32 %v399_v35, %v269_v31  ;;  %v430_v38 = vadd.f32 %v409_v36, %v273_v32  ;;  %v382_v39 = vpop.f32.mrf.mxu0  ;;  %v392_v40 = vpop.f32.mrf.mxu1 }
  0xbd   : > { %v419_v41 = vadd.f32 %v382_v39, %v262_v33  ;;  %v423_v42 = vadd.f32 %v392_v40, %v266_v34 }
  0xbe   : > { %443 = vst.msk [vmem:[#allocation2 + $0x48] sm:$0xff] %vm433_vm3, %v426_v37 }
  0xbf   : > { %447 = vst.msk [vmem:[#allocation2 + $0x68] sm:$0xff] %vm433_vm3, %v430_v38 }
  0xc0   : > { %436 = vst.msk [vmem:[#allocation2 + $0x10] sm:$0xff] %vm433_vm3, %v419_v41 }
  0xc1   : > { %440 = vst.msk [vmem:[#allocation2 + $0x30] sm:$0xff] %vm433_vm3, %v423_v42 }
  0xc3   : > { %v402_v47 = vpop.f32.mrf.mxu2  ;;  %v412_v48 = vpop.f32.mrf.mxu3 }
  0xc4   : > { %v427_v49 = vadd.f32 %v402_v47, %v270_v43  ;;  %v431_v50 = vadd.f32 %v412_v48, %v274_v44  ;;  %v384_v51 = vpop.f32.mrf.mxu0  ;;  %v394_v52 = vpop.f32.mrf.mxu1 }
  0xc5   : > { %v420_v53 = vadd.f32 %v384_v51, %v263_v45  ;;  %v424_v54 = vadd.f32 %v394_v52, %v267_v46 }
  0xc6   : > { %444 = vst.msk [vmem:[#allocation2 + $0x50] sm:$0xff] %vm433_vm3, %v427_v49 }
  0xc7   : > { %448 = vst.msk [vmem:[#allocation2 + $0x70] sm:$0xff] %vm433_vm3, %v431_v50 }
  0xc8   : > { %437 = vst.msk [vmem:[#allocation2 + $0x18] sm:$0xff] %vm433_vm3, %v420_v53 }
  0xc9   : > { %441 = vst.msk [vmem:[#allocation2 + $0x38] sm:$0xff] %vm433_vm3, %v424_v54 }
  0xcb   : > { %v404_v57 = vpop.f32.mrf.mxu2  ;;  %v414_v58 = vpop.f32.mrf.mxu3  ;;  %453 = sbr.rel (%p647_p8) target bundleno = 225 (0xe1), region = 36 }
  0xcc   : > { %v428_v59 = vadd.f32 %v404_v57, %v271_v55  ;;  %v432_v60 = vadd.f32 %v414_v58, %v275_v56 }
  0xce   : > { %445 = vst.msk [vmem:[#allocation2 + $0x58] sm:$0xff] %vm433_vm3, %v428_v59 }
  0xcf   : > { %449 = vst.msk [vmem:[#allocation2 + $0x78] sm:$0xff] %vm433_vm3, %v432_v60 }
  0xd0   : > { %v454_v61 = vld [vmem:[#allocation2] sm:$0xff]  ;;  %v455_v62 = vld [vmem:[#allocation2 + $0x8] sm:$0xff]  ;;  %v456_v63 = vld [vmem:[#allocation2 + $0x10] sm:$0xff] }
  0xd1   : > { %470 = vst.msk [vmem:[%s806_s29] sm:$0xff] %vm433_vm3, %v454_v61  ;;  %v457_v0 = vld [vmem:[#allocation2 + $0x18] sm:$0xff]  ;;  %v458_v1 = vld [vmem:[#allocation2 + $0x20] sm:$0xff]  ;;  %v459_v2 = vld [vmem:[#allocation2 + $0x28] sm:$0xff] }
  0xd2   : > { %471 = vst.msk [vmem:[%s806_s29 + $0x8] sm:$0xff] %vm433_vm3, %v455_v62  ;;  %v460_v3 = vld [vmem:[#allocation2 + $0x30] sm:$0xff]  ;;  %v461_v4 = vld [vmem:[#allocation2 + $0x38] sm:$0xff]  ;;  %v462_v5 = vld [vmem:[#allocation2 + $0x40] sm:$0xff] }
  0xd3   : > { %472 = vst.msk [vmem:[%s806_s29 + $0x10] sm:$0xff] %vm433_vm3, %v456_v63  ;;  %v463_v6 = vld [vmem:[#allocation2 + $0x48] sm:$0xff]  ;;  %v464_v7 = vld [vmem:[#allocation2 + $0x50] sm:$0xff]  ;;  %v466_v9 = vld [vmem:[#allocation2 + $0x60] sm:$0xff] }
  0xd4   : > { %473 = vst.msk [vmem:[%s806_s29 + $0x18] sm:$0xff] %vm433_vm3, %v457_v0  ;;  %v467_v10 = vld [vmem:[#allocation2 + $0x68] sm:$0xff]  ;;  %v468_v11 = vld [vmem:[#allocation2 + $0x70] sm:$0xff] }
  0xd5   : > { %474 = vst.msk [vmem:[%s806_s29 + $0x20] sm:$0xff] %vm433_vm3, %v458_v1  ;;  %v465_v8 = vld [vmem:[#allocation2 + $0x58] sm:$0xff] }
  0xd6   : > { %475 = vst.msk [vmem:[%s806_s29 + $0x28] sm:$0xff] %vm433_vm3, %v459_v2  ;;  %v469_v12 = vld [vmem:[#allocation2 + $0x78] sm:$0xff] }
  0xd7   : > { %476 = vst.msk [vmem:[%s806_s29 + $0x30] sm:$0xff] %vm433_vm3, %v460_v3 }
  0xd8   : > { %477 = vst.msk [vmem:[%s806_s29 + $0x38] sm:$0xff] %vm433_vm3, %v461_v4 }
  0xd9   : > { %478 = vst.msk [vmem:[%s806_s29 + $0x40] sm:$0xff] %vm433_vm3, %v462_v5 }
  0xda   : > { %479 = vst.msk [vmem:[%s806_s29 + $0x48] sm:$0xff] %vm433_vm3, %v463_v6 }
  0xdb   : > { %480 = vst.msk [vmem:[%s806_s29 + $0x50] sm:$0xff] %vm433_vm3, %v464_v7 }
  0xdc   : > { %481 = vst.msk [vmem:[%s806_s29 + $0x58] sm:$0xff] %vm433_vm3, %v465_v8 }
  0xdd   : > { %482 = vst.msk [vmem:[%s806_s29 + $0x60] sm:$0xff] %vm433_vm3, %v466_v9 }
  0xde   : > { %483 = vst.msk [vmem:[%s806_s29 + $0x68] sm:$0xff] %vm433_vm3, %v467_v10 }
  0xdf   : > { %484 = vst.msk [vmem:[%s806_s29 + $0x70] sm:$0xff] %vm433_vm3, %v468_v11 }
  0xe0   : > { %485 = vst.msk [vmem:[%s806_s29 + $0x78] sm:$0xff] %vm433_vm3, %v469_v12 }
  0xe1 PF: > { %s12_s13 = sadd.s32 1, %s744_s13   ;;  %s908_s9 = smov %s736_s11 }
  0xe2   : > { %p9_p9 = scmp.ge.s32.totalorder %s12_s13, 47   ;;  %s909_s10 = smov %s740_s12 }
  0xe3   : > { %s910_s11 = smov %s913_s14  ;;  %s911_s12 = smov %s917_s15 }
  0xe4   :  { %11 = sbr.rel (!%p9_p9) target bundleno = 3 (0x3), region = 69 }

// kernel: espnet_encoder.50
= control target key start
LH: loop header
LB: loop body
LE: loop exit
PB: predicated region body
PF: predicated region fallthrough
CT: control target
= control target key end

     0   :  { %vm125_vm0 = vcmask 523264   ;;  %s349_s0 = inlined_call_operand.vmem [shape: f32[128,64], index: 0, kind: input, shape index: {}]   ;;  %s350_s1 = inlined_call_operand.vmem [shape: f32[1,64], index: 1, kind: input, shape index: {}]   ;;  %s351_s2 = inlined_call_operand.vmem [shape: f32[1,64], index: 2, kind: input, shape index: {}]   ;;  %s352_s3 = inlined_call_operand.vmem [shape: f32[1,64], index: 3, kind: input, shape index: {}]   ;;  %s353_s4 = inlined_call_operand.vmem [shape: f32[128,64], index: 4, kind: output, shape index: {}]  }
   0x1   :  { %v17_v0 = vld [vmem:[%s349_s0] sm:$0xff]  ;;  %v18_v5 = vld [vmem:[%s349_s0 + $0x8] sm:$0xff]  ;;  %v19_v6 = vld [vmem:[%s349_s0 + $0x10] sm:$0xff] }
   0x2   :  { %v180_v1 = vld [vmem:[%s350_s1] ss:$0 sm:$0xff]  ;;  %v20_v9 = vld [vmem:[%s349_s0 + $0x18] sm:$0xff]  ;;  %v22_v11 = vld [vmem:[%s349_s0 + $0x28] sm:$0xff] }
   0x3   :  { %v185_v2 = vld [vmem:[%s351_s2] ss:$0 sm:$0xff]  ;;  %v37_v3 = vmul.f32 %v180_v1, %v17_v0  ;;  %v38_v7 = vmul.f32 %v180_v1, %v18_v5  ;;  %v39_v8 = vmul.f32 %v180_v1, %v19_v6  ;;  %v40_v13 = vmul.f32 %v180_v1, %v20_v9  ;;  %v23_v16 = vld [vmem:[%s349_s0 + $0x30] sm:$0xff]  ;;  %v24_v17 = vld [vmem:[%s349_s0 + $0x38] sm:$0xff] }
   0x4   :  { %v191_v4 = vld [vmem:[%s352_s3] ss:$0 sm:$0xff]  ;;  %v42_v15 = vmul.f32 %v180_v1, %v22_v11  ;;  %v43_v20 = vmul.f32 %v180_v1, %v23_v16  ;;  %v44_v21 = vmul.f32 %v180_v1, %v24_v17  ;;  %v26_v30 = vld [vmem:[%s349_s0 + $0x48] sm:$0xff]  ;;  %v27_v39 = vld [vmem:[%s349_s0 + $0x50] sm:$0xff] }
   0x5   :  { %v21_v10 = vld [vmem:[%s349_s0 + $0x20] sm:$0xff]  ;;  %v57_v12 = vadd.f32 %v185_v2, %v37_v3  ;;  %v58_v18 = vadd.f32 %v185_v2, %v38_v7  ;;  %v59_v19 = vadd.f32 %v185_v2, %v39_v8  ;;  %v60_v23 = vadd.f32 %v185_v2, %v40_v13  ;;  %v28_v43 = vld [vmem:[%s349_s0 + $0x58] sm:$0xff]  ;;  %v30_v51 = vld [vmem:[%s349_s0 + $0x68] sm:$0xff] }
   0x6   :  { %v41_v14 = vmul.f32 %v180_v1, %v21_v10  ;;  %v25_v27 = vld [vmem:[%s349_s0 + $0x40] sm:$0xff]  ;;  %v62_v34 = vadd.f32 %v185_v2, %v42_v15  ;;  %v63_v36 = vadd.f32 %v185_v2, %v43_v20  ;;  %v64_v37 = vadd.f32 %v185_v2, %v44_v21  ;;  %v31_v56 = vld [vmem:[%s349_s0 + $0x70] sm:$0xff]  ;;  %v32_v57 = vld [vmem:[%s349_s0 + $0x78] sm:$0xff] }
   0x7   :  { %vm73_vm1 = vcmp.ge.f32.partialorder %v57_v12, 0.0  ;;  %v93_v22 = vmul.f32 %v191_v4, %v57_v12  ;;  %vm74_vm2 = vcmp.ge.f32.partialorder %v58_v18, 0.0  ;;  %v94_v25 = vmul.f32 %v191_v4, %v58_v18  ;;  %v29_v44 = vld [vmem:[%s349_s0 + $0x60] sm:$0xff] }
   0x8   :  { %v61_v24 = vadd.f32 %v185_v2, %v41_v14  ;;  %vm75_vm3 = vcmp.ge.f32.partialorder %v59_v19, 0.0  ;;  %v95_v26 = vmul.f32 %v191_v4, %v59_v19  ;;  %vm76_vm4 = vcmp.ge.f32.partialorder %v60_v23, 0.0 }
   0x9   :  { %v109_v28 = vsel %vm73_vm1, %v57_v12, %v93_v22  ;;  %v96_v29 = vmul.f32 %v191_v4, %v60_v23  ;;  %v110_v31 = vsel %vm74_vm2, %v58_v18, %v94_v25  ;;  %v45_v38 = vmul.f32 %v180_v1, %v25_v27 }
   0xa   :  { %vm77_vm5 = vcmp.ge.f32.partialorder %v61_v24, 0.0  ;;  %126 = vst.msk [vmem:[%s353_s4] sm:$0xff] %vm125_vm0, %v109_v28  ;;  %v111_v32 = vsel %vm75_vm3, %v59_v19, %v95_v26  ;;  %v97_v33 = vmul.f32 %v191_v4, %v61_v24  ;;  %vm78_vm6 = vcmp.ge.f32.partialorder %v62_v34, 0.0 }
   0xb   :  { %127 = vst.msk [vmem:[%s353_s4 + $0x8] sm:$0xff] %vm125_vm0, %v110_v31  ;;  %v112_v35 = vsel %vm76_vm4, %v60_v23, %v96_v29  ;;  %v98_v41 = vmul.f32 %v191_v4, %v62_v34  ;;  %v46_v42 = vmul.f32 %v180_v1, %v26_v30  ;;  %vm79_vm7 = vcmp.ge.f32.partialorder %v63_v36, 0.0 }
   0xc   :  { %128 = vst.msk [vmem:[%s353_s4 + $0x10] sm:$0xff] %vm125_vm0, %v111_v32  ;;  %v113_v40 = vsel %vm77_vm5, %v61_v24, %v97_v33  ;;  %v99_v45 = vmul.f32 %v191_v4, %v63_v36  ;;  %vm80_vm8 = vcmp.ge.f32.partialorder %v64_v37, 0.0  ;;  %v100_v46 = vmul.f32 %v191_v4, %v64_v37 }
   0xd   :  { %129 = vst.msk [vmem:[%s353_s4 + $0x18] sm:$0xff] %vm125_vm0, %v112_v35  ;;  %v114_v47 = vsel %vm78_vm6, %v62_v34, %v98_v41  ;;  %v65_v48 = vadd.f32 %v185_v2, %v45_v38  ;;  %v66_v49 = vadd.f32 %v185_v2, %v46_v42  ;;  %v47_v50 = vmul.f32 %v180_v1, %v27_v39 }
   0xe   :  { %130 = vst.msk [vmem:[%s353_s4 + $0x20] sm:$0xff] %vm125_vm0, %v113_v40  ;;  %v115_v52 = vsel %vm79_vm7, %v63_v36, %v99_v45  ;;  %v116_v53 = vsel %vm80_vm8, %v64_v37, %v100_v46  ;;  %v48_v54 = vmul.f32 %v180_v1, %v28_v43  ;;  %v49_v55 = vmul.f32 %v180_v1, %v29_v44 }
   0xf   :  { %131 = vst.msk [vmem:[%s353_s4 + $0x28] sm:$0xff] %vm125_vm0, %v114_v47  ;;  %vm81_vm9 = vcmp.ge.f32.partialorder %v65_v48, 0.0  ;;  %v101_v58 = vmul.f32 %v191_v4, %v65_v48  ;;  %vm82_vm10 = vcmp.ge.f32.partialorder %v66_v49, 0.0  ;;  %v102_v59 = vmul.f32 %v191_v4, %v66_v49 }
  0x10   :  { %132 = vst.msk [vmem:[%s353_s4 + $0x30] sm:$0xff] %vm125_vm0, %v115_v52  ;;  %v67_v60 = vadd.f32 %v185_v2, %v47_v50  ;;  %v68_v61 = vadd.f32 %v185_v2, %v48_v54  ;;  %v69_v62 = vadd.f32 %v185_v2, %v49_v55  ;;  %v50_v63 = vmul.f32 %v180_v1, %v30_v51 }
  0x11   :  { %133 = vst.msk [vmem:[%s353_s4 + $0x38] sm:$0xff] %vm125_vm0, %v116_v53  ;;  %v117_v0 = vsel %vm81_vm9, %v65_v48, %v101_v58  ;;  %v118_v3 = vsel %vm82_vm10, %v66_v49, %v102_v59  ;;  %v51_v5 = vmul.f32 %v180_v1, %v31_v56  ;;  %v52_v6 = vmul.f32 %v180_v1, %v32_v57 }
  0x12   :  { %134 = vst.msk [vmem:[%s353_s4 + $0x40] sm:$0xff] %vm125_vm0, %v117_v0  ;;  %vm83_vm11 = vcmp.ge.f32.partialorder %v67_v60, 0.0  ;;  %v103_v7 = vmul.f32 %v191_v4, %v67_v60  ;;  %vm84_vm12 = vcmp.ge.f32.partialorder %v68_v61, 0.0  ;;  %v104_v8 = vmul.f32 %v191_v4, %v68_v61 }
  0x13   :  { %135 = vst.msk [vmem:[%s353_s4 + $0x48] sm:$0xff] %vm125_vm0, %v118_v3  ;;  %vm85_vm13 = vcmp.ge.f32.partialorder %v69_v62, 0.0  ;;  %v105_v9 = vmul.f32 %v191_v4, %v69_v62  ;;  %v70_v1 = vadd.f32 %v185_v2, %v50_v63  ;;  %v71_v10 = vadd.f32 %v185_v2, %v51_v5 }
  0x14   :  { %v119_v11 = vsel %vm83_vm11, %v67_v60, %v103_v7  ;;  %v120_v12 = vsel %vm84_vm12, %v68_v61, %v104_v8  ;;  %v72_v13 = vadd.f32 %v185_v2, %v52_v6 }
  0x15   :  { %136 = vst.msk [vmem:[%s353_s4 + $0x50] sm:$0xff] %vm125_vm0, %v119_v11  ;;  %v121_v14 = vsel %vm85_vm13, %v69_v62, %v105_v9  ;;  %vm86_vm14 = vcmp.ge.f32.partialorder %v70_v1, 0.0  ;;  %v106_v15 = vmul.f32 %v191_v4, %v70_v1  ;;  %vm87_vm15 = vcmp.ge.f32.partialorder %v71_v10, 0.0 }
  0x16   :  { %137 = vst.msk [vmem:[%s353_s4 + $0x58] sm:$0xff] %vm125_vm0, %v120_v12  ;;  %v107_v16 = vmul.f32 %v191_v4, %v71_v10  ;;  %vm88_vm1 = vcmp.ge.f32.partialorder %v72_v13, 0.0  ;;  %v108_v2 = vmul.f32 %v191_v4, %v72_v13 }
  0x17   :  { %138 = vst.msk [vmem:[%s353_s4 + $0x60] sm:$0xff] %vm125_vm0, %v121_v14  ;;  %v122_v17 = vsel %vm86_vm14, %v70_v1, %v106_v15 }
  0x18   :  { %139 = vst.msk [vmem:[%s353_s4 + $0x68] sm:$0xff] %vm125_vm0, %v122_v17  ;;  %v123_v18 = vsel %vm87_vm15, %v71_v10, %v107_v16  ;;  %v124_v19 = vsel %vm88_vm1, %v72_v13, %v108_v2 }
  0x19   :  { %140 = vst.msk [vmem:[%s353_s4 + $0x70] sm:$0xff] %vm125_vm0, %v123_v18 }
  0x1a   :  { %141 = vst.msk [vmem:[%s353_s4 + $0x78] sm:$0xff] %vm125_vm0, %v124_v19 }

// kernel: espnet_encoder.51
= control target key start
LH: loop header
LB: loop body
LE: loop exit
PB: predicated region body
PF: predicated region fallthrough
CT: control target
= control target key end

     0   :  { %vm56_vm0 = vcmask 97280   ;;  %v416_v2 = vmov 0.0   ;;  %vm177_vm1 = vcmask 523264   ;;  %s572_s1 = inlined_call_operand.vmem [shape: bf16[1,64,12], index: 1, kind: input, shape index: {}]   ;;  %s573_s0 = inlined_call_operand.vmem [shape: bf16[1,128,64], index: 0, kind: input, shape index: {}]   ;;  %s574_s2 = inlined_call_operand.vmem [shape: f32[1,128,12], index: 2, kind: output, shape index: {}]  }
   0x1   :  { %v402_v0 = vld [vmem:[%s572_s1 + $0x18] sm:$0xff]  ;;  %v401_v1 = vld [vmem:[%s572_s1 + $0x10] sm:$0xff]  ;;  %57 = vst.msk [vmem:[#allocation2] sm:$0xff] %vm56_vm0, %v416_v2  ;;  %v400_v3 = vld [vmem:[%s572_s1 + $0x8] sm:$0xff] }
   0x2   :  { %206 = vmatpush.bf16.msra.mxu0 %v402_v0  ;;  %403 = vmatpush.bf16.msra.mxu1 %v402_v0  ;;  %58 = vst.msk [vmem:[#allocation2 + $0x8] sm:$0xff] %vm56_vm0, %v416_v2  ;;  %v399_v4 = vld [vmem:[%s572_s1] sm:$0xff]  ;;  %v393_v6 = vld [vmem:[%s573_s0 + $0x10] sm:$0xff]  ;;  %v392_v9 = vld [vmem:[%s573_s0 + $0x8] sm:$0xff] }
   0x3   :  { %404 = vmatpush.bf16.msra.mxu2 %v402_v0  ;;  %405 = vmatpush.bf16.msra.mxu3 %v402_v0  ;;  %59 = vst.msk [vmem:[#allocation2 + $0x10] sm:$0xff] %vm56_vm0, %v416_v2  ;;  %v391_v5 = vld [vmem:[%s573_s0] sm:$0xff]  ;;  %v397_v8 = vld [vmem:[%s573_s0 + $0x30] sm:$0xff]  ;;  %v394_v10 = vld [vmem:[%s573_s0 + $0x18] sm:$0xff] }
   0x4   :  { %60 = vst.msk [vmem:[#allocation2 + $0x18] sm:$0xff] %vm56_vm0, %v416_v2  ;;  %v395_v7 = vld [vmem:[%s573_s0 + $0x20] sm:$0xff]  ;;  %v396_v11 = vld [vmem:[%s573_s0 + $0x28] sm:$0xff]  ;;  %v398_v12 = vld [vmem:[%s573_s0 + $0x38] sm:$0xff] }
   0x5   :  { %61 = vst.msk [vmem:[#allocation2 + $0x20] sm:$0xff] %vm56_vm0, %v416_v2 }
   0x6   :  { %207 = vmatpush.bf16.msra.mxu0 %v401_v1  ;;  %406 = vmatpush.bf16.msra.mxu1 %v401_v1  ;;  %62 = vst.msk [vmem:[#allocation2 + $0x28] sm:$0xff] %vm56_vm0, %v416_v2 }
   0x7   :  { %407 = vmatpush.bf16.msra.mxu2 %v401_v1  ;;  %408 = vmatpush.bf16.msra.mxu3 %v401_v1  ;;  %63 = vst.msk [vmem:[#allocation2 + $0x30] sm:$0xff] %vm56_vm0, %v416_v2 }
   0x8   :  { %64 = vst.msk [vmem:[#allocation2 + $0x38] sm:$0xff] %vm56_vm0, %v416_v2  ;;  %v73_v13 = vld [vmem:[#allocation2] sm:$0xff] }
   0x9   :  { %65 = vst.msk [vmem:[#allocation2 + $0x40] sm:$0xff] %vm56_vm0, %v416_v2  ;;  %v74_v23 = vld [vmem:[#allocation2 + $0x8] sm:$0xff] }
   0xa   :  { %208 = vmatpush.bf16.msra.mxu0 %v400_v3  ;;  %409 = vmatpush.bf16.msra.mxu1 %v400_v3  ;;  %66 = vst.msk [vmem:[#allocation2 + $0x48] sm:$0xff] %vm56_vm0, %v416_v2  ;;  %v75_v42 = vld [vmem:[#allocation2 + $0x10] sm:$0xff] }
   0xb   :  { %410 = vmatpush.bf16.msra.mxu2 %v400_v3  ;;  %411 = vmatpush.bf16.msra.mxu3 %v400_v3  ;;  %67 = vst.msk [vmem:[#allocation2 + $0x50] sm:$0xff] %vm56_vm0, %v416_v2  ;;  %v76_v53 = vld [vmem:[#allocation2 + $0x18] sm:$0xff] }
   0xc   :  { %68 = vst.msk [vmem:[#allocation2 + $0x58] sm:$0xff] %vm56_vm0, %v416_v2  ;;  %v77_v14 = vld [vmem:[#allocation2 + $0x20] sm:$0xff] }
   0xd   :  { %69 = vst.msk [vmem:[#allocation2 + $0x60] sm:$0xff] %vm56_vm0, %v416_v2  ;;  %v78_v26 = vld [vmem:[#allocation2 + $0x28] sm:$0xff] }
   0xe   :  { %209 = vmatpush.bf16.msra.mxu0 %v399_v4  ;;  %412 = vmatpush.bf16.msra.mxu1 %v399_v4  ;;  %70 = vst.msk [vmem:[#allocation2 + $0x68] sm:$0xff] %vm56_vm0, %v416_v2  ;;  %v79_v43 = vld [vmem:[#allocation2 + $0x30] sm:$0xff] }
   0xf   :  { %413 = vmatpush.bf16.msra.mxu2 %v399_v4  ;;  %414 = vmatpush.bf16.msra.mxu3 %v399_v4  ;;  %71 = vst.msk [vmem:[#allocation2 + $0x70] sm:$0xff] %vm56_vm0, %v416_v2  ;;  %v80_v56 = vld [vmem:[#allocation2 + $0x38] sm:$0xff] }
  0x10   :  { %72 = vst.msk [vmem:[#allocation2 + $0x78] sm:$0xff] %vm56_vm0, %v416_v2  ;;  %v81_v19 = vld [vmem:[#allocation2 + $0x40] sm:$0xff] }
  0x11   :  { %383 = vmatmul.msk.bf16.vlgmr.msra.gmra.mxu0 %vm177_vm1, %v391_v5  ;;  %385 = vmatmul.msk.bf16.vlgmr.msra.gmra.mxu1 %vm177_vm1, %v393_v6  ;;  %v82_v33 = vld [vmem:[#allocation2 + $0x48] sm:$0xff] }
  0x12   :  { %387 = vmatmul.msk.bf16.vlgmr.msra.gmra.mxu2 %vm177_vm1, %v395_v7  ;;  %389 = vmatmul.msk.bf16.vlgmr.msra.gmra.mxu3 %vm177_vm1, %v397_v8  ;;  %v83_v48 = vld [vmem:[#allocation2 + $0x50] sm:$0xff] }
  0x13   :  { %v84_v63 = vld [vmem:[#allocation2 + $0x58] sm:$0xff] }
  0x14   :  { %v85_v20 = vld [vmem:[#allocation2 + $0x60] sm:$0xff] }
  0x15   :  { %v86_v34 = vld [vmem:[#allocation2 + $0x68] sm:$0xff] }
  0x16   :  { %v87_v50 = vld [vmem:[#allocation2 + $0x70] sm:$0xff] }
  0x17   :  { %v88_v0 = vld [vmem:[#allocation2 + $0x78] sm:$0xff] }
  0x21   :  { %384 = vmatmul.msk.bf16.gmra.mxu0 %vm177_vm1, %v392_v9  ;;  %386 = vmatmul.msk.bf16.gmra.mxu1 %vm177_vm1, %v394_v10 }
  0x22   :  { %388 = vmatmul.msk.bf16.gmra.mxu2 %vm177_vm1, %v396_v11  ;;  %390 = vmatmul.msk.bf16.gmra.mxu3 %vm177_vm1, %v398_v12 }
  0x8e   :  { %v211_v15 = vpop.f32.mrf.mxu0  ;;  %v221_v16 = vpop.f32.mrf.mxu1 }
  0x8f   :  { %v251_v17 = vadd.f32 %v211_v15, %v73_v13  ;;  %v255_v18 = vadd.f32 %v221_v16, %v77_v14 }
  0x91   :  { %268 = vst.msk [vmem:[#allocation2] sm:$0xff] %vm56_vm0, %v251_v17 }
  0x92   :  { %272 = vst.msk [vmem:[#allocation2 + $0x20] sm:$0xff] %vm56_vm0, %v255_v18 }
  0x95   :  { %v231_v21 = vpop.f32.mrf.mxu2  ;;  %v241_v22 = vpop.f32.mrf.mxu3 }
  0x96   :  { %v259_v24 = vadd.f32 %v231_v21, %v81_v19  ;;  %v213_v25 = vpop.f32.mrf.mxu0  ;;  %v223_v27 = vpop.f32.mrf.mxu1  ;;  %v263_v28 = vadd.f32 %v241_v22, %v85_v20 }
  0x97   :  { %v252_v30 = vadd.f32 %v213_v25, %v74_v23  ;;  %v256_v32 = vadd.f32 %v223_v27, %v78_v26 }
  0x98   :  { %v287_v29 = vld [vmem:[#allocation2] sm:$0xff]  ;;  %276 = vst.msk [vmem:[#allocation2 + $0x40] sm:$0xff] %vm56_vm0, %v259_v24 }
  0x99   :  { %303 = vst.msk [vmem:[%s574_s2] sm:$0xff] %vm56_vm0, %v287_v29  ;;  %v291_v31 = vld [vmem:[#allocation2 + $0x20] sm:$0xff] }
  0x9a   :  { %307 = vst.msk [vmem:[%s574_s2 + $0x20] sm:$0xff] %vm56_vm0, %v291_v31 }
  0x9b   :  { %280 = vst.msk [vmem:[#allocation2 + $0x60] sm:$0xff] %vm56_vm0, %v263_v28 }
  0x9c   :  { %269 = vst.msk [vmem:[#allocation2 + $0x8] sm:$0xff] %vm56_vm0, %v252_v30 }
  0x9d   :  { %273 = vst.msk [vmem:[#allocation2 + $0x28] sm:$0xff] %vm56_vm0, %v256_v32  ;;  %v233_v35 = vpop.f32.mrf.mxu2  ;;  %v243_v36 = vpop.f32.mrf.mxu3 }
  0x9e   :  { %v260_v37 = vadd.f32 %v233_v35, %v82_v33  ;;  %v264_v38 = vadd.f32 %v243_v36, %v86_v34  ;;  %v216_v39 = vpop.f32.mrf.mxu0  ;;  %v226_v40 = vpop.f32.mrf.mxu1 }
  0x9f   :  { %v295_v41 = vld [vmem:[#allocation2 + $0x40] sm:$0xff]  ;;  %v253_v45 = vadd.f32 %v216_v39, %v75_v42  ;;  %v257_v47 = vadd.f32 %v226_v40, %v79_v43 }
  0xa0   :  { %311 = vst.msk [vmem:[%s574_s2 + $0x40] sm:$0xff] %vm56_vm0, %v295_v41 }
  0xa1   :  { %277 = vst.msk [vmem:[#allocation2 + $0x48] sm:$0xff] %vm56_vm0, %v260_v37 }
  0xa2   :  { %v299_v44 = vld [vmem:[#allocation2 + $0x60] sm:$0xff]  ;;  %281 = vst.msk [vmem:[#allocation2 + $0x68] sm:$0xff] %vm56_vm0, %v264_v38 }
  0xa3   :  { %315 = vst.msk [vmem:[%s574_s2 + $0x60] sm:$0xff] %vm56_vm0, %v299_v44  ;;  %v288_v46 = vld [vmem:[#allocation2 + $0x8] sm:$0xff] }
  0xa4   :  { %304 = vst.msk [vmem:[%s574_s2 + $0x8] sm:$0xff] %vm56_vm0, %v288_v46  ;;  %v292_v49 = vld [vmem:[#allocation2 + $0x28] sm:$0xff] }
  0xa5   :  { %308 = vst.msk [vmem:[%s574_s2 + $0x28] sm:$0xff] %vm56_vm0, %v292_v49  ;;  %v236_v51 = vpop.f32.mrf.mxu2  ;;  %v246_v52 = vpop.f32.mrf.mxu3 }
  0xa6   :  { %270 = vst.msk [vmem:[#allocation2 + $0x10] sm:$0xff] %vm56_vm0, %v253_v45  ;;  %v261_v54 = vadd.f32 %v236_v51, %v83_v48  ;;  %v218_v55 = vpop.f32.mrf.mxu0  ;;  %v228_v57 = vpop.f32.mrf.mxu1  ;;  %v265_v58 = vadd.f32 %v246_v52, %v87_v50 }
  0xa7   :  { %274 = vst.msk [vmem:[#allocation2 + $0x30] sm:$0xff] %vm56_vm0, %v257_v47  ;;  %v254_v60 = vadd.f32 %v218_v55, %v76_v53  ;;  %v258_v62 = vadd.f32 %v228_v57, %v80_v56 }
  0xa8   :  { %v296_v59 = vld [vmem:[#allocation2 + $0x48] sm:$0xff]  ;;  %278 = vst.msk [vmem:[#allocation2 + $0x50] sm:$0xff] %vm56_vm0, %v261_v54 }
  0xa9   :  { %312 = vst.msk [vmem:[%s574_s2 + $0x48] sm:$0xff] %vm56_vm0, %v296_v59  ;;  %v300_v61 = vld [vmem:[#allocation2 + $0x68] sm:$0xff] }
  0xaa   :  { %316 = vst.msk [vmem:[%s574_s2 + $0x68] sm:$0xff] %vm56_vm0, %v300_v61 }
  0xab   :  { %282 = vst.msk [vmem:[#allocation2 + $0x70] sm:$0xff] %vm56_vm0, %v265_v58 }
  0xac   :  { %271 = vst.msk [vmem:[#allocation2 + $0x18] sm:$0xff] %vm56_vm0, %v254_v60 }
  0xad   :  { %v289_v1 = vld [vmem:[#allocation2 + $0x10] sm:$0xff]  ;;  %275 = vst.msk [vmem:[#allocation2 + $0x38] sm:$0xff] %vm56_vm0, %v258_v62  ;;  %v238_v2 = vpop.f32.mrf.mxu2  ;;  %v248_v3 = vpop.f32.mrf.mxu3 }
  0xae   :  { %305 = vst.msk [vmem:[%s574_s2 + $0x10] sm:$0xff] %vm56_vm0, %v289_v1  ;;  %v293_v4 = vld [vmem:[#allocation2 + $0x30] sm:$0xff]  ;;  %v262_v5 = vadd.f32 %v238_v2, %v84_v63  ;;  %v266_v6 = vadd.f32 %v248_v3, %v88_v0 }
  0xaf   :  { %309 = vst.msk [vmem:[%s574_s2 + $0x30] sm:$0xff] %vm56_vm0, %v293_v4  ;;  %v297_v7 = vld [vmem:[#allocation2 + $0x50] sm:$0xff] }
  0xb0   :  { %313 = vst.msk [vmem:[%s574_s2 + $0x50] sm:$0xff] %vm56_vm0, %v297_v7 }
  0xb1   :  { %279 = vst.msk [vmem:[#allocation2 + $0x58] sm:$0xff] %vm56_vm0, %v262_v5 }
  0xb2   :  { %v301_v8 = vld [vmem:[#allocation2 + $0x70] sm:$0xff]  ;;  %283 = vst.msk [vmem:[#allocation2 + $0x78] sm:$0xff] %vm56_vm0, %v266_v6 }
  0xb3   :  { %317 = vst.msk [vmem:[%s574_s2 + $0x70] sm:$0xff] %vm56_vm0, %v301_v8  ;;  %v290_v9 = vld [vmem:[#allocation2 + $0x18] sm:$0xff] }
  0xb4   :  { %306 = vst.msk [vmem:[%s574_s2 + $0x18] sm:$0xff] %vm56_vm0, %v290_v9  ;;  %v294_v10 = vld [vmem:[#allocation2 + $0x38] sm:$0xff] }
  0xb5   :  { %310 = vst.msk [vmem:[%s574_s2 + $0x38] sm:$0xff] %vm56_vm0, %v294_v10 }
  0xb8   :  { %v298_v11 = vld [vmem:[#allocation2 + $0x58] sm:$0xff] }
  0xb9   :  { %314 = vst.msk [vmem:[%s574_s2 + $0x58] sm:$0xff] %vm56_vm0, %v298_v11  ;;  %v302_v12 = vld [vmem:[#allocation2 + $0x78] sm:$0xff] }
  0xba   :  { %318 = vst.msk [vmem:[%s574_s2 + $0x78] sm:$0xff] %vm56_vm0, %v302_v12 }

// kernel: espnet_encoder.44
= control target key start
LH: loop header
LB: loop body
LE: loop exit
PB: predicated region body
PF: predicated region fallthrough
CT: control target
= control target key end

     0   :  { %vm52_vm0 = vcmask 195584   ;;  %s145_s0 = inlined_call_operand.vmem [shape: f32[9,16,24], index: 0, kind: input, shape index: {}]   ;;  %s146_s1 = inlined_call_operand.vmem [shape: f32[16,24], index: 1, kind: output, shape index: {}]  }
   0x1   :  { %v8_v0 = vld [vmem:[%s145_s0] sm:$0xff]  ;;  %v59_v1 = vld [vmem:[%s145_s0 + $0x10] sm:$0xff]  ;;  %v9_v6 = vld [vmem:[%s145_s0 + $0x8] sm:$0xff] }
   0x2   :  { %v61_v2 = vld [vmem:[%s145_s0 + $0x20] sm:$0xff]  ;;  %v13_v3 = vadd.f32 %v59_v1, %v8_v0  ;;  %v63_v4 = vld [vmem:[%s145_s0 + $0x30] sm:$0xff]  ;;  %v60_v7 = vld [vmem:[%s145_s0 + $0x18] sm:$0xff] }
   0x3   :  { %v62_v8 = vld [vmem:[%s145_s0 + $0x28] sm:$0xff]  ;;  %v65_v9 = vld [vmem:[%s145_s0 + $0x40] sm:$0xff]  ;;  %v14_v10 = vadd.f32 %v60_v7, %v9_v6  ;;  %v64_v12 = vld [vmem:[%s145_s0 + $0x38] sm:$0xff] }
   0x4   :  { %v18_v5 = vadd.f32 %v61_v2, %v13_v3  ;;  %v67_v13 = vld [vmem:[%s145_s0 + $0x50] sm:$0xff]  ;;  %v66_v16 = vld [vmem:[%s145_s0 + $0x48] sm:$0xff]  ;;  %v69_v17 = vld [vmem:[%s145_s0 + $0x60] sm:$0xff] }
   0x5   :  { %v19_v14 = vadd.f32 %v62_v8, %v14_v10  ;;  %v68_v20 = vld [vmem:[%s145_s0 + $0x58] sm:$0xff]  ;;  %v71_v21 = vld [vmem:[%s145_s0 + $0x70] sm:$0xff]  ;;  %v70_v24 = vld [vmem:[%s145_s0 + $0x68] sm:$0xff] }
   0x6   :  { %v23_v11 = vadd.f32 %v63_v4, %v18_v5  ;;  %v73_v25 = vld [vmem:[%s145_s0 + $0x80] sm:$0xff]  ;;  %v72_v28 = vld [vmem:[%s145_s0 + $0x78] sm:$0xff]  ;;  %v74_v31 = vld [vmem:[%s145_s0 + $0x88] sm:$0xff] }
   0x7   :  { %v24_v18 = vadd.f32 %v64_v12, %v19_v14 }
   0x8   :  { %v28_v15 = vadd.f32 %v65_v9, %v23_v11 }
   0x9   :  { %v29_v22 = vadd.f32 %v66_v16, %v24_v18 }
   0xa   :  { %v33_v19 = vadd.f32 %v67_v13, %v28_v15 }
   0xb   :  { %v34_v26 = vadd.f32 %v68_v20, %v29_v22 }
   0xc   :  { %v38_v23 = vadd.f32 %v69_v17, %v33_v19 }
   0xd   :  { %v39_v29 = vadd.f32 %v70_v24, %v34_v26 }
   0xe   :  { %v43_v27 = vadd.f32 %v71_v21, %v38_v23 }
   0xf   :  { %v44_v32 = vadd.f32 %v72_v28, %v39_v29 }
  0x10   :  { %v48_v30 = vadd.f32 %v73_v25, %v43_v27 }
  0x11   :  { %v49_v34 = vadd.f32 %v74_v31, %v44_v32 }
  0x12   :  { %v50_v33 = vmul.f32 0.11111111, %v48_v30 }
  0x13   :  { %v51_v35 = vmul.f32 0.11111111, %v49_v34 }
  0x14   :  { %53 = vst.msk [vmem:[%s146_s1] sm:$0xff] %vm52_vm0, %v50_v33 }
  0x15   :  { %54 = vst.msk [vmem:[%s146_s1 + $0x8] sm:$0xff] %vm52_vm0, %v51_v35 }

// kernel: espnet_encoder.59
= control target key start
LH: loop header
LB: loop body
LE: loop exit
PB: predicated region body
PF: predicated region fallthrough
CT: control target
= control target key end

     0   :  { %vm13_vm0 = vcmask 23552   ;;  %v227_v0 = vmov 0.0   ;;  %vm110_vm1 = vcmask 1040384   ;;  %s410_s1 = inlined_call_operand.vmem [shape: f32[8,131], index: 1, kind: output, shape index: {}]   ;;  %s411_s0 = inlined_call_operand.vmem [shape: f32[128,131], index: 0, kind: input, shape index: {}]  }
   0x1   :  { %12 = vst [vmem:[%s410_s1] sm:$0xff] %v227_v0  ;;  %v15_v1 = vld [vmem:[%s411_s0] sm:$0xff]  ;;  %v16_v2 = vld [vmem:[%s411_s0 + $0x8] sm:$0xff]  ;;  %v17_v3 = vld [vmem:[%s411_s0 + $0x10] sm:$0xff] }
   0x2   :  { %14 = vst.msk [vmem:[%s410_s1 + $0x8] sm:$0xff] %vm13_vm0, %v227_v0  ;;  %v18_v4 = vld [vmem:[%s411_s0 + $0x18] sm:$0xff]  ;;  %v20_v5 = vld [vmem:[%s411_s0 + $0x28] sm:$0xff]  ;;  %v48_v6 = vadd.f32 %v17_v3, %v15_v1  ;;  %v70_v7 = vsel %vm13_vm0, %v16_v2, 0.0  ;;  %v19_v8 = vld [vmem:[%s411_s0 + $0x20] sm:$0xff]  ;;  %v122_v39 = vmul.f32 %v15_v1, %v15_v1  ;;  %v124_v40 = vmul.f32 %v17_v3, %v17_v3 }
   0x3   :  { %v71_v9 = vsel %vm13_vm0, %v18_v4, 0.0  ;;  %v73_v10 = vsel %vm13_vm0, %v20_v5, 0.0  ;;  %v22_v11 = vld [vmem:[%s411_s0 + $0x38] sm:$0xff]  ;;  %v21_v14 = vld [vmem:[%s411_s0 + $0x30] sm:$0xff]  ;;  %v24_v16 = vld [vmem:[%s411_s0 + $0x48] sm:$0xff]  ;;  %v123_v43 = vmul.f32 %v16_v2, %v16_v2  ;;  %v125_v44 = vmul.f32 %v18_v4, %v18_v4 }
   0x4   :  { %v49_v12 = vadd.f32 %v48_v6, %v19_v8  ;;  %v72_v13 = vadd.f32 %v71_v9, %v70_v7  ;;  %v75_v15 = vsel %vm13_vm0, %v22_v11, 0.0  ;;  %v23_v19 = vld [vmem:[%s411_s0 + $0x40] sm:$0xff]  ;;  %v77_v20 = vsel %vm13_vm0, %v24_v16, 0.0  ;;  %v26_v21 = vld [vmem:[%s411_s0 + $0x58] sm:$0xff]  ;;  %v25_v24 = vld [vmem:[%s411_s0 + $0x50] sm:$0xff] }
   0x5   :  { %v79_v25 = vsel %vm13_vm0, %v26_v21, 0.0  ;;  %v28_v26 = vld [vmem:[%s411_s0 + $0x68] sm:$0xff]  ;;  %v27_v29 = vld [vmem:[%s411_s0 + $0x60] sm:$0xff]  ;;  %v30_v31 = vld [vmem:[%s411_s0 + $0x78] sm:$0xff]  ;;  %v127_v45 = vmul.f32 %v20_v5, %v20_v5  ;;  %v126_v49 = vmul.f32 %v19_v8, %v19_v8  ;;  %v128_v52 = vmul.f32 %v21_v14, %v21_v14 }
   0x6   :  { %v50_v17 = vadd.f32 %v49_v12, %v21_v14  ;;  %v74_v18 = vadd.f32 %v73_v10, %v72_v13  ;;  %v81_v30 = vsel %vm13_vm0, %v28_v26, 0.0  ;;  %v29_v34 = vld [vmem:[%s411_s0 + $0x70] sm:$0xff]  ;;  %v83_v35 = vsel %vm13_vm0, %v30_v31, 0.0  ;;  %v304_v36 = vld [vmem:[%s411_s0 + $0x88] sm:$0xff]  ;;  %v31_v41 = vld [vmem:[%s411_s0 + $0x80] sm:$0xff] }
   0x7   :  { %v85_v42 = vsel %vm13_vm0, %v304_v36, 0.0  ;;  %v314_v46 = vld [vmem:[%s411_s0 + $0x98] sm:$0xff]  ;;  %v33_v50 = vld [vmem:[%s411_s0 + $0x90] sm:$0xff]  ;;  %v129_v53 = vmul.f32 %v22_v11, %v22_v11  ;;  %v130_v54 = vmul.f32 %v23_v19, %v23_v19  ;;  %v324_v55 = vld [vmem:[%s411_s0 + $0xa8] sm:$0xff]  ;;  %v131_v58 = vmul.f32 %v24_v16, %v24_v16 }
   0x8   :  { %v51_v22 = vadd.f32 %v50_v17, %v23_v19  ;;  %v76_v23 = vadd.f32 %v75_v15, %v74_v18  ;;  %v87_v51 = vsel %vm13_vm0, %v314_v46, 0.0  ;;  %v154_v59 = vadd.f32 %v124_v40, %v122_v39  ;;  %v35_v60 = vld [vmem:[%s411_s0 + $0xa0] sm:$0xff]  ;;  %v38_v1 = vld [vmem:[%s411_s0 + $0xb8] sm:$0xff]  ;;  %v37_v6 = vld [vmem:[%s411_s0 + $0xb0] sm:$0xff] }
   0x9   :  { %v89_v61 = vsel %vm13_vm0, %v324_v55, 0.0  ;;  %v175_v62 = vsel %vm13_vm0, %v123_v43, 0.0  ;;  %v176_v63 = vsel %vm13_vm0, %v125_v44, 0.0  ;;  %v178_v0 = vsel %vm13_vm0, %v127_v45, 0.0  ;;  %v40_v11 = vld [vmem:[%s411_s0 + $0xc8] sm:$0xff]  ;;  %v39_v16 = vld [vmem:[%s411_s0 + $0xc0] sm:$0xff] }
   0xa   :  { %v52_v27 = vadd.f32 %v51_v22, %v25_v24  ;;  %v78_v28 = vadd.f32 %v77_v20, %v76_v23  ;;  %v155_v4 = vadd.f32 %v154_v59, %v126_v49  ;;  %v177_v5 = vadd.f32 %v176_v63, %v175_v62  ;;  %v43_v39 = vld [vmem:[%s411_s0 + $0xe0] sm:$0xff]  ;;  %v46_v43 = vld [vmem:[%s411_s0 + $0xf8] sm:$0xff]  ;;  %v45_v49 = vld [vmem:[%s411_s0 + $0xf0] sm:$0xff] }
   0xb   :  { %v91_v7 = vsel %vm13_vm0, %v38_v1, 0.0  ;;  %v132_v8 = vmul.f32 %v25_v24, %v25_v24  ;;  %v133_v9 = vmul.f32 %v26_v21, %v26_v21  ;;  %v180_v10 = vsel %vm13_vm0, %v129_v53, 0.0  ;;  %v42_v21 = vld [vmem:[%s411_s0 + $0xd8] sm:$0xff] }
   0xc   :  { %v53_v32 = vadd.f32 %v52_v27, %v27_v29  ;;  %v80_v33 = vadd.f32 %v79_v25, %v78_v28  ;;  %v156_v14 = vadd.f32 %v155_v4, %v128_v52  ;;  %v179_v15 = vadd.f32 %v178_v0, %v177_v5  ;;  %v41_v27 = vld [vmem:[%s411_s0 + $0xd0] sm:$0xff] }
   0xd   :  { %v93_v17 = vsel %vm13_vm0, %v40_v11, 0.0  ;;  %v134_v18 = vmul.f32 %v27_v29, %v27_v29  ;;  %v135_v19 = vmul.f32 %v28_v26, %v28_v26  ;;  %v182_v20 = vsel %vm13_vm0, %v131_v58, 0.0  ;;  %v44_v29 = vld [vmem:[%s411_s0 + $0xe8] sm:$0xff] }
   0xe   :  { %v54_v37 = vadd.f32 %v53_v32, %v29_v34  ;;  %v82_v38 = vadd.f32 %v81_v30, %v80_v33  ;;  %v157_v24 = vadd.f32 %v156_v14, %v130_v54  ;;  %v181_v25 = vadd.f32 %v180_v10, %v179_v15 }
   0xf   :  { %v95_v28 = vsel %vm13_vm0, %v42_v21, 0.0  ;;  %v136_v30 = vmul.f32 %v29_v34, %v29_v34  ;;  %v137_v32 = vmul.f32 %v30_v31, %v30_v31  ;;  %v184_v26 = vsel %vm13_vm0, %v133_v9, 0.0 }
  0x10   :  { %v55_v47 = vadd.f32 %v54_v37, %v31_v41  ;;  %v84_v48 = vadd.f32 %v83_v35, %v82_v38  ;;  %v158_v37 = vadd.f32 %v157_v24, %v132_v8  ;;  %v183_v38 = vadd.f32 %v182_v20, %v181_v25 }
  0x11   :  { %v97_v40 = vsel %vm13_vm0, %v44_v29, 0.0  ;;  %v139_v31 = vmul.f32 %v304_v36, %v304_v36  ;;  %v186_v34 = vsel %vm13_vm0, %v135_v19, 0.0  ;;  %v141_v36 = vmul.f32 %v314_v46, %v314_v46 }
  0x12   :  { %v56_v56 = vadd.f32 %v55_v47, %v33_v50  ;;  %v86_v57 = vadd.f32 %v85_v42, %v84_v48  ;;  %v138_v42 = vmul.f32 %v31_v41, %v31_v41  ;;  %v159_v47 = vadd.f32 %v158_v37, %v134_v18 }
  0x13   :  { %v185_v48 = vadd.f32 %v184_v26, %v183_v38  ;;  %v140_v41 = vmul.f32 %v33_v50, %v33_v50  ;;  %v188_v52 = vsel %vm13_vm0, %v137_v32, 0.0  ;;  %v142_v58 = vmul.f32 %v35_v60, %v35_v60 }
  0x14   :  { %v57_v2 = vadd.f32 %v56_v56, %v35_v60  ;;  %v88_v3 = vadd.f32 %v87_v51, %v86_v57  ;;  %v99_v51 = vsel %vm13_vm0, %v46_v43, 0.0  ;;  %v160_v56 = vadd.f32 %v159_v47, %v136_v30 }
  0x15   :  { %v187_v57 = vadd.f32 %v186_v34, %v185_v48  ;;  %v143_v59 = vmul.f32 %v324_v55, %v324_v55  ;;  %v144_v50 = vmul.f32 %v37_v6, %v37_v6  ;;  %v192_v46 = vsel %vm13_vm0, %v141_v36, 0.0 }
  0x16   :  { %v58_v12 = vadd.f32 %v57_v2, %v37_v6  ;;  %v90_v13 = vadd.f32 %v89_v61, %v88_v3  ;;  %v190_v61 = vsel %vm13_vm0, %v139_v31, 0.0  ;;  %v161_v0 = vadd.f32 %v160_v56, %v138_v42  ;;  %v47_v31 = vld [vmem:[%s410_s1] ss:$8 sm:$0x3] }
  0x17   :  { %v189_v2 = vadd.f32 %v188_v52, %v187_v57  ;;  %v145_v3 = vmul.f32 %v38_v1, %v38_v1  ;;  %v146_v9 = vmul.f32 %v39_v16, %v39_v16  ;;  %v147_v10 = vmul.f32 %v40_v11, %v40_v11 }
  0x18   :  { %v59_v22 = vadd.f32 %v58_v12, %v39_v16  ;;  %v92_v23 = vadd.f32 %v91_v7, %v90_v13  ;;  %v162_v7 = vadd.f32 %v161_v0, %v140_v41  ;;  %v194_v60 = vsel %vm13_vm0, %v143_v59, 0.0 }
  0x19   :  { %v191_v8 = vadd.f32 %v190_v61, %v189_v2  ;;  %v148_v15 = vmul.f32 %v41_v27, %v41_v27  ;;  %v196_v18 = vsel %vm13_vm0, %v145_v3, 0.0  ;;  %v198_v24 = vsel %vm13_vm0, %v147_v10, 0.0 }
  0x1a   :  { %v60_v33 = vadd.f32 %v59_v22, %v41_v27  ;;  %v94_v35 = vadd.f32 %v93_v17, %v92_v23  ;;  %v163_v13 = vadd.f32 %v162_v7, %v142_v58  ;;  %v149_v17 = vmul.f32 %v42_v21, %v42_v21 }
  0x1b   :  { %v193_v14 = vadd.f32 %v192_v46, %v191_v8  ;;  %v150_v22 = vmul.f32 %v43_v39, %v43_v39  ;;  %v151_v23 = vmul.f32 %v44_v29, %v44_v29  ;;  %v153_v30 = vmul.f32 %v46_v43, %v46_v43 }
  0x1c   :  { %v61_v44 = vadd.f32 %v60_v33, %v43_v39  ;;  %v96_v45 = vadd.f32 %v95_v28, %v94_v35  ;;  %v164_v19 = vadd.f32 %v163_v13, %v144_v50  ;;  %v200_v32 = vsel %vm13_vm0, %v149_v17, 0.0 }
  0x1d   :  { %v195_v20 = vadd.f32 %v194_v60, %v193_v14  ;;  %v152_v27 = vmul.f32 %v45_v49, %v45_v49  ;;  %v114_v35 = vlaneseq  ;;  %v202_v37 = vsel %vm13_vm0, %v151_v23, 0.0 }
  0x1e   :  { %v62_v53 = vadd.f32 %v61_v44, %v45_v49  ;;  %v98_v54 = vadd.f32 %v97_v40, %v96_v45  ;;  %v165_v25 = vadd.f32 %v164_v19, %v146_v9  ;;  %v204_v42 = vsel %vm13_vm0, %v153_v30, 0.0 }
  0x1f   :  { %v197_v28 = vadd.f32 %v196_v18, %v195_v20  ;;  %vm392_vm2 = vcmp.lt.s32.totalorder %v114_v35, 131 }
  0x20   :  { %v63_v62 = vrot.slane %v62_v53, 4  ;;  %v100_v63 = vadd.f32 %v99_v51, %v98_v54  ;;  %v166_v21 = vadd.f32 %v165_v25, %v148_v15 }
  0x21   :  { %v199_v33 = vadd.f32 %v198_v24, %v197_v28 }
  0x22   :  { %v64_v4 = vadd.f32 %v63_v62, %v62_v53  ;;  %v101_v5 = vrot.slane %v100_v63, 4  ;;  %v167_v39 = vadd.f32 %v166_v21, %v150_v22 }
  0x23   :  { %v201_v29 = vadd.f32 %v200_v32, %v199_v33 }
  0x24   :  { %v65_v12 = vrot.slane %v64_v4, 2  ;;  %v102_v55 = vadd.f32 %v101_v5, %v100_v63  ;;  %v168_v43 = vadd.f32 %v167_v39, %v152_v27  ;;  %v224_v63 = vld [vmem:[%s410_s1 + $0x1] ss:$8 sm:$0x3] }
  0x25   :  { %v203_v44 = vadd.f32 %v202_v37, %v201_v29 }
  0x26   :  { %v66_v6 = vadd.f32 %v65_v12, %v64_v4  ;;  %v103_v1 = vrot.slane %v102_v55, 2  ;;  %v169_v48 = vrot.slane %v168_v43, 4 }
  0x27   :  { %v205_v49 = vadd.f32 %v204_v42, %v203_v44 }
  0x28   :  { %v67_v16 = vrot.slane %v66_v6, 1  ;;  %v104_v11 = vadd.f32 %v103_v1, %v102_v55  ;;  %v170_v41 = vadd.f32 %v169_v48, %v168_v43 }
  0x29   :  { %v206_v36 = vrot.slane %v205_v49, 4 }
  0x2a   :  { %v105_v26 = vrot.slane %v104_v11, 1  ;;  %v68_v38 = vadd.f32 %v67_v16, %v66_v6  ;;  %v171_v52 = vrot.slane %v170_v41, 2 }
  0x2b   :  { %v207_v53 = vadd.f32 %v206_v36, %v205_v49 }
  0x2c   :  { %v106_v40 = vadd.f32 %v105_v26, %v104_v11  ;;  %v172_v54 = vadd.f32 %v171_v52, %v170_v41 }
  0x2d   :  { %v208_v56 = vrot.slane %v207_v53, 2 }
  0x2e   :  { %v109_v34 = vrot.slane %v106_v40, 7  ;;  %v173_v57 = vrot.slane %v172_v54, 1 }
  0x2f   :  { %v209_v58 = vadd.f32 %v208_v56, %v207_v53 }
  0x30   :  { %v111_v45 = vsel %vm110_vm1, %v68_v38, %v109_v34  ;;  %v174_v61 = vadd.f32 %v173_v57, %v172_v54 }
  0x31   :  { %v113_v51 = vadd.f32 %v111_v45, %v47_v31  ;;  %v210_v59 = vrot.slane %v209_v58, 1 }
  0x33   :  { %118 = vst.msk [vmem:[%s410_s1] ss:$8 sm:$0x3] %vm392_vm2, %v113_v51  ;;  %v211_v62 = vadd.f32 %v210_v59, %v209_v58 }
  0x35   :  { %v214_v0 = vrot.slane %v211_v62, 7 }
  0x37   :  { %v215_v2 = vsel %vm110_vm1, %v174_v61, %v214_v0 }
  0x38   :  { %v217_v50 = vadd.f32 %v224_v63, %v215_v2 }
  0x3a   :  { %225 = vst.msk [vmem:[%s410_s1 + $0x1] ss:$8 sm:$0x3] %vm392_vm2, %v217_v50 }

// kernel: espnet_encoder.60
= control target key start
LH: loop header
LB: loop body
LE: loop exit
PB: predicated region body
PF: predicated region fallthrough
CT: control target
= control target key end

     0   :  { %vm228_vm0 = vcmask 23552   ;;  %s615_s0 = inlined_call_operand.vmem [shape: f32[128,131], index: 0, kind: input, shape index: {}]   ;;  %s616_s1 = inlined_call_operand.vmem [shape: f32[1,131], index: 1, kind: input, shape index: {}]   ;;  %s617_s2 = inlined_call_operand.vmem [shape: f32[1,131], index: 2, kind: input, shape index: {}]   ;;  %s618_s3 = inlined_call_operand.vmem [shape: f32[1,131], index: 3, kind: input, shape index: {}]   ;;  %s619_s4 = inlined_call_operand.vmem [shape: f32[128,131], index: 4, kind: output, shape index: {}]  }
   0x1   :  { %v17_v0 = vld [vmem:[%s615_s0] sm:$0xff]  ;;  %v18_v6 = vld [vmem:[%s615_s0 + $0x8] sm:$0xff]  ;;  %v19_v11 = vld [vmem:[%s615_s0 + $0x10] sm:$0xff] }
   0x2   :  { %v49_v1 = vld [vmem:[%s616_s1] sm:$0x3]  ;;  %v20_v12 = vld [vmem:[%s615_s0 + $0x18] sm:$0xff]  ;;  %v22_v18 = vld [vmem:[%s615_s0 + $0x28] sm:$0xff] }
   0x3   :  { %v87_v2 = vld [vmem:[%s617_s2] sm:$0x3]  ;;  %v298_v3 = vperm.slane %v49_v1, 0  ;;  %v308_v7 = vperm.slane %v49_v1, 1  ;;  %v23_v19 = vld [vmem:[%s615_s0 + $0x30] sm:$0xff]  ;;  %v24_v20 = vld [vmem:[%s615_s0 + $0x38] sm:$0xff] }
   0x4   :  { %v300_v4 = vperm.slane %v87_v2, 0  ;;  %v157_v5 = vld [vmem:[%s618_s3] sm:$0x3]  ;;  %v312_v9 = vperm.slane %v87_v2, 1  ;;  %v26_v41 = vld [vmem:[%s615_s0 + $0x48] sm:$0xff]  ;;  %v27_v45 = vld [vmem:[%s615_s0 + $0x50] sm:$0xff] }
   0x5   :  { %v310_v8 = vperm.slane %v157_v5, 0  ;;  %v314_v10 = vperm.slane %v157_v5, 1  ;;  %v21_v13 = vld [vmem:[%s615_s0 + $0x20] sm:$0xff]  ;;  %v55_v14 = vmul.f32 %v298_v3, %v17_v0  ;;  %v56_v15 = vmul.f32 %v308_v7, %v18_v6  ;;  %v28_v46 = vld [vmem:[%s615_s0 + $0x58] sm:$0xff]  ;;  %v30_v50 = vld [vmem:[%s615_s0 + $0x68] sm:$0xff] }
   0x6   :  { %v57_v16 = vmul.f32 %v298_v3, %v19_v11  ;;  %v58_v17 = vmul.f32 %v308_v7, %v20_v12  ;;  %v59_v21 = vmul.f32 %v298_v3, %v21_v13  ;;  %v60_v22 = vmul.f32 %v308_v7, %v22_v18  ;;  %v25_v40 = vld [vmem:[%s615_s0 + $0x40] sm:$0xff]  ;;  %v31_v55 = vld [vmem:[%s615_s0 + $0x70] sm:$0xff] }
   0x7   :  { %v61_v23 = vmul.f32 %v298_v3, %v23_v19  ;;  %v62_v24 = vmul.f32 %v308_v7, %v24_v20  ;;  %v93_v25 = vadd.f32 %v300_v4, %v55_v14  ;;  %v94_v26 = vadd.f32 %v312_v9, %v56_v15  ;;  %v29_v47 = vld [vmem:[%s615_s0 + $0x60] sm:$0xff]  ;;  %v32_v14 = vld [vmem:[%s615_s0 + $0x78] sm:$0xff] }
   0x8   :  { %v95_v27 = vadd.f32 %v300_v4, %v57_v16  ;;  %v96_v28 = vadd.f32 %v312_v9, %v58_v17  ;;  %v97_v29 = vadd.f32 %v300_v4, %v59_v21  ;;  %v98_v30 = vadd.f32 %v312_v9, %v60_v22  ;;  %v33_v15 = vld [vmem:[%s615_s0 + $0x80] sm:$0xff]  ;;  %v34_v16 = vld [vmem:[%s615_s0 + $0x88] sm:$0xff] }
   0x9   :  { %v99_v31 = vadd.f32 %v300_v4, %v61_v23  ;;  %v100_v32 = vadd.f32 %v312_v9, %v62_v24  ;;  %vm125_vm1 = vcmp.ge.f32.partialorder %v93_v25, 0.0  ;;  %v163_v33 = vmul.f32 %v310_v8, %v93_v25  ;;  %v35_v24 = vld [vmem:[%s615_s0 + $0x90] sm:$0xff] }
   0xa   :  { %vm126_vm2 = vcmp.ge.f32.partialorder %v94_v26, 0.0  ;;  %v164_v34 = vmul.f32 %v314_v10, %v94_v26  ;;  %vm127_vm3 = vcmp.ge.f32.partialorder %v95_v27, 0.0  ;;  %v165_v35 = vmul.f32 %v310_v8, %v95_v27 }
   0xb   :  { %vm128_vm4 = vcmp.ge.f32.partialorder %v96_v28, 0.0  ;;  %v166_v36 = vmul.f32 %v314_v10, %v96_v28  ;;  %v195_v37 = vsel %vm125_vm1, %v93_v25, %v163_v33  ;;  %vm129_vm5 = vcmp.ge.f32.partialorder %v97_v29, 0.0 }
   0xc   :  { %v196_v38 = vsel %vm126_vm2, %v94_v26, %v164_v34  ;;  %v167_v39 = vmul.f32 %v310_v8, %v97_v29  ;;  %227 = vst [vmem:[%s619_s4] sm:$0xff] %v195_v37  ;;  %v197_v42 = vsel %vm127_vm3, %v95_v27, %v165_v35  ;;  %vm130_vm6 = vcmp.ge.f32.partialorder %v98_v30, 0.0 }
   0xd   :  { %v198_v43 = vsel %vm128_vm4, %v96_v28, %v166_v36  ;;  %v168_v44 = vmul.f32 %v314_v10, %v98_v30  ;;  %229 = vst.msk [vmem:[%s619_s4 + $0x8] sm:$0xff] %vm228_vm0, %v196_v38  ;;  %vm131_vm7 = vcmp.ge.f32.partialorder %v99_v31, 0.0  ;;  %v169_v49 = vmul.f32 %v310_v8, %v99_v31 }
   0xe   :  { %v199_v48 = vsel %vm129_vm5, %v97_v29, %v167_v39  ;;  %vm132_vm8 = vcmp.ge.f32.partialorder %v100_v32, 0.0  ;;  %230 = vst [vmem:[%s619_s4 + $0x10] sm:$0xff] %v197_v42  ;;  %v170_v52 = vmul.f32 %v314_v10, %v100_v32  ;;  %v63_v53 = vmul.f32 %v298_v3, %v25_v40  ;;  %v36_v29 = vld [vmem:[%s615_s0 + $0x98] sm:$0xff] }
   0xf   :  { %v200_v51 = vsel %vm130_vm6, %v98_v30, %v168_v44  ;;  %v64_v54 = vmul.f32 %v308_v7, %v26_v41  ;;  %231 = vst.msk [vmem:[%s619_s4 + $0x18] sm:$0xff] %vm228_vm0, %v198_v43  ;;  %v201_v56 = vsel %vm131_vm7, %v99_v31, %v169_v49  ;;  %v65_v57 = vmul.f32 %v298_v3, %v27_v45  ;;  %v37_v30 = vld [vmem:[%s615_s0 + $0xa0] sm:$0xff]  ;;  %v38_v41 = vld [vmem:[%s615_s0 + $0xa8] sm:$0xff] }
  0x10   :  { %v66_v58 = vmul.f32 %v308_v7, %v28_v46  ;;  %v67_v59 = vmul.f32 %v298_v3, %v29_v47  ;;  %232 = vst [vmem:[%s619_s4 + $0x20] sm:$0xff] %v199_v48  ;;  %v202_v60 = vsel %vm132_vm8, %v100_v32, %v170_v52  ;;  %v101_v61 = vadd.f32 %v300_v4, %v63_v53  ;;  %v40_v52 = vld [vmem:[%s615_s0 + $0xb8] sm:$0xff]  ;;  %v41_v53 = vld [vmem:[%s615_s0 + $0xc0] sm:$0xff] }
  0x11   :  { %v102_v62 = vadd.f32 %v312_v9, %v64_v54  ;;  %v68_v63 = vmul.f32 %v308_v7, %v30_v50  ;;  %233 = vst.msk [vmem:[%s619_s4 + $0x28] sm:$0xff] %vm228_vm0, %v200_v51  ;;  %v103_v0 = vadd.f32 %v300_v4, %v65_v57  ;;  %v69_v5 = vmul.f32 %v298_v3, %v31_v55  ;;  %v39_v51 = vld [vmem:[%s615_s0 + $0xb0] sm:$0xff] }
  0x12   :  { %v104_v1 = vadd.f32 %v312_v9, %v66_v58  ;;  %v105_v2 = vadd.f32 %v300_v4, %v67_v59  ;;  %234 = vst [vmem:[%s619_s4 + $0x30] sm:$0xff] %v201_v56  ;;  %vm133_vm9 = vcmp.ge.f32.partialorder %v101_v61, 0.0  ;;  %v171_v6 = vmul.f32 %v310_v8, %v101_v61  ;;  %v42_v59 = vld [vmem:[%s615_s0 + $0xc8] sm:$0xff] }
  0x13   :  { %vm134_vm10 = vcmp.ge.f32.partialorder %v102_v62, 0.0  ;;  %v172_v11 = vmul.f32 %v314_v10, %v102_v62  ;;  %235 = vst.msk [vmem:[%s619_s4 + $0x38] sm:$0xff] %vm228_vm0, %v202_v60  ;;  %vm135_vm11 = vcmp.ge.f32.partialorder %v103_v0, 0.0  ;;  %v173_v12 = vmul.f32 %v310_v8, %v103_v0 }
  0x14   :  { %vm136_vm12 = vcmp.ge.f32.partialorder %v104_v1, 0.0  ;;  %v174_v13 = vmul.f32 %v314_v10, %v104_v1  ;;  %v203_v17 = vsel %vm133_vm9, %v101_v61, %v171_v6  ;;  %vm137_vm13 = vcmp.ge.f32.partialorder %v105_v2, 0.0 }
  0x15   :  { %v204_v18 = vsel %vm134_vm10, %v102_v62, %v172_v11  ;;  %v175_v19 = vmul.f32 %v310_v8, %v105_v2  ;;  %236 = vst [vmem:[%s619_s4 + $0x40] sm:$0xff] %v203_v17  ;;  %v205_v20 = vsel %vm135_vm11, %v103_v0, %v173_v12  ;;  %v106_v22 = vadd.f32 %v312_v9, %v68_v63  ;;  %v43_v0 = vld [vmem:[%s615_s0 + $0xd0] sm:$0xff] }
  0x16   :  { %v206_v21 = vsel %vm136_vm12, %v104_v1, %v174_v13  ;;  %v107_v23 = vadd.f32 %v300_v4, %v69_v5  ;;  %237 = vst.msk [vmem:[%s619_s4 + $0x48] sm:$0xff] %vm228_vm0, %v204_v18  ;;  %v70_v26 = vmul.f32 %v308_v7, %v32_v14  ;;  %v71_v27 = vmul.f32 %v298_v3, %v33_v15  ;;  %v44_v1 = vld [vmem:[%s615_s0 + $0xd8] sm:$0xff] }
  0x17   :  { %v207_v25 = vsel %vm137_vm13, %v105_v2, %v175_v19  ;;  %v72_v28 = vmul.f32 %v308_v7, %v34_v16  ;;  %238 = vst [vmem:[%s619_s4 + $0x50] sm:$0xff] %v205_v20  ;;  %vm138_vm14 = vcmp.ge.f32.partialorder %v106_v22, 0.0  ;;  %v176_v31 = vmul.f32 %v314_v10, %v106_v22  ;;  %v45_v2 = vld [vmem:[%s615_s0 + $0xe0] sm:$0xff] }
  0x18   :  { %vm139_vm15 = vcmp.ge.f32.partialorder %v107_v23, 0.0  ;;  %v177_v32 = vmul.f32 %v310_v8, %v107_v23  ;;  %239 = vst.msk [vmem:[%s619_s4 + $0x58] sm:$0xff] %vm228_vm0, %v206_v21  ;;  %v108_v33 = vadd.f32 %v312_v9, %v70_v26  ;;  %v109_v34 = vadd.f32 %v300_v4, %v71_v27 }
  0x19   :  { %v110_v35 = vadd.f32 %v312_v9, %v72_v28  ;;  %v73_v36 = vmul.f32 %v298_v3, %v35_v24  ;;  %240 = vst [vmem:[%s619_s4 + $0x60] sm:$0xff] %v207_v25  ;;  %v208_v37 = vsel %vm138_vm14, %v106_v22, %v176_v31  ;;  %v74_v39 = vmul.f32 %v308_v7, %v36_v29  ;;  %v46_v29 = vld [vmem:[%s615_s0 + $0xe8] sm:$0xff] }
  0x1a   :  { %v209_v38 = vsel %vm139_vm15, %v107_v23, %v177_v32  ;;  %v75_v40 = vmul.f32 %v298_v3, %v37_v30  ;;  %241 = vst.msk [vmem:[%s619_s4 + $0x68] sm:$0xff] %vm228_vm0, %v208_v37  ;;  %vm140_vm1 = vcmp.ge.f32.partialorder %v108_v33, 0.0  ;;  %v178_v42 = vmul.f32 %v314_v10, %v108_v33  ;;  %v47_v30 = vld [vmem:[%s615_s0 + $0xf0] sm:$0xff] }
  0x1b   :  { %vm141_vm2 = vcmp.ge.f32.partialorder %v109_v34, 0.0  ;;  %v179_v43 = vmul.f32 %v310_v8, %v109_v34  ;;  %242 = vst [vmem:[%s619_s4 + $0x70] sm:$0xff] %v209_v38  ;;  %vm142_vm3 = vcmp.ge.f32.partialorder %v110_v35, 0.0  ;;  %v180_v44 = vmul.f32 %v314_v10, %v110_v35 }
  0x1c   :  { %v111_v45 = vadd.f32 %v300_v4, %v73_v36  ;;  %v112_v46 = vadd.f32 %v312_v9, %v74_v39  ;;  %v210_v47 = vsel %vm140_vm1, %v108_v33, %v178_v42  ;;  %v113_v49 = vadd.f32 %v300_v4, %v75_v40  ;;  %v48_v33 = vld [vmem:[%s615_s0 + $0xf8] sm:$0xff] }
  0x1d   :  { %v211_v48 = vsel %vm141_vm2, %v109_v34, %v179_v43  ;;  %v76_v50 = vmul.f32 %v308_v7, %v38_v41  ;;  %243 = vst.msk [vmem:[%s619_s4 + $0x78] sm:$0xff] %vm228_vm0, %v210_v47  ;;  %v212_v54 = vsel %vm142_vm3, %v110_v35, %v180_v44  ;;  %v77_v61 = vmul.f32 %v298_v3, %v39_v51 }
  0x1e   :  { %vm143_vm4 = vcmp.ge.f32.partialorder %v111_v45, 0.0  ;;  %v181_v55 = vmul.f32 %v310_v8, %v111_v45  ;;  %vm144_vm5 = vcmp.ge.f32.partialorder %v112_v46, 0.0  ;;  %244 = vst [vmem:[%s619_s4 + $0x80] sm:$0xff] %v211_v48  ;;  %v182_v56 = vmul.f32 %v314_v10, %v112_v46 }
  0x1f   :  { %vm145_vm6 = vcmp.ge.f32.partialorder %v113_v49, 0.0  ;;  %v183_v57 = vmul.f32 %v310_v8, %v113_v49  ;;  %v114_v58 = vadd.f32 %v312_v9, %v76_v50  ;;  %245 = vst.msk [vmem:[%s619_s4 + $0x88] sm:$0xff] %vm228_vm0, %v212_v54  ;;  %v78_v62 = vmul.f32 %v308_v7, %v40_v52 }
  0x20   :  { %v213_v60 = vsel %vm143_vm4, %v111_v45, %v181_v55  ;;  %v79_v63 = vmul.f32 %v298_v3, %v41_v53  ;;  %v214_v5 = vsel %vm144_vm5, %v112_v46, %v182_v56  ;;  %v115_v12 = vadd.f32 %v300_v4, %v77_v61 }
  0x21   :  { %246 = vst [vmem:[%s619_s4 + $0x90] sm:$0xff] %v213_v60  ;;  %v215_v6 = vsel %vm145_vm6, %v113_v49, %v183_v57  ;;  %vm146_vm7 = vcmp.ge.f32.partialorder %v114_v58, 0.0  ;;  %v184_v11 = vmul.f32 %v314_v10, %v114_v58  ;;  %v116_v13 = vadd.f32 %v312_v9, %v78_v62 }
  0x22   :  { %247 = vst.msk [vmem:[%s619_s4 + $0x98] sm:$0xff] %vm228_vm0, %v214_v5  ;;  %v117_v14 = vadd.f32 %v300_v4, %v79_v63  ;;  %v80_v15 = vmul.f32 %v308_v7, %v42_v59  ;;  %v81_v17 = vmul.f32 %v298_v3, %v43_v0  ;;  %v82_v18 = vmul.f32 %v308_v7, %v44_v1 }
  0x23   :  { %248 = vst [vmem:[%s619_s4 + $0xa0] sm:$0xff] %v215_v6  ;;  %v216_v16 = vsel %vm146_vm7, %v114_v58, %v184_v11  ;;  %v83_v19 = vmul.f32 %v298_v3, %v45_v2  ;;  %vm147_vm8 = vcmp.ge.f32.partialorder %v115_v12, 0.0  ;;  %v185_v20 = vmul.f32 %v310_v8, %v115_v12 }
  0x24   :  { %249 = vst.msk [vmem:[%s619_s4 + $0xa8] sm:$0xff] %vm228_vm0, %v216_v16  ;;  %vm148_vm9 = vcmp.ge.f32.partialorder %v116_v13, 0.0  ;;  %v186_v21 = vmul.f32 %v314_v10, %v116_v13  ;;  %vm149_vm10 = vcmp.ge.f32.partialorder %v117_v14, 0.0  ;;  %v187_v22 = vmul.f32 %v310_v8, %v117_v14 }
  0x25   :  { %v118_v23 = vadd.f32 %v312_v9, %v80_v15  ;;  %v119_v24 = vadd.f32 %v300_v4, %v81_v17  ;;  %v217_v25 = vsel %vm147_vm8, %v115_v12, %v185_v20  ;;  %v120_v27 = vadd.f32 %v312_v9, %v82_v18 }
  0x26   :  { %v218_v26 = vsel %vm148_vm9, %v116_v13, %v186_v21  ;;  %v121_v28 = vadd.f32 %v300_v4, %v83_v19  ;;  %250 = vst [vmem:[%s619_s4 + $0xb0] sm:$0xff] %v217_v25  ;;  %v219_v31 = vsel %vm149_vm10, %v117_v14, %v187_v22  ;;  %v84_v38 = vmul.f32 %v308_v7, %v46_v29 }
  0x27   :  { %vm150_vm11 = vcmp.ge.f32.partialorder %v118_v23, 0.0  ;;  %v188_v32 = vmul.f32 %v314_v10, %v118_v23  ;;  %vm151_vm12 = vcmp.ge.f32.partialorder %v119_v24, 0.0  ;;  %251 = vst.msk [vmem:[%s619_s4 + $0xb8] sm:$0xff] %vm228_vm0, %v218_v26  ;;  %v189_v34 = vmul.f32 %v310_v8, %v119_v24 }
  0x28   :  { %vm152_vm13 = vcmp.ge.f32.partialorder %v120_v27, 0.0  ;;  %v190_v35 = vmul.f32 %v314_v10, %v120_v27  ;;  %vm153_vm14 = vcmp.ge.f32.partialorder %v121_v28, 0.0  ;;  %252 = vst [vmem:[%s619_s4 + $0xc0] sm:$0xff] %v219_v31  ;;  %v191_v37 = vmul.f32 %v310_v8, %v121_v28 }
  0x29   :  { %v220_v36 = vsel %vm150_vm11, %v118_v23, %v188_v32  ;;  %v85_v39 = vmul.f32 %v298_v3, %v47_v30  ;;  %v221_v40 = vsel %vm151_vm12, %v119_v24, %v189_v34  ;;  %v86_v42 = vmul.f32 %v308_v7, %v48_v33 }
  0x2a   :  { %253 = vst.msk [vmem:[%s619_s4 + $0xc8] sm:$0xff] %vm228_vm0, %v220_v36  ;;  %v222_v41 = vsel %vm152_vm13, %v120_v27, %v190_v35  ;;  %v223_v43 = vsel %vm153_vm14, %v121_v28, %v191_v37  ;;  %v122_v44 = vadd.f32 %v312_v9, %v84_v38 }
  0x2b   :  { %254 = vst [vmem:[%s619_s4 + $0xd0] sm:$0xff] %v221_v40  ;;  %v123_v45 = vadd.f32 %v300_v4, %v85_v39  ;;  %v124_v3 = vadd.f32 %v312_v9, %v86_v42 }
  0x2c   :  { %255 = vst.msk [vmem:[%s619_s4 + $0xd8] sm:$0xff] %vm228_vm0, %v222_v41  ;;  %vm154_vm15 = vcmp.ge.f32.partialorder %v122_v44, 0.0  ;;  %v192_v7 = vmul.f32 %v314_v10, %v122_v44 }
  0x2d   :  { %256 = vst [vmem:[%s619_s4 + $0xe0] sm:$0xff] %v223_v43  ;;  %vm155_vm1 = vcmp.ge.f32.partialorder %v123_v45, 0.0  ;;  %v193_v46 = vmul.f32 %v310_v8, %v123_v45  ;;  %vm156_vm2 = vcmp.ge.f32.partialorder %v124_v3, 0.0  ;;  %v194_v4 = vmul.f32 %v314_v10, %v124_v3 }
  0x2e   :  { %v224_v47 = vsel %vm154_vm15, %v122_v44, %v192_v7 }
  0x2f   :  { %v225_v48 = vsel %vm155_vm1, %v123_v45, %v193_v46  ;;  %257 = vst.msk [vmem:[%s619_s4 + $0xe8] sm:$0xff] %vm228_vm0, %v224_v47  ;;  %v226_v9 = vsel %vm156_vm2, %v124_v3, %v194_v4 }
  0x30   :  { %258 = vst [vmem:[%s619_s4 + $0xf0] sm:$0xff] %v225_v48 }
  0x31   :  { %259 = vst.msk [vmem:[%s619_s4 + $0xf8] sm:$0xff] %vm228_vm0, %v226_v9 }

// kernel: espnet_encoder.61
= control target key start
LH: loop header
LB: loop body
LE: loop exit
PB: predicated region body
PF: predicated region fallthrough
CT: control target
= control target key end

     0   :  { %s672_s9 = smov 0   ;;  %s674_s10 = smov 0   ;;  %s754_s0 = inlined_call_operand.vmem [shape: bf16[9,32,131], index: 0, kind: input, shape index: {}]   ;;  %s755_s1 = inlined_call_operand.vmem [shape: bf16[9,131,25], index: 1, kind: input, shape index: {}]   ;;  %s756_s2 = inlined_call_operand.vmem [shape: f32[1,32,25], index: 2, kind: output, shape index: {}]  }
   0x1   :  { %s676_s11 = smov 0  }
   0x2 LB: > { %s24_s12 = sadd.s32 1, %s649_s10  ;;  %p523_p0 = scmp.ge.s32.totalorder %s653_s11, 1  ;;  %s653_s11 = sphi %s676_s11, %s12_s11   ;;  %s649_s10 = sphi %s674_s10, %s758_s10   ;;  %s645_s9 = sphi %s672_s9, %s757_s9  }
   0x3   : > { %p25_p1 = scmp.ge.s32.totalorder %s24_s12, 9  ;;  %p167_p2 = scmp.lt.s32.totalorder %s653_s11, 10 }
   0x5   : > { %s760_s12 = smov (%p25_p1, %s24_s12), 0  ;;  %p168_p3 = pnand %p523_p0, %p167_p2 }
   0x6   : > { %p210_p4 = scmp.lt.s32.totalorder (!%p168_p3), %s645_s9, 8  ;;  %p527_p5 = scmp.ne.s32.totalorder (!%p168_p3), %s645_s9, 0 }
   0x7   : > { %171 = sbr.rel (%p168_p3) target bundleno = 208 (0xd0), region = 28 }
   0xc   : > { %s211_s13 = scalar_select %p210_p4, %s645_s9, 8 }
   0xd   : > { %245 = sbr.rel (%p527_p5) target bundleno = 23 (0x17), region = 32 }
   0xe   : > { %s583_s14 = sshll.u32 %s211_s13, 5  ;;  %s604_s15 = smul.u32 68, %s211_s13 }
   0xf   : > { %s697_s18 = scalar_lea.vmem %s754_s0, %s583_s14 }
  0x10   : > { %s702_s21 = scalar_lea.vmem %s755_s1, %s604_s15 }
  0x12   : > { %vm246_vm0 = vcmask 203776   ;;  %v655_v0 = vmov 0.0  }
  0x13   : > { %247 = vst.msk [vmem:[#allocation2] sm:$0xff] %vm246_vm0, %v655_v0 }
  0x14   : > { %248 = vst.msk [vmem:[#allocation2 + $0x8] sm:$0xff] %vm246_vm0, %v655_v0 }
  0x15   : > { %249 = vst.msk [vmem:[#allocation2 + $0x10] sm:$0xff] %vm246_vm0, %v655_v0 }
  0x16   : > { %250 = vst.msk [vmem:[#allocation2 + $0x18] sm:$0xff] %vm246_vm0, %v655_v0 }
  0x17 PF: > { %v595_v1 = vld [vmem:[%s702_s21 + $0x38] sm:$0xff]  ;;  %vm352_vm1 = vcmask 1040384   ;;  %vm353_vm2 = vcmask 1041408   ;;  %v275_v2 = vld [vmem:[%s702_s21 + $0x40] sm:$0x3]  ;;  %v656_v3 = vmov 65535  }
  0x18   : > { %v354_v4 = vsel %vm352_vm1, 4294967295, %v656_v3  ;;  %359 = vmatpush.bf16.msra.mxu0 %v595_v1  ;;  %596 = vmatpush.bf16.msra.mxu2 %v595_v1  ;;  %v594_v5 = vld [vmem:[%s702_s21 + $0x30] sm:$0xff]  ;;  %v327_v6 = vunpack.c.l.b16 %v275_v2  ;;  %v584_v9 = vld [vmem:[%s697_s18 + $0x4] sm:$0xf]  ;;  %v532_v10 = vld [vmem:[%s697_s18 + $0x8] sm:$0xf0] }
  0x19   : > { %v355_v7 = vsel %vm353_vm2, %v354_v4, 0  ;;  %v593_v11 = vld [vmem:[%s702_s21 + $0x28] sm:$0xff]  ;;  %v535_v13 = vor.u32 %v584_v9, %v532_v10  ;;  %vm345_vm3 = vcmask 23552   ;;  %v592_v14 = vld [vmem:[%s702_s21 + $0x20] sm:$0xff]  ;;  %v591_v15 = vld [vmem:[%s702_s21 + $0x18] sm:$0xff]  ;;  %vm401_vm4 = vcmask 203776  }
  0x1a   : > { %v336_v8 = vpack.c.b16 %v327_v6, %v327_v6  ;;  %v590_v16 = vld [vmem:[%s702_s21 + $0x10] sm:$0xff]  ;;  %v540_v18 = vld [vmem:[%s697_s18 + $0x18] sm:$0xf0]  ;;  %v589_v19 = vld [vmem:[%s702_s21 + $0x8] sm:$0xff]  ;;  %p578_p6 = scmp.ne.s32.totalorder %s645_s9, 8 }
  0x1b   : > { %v586_v17 = vld [vmem:[%s697_s18 + $0x14] sm:$0xf]  ;;  %v588_v21 = vld [vmem:[%s702_s21] sm:$0xff]  ;;  %v585_v23 = vld [vmem:[%s697_s18 + $0x4] sm:$0xf0] }
  0x1c   : > { %360 = vmatpush.bf16.msra.mxu0 %v594_v5  ;;  %597 = vmatpush.bf16.msra.mxu2 %v594_v5  ;;  %v357_v12 = vand.u32 %v355_v7, %v336_v8  ;;  %v543_v20 = vor.u32 %v586_v17, %v540_v18  ;;  %v530_v22 = vld [vmem:[%s697_s18] sm:$0xf]  ;;  %v538_v24 = vld [vmem:[%s697_s18 + $0x10] sm:$0xf]  ;;  %v587_v25 = vld [vmem:[%s697_s18 + $0x14] sm:$0xf0] }
  0x1d   : > { %v531_v26 = vor.u32 %v585_v23, %v530_v22  ;;  %v539_v27 = vor.u32 %v587_v25, %v538_v24  ;;  %v251_v30 = vld [vmem:[#allocation2] sm:$0xff]  ;;  %v253_v35 = vld [vmem:[#allocation2 + $0x10] sm:$0xff]  ;;  %v252_v38 = vld [vmem:[#allocation2 + $0x8] sm:$0xff] }
  0x1e   : > { %385 = vmatpush.bf16.msra.mxu1 %v357_v12  ;;  %v254_v44 = vld [vmem:[#allocation2 + $0x18] sm:$0xff] }
  0x20   : > { %361 = vmatpush.bf16.msra.mxu0 %v593_v11  ;;  %598 = vmatpush.bf16.msra.mxu2 %v593_v11 }
  0x21   : > { %576 = vmatmul.msk.bf16.vlgmr.msra.gmra.mxu1 %vm345_vm3, %v535_v13 }
  0x24   : > { %362 = vmatpush.bf16.msra.mxu0 %v592_v14  ;;  %599 = vmatpush.bf16.msra.mxu2 %v592_v14 }
  0x28   : > { %363 = vmatpush.bf16.msra.mxu0 %v591_v15  ;;  %600 = vmatpush.bf16.msra.mxu2 %v591_v15 }
  0x2c   : > { %364 = vmatpush.bf16.msra.mxu0 %v590_v16  ;;  %601 = vmatpush.bf16.msra.mxu2 %v590_v16 }
  0x30   : > { %365 = vmatpush.bf16.msra.mxu0 %v589_v19  ;;  %602 = vmatpush.bf16.msra.mxu2 %v589_v19 }
  0x31   : > { %577 = vmatmul.msk.bf16.gmra.mxu1 %vm345_vm3, %v543_v20 }
  0x34   : > { %366 = vmatpush.bf16.msra.mxu0 %v588_v21  ;;  %603 = vmatpush.bf16.msra.mxu2 %v588_v21 }
  0x37   : > { %367 = vmatmul.bf16.vlgmr.msra.gmra.mxu0 %v531_v26  ;;  %372 = vmatmul.bf16.vlgmr.msra.gmra.mxu2 %v539_v27 }
  0x9e   : > { %v387_v28 = vpop.f32.mrf.mxu1 }
  0xa6   : > { %v389_v29 = vpop.f32.mrf.mxu1 }
  0xae   : > { %v392_v34 = vpop.f32.mrf.mxu1 }
  0xb4   : > { %v368_v31 = vpop.f32.mrf.mxu0 }
  0xb5   : > { %v388_v32 = vadd.f32 %v387_v28, %v368_v31 }
  0xb6   : > { %v394_v43 = vpop.f32.mrf.mxu1 }
  0xb7   : > { %v397_v33 = vadd.f32 %v388_v32, %v251_v30 }
  0xb9   : > { %402 = vst.msk [vmem:[#allocation2] sm:$0xff] %vm401_vm4, %v397_v33 }
  0xba   : > { %v373_v36 = vpop.f32.mrf.mxu2 }
  0xbb   : > { %v393_v37 = vadd.f32 %v392_v34, %v373_v36 }
  0xbc   : > { %v370_v39 = vpop.f32.mrf.mxu0 }
  0xbd   : > { %v399_v40 = vadd.f32 %v393_v37, %v253_v35  ;;  %v390_v41 = vadd.f32 %v389_v29, %v370_v39 }
  0xbf   : > { %404 = vst.msk [vmem:[#allocation2 + $0x10] sm:$0xff] %vm401_vm4, %v399_v40  ;;  %v398_v42 = vadd.f32 %v390_v41, %v252_v38 }
  0xc1   : > { %403 = vst.msk [vmem:[#allocation2 + $0x8] sm:$0xff] %vm401_vm4, %v398_v42 }
  0xc2   : > { %v375_v45 = vpop.f32.mrf.mxu2 }
  0xc3   : > { %v395_v46 = vadd.f32 %v394_v43, %v375_v45  ;;  %409 = sbr.rel (%p578_p6) target bundleno = 208 (0xd0), region = 36 }
  0xc5   : > { %v400_v47 = vadd.f32 %v395_v46, %v254_v44 }
  0xc7   : > { %405 = vst.msk [vmem:[#allocation2 + $0x18] sm:$0xff] %vm401_vm4, %v400_v47 }
  0xc8   : > { %v410_v48 = vld [vmem:[#allocation2] sm:$0xff]  ;;  %v411_v49 = vld [vmem:[#allocation2 + $0x8] sm:$0xff]  ;;  %v412_v50 = vld [vmem:[#allocation2 + $0x10] sm:$0xff] }
  0xc9   : > { %414 = vst.msk [vmem:[%s756_s2] sm:$0xff] %vm401_vm4, %v410_v48 }
  0xca   : > { %415 = vst.msk [vmem:[%s756_s2 + $0x8] sm:$0xff] %vm401_vm4, %v411_v49 }
  0xcb   : > { %416 = vst.msk [vmem:[%s756_s2 + $0x10] sm:$0xff] %vm401_vm4, %v412_v50 }
  0xce   : > { %v413_v51 = vld [vmem:[#allocation2 + $0x18] sm:$0xff] }
  0xcf   : > { %417 = vst.msk [vmem:[%s756_s2 + $0x18] sm:$0xff] %vm401_vm4, %v413_v51 }
  0xd0 PF: > { %s12_s11 = sadd.s32 1, %s653_s11   ;;  %s757_s9 = smov %s649_s10 }
  0xd1   : > { %p9_p7 = scmp.ge.s32.totalorder %s12_s11, 11   ;;  %s758_s10 = smov %s760_s12 }
  0xd3   :  { %11 = sbr.rel (!%p9_p7) target bundleno = 2 (0x2), region = 69 }

// kernel: espnet_encoder.62
= control target key start
LH: loop header
LB: loop body
LE: loop exit
PB: predicated region body
PF: predicated region fallthrough
CT: control target
= control target key end

     0   :  { %s581_s9 = smov 0   ;;  %s583_s10 = smov 0   ;;  %s654_s0 = inlined_call_operand.vmem [shape: bf16[45,32,25], index: 0, kind: input, shape index: {}]   ;;  %s655_s1 = inlined_call_operand.vmem [shape: bf16[45,25,28], index: 1, kind: input, shape index: {}]   ;;  %s656_s2 = inlined_call_operand.vmem [shape: f32[5,32,28], index: 2, kind: output, shape index: {}]  }
   0x1   :  { %s585_s11 = smov 0   ;;  %s587_s12 = smov 0  }
   0x2   :  { %s589_s13 = smov 0  }
   0x3 LB: > { %s24_s14 = sadd.s32 1, %s554_s11  ;;  %s27_s15 = sadd.s32 1, %s558_s12  ;;  %s562_s13 = sphi %s589_s13, %s12_s13   ;;  %s558_s12 = sphi %s587_s12, %s660_s12   ;;  %s554_s11 = sphi %s585_s11, %s659_s11   ;;  %s550_s10 = sphi %s583_s10, %s658_s10   ;;  %s546_s9 = sphi %s581_s9, %s657_s9  }
   0x4   : > { %p25_p0 = scmp.ge.s32.totalorder %s24_s14, 9  ;;  %p444_p1 = scmp.ge.s32.totalorder %s562_s13, 1 }
   0x5   : > { %p166_p2 = scmp.lt.s32.totalorder %s562_s13, 46 }
   0x6   : > { %s662_s14 = smov (%p25_p0, %s24_s14), 0  ;;  %s664_s15 = smov (!%p25_p0, %s27_s15), %s558_s12 }
   0x7   : > { %p167_p3 = pnand %p444_p1, %p166_p2  ;;  %p29_p4 = scmp.ge.s32.totalorder %s664_s15, 5 }
   0x8   : > { %s205_s16 = smul.u32 (!%p167_p3), 9, %s550_s10  ;;  %p229_p5 = scmp.lt.s32.totalorder (!%p167_p3), %s550_s10, 4 }
   0x9   : > { %s666_s15 = smov (%p29_p4, %s664_s15), 0  ;;  %170 = sbr.rel (%p167_p3) target bundleno = 186 (0xba), region = 28 }
   0xa   : > { %s206_s17 = sadd.s32 (!%p167_p3), %s546_s9, %s205_s16  ;;  %p451_p7 = scmp.ne.s32.totalorder (!%p167_p3), %s546_s9, 0 }
   0xb   : > { %p208_p6 = scmp.lt.s32.totalorder (!%p167_p3), %s206_s17, 44 }
   0xe   : > { %s668_s10 = smov (!%p229_p5, %s550_s10), 4  ;;  %s670_s17 = smov (!%p208_p6, %s206_s17), 44 }
   0xf   : > { %s475_s18 = sshll.u32 %s668_s10, 5  ;;  %s473_s19 = sshll.u32 %s670_s17, 4 }
  0x10   : > { %s617_s22 = scalar_lea.vmem %s656_s2, %s475_s18  ;;  %s215_s25 = scalar_lea.vmem %s654_s0, %s473_s19 }
  0x11   : > { %s225_s28 = scalar_lea.vmem %s655_s1, %s473_s19  ;;  %242 = sbr.rel (%p451_p7) target bundleno = 27 (0x1b), region = 32 }
  0x16   : > { %vm243_vm0 = vcmask 228352   ;;  %v564_v0 = vmov 0.0  }
  0x17   : > { %244 = vst.msk [vmem:[#allocation2] sm:$0xff] %vm243_vm0, %v564_v0 }
  0x18   : > { %245 = vst.msk [vmem:[#allocation2 + $0x8] sm:$0xff] %vm243_vm0, %v564_v0 }
  0x19   : > { %246 = vst.msk [vmem:[#allocation2 + $0x10] sm:$0xff] %vm243_vm0, %v564_v0 }
  0x1a   : > { %247 = vst.msk [vmem:[#allocation2 + $0x18] sm:$0xff] %vm243_vm0, %v564_v0 }
  0x1b PF: > { %v466_v1 = vld [vmem:[%s225_s28 + $0x8] sm:$0xf]  ;;  %v479_v2 = vld [vmem:[%s225_s28 + $0x8] sm:$0x10]  ;;  %vm288_vm1 = vcmask 1043456   ;;  %vm289_vm2 = vcmask 1044480  }
  0x1c   : > { %v467_v3 = vor.u32 %v479_v2, %v466_v1  ;;  %v565_v4 = vmov 65535   ;;  %v478_v8 = vld [vmem:[%s225_s28] sm:$0xff]  ;;  %v477_v10 = vld [vmem:[%s215_s25 + $0x8] sm:$0xff]  ;;  %vm281_vm3 = vcmask 203776   ;;  %vm318_vm4 = vcmask 228352   ;;  %p470_p8 = scmp.ne.s32.totalorder %s546_s9, 8 }
  0x1d   : > { %v290_v5 = vsel %vm288_vm1, 4294967295, %v565_v4  ;;  %v476_v9 = vld [vmem:[%s215_s25] sm:$0xff] }
  0x1e   : > { %v291_v6 = vsel %vm289_vm2, %v290_v5, 0  ;;  %v248_v11 = vld [vmem:[#allocation2] sm:$0xff] }
  0x1f   : > { %v293_v7 = vand.u32 %v467_v3, %v291_v6  ;;  %v249_v17 = vld [vmem:[#allocation2 + $0x8] sm:$0xff] }
  0x20   : > { %v250_v12 = vld [vmem:[#allocation2 + $0x10] sm:$0xff] }
  0x21   : > { %301 = vmatpush.bf16.msra.mxu0 %v293_v7  ;;  %480 = vmatpush.bf16.msra.mxu1 %v293_v7  ;;  %v251_v18 = vld [vmem:[#allocation2 + $0x18] sm:$0xff] }
  0x25   : > { %302 = vmatpush.bf16.msra.mxu0 %v478_v8  ;;  %481 = vmatpush.bf16.msra.mxu1 %v478_v8 }
  0x28   : > { %468 = vmatmul.msk.bf16.vlgmr.msra.gmra.mxu0 %vm281_vm3, %v476_v9  ;;  %469 = vmatmul.msk.bf16.vlgmr.msra.gmra.mxu1 %vm281_vm3, %v477_v10 }
  0xa5   : > { %v304_v13 = vpop.f32.mrf.mxu0  ;;  %v309_v14 = vpop.f32.mrf.mxu1 }
  0xa6   : > { %v314_v15 = vadd.f32 %v304_v13, %v248_v11  ;;  %v316_v16 = vadd.f32 %v309_v14, %v250_v12 }
  0xa8   : > { %319 = vst.msk [vmem:[#allocation2] sm:$0xff] %vm318_vm4, %v314_v15 }
  0xa9   : > { %321 = vst.msk [vmem:[#allocation2 + $0x10] sm:$0xff] %vm318_vm4, %v316_v16 }
  0xad   : > { %v306_v19 = vpop.f32.mrf.mxu0  ;;  %v311_v20 = vpop.f32.mrf.mxu1  ;;  %326 = sbr.rel (%p470_p8) target bundleno = 186 (0xba), region = 36 }
  0xae   : > { %v315_v21 = vadd.f32 %v306_v19, %v249_v17  ;;  %v317_v22 = vadd.f32 %v311_v20, %v251_v18 }
  0xb0   : > { %320 = vst.msk [vmem:[#allocation2 + $0x8] sm:$0xff] %vm318_vm4, %v315_v21 }
  0xb1   : > { %322 = vst.msk [vmem:[#allocation2 + $0x18] sm:$0xff] %vm318_vm4, %v317_v22 }
  0xb2   : > { %v327_v23 = vld [vmem:[#allocation2] sm:$0xff]  ;;  %v329_v25 = vld [vmem:[#allocation2 + $0x10] sm:$0xff] }
  0xb3   : > { %331 = vst.msk [vmem:[%s617_s22] sm:$0xff] %vm318_vm4, %v327_v23 }
  0xb4   : > { %333 = vst.msk [vmem:[%s617_s22 + $0x10] sm:$0xff] %vm318_vm4, %v329_v25 }
  0xb7   : > { %v328_v24 = vld [vmem:[#allocation2 + $0x8] sm:$0xff] }
  0xb8   : > { %v330_v26 = vld [vmem:[#allocation2 + $0x18] sm:$0xff]  ;;  %332 = vst.msk [vmem:[%s617_s22 + $0x8] sm:$0xff] %vm318_vm4, %v328_v24 }
  0xb9   : > { %334 = vst.msk [vmem:[%s617_s22 + $0x18] sm:$0xff] %vm318_vm4, %v330_v26 }
  0xba PF: > { %s12_s13 = sadd.s32 1, %s562_s13   ;;  %s657_s9 = smov %s554_s11 }
  0xbb   : > { %p9_p9 = scmp.ge.s32.totalorder %s12_s13, 47   ;;  %s658_s10 = smov %s558_s12 }
  0xbc   : > { %s659_s11 = smov %s662_s14  ;;  %s660_s12 = smov %s666_s15 }
  0xbd   :  { %11 = sbr.rel (!%p9_p9) target bundleno = 3 (0x3), region = 69 }

// kernel: espnet_encoder.63
= control target key start
LH: loop header
LB: loop body
LE: loop exit
PB: predicated region body
PF: predicated region fallthrough
CT: control target
= control target key end

     0   :  { %v50_v0 = vmov 0.0   ;;  %s88_s1 = inlined_call_operand.vmem [shape: f32[8,128], index: 1, kind: output, shape index: {}]   ;;  %s89_s0 = inlined_call_operand.vmem [shape: f32[32,128], index: 0, kind: input, shape index: {}]  }
   0x1   :  { %12 = vst [vmem:[%s88_s1] sm:$0xff] %v50_v0  ;;  %v13_v1 = vld [vmem:[%s89_s0] sm:$0xff]  ;;  %v14_v2 = vld [vmem:[%s89_s0 + $0x8] sm:$0xff]  ;;  %v15_v3 = vld [vmem:[%s89_s0 + $0x10] sm:$0xff] }
   0x2   :  { %v16_v4 = vld [vmem:[%s89_s0 + $0x18] sm:$0xff]  ;;  %v18_v5 = vadd.f32 %v14_v2, %v13_v1  ;;  %v30_v6 = vmul.f32 %v13_v1, %v13_v1  ;;  %v31_v7 = vmul.f32 %v14_v2, %v14_v2  ;;  %v32_v8 = vmul.f32 %v15_v3, %v15_v3 }
   0x3   :  { %v33_v10 = vmul.f32 %v16_v4, %v16_v4 }
   0x4   :  { %v19_v9 = vadd.f32 %v18_v5, %v15_v3  ;;  %v34_v11 = vadd.f32 %v31_v7, %v30_v6 }
   0x6   :  { %v20_v12 = vadd.f32 %v19_v9, %v16_v4  ;;  %v35_v13 = vadd.f32 %v34_v11, %v32_v8 }
   0x8   :  { %v21_v14 = vrot.slane %v20_v12, 4  ;;  %v36_v15 = vadd.f32 %v35_v13, %v33_v10  ;;  %v17_v24 = vld [vmem:[%s88_s1] sm:$0x1]  ;;  %v29_v27 = vld [vmem:[%s88_s1 + $0x1] sm:$0x1] }
   0xa   :  { %v22_v16 = vadd.f32 %v21_v14, %v20_v12  ;;  %v37_v17 = vrot.slane %v36_v15, 4 }
   0xc   :  { %v23_v18 = vrot.slane %v22_v16, 2  ;;  %v38_v19 = vadd.f32 %v37_v17, %v36_v15 }
   0xe   :  { %v24_v20 = vadd.f32 %v23_v18, %v22_v16  ;;  %v39_v21 = vrot.slane %v38_v19, 2 }
  0x10   :  { %v25_v22 = vrot.slane %v24_v20, 1  ;;  %v40_v23 = vadd.f32 %v39_v21, %v38_v19 }
  0x12   :  { %v26_v25 = vadd.f32 %v25_v22, %v24_v20  ;;  %v41_v26 = vrot.slane %v40_v23, 1 }
  0x14   :  { %v27_v28 = vadd.f32 %v26_v25, %v17_v24  ;;  %v42_v29 = vadd.f32 %v41_v26, %v40_v23 }
  0x16   :  { %28 = vst [vmem:[%s88_s1] sm:$0x1] %v27_v28  ;;  %v43_v30 = vadd.f32 %v42_v29, %v29_v27 }
  0x18   :  { %44 = vst [vmem:[%s88_s1 + $0x1] sm:$0x1] %v43_v30 }

// kernel: espnet_encoder.64
= control target key start
LH: loop header
LB: loop body
LE: loop exit
PB: predicated region body
PF: predicated region fallthrough
CT: control target
= control target key end

     0   :  { %s122_s0 = inlined_call_operand.vmem [shape: f32[32,128], index: 0, kind: input, shape index: {}]   ;;  %s123_s1 = inlined_call_operand.vmem [shape: f32[1,128], index: 1, kind: input, shape index: {}]   ;;  %s124_s2 = inlined_call_operand.vmem [shape: f32[1,128], index: 2, kind: input, shape index: {}]   ;;  %s125_s3 = inlined_call_operand.vmem [shape: f32[1,128], index: 3, kind: input, shape index: {}]   ;;  %s126_s4 = inlined_call_operand.vmem [shape: f32[32,128], index: 4, kind: output, shape index: {}]  }
   0x1   :  { %v17_v0 = vld [vmem:[%s122_s0] sm:$0xff]  ;;  %v18_v5 = vld [vmem:[%s122_s0 + $0x8] sm:$0xff]  ;;  %v19_v6 = vld [vmem:[%s122_s0 + $0x10] sm:$0xff] }
   0x2   :  { %v61_v1 = vld [vmem:[%s123_s1] ss:$0 sm:$0xff]  ;;  %v20_v9 = vld [vmem:[%s122_s0 + $0x18] sm:$0xff] }
   0x3   :  { %v62_v2 = vld [vmem:[%s124_s2] ss:$0 sm:$0xff]  ;;  %v25_v3 = vmul.f32 %v61_v1, %v17_v0  ;;  %v26_v7 = vmul.f32 %v61_v1, %v18_v5  ;;  %v27_v8 = vmul.f32 %v61_v1, %v19_v6  ;;  %v28_v11 = vmul.f32 %v61_v1, %v20_v9 }
   0x4   :  { %v63_v4 = vld [vmem:[%s125_s3] ss:$0 sm:$0xff] }
   0x5   :  { %v33_v10 = vadd.f32 %v62_v2, %v25_v3  ;;  %v34_v12 = vadd.f32 %v62_v2, %v26_v7  ;;  %v35_v13 = vadd.f32 %v62_v2, %v27_v8  ;;  %v36_v15 = vadd.f32 %v62_v2, %v28_v11 }
   0x7   :  { %vm37_vm0 = vcmp.ge.f32.partialorder %v33_v10, 0.0  ;;  %v45_v14 = vmul.f32 %v63_v4, %v33_v10  ;;  %vm38_vm1 = vcmp.ge.f32.partialorder %v34_v12, 0.0  ;;  %v46_v16 = vmul.f32 %v63_v4, %v34_v12 }
   0x8   :  { %vm39_vm2 = vcmp.ge.f32.partialorder %v35_v13, 0.0  ;;  %v47_v17 = vmul.f32 %v63_v4, %v35_v13  ;;  %vm40_vm3 = vcmp.ge.f32.partialorder %v36_v15, 0.0  ;;  %v48_v19 = vmul.f32 %v63_v4, %v36_v15 }
   0x9   :  { %v49_v18 = vsel %vm37_vm0, %v33_v10, %v45_v14  ;;  %v50_v20 = vsel %vm38_vm1, %v34_v12, %v46_v16 }
   0xa   :  { %53 = vst [vmem:[%s126_s4] sm:$0xff] %v49_v18  ;;  %v51_v21 = vsel %vm39_vm2, %v35_v13, %v47_v17  ;;  %v52_v22 = vsel %vm40_vm3, %v36_v15, %v48_v19 }
   0xb   :  { %54 = vst [vmem:[%s126_s4 + $0x8] sm:$0xff] %v50_v20 }
   0xc   :  { %55 = vst [vmem:[%s126_s4 + $0x10] sm:$0xff] %v51_v21 }
   0xd   :  { %56 = vst [vmem:[%s126_s4 + $0x18] sm:$0xff] %v52_v22 }

// kernel: espnet_encoder.65
= control target key start
LH: loop header
LB: loop body
LE: loop exit
PB: predicated region body
PF: predicated region fallthrough
CT: control target
= control target key end

     0   :  { %vm55_vm0 = vcmask 203776   ;;  %v258_v2 = vmov 0.0   ;;  %s328_s1 = inlined_call_operand.vmem [shape: bf16[1,128,25], index: 1, kind: input, shape index: {}]   ;;  %s329_s0 = inlined_call_operand.vmem [shape: bf16[1,32,128], index: 0, kind: input, shape index: {}]   ;;  %s330_s2 = inlined_call_operand.vmem [shape: f32[1,32,25], index: 2, kind: output, shape index: {}]  }
   0x1   :  { %v248_v0 = vld [vmem:[%s328_s1 + $0x38] sm:$0xff]  ;;  %v247_v1 = vld [vmem:[%s328_s1 + $0x30] sm:$0xff]  ;;  %56 = vst.msk [vmem:[#allocation2] sm:$0xff] %vm55_vm0, %v258_v2  ;;  %v246_v3 = vld [vmem:[%s328_s1 + $0x28] sm:$0xff] }
   0x2   :  { %144 = vmatpush.bf16.msra.mxu0 %v248_v0  ;;  %249 = vmatpush.bf16.msra.mxu1 %v248_v0  ;;  %57 = vst.msk [vmem:[#allocation2 + $0x8] sm:$0xff] %vm55_vm0, %v258_v2  ;;  %v245_v4 = vld [vmem:[%s328_s1 + $0x20] sm:$0xff]  ;;  %v244_v5 = vld [vmem:[%s328_s1 + $0x18] sm:$0xff]  ;;  %v243_v6 = vld [vmem:[%s328_s1 + $0x10] sm:$0xff] }
   0x3   :  { %58 = vst.msk [vmem:[#allocation2 + $0x10] sm:$0xff] %vm55_vm0, %v258_v2  ;;  %v242_v7 = vld [vmem:[%s328_s1 + $0x8] sm:$0xff]  ;;  %v241_v8 = vld [vmem:[%s328_s1] sm:$0xff] }
   0x4   :  { %59 = vst.msk [vmem:[#allocation2 + $0x18] sm:$0xff] %vm55_vm0, %v258_v2  ;;  %v239_v9 = vld [vmem:[%s329_s0] sm:$0xff]  ;;  %v240_v10 = vld [vmem:[%s329_s0 + $0x8] sm:$0xff] }
   0x6   :  { %145 = vmatpush.bf16.msra.mxu0 %v247_v1  ;;  %250 = vmatpush.bf16.msra.mxu1 %v247_v1 }
   0x8   :  { %v60_v11 = vld [vmem:[#allocation2] sm:$0xff] }
   0x9   :  { %v61_v17 = vld [vmem:[#allocation2 + $0x8] sm:$0xff] }
   0xa   :  { %146 = vmatpush.bf16.msra.mxu0 %v246_v3  ;;  %251 = vmatpush.bf16.msra.mxu1 %v246_v3  ;;  %v62_v12 = vld [vmem:[#allocation2 + $0x10] sm:$0xff] }
   0xb   :  { %v63_v18 = vld [vmem:[#allocation2 + $0x18] sm:$0xff] }
   0xe   :  { %147 = vmatpush.bf16.msra.mxu0 %v245_v4  ;;  %252 = vmatpush.bf16.msra.mxu1 %v245_v4 }
  0x12   :  { %148 = vmatpush.bf16.msra.mxu0 %v244_v5  ;;  %253 = vmatpush.bf16.msra.mxu1 %v244_v5 }
  0x16   :  { %149 = vmatpush.bf16.msra.mxu0 %v243_v6  ;;  %254 = vmatpush.bf16.msra.mxu1 %v243_v6 }
  0x1a   :  { %150 = vmatpush.bf16.msra.mxu0 %v242_v7  ;;  %255 = vmatpush.bf16.msra.mxu1 %v242_v7 }
  0x1e   :  { %151 = vmatpush.bf16.msra.mxu0 %v241_v8  ;;  %256 = vmatpush.bf16.msra.mxu1 %v241_v8 }
  0x21   :  { %152 = vmatmul.bf16.vlgmr.msra.gmra.mxu0 %v239_v9  ;;  %157 = vmatmul.bf16.vlgmr.msra.gmra.mxu1 %v240_v10 }
  0x9e   :  { %v153_v13 = vpop.f32.mrf.mxu0  ;;  %v158_v14 = vpop.f32.mrf.mxu1 }
  0x9f   :  { %v163_v15 = vadd.f32 %v153_v13, %v60_v11  ;;  %v165_v16 = vadd.f32 %v158_v14, %v62_v12 }
  0xa1   :  { %168 = vst.msk [vmem:[#allocation2] sm:$0xff] %vm55_vm0, %v163_v15 }
  0xa2   :  { %170 = vst.msk [vmem:[#allocation2 + $0x10] sm:$0xff] %vm55_vm0, %v165_v16 }
  0xa6   :  { %v155_v19 = vpop.f32.mrf.mxu0  ;;  %v160_v20 = vpop.f32.mrf.mxu1 }
  0xa7   :  { %v164_v21 = vadd.f32 %v155_v19, %v61_v17  ;;  %v166_v23 = vadd.f32 %v160_v20, %v63_v18 }
  0xa8   :  { %v175_v22 = vld [vmem:[#allocation2] sm:$0xff] }
  0xa9   :  { %179 = vst.msk [vmem:[%s330_s2] sm:$0xff] %vm55_vm0, %v175_v22  ;;  %v177_v24 = vld [vmem:[#allocation2 + $0x10] sm:$0xff] }
  0xaa   :  { %181 = vst.msk [vmem:[%s330_s2 + $0x10] sm:$0xff] %vm55_vm0, %v177_v24 }
  0xab   :  { %169 = vst.msk [vmem:[#allocation2 + $0x8] sm:$0xff] %vm55_vm0, %v164_v21 }
  0xac   :  { %171 = vst.msk [vmem:[#allocation2 + $0x18] sm:$0xff] %vm55_vm0, %v166_v23 }
  0xb2   :  { %v176_v25 = vld [vmem:[#allocation2 + $0x8] sm:$0xff] }
  0xb3   :  { %180 = vst.msk [vmem:[%s330_s2 + $0x8] sm:$0xff] %vm55_vm0, %v176_v25  ;;  %v178_v26 = vld [vmem:[#allocation2 + $0x18] sm:$0xff] }
  0xb4   :  { %182 = vst.msk [vmem:[%s330_s2 + $0x18] sm:$0xff] %vm55_vm0, %v178_v26 }

// kernel: espnet_encoder.77
= control target key start
LH: loop header
LB: loop body
LE: loop exit
PB: predicated region body
PF: predicated region fallthrough
CT: control target
= control target key end

     0   :  { %v97_v0 = vmov 0.0   ;;  %v48_v47 = vlaneseq  ;;  %vm44_vm0 = vcmask 1040384   ;;  %s150_s1 = inlined_call_operand.vmem [shape: f32[8,256], index: 1, kind: output, shape index: {}]   ;;  %s151_s0 = inlined_call_operand.vmem [shape: f32[32,256], index: 0, kind: input, shape index: {}]  }
   0x1   :  { %12 = vst [vmem:[%s150_s1] sm:$0xff] %v97_v0  ;;  %v14_v1 = vld [vmem:[%s151_s0] sm:$0xff]  ;;  %v15_v2 = vld [vmem:[%s151_s0 + $0x8] sm:$0xff]  ;;  %v16_v3 = vld [vmem:[%s151_s0 + $0x10] sm:$0xff] }
   0x2   :  { %13 = vst [vmem:[%s150_s1 + $0x8] sm:$0xff] %v97_v0  ;;  %v17_v4 = vld [vmem:[%s151_s0 + $0x18] sm:$0xff]  ;;  %v18_v5 = vld [vmem:[%s151_s0 + $0x20] sm:$0xff]  ;;  %v19_v6 = vld [vmem:[%s151_s0 + $0x28] sm:$0xff]  ;;  %v23_v7 = vadd.f32 %v16_v3, %v14_v1  ;;  %v56_v8 = vmul.f32 %v14_v1, %v14_v1  ;;  %v57_v9 = vmul.f32 %v15_v2, %v15_v2  ;;  %v58_v13 = vmul.f32 %v16_v3, %v16_v3 }
   0x3   :  { %v20_v10 = vld [vmem:[%s151_s0 + $0x30] sm:$0xff]  ;;  %v21_v11 = vld [vmem:[%s151_s0 + $0x38] sm:$0xff]  ;;  %v32_v12 = vadd.f32 %v17_v4, %v15_v2  ;;  %v59_v14 = vmul.f32 %v17_v4, %v17_v4  ;;  %v60_v15 = vmul.f32 %v18_v5, %v18_v5  ;;  %v61_v17 = vmul.f32 %v19_v6, %v19_v6 }
   0x4   :  { %v24_v16 = vadd.f32 %v23_v7, %v18_v5  ;;  %v62_v18 = vmul.f32 %v20_v10, %v20_v10  ;;  %v63_v20 = vmul.f32 %v21_v11, %v21_v11  ;;  %v64_v21 = vadd.f32 %v58_v13, %v56_v8 }
   0x5   :  { %v33_v19 = vadd.f32 %v32_v12, %v19_v6  ;;  %v73_v22 = vadd.f32 %v59_v14, %v57_v9  ;;  %vm50_vm1 = vcmp.lt.s32.totalorder %v48_v47, 256 }
   0x6   :  { %v25_v23 = vadd.f32 %v24_v16, %v20_v10  ;;  %v65_v25 = vadd.f32 %v64_v21, %v60_v15 }
   0x7   :  { %v34_v24 = vadd.f32 %v33_v19, %v21_v11  ;;  %v74_v26 = vadd.f32 %v73_v22, %v61_v17 }
   0x8   :  { %v26_v27 = vrot.slane %v25_v23, 4  ;;  %v66_v29 = vadd.f32 %v65_v25, %v62_v18 }
   0x9   :  { %v35_v28 = vrot.slane %v34_v24, 4  ;;  %v75_v30 = vadd.f32 %v74_v26, %v63_v20  ;;  %v22_v52 = vld [vmem:[%s150_s1] ss:$8 sm:$0x3] }
   0xa   :  { %v27_v31 = vadd.f32 %v26_v27, %v25_v23  ;;  %v67_v33 = vrot.slane %v66_v29, 4  ;;  %v94_v57 = vld [vmem:[%s150_s1 + $0x1] ss:$8 sm:$0x3] }
   0xb   :  { %v36_v32 = vadd.f32 %v35_v28, %v34_v24  ;;  %v76_v34 = vrot.slane %v75_v30, 4 }
   0xc   :  { %v28_v35 = vrot.slane %v27_v31, 2  ;;  %v68_v37 = vadd.f32 %v67_v33, %v66_v29 }
   0xd   :  { %v37_v36 = vrot.slane %v36_v32, 2  ;;  %v77_v38 = vadd.f32 %v76_v34, %v75_v30 }
   0xe   :  { %v29_v39 = vadd.f32 %v28_v35, %v27_v31  ;;  %v69_v41 = vrot.slane %v68_v37, 2 }
   0xf   :  { %v38_v40 = vadd.f32 %v37_v36, %v36_v32  ;;  %v78_v42 = vrot.slane %v77_v38, 2 }
  0x10   :  { %v30_v43 = vrot.slane %v29_v39, 1  ;;  %v70_v45 = vadd.f32 %v69_v41, %v68_v37 }
  0x11   :  { %v39_v44 = vrot.slane %v38_v40, 1  ;;  %v79_v46 = vadd.f32 %v78_v42, %v77_v38 }
  0x12   :  { %v31_v48 = vadd.f32 %v30_v43, %v29_v39  ;;  %v71_v50 = vrot.slane %v70_v45, 1 }
  0x13   :  { %v40_v49 = vadd.f32 %v39_v44, %v38_v40  ;;  %v80_v51 = vrot.slane %v79_v46, 1 }
  0x14   :  { %v72_v54 = vadd.f32 %v71_v50, %v70_v45 }
  0x15   :  { %v43_v53 = vrot.slane %v40_v49, 7  ;;  %v81_v55 = vadd.f32 %v80_v51, %v79_v46 }
  0x17   :  { %v45_v56 = vsel %vm44_vm0, %v31_v48, %v43_v53  ;;  %v84_v58 = vrot.slane %v81_v55, 7 }
  0x18   :  { %v47_v59 = vadd.f32 %v45_v56, %v22_v52 }
  0x19   :  { %v85_v60 = vsel %vm44_vm0, %v72_v54, %v84_v58 }
  0x1a   :  { %52 = vst.msk [vmem:[%s150_s1] ss:$8 sm:$0x3] %vm50_vm1, %v47_v59  ;;  %v87_v61 = vadd.f32 %v94_v57, %v85_v60 }
  0x1c   :  { %95 = vst.msk [vmem:[%s150_s1 + $0x1] ss:$8 sm:$0x3] %vm50_vm1, %v87_v61 }

// kernel: espnet_encoder.78
= control target key start
LH: loop header
LB: loop body
LE: loop exit
PB: predicated region body
PF: predicated region fallthrough
CT: control target
= control target key end

     0   :  { %s177_s0 = inlined_call_operand.vmem [shape: f32[32,256], index: 0, kind: input, shape index: {}]   ;;  %s178_s1 = inlined_call_operand.vmem [shape: f32[1,256], index: 1, kind: input, shape index: {}]   ;;  %s179_s2 = inlined_call_operand.vmem [shape: f32[1,256], index: 2, kind: input, shape index: {}]   ;;  %s180_s3 = inlined_call_operand.vmem [shape: f32[1,256], index: 3, kind: input, shape index: {}]   ;;  %s181_s4 = inlined_call_operand.vmem [shape: f32[32,256], index: 4, kind: output, shape index: {}]  }
   0x1   :  { %v17_v0 = vld [vmem:[%s177_s0] sm:$0xff]  ;;  %v18_v6 = vld [vmem:[%s177_s0 + $0x8] sm:$0xff]  ;;  %v19_v11 = vld [vmem:[%s177_s0 + $0x10] sm:$0xff] }
   0x2   :  { %v25_v1 = vld [vmem:[%s178_s1] sm:$0x3]  ;;  %v20_v12 = vld [vmem:[%s177_s0 + $0x18] sm:$0xff]  ;;  %v22_v18 = vld [vmem:[%s177_s0 + $0x28] sm:$0xff] }
   0x3   :  { %v39_v2 = vld [vmem:[%s179_s2] sm:$0x3]  ;;  %v27_v3 = vperm.slane %v25_v1, 0  ;;  %v28_v7 = vperm.slane %v25_v1, 1  ;;  %v23_v19 = vld [vmem:[%s177_s0 + $0x30] sm:$0xff]  ;;  %v24_v20 = vld [vmem:[%s177_s0 + $0x38] sm:$0xff] }
   0x4   :  { %v41_v4 = vperm.slane %v39_v2, 0  ;;  %v61_v5 = vld [vmem:[%s180_s3] sm:$0x3]  ;;  %v42_v9 = vperm.slane %v39_v2, 1 }
   0x5   :  { %v63_v8 = vperm.slane %v61_v5, 0  ;;  %v64_v10 = vperm.slane %v61_v5, 1  ;;  %v21_v13 = vld [vmem:[%s177_s0 + $0x20] sm:$0xff]  ;;  %v31_v14 = vmul.f32 %v27_v3, %v17_v0  ;;  %v32_v15 = vmul.f32 %v28_v7, %v18_v6 }
   0x6   :  { %v33_v16 = vmul.f32 %v27_v3, %v19_v11  ;;  %v34_v17 = vmul.f32 %v28_v7, %v20_v12  ;;  %v35_v21 = vmul.f32 %v27_v3, %v21_v13  ;;  %v36_v22 = vmul.f32 %v28_v7, %v22_v18 }
   0x7   :  { %v37_v23 = vmul.f32 %v27_v3, %v23_v19  ;;  %v38_v24 = vmul.f32 %v28_v7, %v24_v20  ;;  %v45_v25 = vadd.f32 %v41_v4, %v31_v14  ;;  %v46_v26 = vadd.f32 %v42_v9, %v32_v15 }
   0x8   :  { %v47_v27 = vadd.f32 %v41_v4, %v33_v16  ;;  %v48_v28 = vadd.f32 %v42_v9, %v34_v17  ;;  %v49_v29 = vadd.f32 %v41_v4, %v35_v21  ;;  %v50_v30 = vadd.f32 %v42_v9, %v36_v22 }
   0x9   :  { %v51_v31 = vadd.f32 %v41_v4, %v37_v23  ;;  %v52_v32 = vadd.f32 %v42_v9, %v38_v24  ;;  %vm53_vm0 = vcmp.ge.f32.partialorder %v45_v25, 0.0  ;;  %v67_v33 = vmul.f32 %v63_v8, %v45_v25 }
   0xa   :  { %vm54_vm1 = vcmp.ge.f32.partialorder %v46_v26, 0.0  ;;  %v68_v34 = vmul.f32 %v64_v10, %v46_v26  ;;  %vm55_vm2 = vcmp.ge.f32.partialorder %v47_v27, 0.0  ;;  %v69_v35 = vmul.f32 %v63_v8, %v47_v27 }
   0xb   :  { %vm56_vm3 = vcmp.ge.f32.partialorder %v48_v28, 0.0  ;;  %v70_v36 = vmul.f32 %v64_v10, %v48_v28  ;;  %v75_v37 = vsel %vm53_vm0, %v45_v25, %v67_v33  ;;  %vm57_vm4 = vcmp.ge.f32.partialorder %v49_v29, 0.0 }
   0xc   :  { %v76_v38 = vsel %vm54_vm1, %v46_v26, %v68_v34  ;;  %v71_v39 = vmul.f32 %v63_v8, %v49_v29  ;;  %83 = vst [vmem:[%s181_s4] sm:$0xff] %v75_v37  ;;  %v77_v40 = vsel %vm55_vm2, %v47_v27, %v69_v35  ;;  %vm58_vm5 = vcmp.ge.f32.partialorder %v50_v30, 0.0 }
   0xd   :  { %v78_v41 = vsel %vm56_vm3, %v48_v28, %v70_v36  ;;  %v72_v42 = vmul.f32 %v64_v10, %v50_v30  ;;  %84 = vst [vmem:[%s181_s4 + $0x8] sm:$0xff] %v76_v38  ;;  %vm59_vm6 = vcmp.ge.f32.partialorder %v51_v31, 0.0  ;;  %v73_v44 = vmul.f32 %v63_v8, %v51_v31 }
   0xe   :  { %v79_v43 = vsel %vm57_vm4, %v49_v29, %v71_v39  ;;  %vm60_vm7 = vcmp.ge.f32.partialorder %v52_v32, 0.0  ;;  %85 = vst [vmem:[%s181_s4 + $0x10] sm:$0xff] %v77_v40  ;;  %v74_v46 = vmul.f32 %v64_v10, %v52_v32 }
   0xf   :  { %v80_v45 = vsel %vm58_vm5, %v50_v30, %v72_v42  ;;  %86 = vst [vmem:[%s181_s4 + $0x18] sm:$0xff] %v78_v41  ;;  %v81_v47 = vsel %vm59_vm6, %v51_v31, %v73_v44 }
  0x10   :  { %87 = vst [vmem:[%s181_s4 + $0x20] sm:$0xff] %v79_v43  ;;  %v82_v48 = vsel %vm60_vm7, %v52_v32, %v74_v46 }
  0x11   :  { %88 = vst [vmem:[%s181_s4 + $0x28] sm:$0xff] %v80_v45 }
  0x12   :  { %89 = vst [vmem:[%s181_s4 + $0x30] sm:$0xff] %v81_v47 }
  0x13   :  { %90 = vst [vmem:[%s181_s4 + $0x38] sm:$0xff] %v82_v48 }

// kernel: espnet_encoder.79
= control target key start
LH: loop header
LB: loop body
LE: loop exit
PB: predicated region body
PF: predicated region fallthrough
CT: control target
= control target key end

     0   :  { %s595_s0 = inlined_call_operand.vmem [shape: bf16[32,256], index: 0, kind: input, shape index: {}]   ;;  %s596_s1 = inlined_call_operand.vmem [shape: bf16[256,19], index: 1, kind: input, shape index: {}]   ;;  %s597_s2 = inlined_call_operand.hbm [shape: f32[32,19], index: 2, kind: output, shape index: {}]  }
   0x1   :  { %v412_v0 = vld [vmem:[%s596_s1 + $0x38] sm:$0xff]  ;;  %v411_v2 = vld [vmem:[%s596_s1 + $0x30] sm:$0xff]  ;;  %v410_v4 = vld [vmem:[%s596_s1 + $0x28] sm:$0xff] }
   0x2   :  { %v420_v1 = vld [vmem:[%s596_s1 + $0x78] sm:$0xff]  ;;  %164 = vmatpush.bf16.msra.mxu0 %v412_v0  ;;  %421 = vmatpush.bf16.msra.mxu2 %v412_v0  ;;  %v419_v3 = vld [vmem:[%s596_s1 + $0x70] sm:$0xff]  ;;  %v418_v5 = vld [vmem:[%s596_s1 + $0x68] sm:$0xff] }
   0x3   :  { %183 = vmatpush.bf16.msra.mxu1 %v420_v1  ;;  %429 = vmatpush.bf16.msra.mxu3 %v420_v1 }
   0x6   :  { %165 = vmatpush.bf16.msra.mxu0 %v411_v2  ;;  %422 = vmatpush.bf16.msra.mxu2 %v411_v2 }
   0x7   :  { %184 = vmatpush.bf16.msra.mxu1 %v419_v3  ;;  %430 = vmatpush.bf16.msra.mxu3 %v419_v3 }
   0x8   :  { %7 = vsyncpa [#allocation3], 0  ;;  %v409_v6 = vld [vmem:[%s596_s1 + $0x20] sm:$0xff]  ;;  %v408_v8 = vld [vmem:[%s596_s1 + $0x18] sm:$0xff]  ;;  %vm202_vm0 = vcmask 154624   ;;  %s309_s3 = sshll.u32 %s597_s2, 4  ;;  %s310_s3 = int_to_ptr.hbm [resolvable:$true] %s309_s3 }
   0x9   :  { %v417_v7 = vld [vmem:[%s596_s1 + $0x60] sm:$0xff]  ;;  %v416_v9 = vld [vmem:[%s596_s1 + $0x58] sm:$0xff]  ;;  %v407_v10 = vld [vmem:[%s596_s1 + $0x10] sm:$0xff]  ;;  %s483_s4 = smov 128   ;;  %s484_s5 = smov 8  }
   0xa   :  { %166 = vmatpush.bf16.msra.mxu0 %v410_v4  ;;  %423 = vmatpush.bf16.msra.mxu2 %v410_v4  ;;  %v415_v11 = vld [vmem:[%s596_s1 + $0x50] sm:$0xff]  ;;  %v406_v12 = vld [vmem:[%s596_s1 + $0x8] sm:$0xff]  ;;  %v405_v14 = vld [vmem:[%s596_s1] sm:$0xff] }
   0xb   :  { %185 = vmatpush.bf16.msra.mxu1 %v418_v5  ;;  %431 = vmatpush.bf16.msra.mxu3 %v418_v5  ;;  %v414_v13 = vld [vmem:[%s596_s1 + $0x48] sm:$0xff]  ;;  %v413_v15 = vld [vmem:[%s596_s1 + $0x40] sm:$0xff]  ;;  %v331_v18 = vld [vmem:[%s595_s0 + $0x10] sm:$0xf] }
   0xc   :  { %v323_v16 = vld [vmem:[%s595_s0] sm:$0xf]  ;;  %v402_v17 = vld [vmem:[%s595_s0 + $0x4] sm:$0xf0]  ;;  %v404_v19 = vld [vmem:[%s595_s0 + $0x14] sm:$0xf0] }
   0xd   :  { %v401_v20 = vld [vmem:[%s595_s0 + $0x4] sm:$0xf]  ;;  %v325_v21 = vld [vmem:[%s595_s0 + $0x8] sm:$0xf0]  ;;  %v403_v22 = vld [vmem:[%s595_s0 + $0x14] sm:$0xf]  ;;  %v324_v24 = vor.u32 %v402_v17, %v323_v16  ;;  %v332_v25 = vor.u32 %v404_v19, %v331_v18 }
   0xe   :  { %167 = vmatpush.bf16.msra.mxu0 %v409_v6  ;;  %424 = vmatpush.bf16.msra.mxu2 %v409_v6  ;;  %v333_v23 = vld [vmem:[%s595_s0 + $0x18] sm:$0xf0]  ;;  %v328_v26 = vor.u32 %v401_v20, %v325_v21  ;;  %s482_s0 = smov [#allocation2]  }
   0xf   :  { %186 = vmatpush.bf16.msra.mxu1 %v417_v7  ;;  %432 = vmatpush.bf16.msra.mxu3 %v417_v7  ;;  %v336_v27 = vor.u32 %v403_v22, %v333_v23  ;;  %s307_s28 = sshll.u32 %s482_s0, 4  ;;  %s308_s28 = int_to_ptr.vmem [resolvable:$true] %s307_s28 }
  0x12   :  { %168 = vmatpush.bf16.msra.mxu0 %v408_v8  ;;  %425 = vmatpush.bf16.msra.mxu2 %v408_v8 }
  0x13   :  { %187 = vmatpush.bf16.msra.mxu1 %v416_v9  ;;  %433 = vmatpush.bf16.msra.mxu3 %v416_v9 }
  0x16   :  { %169 = vmatpush.bf16.msra.mxu0 %v407_v10  ;;  %426 = vmatpush.bf16.msra.mxu2 %v407_v10 }
  0x17   :  { %188 = vmatpush.bf16.msra.mxu1 %v415_v11  ;;  %434 = vmatpush.bf16.msra.mxu3 %v415_v11 }
  0x1a   :  { %170 = vmatpush.bf16.msra.mxu0 %v406_v12  ;;  %427 = vmatpush.bf16.msra.mxu2 %v406_v12 }
  0x1b   :  { %189 = vmatpush.bf16.msra.mxu1 %v414_v13  ;;  %435 = vmatpush.bf16.msra.mxu3 %v414_v13 }
  0x1e   :  { %171 = vmatpush.bf16.msra.mxu0 %v405_v14  ;;  %428 = vmatpush.bf16.msra.mxu2 %v405_v14 }
  0x1f   :  { %190 = vmatpush.bf16.msra.mxu1 %v413_v15  ;;  %436 = vmatpush.bf16.msra.mxu3 %v413_v15 }
  0x21   :  { %172 = vmatmul.bf16.vlgmr.msra.gmra.mxu0 %v324_v24  ;;  %177 = vmatmul.bf16.vlgmr.msra.gmra.mxu2 %v332_v25 }
  0x22   :  { %191 = vmatmul.bf16.vlgmr.msra.gmra.mxu1 %v328_v26  ;;  %196 = vmatmul.bf16.vlgmr.msra.gmra.mxu3 %v336_v27 }
  0x9e   :  { %v173_v28 = vpop.f32.mrf.mxu0 }
  0x9f   :  { %v192_v29 = vpop.f32.mrf.mxu1 }
  0xa0   :  { %v193_v30 = vadd.f32 %v192_v29, %v173_v28 }
  0xa2   :  { %v203_v31 = vsel %vm202_vm0, %v193_v30, -inf }
  0xa3   :  { %204 = vmax.xlane.f32.xlu0 %v203_v31 }
  0xa4   :  { %v178_v32 = vpop.f32.mrf.mxu2 }
  0xa5   :  { %v197_v33 = vpop.f32.mrf.mxu3 }
  0xa6   :  { %v198_v34 = vadd.f32 %v197_v33, %v178_v32  ;;  %v175_v35 = vpop.f32.mrf.mxu0 }
  0xa7   :  { %v194_v36 = vpop.f32.mrf.mxu1 }
  0xa8   :  { %v195_v37 = vadd.f32 %v194_v36, %v175_v35  ;;  %v209_v38 = vsel %vm202_vm0, %v198_v34, -inf }
  0xa9   :  { %210 = vmax.xlane.f32.xlu1 %v209_v38 }
  0xaa   :  { %v206_v39 = vsel %vm202_vm0, %v195_v37, -inf }
  0xab   :  { %207 = vmax.xlane.f32.xlu0 %v206_v39 }
  0xac   :  { %v180_v40 = vpop.f32.mrf.mxu2 }
  0xad   :  { %v199_v41 = vpop.f32.mrf.mxu3 }
  0xae   :  { %v200_v42 = vadd.f32 %v199_v41, %v180_v40 }
  0xb0   :  { %v212_v43 = vsel %vm202_vm0, %v200_v42, -inf }
  0xb1   :  { %213 = vmax.xlane.f32.xlu1 %v212_v43 }
 0x116   :  { %v205_v44 = vpop.xlane.xlu0 %204 }
 0x117   :  { %v215_v45 = vsub.f32 %v193_v30, %v205_v44 }
 0x119   :  { %v219_v46 = vmul.f32 1.442695, %v215_v45 }
 0x11b   :  { %440 = vpow2.f32 %v219_v46 }
 0x11c   :  { %v211_v47 = vpop.xlane.xlu1 %210 }
 0x11d   :  { %v217_v48 = vsub.f32 %v198_v34, %v211_v47 }
 0x11e   :  { %v208_v49 = vpop.xlane.xlu0 %207 }
 0x11f   :  { %v223_v50 = vmul.f32 1.442695, %v217_v48  ;;  %v216_v51 = vsub.f32 %v195_v37, %v208_v49 }
 0x121   :  { %v441_v52 = vpop.eup %440  ;;  %442 = vpow2.f32 %v223_v50  ;;  %v221_v53 = vmul.f32 1.442695, %v216_v51 }
 0x122   :  { %v227_v54 = vsel %vm202_vm0, %v441_v52, 0.0 }
 0x123   :  { %444 = vpow2.f32 %v221_v53  ;;  %228 = vadd.xlane.f32.xlu2 %v227_v54 }
 0x124   :  { %v214_v55 = vpop.xlane.xlu1 %213 }
 0x125   :  { %v218_v56 = vsub.f32 %v200_v42, %v214_v55 }
 0x127   :  { %v443_v57 = vpop.eup %442  ;;  %v225_v58 = vmul.f32 1.442695, %v218_v56 }
 0x128   :  { %v233_v59 = vsel %vm202_vm0, %v443_v57, 0.0 }
 0x129   :  { %v578_v60 = vpop.eup %444  ;;  %446 = vpow2.f32 %v225_v58  ;;  %234 = vadd.xlane.f32.xlu0 %v233_v59 }
 0x12a   :  { %v230_v61 = vsel %vm202_vm0, %v578_v60, 0.0 }
 0x12b   :  { %231 = vadd.xlane.f32.xlu2 %v230_v61 }
 0x12f   :  { %v582_v62 = vpop.eup %446 }
 0x130   :  { %v236_v63 = vsel %vm202_vm0, %v582_v62, 0.0 }
 0x131   :  { %237 = vadd.xlane.f32.xlu1 %v236_v63 }
 0x196   :  { %v229_v0 = vpop.xlane.xlu2 %228 }
 0x197   :  { %448 = vrcp.f32 %v229_v0  ;;  %v250_v6 = vand.u32 2147483648, %v229_v0  ;;  %v248_v8 = vand.u32 2147483647, %v229_v0  ;;  %vm244_vm2 = vweird.f32 %v229_v0 }
 0x199   :  { %v251_v14 = vor.u32 1.1754944e-38, %v250_v6  ;;  %vm249_vm4 = vcmp.eq.f32.partialorder %v248_v8, 8.507059e+37 }
 0x19c   :  { %v235_v1 = vpop.xlane.xlu0 %234 }
 0x19d   :  { %v449_v2 = vpop.eup %448  ;;  %450 = vrcp.f32 %v235_v1  ;;  %v278_v19 = vand.u32 2147483647, %v235_v1  ;;  %v280_v20 = vand.u32 2147483648, %v235_v1  ;;  %vm274_vm6 = vweird.f32 %v235_v1 }
 0x19e   :  { %v240_v3 = vmul.f32 %v449_v2, %v229_v0  ;;  %v232_v4 = vpop.xlane.xlu2 %231  ;;  %vm245_vm1 = vweird.f32 %v449_v2 }
 0x19f   :  { %452 = vrcp.f32 %v232_v4  ;;  %vm246_vm3 = vmor %vm244_vm2, %vm245_vm1  ;;  %v265_v24 = vand.u32 2147483648, %v232_v4  ;;  %v263_v27 = vand.u32 2147483647, %v232_v4  ;;  %vm279_vm9 = vcmp.eq.f32.partialorder %v278_v19, 8.507059e+37 }
 0x1a0   :  { %v241_v5 = vsub.f32 1.0, %v240_v3  ;;  %v281_v29 = vor.u32 1.1754944e-38, %v280_v20  ;;  %vm259_vm10 = vweird.f32 %v232_v4 }
 0x1a1   :  { %v266_v34 = vor.u32 1.1754944e-38, %v265_v24  ;;  %vm264_vm12 = vcmp.eq.f32.partialorder %v263_v27, 8.507059e+37 }
 0x1a2   :  { %v242_v7 = vmul.f32 %v449_v2, %v241_v5 }
 0x1a3   :  { %v451_v9 = vpop.eup %450 }
 0x1a4   :  { %v243_v10 = vadd.f32 %v449_v2, %v242_v7  ;;  %v270_v11 = vmul.f32 %v451_v9, %v235_v1  ;;  %v238_v12 = vpop.xlane.xlu1 %237  ;;  %vm275_vm5 = vweird.f32 %v451_v9 }
 0x1a5   :  { %v453_v13 = vpop.eup %452  ;;  %454 = vrcp.f32 %v238_v12  ;;  %vm276_vm8 = vmor %vm274_vm6, %vm275_vm5  ;;  %v295_v39 = vand.u32 2147483648, %v238_v12  ;;  %v293_v42 = vand.u32 2147483647, %v238_v12  ;;  %vm289_vm14 = vweird.f32 %v238_v12 }
 0x1a6   :  { %v247_v15 = vsel %vm246_vm3, %v449_v2, %v243_v10  ;;  %v271_v16 = vsub.f32 1.0, %v270_v11  ;;  %v255_v17 = vmul.f32 %v453_v13, %v232_v4  ;;  %vm260_vm7 = vweird.f32 %v453_v13 }
 0x1a7   :  { %v252_v18 = vsel %vm249_vm4, %v251_v14, %v247_v15  ;;  %vm261_vm11 = vmor %vm259_vm10, %vm260_vm7  ;;  %v296_v44 = vor.u32 1.1754944e-38, %v295_v39  ;;  %vm294_vm1 = vcmp.eq.f32.partialorder %v293_v42, 8.507059e+37 }
 0x1a8   :  { %v253_v21 = vmul.f32 %v441_v52, %v252_v18  ;;  %v272_v22 = vmul.f32 %v451_v9, %v271_v16  ;;  %v256_v23 = vsub.f32 1.0, %v255_v17 }
 0x1aa   :  { %299 = vst.msk [vmem:[#allocation2] sm:$0xff] %vm202_vm0, %v253_v21  ;;  %v273_v25 = vadd.f32 %v451_v9, %v272_v22  ;;  %v257_v26 = vmul.f32 %v453_v13, %v256_v23 }
 0x1ab   :  { %v455_v28 = vpop.eup %454 }
 0x1ac   :  { %v277_v30 = vsel %vm276_vm8, %v451_v9, %v273_v25  ;;  %v258_v31 = vadd.f32 %v453_v13, %v257_v26  ;;  %v285_v32 = vmul.f32 %v455_v28, %v238_v12  ;;  %vm290_vm13 = vweird.f32 %v455_v28 }
 0x1ad   :  { %v282_v33 = vsel %vm279_vm9, %v281_v29, %v277_v30  ;;  %vm291_vm15 = vmor %vm289_vm14, %vm290_vm13 }
 0x1ae   :  { %v283_v35 = vmul.f32 %v443_v57, %v282_v33  ;;  %v262_v36 = vsel %vm261_vm11, %v453_v13, %v258_v31  ;;  %v286_v37 = vsub.f32 1.0, %v285_v32 }
 0x1af   :  { %v267_v38 = vsel %vm264_vm12, %v266_v34, %v262_v36 }
 0x1b0   :  { %301 = vst.msk [vmem:[#allocation2 + $0x10] sm:$0xff] %vm202_vm0, %v283_v35  ;;  %v268_v40 = vmul.f32 %v578_v60, %v267_v38  ;;  %v287_v41 = vmul.f32 %v455_v28, %v286_v37 }
 0x1b2   :  { %300 = vst.msk [vmem:[#allocation2 + $0x8] sm:$0xff] %vm202_vm0, %v268_v40  ;;  %v288_v43 = vadd.f32 %v455_v28, %v287_v41 }
 0x1b4   :  { %v292_v45 = vsel %vm291_vm15, %v455_v28, %v288_v43 }
 0x1b5   :  { %v297_v46 = vsel %vm294_vm1, %v296_v44, %v292_v45 }
 0x1b6   :  { %v298_v47 = vmul.f32 %v582_v62, %v297_v46 }
 0x1b8   :  { %302 = vst.msk [vmem:[#allocation2 + $0x18] sm:$0xff] %vm202_vm0, %v298_v47 }
 0x1b9   :  { %315 = dma.vmem_to_hbm [thread:$0]  %s308_s28, 512, %s310_s3, [#allocation3], %s483_s4, %s483_s4, %s484_s5  }
 0x1ba   :  { %480 = dma.done.wait [#allocation3], 512  }
 0x1bb   :  { %481 = vsyncadd [#allocation3], 4294966784 }
 0x1bc   :  { %320 = vsyncpa [#allocation3], 1 }

</bundles_post_ra>
